<compile_context>
chip_gen: v6e
topology: v6e:2x2x1
jax: 0.10.0
libtpu: 0.0.40
codegen_flags: <defaults>
</compile_context>

<pallas_src>
import functools

import jax
import jax.numpy as jnp
from jax import lax
from jax.experimental import pallas as pl
from jax.experimental.pallas import tpu as pltpu

KSIZE = 4
PAD = 1
LEAKY_SLOPE = 0.2
LANE = 128


# ----------------------------------------------------------------------------
# Pallas kernel: direct 4x4 conv (stride 1 or 2) with fused LeakyReLU
# ----------------------------------------------------------------------------
def _conv_tap_kernel(x_ref, w_ref, o_ref, *, oh, ow, stride, leaky):
    """x_ref: (1, stride*stride, PH, PW, C)  phase-split, padded, NHWC (bf16)
       w_ref: (16, C, TOC)                   per-tap weight slabs (bf16)
       o_ref: (1, OH, OW, TOC)               output tile
    """
    toc = o_ref.shape[-1]

    def row_body(i, carry):
        acc = jnp.zeros((ow, toc), jnp.float32)
        # 16 kernel taps, fully unrolled: each tap is a contiguous window slice
        # of one stride-phase and a (OW, C) @ (C, TOC) MXU matmul.
        for kh in range(KSIZE):
            for kw in range(KSIZE):
                a, dh = kh % stride, kh // stride
                b, dw = kw % stride, kw // stride
                xrow = x_ref[0, a * stride + b, i + dh, pl.ds(dw, ow), :]
                acc = acc + jnp.dot(xrow, w_ref[kh * KSIZE + kw],
                                    preferred_element_type=jnp.float32)
        if leaky:
            acc = jnp.where(acc >= 0, acc, LEAKY_SLOPE * acc)
        o_ref[0, i, :, :] = acc.astype(o_ref.dtype)
        return carry

    lax.fori_loop(0, oh, row_body, 0)


def conv4x4(x_nhwc, w_taps, stride, *, leaky, out_dtype):
    """4x4 conv, padding=1, stride in {1,2}, bias-free, NHWC in/out."""
    N, H, W, C = x_nhwc.shape
    assert w_taps.shape[0] == KSIZE * KSIZE and w_taps.shape[1] == C
    OC = w_taps.shape[2]
    OH = (H + 2 * PAD - KSIZE) // stride + 1
    OW = (W + 2 * PAD - KSIZE) // stride + 1

    # Pad spatially, then phase-split for stride 2 (no data expansion: just a
    # reshape/transpose, which makes every in-kernel tap window contiguous).
    xp = jnp.pad(x_nhwc, ((0, 0), (PAD, PAD), (PAD, PAD), (0, 0)))
    HP, WP = H + 2 * PAD, W + 2 * PAD
    if stride == 1:
        PH, PW = HP, WP
        xph = xp[:, None]                                  # (N, 1, PH, PW, C)
    else:
        PH, PW = HP // stride, WP // stride
        xph = xp.reshape(N, PH, stride, PW, stride, C)
        xph = xph.transpose(0, 2, 4, 1, 3, 5).reshape(N, stride * stride, PH, PW, C)

    # Output-channel tiling (multiples of 128 where OC > 256).
    toc = OC if OC <= 256 else 256
    assert OC % toc == 0
    oc_tiles = OC // toc

    kernel = functools.partial(_conv_tap_kernel, oh=OH, ow=OW, stride=stride,
                               leaky=leaky)

    x_item = jnp.dtype(x_nhwc.dtype).itemsize
    cost = pl.CostEstimate(
        flops=2 * N * OH * OW * (KSIZE * KSIZE * C) * OC,
        transcendentals=0,
        bytes_accessed=(xph.size * x_item
                        + w_taps.size * jnp.dtype(w_taps.dtype).itemsize
                        + N * OH * OW * OC * jnp.dtype(out_dtype).itemsize),
    )

    return pl.pallas_call(
        kernel,
        out_shape=jax.ShapeDtypeStruct((N, OH, OW, OC), out_dtype),
        grid_spec=pltpu.PrefetchScalarGridSpec(
            num_scalar_prefetch=0,
            grid=(N, oc_tiles),
            in_specs=[
                pl.BlockSpec((1, stride * stride, PH, PW, C),
                             lambda n, t: (n, 0, 0, 0, 0)),
                pl.BlockSpec((KSIZE * KSIZE, C, toc), lambda n, t: (0, 0, t)),
            ],
            out_specs=pl.BlockSpec((1, OH, OW, toc), lambda n, t: (n, 0, 0, t)),
        ),
        compiler_params=pltpu.CompilerParams(
            dimension_semantics=("parallel", "parallel")),
        cost_estimate=cost,
    )(xph, w_taps)


# ----------------------------------------------------------------------------
# Parameters: normal(0, 0.02) init + spectral norm, then per-tap matmul form
# ----------------------------------------------------------------------------
# TODO(synk): spectral-norm power iteration is one-time setup, kept in plain JAX.
def spectral_normalize(w, key, n_power_iterations=1, eps=1e-12):
    oc = w.shape[0]
    wm = w.reshape(oc, -1)
    u = jax.random.normal(key, (oc,), dtype=jnp.float32)
    u = u / (jnp.linalg.norm(u) + eps)
    v = None
    for _ in range(n_power_iterations):
        v = wm.T @ u
        v = v / (jnp.linalg.norm(v) + eps)
        u = wm @ v
        u = u / (jnp.linalg.norm(u) + eps)
    sigma = u @ (wm @ v)
    return w / sigma


def init_params(key, in_channels):
    """Raw conv weights (OC, IC, 4, 4), f32, spectral-normalized, no biases."""
    chans = [(in_channels, 64), (64, 128), (128, 256), (256, 512), (512, 1)]
    raw = []
    for i, (ic, oc) in enumerate(chans):
        kw_key, sn_key = jax.random.split(jax.random.fold_in(key, i))
        w = 0.02 * jax.random.normal(kw_key, (oc, ic, KSIZE, KSIZE), dtype=jnp.float32)
        raw.append(spectral_normalize(w, sn_key))
    return raw


def prepare_tap_weights(raw_weights):
    """(OC, IC, 4, 4) f32 -> (16, IC, OC) bf16; final layer OC padded to 128."""
    taps = []
    last = len(raw_weights) - 1
    for li, w in enumerate(raw_weights):
        oc, ic = w.shape[0], w.shape[1]
        wt = jnp.transpose(w, (2, 3, 1, 0)).reshape(KSIZE * KSIZE, ic, oc)
        if li == last and oc < LANE:
            wt = jnp.pad(wt, ((0, 0), (0, 0), (0, LANE - oc)))  # lane-dense output
        taps.append(wt.astype(jnp.bfloat16))
    return taps


# ----------------------------------------------------------------------------
# Forward pass (PyTorch semantics: returns sigmoid(conv5), [conv1..conv5] NCHW)
# ----------------------------------------------------------------------------
def discriminator_forward(x_nchw, tap_weights):
    x = jnp.transpose(x_nchw, (0, 2, 3, 1)).astype(jnp.bfloat16)   # -> NHWC bf16
    w1, w2, w3, w4, w5 = tap_weights
    c1 = conv4x4(x, w1, 2, leaky=True, out_dtype=jnp.bfloat16)
    c2 = conv4x4(c1, w2, 2, leaky=True, out_dtype=jnp.bfloat16)
    c3 = conv4x4(c2, w3, 2, leaky=True, out_dtype=jnp.bfloat16)
    c4 = conv4x4(c3, w4, 1, leaky=True, out_dtype=jnp.bfloat16)
    c5_padded = conv4x4(c4, w5, 1, leaky=False, out_dtype=jnp.float32)
    c5 = c5_padded[..., :1]                       # drop lane-padding channels
    outputs = jax.nn.sigmoid(c5)                  # tiny tensor, host-side sigmoid

    def to_nchw(t):
        return jnp.transpose(t, (0, 3, 1, 2)).astype(jnp.float32)

    feats = [to_nchw(t) for t in (c1, c2, c3, c4, c5)]
    return to_nchw(outputs), feats


# Pure-XLA reference (same mixed precision) for the self-check.
def reference_forward(x_nchw, raw_weights):
    def conv(x, w, stride):
        return lax.conv_general_dilated(
            x.astype(jnp.bfloat16), w.astype(jnp.bfloat16),
            window_strides=(stride, stride), padding=((PAD, PAD), (PAD, PAD)),
            dimension_numbers=("NCHW", "OIHW", "NCHW"),
            preferred_element_type=jnp.float32)

    def leaky(y):
        return jnp.where(y >= 0, y, LEAKY_SLOPE * y)

    w1, w2, w3, w4, w5 = raw_weights
    c1 = leaky(conv(x_nchw, w1, 2))
    c2 = leaky(conv(c1, w2, 2))
    c3 = leaky(conv(c2, w3, 2))
    c4 = leaky(conv(c3, w4, 1))
    c5 = conv(c4, w5, 1)
    return jax.nn.sigmoid(c5), [c1, c2, c3, c4, c5]


if __name__ == "__main__":
    key = jax.random.PRNGKey(0)
    in_channels = 4
    # spatial=32 so the two final 4x4 stride-1 convs still have >=1 output pixel
    x = jax.random.normal(jax.random.fold_in(key, 100),
                          (2, in_channels, 32, 32), dtype=jnp.float32)
    raw = init_params(jax.random.fold_in(key, 200), in_channels)
    taps = prepare_tap_weights(raw)

    fwd = jax.jit(discriminator_forward)
    outputs, feats = fwd(x, taps)
    jax.block_until_ready(outputs)
    jax.block_until_ready(feats)

    ref_out, ref_feats = reference_forward(x, raw)

    assert outputs.shape == (2, 1, 2, 2), outputs.shape
    expected = [(2, 64, 16, 16), (2, 128, 8, 8), (2, 256, 4, 4),
                (2, 512, 3, 3), (2, 1, 2, 2)]
    assert [tuple(f.shape) for f in feats] == expected, [f.shape for f in feats]
    assert jnp.allclose(outputs, ref_out, atol=1e-2, rtol=1e-2), \
        float(jnp.max(jnp.abs(outputs - ref_out)))
    for got, want in zip(feats, ref_feats):
        want = jnp.asarray(want, jnp.float32)
        assert jnp.allclose(got, want, atol=1e-2, rtol=1e-2), \
            float(jnp.max(jnp.abs(got - want)))

    print("KERNEL_OK")
</pallas_src>

<mosaic_0001>
module attributes {stable_mosaic.version = 11 : i64} {
  func.func @_conv_tap_kernel(%arg0: i32, %arg1: i32, %arg2: memref<1x4x17x17x4xbf16, #tpu.memory_space<vmem>>, %arg3: memref<16x4x64xbf16, #tpu.memory_space<vmem>>, %arg4: memref<1x16x16x64xbf16, #tpu.memory_space<vmem>>) attributes {dimension_semantics = [#tpu.dimension_semantics<parallel>, #tpu.dimension_semantics<parallel>], iteration_bounds = array<i64: 2, 1>, scalar_prefetch = 0 : i64, scratch_operands = 0 : i64, tpu.core_type = #tpu.core_type<tc>, window_params = [{transform_indices = @transform_0, window_bounds = array<i64: 1, 4, 17, 17, 4>}, {transform_indices = @transform_1, window_bounds = array<i64: 16, 4, 64>}, {transform_indices = @transform_2, window_bounds = array<i64: 1, 16, 16, 64>}]} {
    %c0_i32 = arith.constant 0 : i32
    %c16_i32 = arith.constant 16 : i32
    %0 = arith.addi %c0_i32, %c16_i32 : i32
    %c1_i32 = arith.constant 1 : i32
    scf.for %arg5 = %c0_i32 to %0 step %c1_i32  : i32 {
      %cst = arith.constant 0.000000e+00 : f32
      %1 = vector.broadcast %cst : f32 to vector<16x64xf32>
      %c0_i32_1 = arith.constant 0 : i32
      %2 = arith.addi %arg5, %c0_i32_1 : i32
      %c0 = arith.constant 0 : index
      %c0_2 = arith.constant 0 : index
      %3 = arith.index_cast %2 : i32 to index
      %c0_3 = arith.constant 0 : index
      %c0_4 = arith.constant 0 : index
      %4 = vector.load %arg2[%c0, %c0_2, %3, %c0_3, %c0_4] : memref<1x4x17x17x4xbf16, #tpu.memory_space<vmem>>, vector<1x1x1x16x4xbf16>
      %5 = vector.shape_cast %4 : vector<1x1x1x16x4xbf16> to vector<16x4xbf16>
      %c0_5 = arith.constant 0 : index
      %c0_6 = arith.constant 0 : index
      %c0_7 = arith.constant 0 : index
      %6 = vector.load %arg3[%c0_5, %c0_6, %c0_7] : memref<16x4x64xbf16, #tpu.memory_space<vmem>>, vector<1x4x64xbf16>
      %7 = vector.shape_cast %6 : vector<1x4x64xbf16> to vector<4x64xbf16>
      %cst_8 = arith.constant dense<0.000000e+00> : vector<16x64xf32>
      %8 = tpu.matmul %5, %7, %cst_8 {dimension_numbers = #tpu.dot_dimension_numbers<[1], [0], [0], [1], [0, 0, 1, 1], [], []>} : vector<16x4xbf16>, vector<4x64xbf16>, vector<16x64xf32> -> vector<16x64xf32>
      %9 = arith.addf %1, %8 : vector<16x64xf32>
      %c0_i32_9 = arith.constant 0 : i32
      %10 = arith.addi %arg5, %c0_i32_9 : i32
      %c0_10 = arith.constant 0 : index
      %c1 = arith.constant 1 : index
      %11 = arith.index_cast %10 : i32 to index
      %c0_11 = arith.constant 0 : index
      %c0_12 = arith.constant 0 : index
      %12 = vector.load %arg2[%c0_10, %c1, %11, %c0_11, %c0_12] : memref<1x4x17x17x4xbf16, #tpu.memory_space<vmem>>, vector<1x1x1x16x4xbf16>
      %13 = vector.shape_cast %12 : vector<1x1x1x16x4xbf16> to vector<16x4xbf16>
      %c1_13 = arith.constant 1 : index
      %c0_14 = arith.constant 0 : index
      %c0_15 = arith.constant 0 : index
      %14 = vector.load %arg3[%c1_13, %c0_14, %c0_15] : memref<16x4x64xbf16, #tpu.memory_space<vmem>>, vector<1x4x64xbf16>
      %15 = vector.shape_cast %14 : vector<1x4x64xbf16> to vector<4x64xbf16>
      %cst_16 = arith.constant dense<0.000000e+00> : vector<16x64xf32>
      %16 = tpu.matmul %13, %15, %cst_16 {dimension_numbers = #tpu.dot_dimension_numbers<[1], [0], [0], [1], [0, 0, 1, 1], [], []>} : vector<16x4xbf16>, vector<4x64xbf16>, vector<16x64xf32> -> vector<16x64xf32>
      %17 = arith.addf %9, %16 : vector<16x64xf32>
      %c0_i32_17 = arith.constant 0 : i32
      %18 = arith.addi %arg5, %c0_i32_17 : i32
      %c0_18 = arith.constant 0 : index
      %c0_19 = arith.constant 0 : index
      %19 = arith.index_cast %18 : i32 to index
      %c1_20 = arith.constant 1 : index
      %c0_21 = arith.constant 0 : index
      %20 = vector.load %arg2[%c0_18, %c0_19, %19, %c1_20, %c0_21] : memref<1x4x17x17x4xbf16, #tpu.memory_space<vmem>>, vector<1x1x1x16x4xbf16>
      %21 = vector.shape_cast %20 : vector<1x1x1x16x4xbf16> to vector<16x4xbf16>
      %c2 = arith.constant 2 : index
      %c0_22 = arith.constant 0 : index
      %c0_23 = arith.constant 0 : index
      %22 = vector.load %arg3[%c2, %c0_22, %c0_23] : memref<16x4x64xbf16, #tpu.memory_space<vmem>>, vector<1x4x64xbf16>
      %23 = vector.shape_cast %22 : vector<1x4x64xbf16> to vector<4x64xbf16>
      %cst_24 = arith.constant dense<0.000000e+00> : vector<16x64xf32>
      %24 = tpu.matmul %21, %23, %cst_24 {dimension_numbers = #tpu.dot_dimension_numbers<[1], [0], [0], [1], [0, 0, 1, 1], [], []>} : vector<16x4xbf16>, vector<4x64xbf16>, vector<16x64xf32> -> vector<16x64xf32>
      %25 = arith.addf %17, %24 : vector<16x64xf32>
      %c0_i32_25 = arith.constant 0 : i32
      %26 = arith.addi %arg5, %c0_i32_25 : i32
      %c0_26 = arith.constant 0 : index
      %c1_27 = arith.constant 1 : index
      %27 = arith.index_cast %26 : i32 to index
      %c1_28 = arith.constant 1 : index
      %c0_29 = arith.constant 0 : index
      %28 = vector.load %arg2[%c0_26, %c1_27, %27, %c1_28, %c0_29] : memref<1x4x17x17x4xbf16, #tpu.memory_space<vmem>>, vector<1x1x1x16x4xbf16>
      %29 = vector.shape_cast %28 : vector<1x1x1x16x4xbf16> to vector<16x4xbf16>
      %c3 = arith.constant 3 : index
      %c0_30 = arith.constant 0 : index
      %c0_31 = arith.constant 0 : index
      %30 = vector.load %arg3[%c3, %c0_30, %c0_31] : memref<16x4x64xbf16, #tpu.memory_space<vmem>>, vector<1x4x64xbf16>
      %31 = vector.shape_cast %30 : vector<1x4x64xbf16> to vector<4x64xbf16>
      %cst_32 = arith.constant dense<0.000000e+00> : vector<16x64xf32>
      %32 = tpu.matmul %29, %31, %cst_32 {dimension_numbers = #tpu.dot_dimension_numbers<[1], [0], [0], [1], [0, 0, 1, 1], [], []>} : vector<16x4xbf16>, vector<4x64xbf16>, vector<16x64xf32> -> vector<16x64xf32>
      %33 = arith.addf %25, %32 : vector<16x64xf32>
      %c0_i32_33 = arith.constant 0 : i32
      %34 = arith.addi %arg5, %c0_i32_33 : i32
      %c0_34 = arith.constant 0 : index
      %c2_35 = arith.constant 2 : index
      %35 = arith.index_cast %34 : i32 to index
      %c0_36 = arith.constant 0 : index
      %c0_37 = arith.constant 0 : index
      %36 = vector.load %arg2[%c0_34, %c2_35, %35, %c0_36, %c0_37] : memref<1x4x17x17x4xbf16, #tpu.memory_space<vmem>>, vector<1x1x1x16x4xbf16>
      %37 = vector.shape_cast %36 : vector<1x1x1x16x4xbf16> to vector<16x4xbf16>
      %c4 = arith.constant 4 : index
      %c0_38 = arith.constant 0 : index
      %c0_39 = arith.constant 0 : index
      %38 = vector.load %arg3[%c4, %c0_38, %c0_39] : memref<16x4x64xbf16, #tpu.memory_space<vmem>>, vector<1x4x64xbf16>
      %39 = vector.shape_cast %38 : vector<1x4x64xbf16> to vector<4x64xbf16>
      %cst_40 = arith.constant dense<0.000000e+00> : vector<16x64xf32>
      %40 = tpu.matmul %37, %39, %cst_40 {dimension_numbers = #tpu.dot_dimension_numbers<[1], [0], [0], [1], [0, 0, 1, 1], [], []>} : vector<16x4xbf16>, vector<4x64xbf16>, vector<16x64xf32> -> vector<16x64xf32>
      %41 = arith.addf %33, %40 : vector<16x64xf32>
      %c0_i32_41 = arith.constant 0 : i32
      %42 = arith.addi %arg5, %c0_i32_41 : i32
      %c0_42 = arith.constant 0 : index
      %c3_43 = arith.constant 3 : index
      %43 = arith.index_cast %42 : i32 to index
      %c0_44 = arith.constant 0 : index
      %c0_45 = arith.constant 0 : index
      %44 = vector.load %arg2[%c0_42, %c3_43, %43, %c0_44, %c0_45] : memref<1x4x17x17x4xbf16, #tpu.memory_space<vmem>>, vector<1x1x1x16x4xbf16>
      %45 = vector.shape_cast %44 : vector<1x1x1x16x4xbf16> to vector<16x4xbf16>
      %c5 = arith.constant 5 : index
      %c0_46 = arith.constant 0 : index
      %c0_47 = arith.constant 0 : index
      %46 = vector.load %arg3[%c5, %c0_46, %c0_47] : memref<16x4x64xbf16, #tpu.memory_space<vmem>>, vector<1x4x64xbf16>
      %47 = vector.shape_cast %46 : vector<1x4x64xbf16> to vector<4x64xbf16>
      %cst_48 = arith.constant dense<0.000000e+00> : vector<16x64xf32>
      %48 = tpu.matmul %45, %47, %cst_48 {dimension_numbers = #tpu.dot_dimension_numbers<[1], [0], [0], [1], [0, 0, 1, 1], [], []>} : vector<16x4xbf16>, vector<4x64xbf16>, vector<16x64xf32> -> vector<16x64xf32>
      %49 = arith.addf %41, %48 : vector<16x64xf32>
      %c0_i32_49 = arith.constant 0 : i32
      %50 = arith.addi %arg5, %c0_i32_49 : i32
      %c0_50 = arith.constant 0 : index
      %c2_51 = arith.constant 2 : index
      %51 = arith.index_cast %50 : i32 to index
      %c1_52 = arith.constant 1 : index
      %c0_53 = arith.constant 0 : index
      %52 = vector.load %arg2[%c0_50, %c2_51, %51, %c1_52, %c0_53] : memref<1x4x17x17x4xbf16, #tpu.memory_space<vmem>>, vector<1x1x1x16x4xbf16>
      %53 = vector.shape_cast %52 : vector<1x1x1x16x4xbf16> to vector<16x4xbf16>
      %c6 = arith.constant 6 : index
      %c0_54 = arith.constant 0 : index
      %c0_55 = arith.constant 0 : index
      %54 = vector.load %arg3[%c6, %c0_54, %c0_55] : memref<16x4x64xbf16, #tpu.memory_space<vmem>>, vector<1x4x64xbf16>
      %55 = vector.shape_cast %54 : vector<1x4x64xbf16> to vector<4x64xbf16>
      %cst_56 = arith.constant dense<0.000000e+00> : vector<16x64xf32>
      %56 = tpu.matmul %53, %55, %cst_56 {dimension_numbers = #tpu.dot_dimension_numbers<[1], [0], [0], [1], [0, 0, 1, 1], [], []>} : vector<16x4xbf16>, vector<4x64xbf16>, vector<16x64xf32> -> vector<16x64xf32>
      %57 = arith.addf %49, %56 : vector<16x64xf32>
      %c0_i32_57 = arith.constant 0 : i32
      %58 = arith.addi %arg5, %c0_i32_57 : i32
      %c0_58 = arith.constant 0 : index
      %c3_59 = arith.constant 3 : index
      %59 = arith.index_cast %58 : i32 to index
      %c1_60 = arith.constant 1 : index
      %c0_61 = arith.constant 0 : index
      %60 = vector.load %arg2[%c0_58, %c3_59, %59, %c1_60, %c0_61] : memref<1x4x17x17x4xbf16, #tpu.memory_space<vmem>>, vector<1x1x1x16x4xbf16>
      %61 = vector.shape_cast %60 : vector<1x1x1x16x4xbf16> to vector<16x4xbf16>
      %c7 = arith.constant 7 : index
      %c0_62 = arith.constant 0 : index
      %c0_63 = arith.constant 0 : index
      %62 = vector.load %arg3[%c7, %c0_62, %c0_63] : memref<16x4x64xbf16, #tpu.memory_space<vmem>>, vector<1x4x64xbf16>
      %63 = vector.shape_cast %62 : vector<1x4x64xbf16> to vector<4x64xbf16>
      %cst_64 = arith.constant dense<0.000000e+00> : vector<16x64xf32>
      %64 = tpu.matmul %61, %63, %cst_64 {dimension_numbers = #tpu.dot_dimension_numbers<[1], [0], [0], [1], [0, 0, 1, 1], [], []>} : vector<16x4xbf16>, vector<4x64xbf16>, vector<16x64xf32> -> vector<16x64xf32>
      %65 = arith.addf %57, %64 : vector<16x64xf32>
      %c1_i32_65 = arith.constant 1 : i32
      %66 = arith.addi %arg5, %c1_i32_65 : i32
      %c0_66 = arith.constant 0 : index
      %c0_67 = arith.constant 0 : index
      %67 = arith.index_cast %66 : i32 to index
      %c0_68 = arith.constant 0 : index
      %c0_69 = arith.constant 0 : index
      %68 = vector.load %arg2[%c0_66, %c0_67, %67, %c0_68, %c0_69] : memref<1x4x17x17x4xbf16, #tpu.memory_space<vmem>>, vector<1x1x1x16x4xbf16>
      %69 = vector.shape_cast %68 : vector<1x1x1x16x4xbf16> to vector<16x4xbf16>
      %c8 = arith.constant 8 : index
      %c0_70 = arith.constant 0 : index
      %c0_71 = arith.constant 0 : index
      %70 = vector.load %arg3[%c8, %c0_70, %c0_71] : memref<16x4x64xbf16, #tpu.memory_space<vmem>>, vector<1x4x64xbf16>
      %71 = vector.shape_cast %70 : vector<1x4x64xbf16> to vector<4x64xbf16>
      %cst_72 = arith.constant dense<0.000000e+00> : vector<16x64xf32>
      %72 = tpu.matmul %69, %71, %cst_72 {dimension_numbers = #tpu.dot_dimension_numbers<[1], [0], [0], [1], [0, 0, 1, 1], [], []>} : vector<16x4xbf16>, vector<4x64xbf16>, vector<16x64xf32> -> vector<16x64xf32>
      %73 = arith.addf %65, %72 : vector<16x64xf32>
      %c1_i32_73 = arith.constant 1 : i32
      %74 = arith.addi %arg5, %c1_i32_73 : i32
      %c0_74 = arith.constant 0 : index
      %c1_75 = arith.constant 1 : index
      %75 = arith.index_cast %74 : i32 to index
      %c0_76 = arith.constant 0 : index
      %c0_77 = arith.constant 0 : index
      %76 = vector.load %arg2[%c0_74, %c1_75, %75, %c0_76, %c0_77] : memref<1x4x17x17x4xbf16, #tpu.memory_space<vmem>>, vector<1x1x1x16x4xbf16>
      %77 = vector.shape_cast %76 : vector<1x1x1x16x4xbf16> to vector<16x4xbf16>
      %c9 = arith.constant 9 : index
      %c0_78 = arith.constant 0 : index
      %c0_79 = arith.constant 0 : index
      %78 = vector.load %arg3[%c9, %c0_78, %c0_79] : memref<16x4x64xbf16, #tpu.memory_space<vmem>>, vector<1x4x64xbf16>
      %79 = vector.shape_cast %78 : vector<1x4x64xbf16> to vector<4x64xbf16>
      %cst_80 = arith.constant dense<0.000000e+00> : vector<16x64xf32>
      %80 = tpu.matmul %77, %79, %cst_80 {dimension_numbers = #tpu.dot_dimension_numbers<[1], [0], [0], [1], [0, 0, 1, 1], [], []>} : vector<16x4xbf16>, vector<4x64xbf16>, vector<16x64xf32> -> vector<16x64xf32>
      %81 = arith.addf %73, %80 : vector<16x64xf32>
      %c1_i32_81 = arith.constant 1 : i32
      %82 = arith.addi %arg5, %c1_i32_81 : i32
      %c0_82 = arith.constant 0 : index
      %c0_83 = arith.constant 0 : index
      %83 = arith.index_cast %82 : i32 to index
      %c1_84 = arith.constant 1 : index
      %c0_85 = arith.constant 0 : index
      %84 = vector.load %arg2[%c0_82, %c0_83, %83, %c1_84, %c0_85] : memref<1x4x17x17x4xbf16, #tpu.memory_space<vmem>>, vector<1x1x1x16x4xbf16>
      %85 = vector.shape_cast %84 : vector<1x1x1x16x4xbf16> to vector<16x4xbf16>
      %c10 = arith.constant 10 : index
      %c0_86 = arith.constant 0 : index
      %c0_87 = arith.constant 0 : index
      %86 = vector.load %arg3[%c10, %c0_86, %c0_87] : memref<16x4x64xbf16, #tpu.memory_space<vmem>>, vector<1x4x64xbf16>
      %87 = vector.shape_cast %86 : vector<1x4x64xbf16> to vector<4x64xbf16>
      %cst_88 = arith.constant dense<0.000000e+00> : vector<16x64xf32>
      %88 = tpu.matmul %85, %87, %cst_88 {dimension_numbers = #tpu.dot_dimension_numbers<[1], [0], [0], [1], [0, 0, 1, 1], [], []>} : vector<16x4xbf16>, vector<4x64xbf16>, vector<16x64xf32> -> vector<16x64xf32>
      %89 = arith.addf %81, %88 : vector<16x64xf32>
      %c1_i32_89 = arith.constant 1 : i32
      %90 = arith.addi %arg5, %c1_i32_89 : i32
      %c0_90 = arith.constant 0 : index
      %c1_91 = arith.constant 1 : index
      %91 = arith.index_cast %90 : i32 to index
      %c1_92 = arith.constant 1 : index
      %c0_93 = arith.constant 0 : index
      %92 = vector.load %arg2[%c0_90, %c1_91, %91, %c1_92, %c0_93] : memref<1x4x17x17x4xbf16, #tpu.memory_space<vmem>>, vector<1x1x1x16x4xbf16>
      %93 = vector.shape_cast %92 : vector<1x1x1x16x4xbf16> to vector<16x4xbf16>
      %c11 = arith.constant 11 : index
      %c0_94 = arith.constant 0 : index
      %c0_95 = arith.constant 0 : index
      %94 = vector.load %arg3[%c11, %c0_94, %c0_95] : memref<16x4x64xbf16, #tpu.memory_space<vmem>>, vector<1x4x64xbf16>
      %95 = vector.shape_cast %94 : vector<1x4x64xbf16> to vector<4x64xbf16>
      %cst_96 = arith.constant dense<0.000000e+00> : vector<16x64xf32>
      %96 = tpu.matmul %93, %95, %cst_96 {dimension_numbers = #tpu.dot_dimension_numbers<[1], [0], [0], [1], [0, 0, 1, 1], [], []>} : vector<16x4xbf16>, vector<4x64xbf16>, vector<16x64xf32> -> vector<16x64xf32>
      %97 = arith.addf %89, %96 : vector<16x64xf32>
      %c1_i32_97 = arith.constant 1 : i32
      %98 = arith.addi %arg5, %c1_i32_97 : i32
      %c0_98 = arith.constant 0 : index
      %c2_99 = arith.constant 2 : index
      %99 = arith.index_cast %98 : i32 to index
      %c0_100 = arith.constant 0 : index
      %c0_101 = arith.constant 0 : index
      %100 = vector.load %arg2[%c0_98, %c2_99, %99, %c0_100, %c0_101] : memref<1x4x17x17x4xbf16, #tpu.memory_space<vmem>>, vector<1x1x1x16x4xbf16>
      %101 = vector.shape_cast %100 : vector<1x1x1x16x4xbf16> to vector<16x4xbf16>
      %c12 = arith.constant 12 : index
      %c0_102 = arith.constant 0 : index
      %c0_103 = arith.constant 0 : index
      %102 = vector.load %arg3[%c12, %c0_102, %c0_103] : memref<16x4x64xbf16, #tpu.memory_space<vmem>>, vector<1x4x64xbf16>
      %103 = vector.shape_cast %102 : vector<1x4x64xbf16> to vector<4x64xbf16>
      %cst_104 = arith.constant dense<0.000000e+00> : vector<16x64xf32>
      %104 = tpu.matmul %101, %103, %cst_104 {dimension_numbers = #tpu.dot_dimension_numbers<[1], [0], [0], [1], [0, 0, 1, 1], [], []>} : vector<16x4xbf16>, vector<4x64xbf16>, vector<16x64xf32> -> vector<16x64xf32>
      %105 = arith.addf %97, %104 : vector<16x64xf32>
      %c1_i32_105 = arith.constant 1 : i32
      %106 = arith.addi %arg5, %c1_i32_105 : i32
      %c0_106 = arith.constant 0 : index
      %c3_107 = arith.constant 3 : index
      %107 = arith.index_cast %106 : i32 to index
      %c0_108 = arith.constant 0 : index
      %c0_109 = arith.constant 0 : index
      %108 = vector.load %arg2[%c0_106, %c3_107, %107, %c0_108, %c0_109] : memref<1x4x17x17x4xbf16, #tpu.memory_space<vmem>>, vector<1x1x1x16x4xbf16>
      %109 = vector.shape_cast %108 : vector<1x1x1x16x4xbf16> to vector<16x4xbf16>
      %c13 = arith.constant 13 : index
      %c0_110 = arith.constant 0 : index
      %c0_111 = arith.constant 0 : index
      %110 = vector.load %arg3[%c13, %c0_110, %c0_111] : memref<16x4x64xbf16, #tpu.memory_space<vmem>>, vector<1x4x64xbf16>
      %111 = vector.shape_cast %110 : vector<1x4x64xbf16> to vector<4x64xbf16>
      %cst_112 = arith.constant dense<0.000000e+00> : vector<16x64xf32>
      %112 = tpu.matmul %109, %111, %cst_112 {dimension_numbers = #tpu.dot_dimension_numbers<[1], [0], [0], [1], [0, 0, 1, 1], [], []>} : vector<16x4xbf16>, vector<4x64xbf16>, vector<16x64xf32> -> vector<16x64xf32>
      %113 = arith.addf %105, %112 : vector<16x64xf32>
      %c1_i32_113 = arith.constant 1 : i32
      %114 = arith.addi %arg5, %c1_i32_113 : i32
      %c0_114 = arith.constant 0 : index
      %c2_115 = arith.constant 2 : index
      %115 = arith.index_cast %114 : i32 to index
      %c1_116 = arith.constant 1 : index
      %c0_117 = arith.constant 0 : index
      %116 = vector.load %arg2[%c0_114, %c2_115, %115, %c1_116, %c0_117] : memref<1x4x17x17x4xbf16, #tpu.memory_space<vmem>>, vector<1x1x1x16x4xbf16>
      %117 = vector.shape_cast %116 : vector<1x1x1x16x4xbf16> to vector<16x4xbf16>
      %c14 = arith.constant 14 : index
      %c0_118 = arith.constant 0 : index
      %c0_119 = arith.constant 0 : index
      %118 = vector.load %arg3[%c14, %c0_118, %c0_119] : memref<16x4x64xbf16, #tpu.memory_space<vmem>>, vector<1x4x64xbf16>
      %119 = vector.shape_cast %118 : vector<1x4x64xbf16> to vector<4x64xbf16>
      %cst_120 = arith.constant dense<0.000000e+00> : vector<16x64xf32>
      %120 = tpu.matmul %117, %119, %cst_120 {dimension_numbers = #tpu.dot_dimension_numbers<[1], [0], [0], [1], [0, 0, 1, 1], [], []>} : vector<16x4xbf16>, vector<4x64xbf16>, vector<16x64xf32> -> vector<16x64xf32>
      %121 = arith.addf %113, %120 : vector<16x64xf32>
      %c1_i32_121 = arith.constant 1 : i32
      %122 = arith.addi %arg5, %c1_i32_121 : i32
      %c0_122 = arith.constant 0 : index
      %c3_123 = arith.constant 3 : index
      %123 = arith.index_cast %122 : i32 to index
      %c1_124 = arith.constant 1 : index
      %c0_125 = arith.constant 0 : index
      %124 = vector.load %arg2[%c0_122, %c3_123, %123, %c1_124, %c0_125] : memref<1x4x17x17x4xbf16, #tpu.memory_space<vmem>>, vector<1x1x1x16x4xbf16>
      %125 = vector.shape_cast %124 : vector<1x1x1x16x4xbf16> to vector<16x4xbf16>
      %c15 = arith.constant 15 : index
      %c0_126 = arith.constant 0 : index
      %c0_127 = arith.constant 0 : index
      %126 = vector.load %arg3[%c15, %c0_126, %c0_127] : memref<16x4x64xbf16, #tpu.memory_space<vmem>>, vector<1x4x64xbf16>
      %127 = vector.shape_cast %126 : vector<1x4x64xbf16> to vector<4x64xbf16>
      %cst_128 = arith.constant dense<0.000000e+00> : vector<16x64xf32>
      %128 = tpu.matmul %125, %127, %cst_128 {dimension_numbers = #tpu.dot_dimension_numbers<[1], [0], [0], [1], [0, 0, 1, 1], [], []>} : vector<16x4xbf16>, vector<4x64xbf16>, vector<16x64xf32> -> vector<16x64xf32>
      %129 = arith.addf %121, %128 : vector<16x64xf32>
      %cst_129 = arith.constant 0.000000e+00 : f32
      %130 = vector.broadcast %cst_129 : f32 to vector<16x64xf32>
      %131 = arith.cmpf oge, %129, %130 : vector<16x64xf32>
      %cst_130 = arith.constant 2.000000e-01 : f32
      %132 = vector.broadcast %cst_130 : f32 to vector<16x64xf32>
      %133 = arith.mulf %132, %129 : vector<16x64xf32>
      %134 = arith.select %131, %129, %133 : vector<16x64xi1>, vector<16x64xf32>
      %135 = arith.truncf %134 : vector<16x64xf32> to vector<16x64xbf16>
      %c0_131 = arith.constant 0 : index
      %136 = arith.index_cast %arg5 : i32 to index
      %c0_132 = arith.constant 0 : index
      %c0_133 = arith.constant 0 : index
      %137 = vector.load %arg4[%c0_131, %136, %c0_132, %c0_133] : memref<1x16x16x64xbf16, #tpu.memory_space<vmem>>, vector<1x1x16x64xbf16>
      %138 = vector.shape_cast %137 : vector<1x1x16x64xbf16> to vector<16x64xbf16>
      %139 = vector.shape_cast %135 : vector<16x64xbf16> to vector<1x1x16x64xbf16>
      tpu.vector_store %arg4[%c0_131, %136, %c0_132, %c0_133], %139 {strides = array<i32>} : memref<1x16x16x64xbf16, #tpu.memory_space<vmem>>, vector<1x1x16x64xbf16>,
    }
    %c16_i32_0 = arith.constant 16 : i32
    return
  }
  func.func @transform_0(%arg0: i32, %arg1: i32) -> (i32, i32, i32, i32, i32) {
    %c0_i32 = arith.constant 0 : i32
    %c0_i32_0 = arith.constant 0 : i32
    %c0_i32_1 = arith.constant 0 : i32
    %c0_i32_2 = arith.constant 0 : i32
    %c0_i32_3 = arith.constant 0 : i32
    return %arg0, %c0_i32, %c0_i32_0, %c0_i32_1, %c0_i32_2 : i32, i32, i32, i32, i32
  }
  func.func @transform_1(%arg0: i32, %arg1: i32) -> (i32, i32, i32) {
    %c0_i32 = arith.constant 0 : i32
    %c0_i32_0 = arith.constant 0 : i32
    %c0_i32_1 = arith.constant 0 : i32
    return %c0_i32, %c0_i32_0, %arg1 : i32, i32, i32
  }
  func.func @transform_2(%arg0: i32, %arg1: i32) -> (i32, i32, i32, i32) {
    %c0_i32 = arith.constant 0 : i32
    %c0_i32_0 = arith.constant 0 : i32
    %c0_i32_1 = arith.constant 0 : i32
    return %arg0, %c0_i32, %c0_i32_0, %arg1 : i32, i32, i32, i32
  }
}

module attributes {stable_mosaic.version = 11 : i64} {
  func.func @_conv_tap_kernel(%arg0: i32, %arg1: i32, %arg2: memref<1x4x9x9x64xbf16, #tpu.memory_space<vmem>>, %arg3: memref<16x64x128xbf16, #tpu.memory_space<vmem>>, %arg4: memref<1x8x8x128xbf16, #tpu.memory_space<vmem>>) attributes {dimension_semantics = [#tpu.dimension_semantics<parallel>, #tpu.dimension_semantics<parallel>], iteration_bounds = array<i64: 2, 1>, scalar_prefetch = 0 : i64, scratch_operands = 0 : i64, tpu.core_type = #tpu.core_type<tc>, window_params = [{transform_indices = @transform_0, window_bounds = array<i64: 1, 4, 9, 9, 64>}, {transform_indices = @transform_1, window_bounds = array<i64: 16, 64, 128>}, {transform_indices = @transform_2, window_bounds = array<i64: 1, 8, 8, 128>}]} {
    %c0_i32 = arith.constant 0 : i32
    %c8_i32 = arith.constant 8 : i32
    %0 = arith.addi %c0_i32, %c8_i32 : i32
    %c1_i32 = arith.constant 1 : i32
    scf.for %arg5 = %c0_i32 to %0 step %c1_i32  : i32 {
      %cst = arith.constant 0.000000e+00 : f32
      %1 = vector.broadcast %cst : f32 to vector<8x128xf32>
      %c0_i32_1 = arith.constant 0 : i32
      %2 = arith.addi %arg5, %c0_i32_1 : i32
      %c0 = arith.constant 0 : index
      %c0_2 = arith.constant 0 : index
      %3 = arith.index_cast %2 : i32 to index
      %c0_3 = arith.constant 0 : index
      %c0_4 = arith.constant 0 : index
      %4 = vector.load %arg2[%c0, %c0_2, %3, %c0_3, %c0_4] : memref<1x4x9x9x64xbf16, #tpu.memory_space<vmem>>, vector<1x1x1x8x64xbf16>
      %5 = vector.shape_cast %4 : vector<1x1x1x8x64xbf16> to vector<8x64xbf16>
      %c0_5 = arith.constant 0 : index
      %c0_6 = arith.constant 0 : index
      %c0_7 = arith.constant 0 : index
      %6 = vector.load %arg3[%c0_5, %c0_6, %c0_7] : memref<16x64x128xbf16, #tpu.memory_space<vmem>>, vector<1x64x128xbf16>
      %7 = vector.shape_cast %6 : vector<1x64x128xbf16> to vector<64x128xbf16>
      %cst_8 = arith.constant dense<0.000000e+00> : vector<8x128xf32>
      %8 = tpu.matmul %5, %7, %cst_8 {dimension_numbers = #tpu.dot_dimension_numbers<[1], [0], [0], [1], [0, 0, 1, 1], [], []>} : vector<8x64xbf16>, vector<64x128xbf16>, vector<8x128xf32> -> vector<8x128xf32>
      %9 = arith.addf %1, %8 : vector<8x128xf32>
      %c0_i32_9 = arith.constant 0 : i32
      %10 = arith.addi %arg5, %c0_i32_9 : i32
      %c0_10 = arith.constant 0 : index
      %c1 = arith.constant 1 : index
      %11 = arith.index_cast %10 : i32 to index
      %c0_11 = arith.constant 0 : index
      %c0_12 = arith.constant 0 : index
      %12 = vector.load %arg2[%c0_10, %c1, %11, %c0_11, %c0_12] : memref<1x4x9x9x64xbf16, #tpu.memory_space<vmem>>, vector<1x1x1x8x64xbf16>
      %13 = vector.shape_cast %12 : vector<1x1x1x8x64xbf16> to vector<8x64xbf16>
      %c1_13 = arith.constant 1 : index
      %c0_14 = arith.constant 0 : index
      %c0_15 = arith.constant 0 : index
      %14 = vector.load %arg3[%c1_13, %c0_14, %c0_15] : memref<16x64x128xbf16, #tpu.memory_space<vmem>>, vector<1x64x128xbf16>
      %15 = vector.shape_cast %14 : vector<1x64x128xbf16> to vector<64x128xbf16>
      %cst_16 = arith.constant dense<0.000000e+00> : vector<8x128xf32>
      %16 = tpu.matmul %13, %15, %cst_16 {dimension_numbers = #tpu.dot_dimension_numbers<[1], [0], [0], [1], [0, 0, 1, 1], [], []>} : vector<8x64xbf16>, vector<64x128xbf16>, vector<8x128xf32> -> vector<8x128xf32>
      %17 = arith.addf %9, %16 : vector<8x128xf32>
      %c0_i32_17 = arith.constant 0 : i32
      %18 = arith.addi %arg5, %c0_i32_17 : i32
      %c0_18 = arith.constant 0 : index
      %c0_19 = arith.constant 0 : index
      %19 = arith.index_cast %18 : i32 to index
      %c1_20 = arith.constant 1 : index
      %c0_21 = arith.constant 0 : index
      %20 = vector.load %arg2[%c0_18, %c0_19, %19, %c1_20, %c0_21] : memref<1x4x9x9x64xbf16, #tpu.memory_space<vmem>>, vector<1x1x1x8x64xbf16>
      %21 = vector.shape_cast %20 : vector<1x1x1x8x64xbf16> to vector<8x64xbf16>
      %c2 = arith.constant 2 : index
      %c0_22 = arith.constant 0 : index
      %c0_23 = arith.constant 0 : index
      %22 = vector.load %arg3[%c2, %c0_22, %c0_23] : memref<16x64x128xbf16, #tpu.memory_space<vmem>>, vector<1x64x128xbf16>
      %23 = vector.shape_cast %22 : vector<1x64x128xbf16> to vector<64x128xbf16>
      %cst_24 = arith.constant dense<0.000000e+00> : vector<8x128xf32>
      %24 = tpu.matmul %21, %23, %cst_24 {dimension_numbers = #tpu.dot_dimension_numbers<[1], [0], [0], [1], [0, 0, 1, 1], [], []>} : vector<8x64xbf16>, vector<64x128xbf16>, vector<8x128xf32> -> vector<8x128xf32>
      %25 = arith.addf %17, %24 : vector<8x128xf32>
      %c0_i32_25 = arith.constant 0 : i32
      %26 = arith.addi %arg5, %c0_i32_25 : i32
      %c0_26 = arith.constant 0 : index
      %c1_27 = arith.constant 1 : index
      %27 = arith.index_cast %26 : i32 to index
      %c1_28 = arith.constant 1 : index
      %c0_29 = arith.constant 0 : index
      %28 = vector.load %arg2[%c0_26, %c1_27, %27, %c1_28, %c0_29] : memref<1x4x9x9x64xbf16, #tpu.memory_space<vmem>>, vector<1x1x1x8x64xbf16>
      %29 = vector.shape_cast %28 : vector<1x1x1x8x64xbf16> to vector<8x64xbf16>
      %c3 = arith.constant 3 : index
      %c0_30 = arith.constant 0 : index
      %c0_31 = arith.constant 0 : index
      %30 = vector.load %arg3[%c3, %c0_30, %c0_31] : memref<16x64x128xbf16, #tpu.memory_space<vmem>>, vector<1x64x128xbf16>
      %31 = vector.shape_cast %30 : vector<1x64x128xbf16> to vector<64x128xbf16>
      %cst_32 = arith.constant dense<0.000000e+00> : vector<8x128xf32>
      %32 = tpu.matmul %29, %31, %cst_32 {dimension_numbers = #tpu.dot_dimension_numbers<[1], [0], [0], [1], [0, 0, 1, 1], [], []>} : vector<8x64xbf16>, vector<64x128xbf16>, vector<8x128xf32> -> vector<8x128xf32>
      %33 = arith.addf %25, %32 : vector<8x128xf32>
      %c0_i32_33 = arith.constant 0 : i32
      %34 = arith.addi %arg5, %c0_i32_33 : i32
      %c0_34 = arith.constant 0 : index
      %c2_35 = arith.constant 2 : index
      %35 = arith.index_cast %34 : i32 to index
      %c0_36 = arith.constant 0 : index
      %c0_37 = arith.constant 0 : index
      %36 = vector.load %arg2[%c0_34, %c2_35, %35, %c0_36, %c0_37] : memref<1x4x9x9x64xbf16, #tpu.memory_space<vmem>>, vector<1x1x1x8x64xbf16>
      %37 = vector.shape_cast %36 : vector<1x1x1x8x64xbf16> to vector<8x64xbf16>
      %c4 = arith.constant 4 : index
      %c0_38 = arith.constant 0 : index
      %c0_39 = arith.constant 0 : index
      %38 = vector.load %arg3[%c4, %c0_38, %c0_39] : memref<16x64x128xbf16, #tpu.memory_space<vmem>>, vector<1x64x128xbf16>
      %39 = vector.shape_cast %38 : vector<1x64x128xbf16> to vector<64x128xbf16>
      %cst_40 = arith.constant dense<0.000000e+00> : vector<8x128xf32>
      %40 = tpu.matmul %37, %39, %cst_40 {dimension_numbers = #tpu.dot_dimension_numbers<[1], [0], [0], [1], [0, 0, 1, 1], [], []>} : vector<8x64xbf16>, vector<64x128xbf16>, vector<8x128xf32> -> vector<8x128xf32>
      %41 = arith.addf %33, %40 : vector<8x128xf32>
      %c0_i32_41 = arith.constant 0 : i32
      %42 = arith.addi %arg5, %c0_i32_41 : i32
      %c0_42 = arith.constant 0 : index
      %c3_43 = arith.constant 3 : index
      %43 = arith.index_cast %42 : i32 to index
      %c0_44 = arith.constant 0 : index
      %c0_45 = arith.constant 0 : index
      %44 = vector.load %arg2[%c0_42, %c3_43, %43, %c0_44, %c0_45] : memref<1x4x9x9x64xbf16, #tpu.memory_space<vmem>>, vector<1x1x1x8x64xbf16>
      %45 = vector.shape_cast %44 : vector<1x1x1x8x64xbf16> to vector<8x64xbf16>
      %c5 = arith.constant 5 : index
      %c0_46 = arith.constant 0 : index
      %c0_47 = arith.constant 0 : index
      %46 = vector.load %arg3[%c5, %c0_46, %c0_47] : memref<16x64x128xbf16, #tpu.memory_space<vmem>>, vector<1x64x128xbf16>
      %47 = vector.shape_cast %46 : vector<1x64x128xbf16> to vector<64x128xbf16>
      %cst_48 = arith.constant dense<0.000000e+00> : vector<8x128xf32>
      %48 = tpu.matmul %45, %47, %cst_48 {dimension_numbers = #tpu.dot_dimension_numbers<[1], [0], [0], [1], [0, 0, 1, 1], [], []>} : vector<8x64xbf16>, vector<64x128xbf16>, vector<8x128xf32> -> vector<8x128xf32>
      %49 = arith.addf %41, %48 : vector<8x128xf32>
      %c0_i32_49 = arith.constant 0 : i32
      %50 = arith.addi %arg5, %c0_i32_49 : i32
      %c0_50 = arith.constant 0 : index
      %c2_51 = arith.constant 2 : index
      %51 = arith.index_cast %50 : i32 to index
      %c1_52 = arith.constant 1 : index
      %c0_53 = arith.constant 0 : index
      %52 = vector.load %arg2[%c0_50, %c2_51, %51, %c1_52, %c0_53] : memref<1x4x9x9x64xbf16, #tpu.memory_space<vmem>>, vector<1x1x1x8x64xbf16>
      %53 = vector.shape_cast %52 : vector<1x1x1x8x64xbf16> to vector<8x64xbf16>
      %c6 = arith.constant 6 : index
      %c0_54 = arith.constant 0 : index
      %c0_55 = arith.constant 0 : index
      %54 = vector.load %arg3[%c6, %c0_54, %c0_55] : memref<16x64x128xbf16, #tpu.memory_space<vmem>>, vector<1x64x128xbf16>
      %55 = vector.shape_cast %54 : vector<1x64x128xbf16> to vector<64x128xbf16>
      %cst_56 = arith.constant dense<0.000000e+00> : vector<8x128xf32>
      %56 = tpu.matmul %53, %55, %cst_56 {dimension_numbers = #tpu.dot_dimension_numbers<[1], [0], [0], [1], [0, 0, 1, 1], [], []>} : vector<8x64xbf16>, vector<64x128xbf16>, vector<8x128xf32> -> vector<8x128xf32>
      %57 = arith.addf %49, %56 : vector<8x128xf32>
      %c0_i32_57 = arith.constant 0 : i32
      %58 = arith.addi %arg5, %c0_i32_57 : i32
      %c0_58 = arith.constant 0 : index
      %c3_59 = arith.constant 3 : index
      %59 = arith.index_cast %58 : i32 to index
      %c1_60 = arith.constant 1 : index
      %c0_61 = arith.constant 0 : index
      %60 = vector.load %arg2[%c0_58, %c3_59, %59, %c1_60, %c0_61] : memref<1x4x9x9x64xbf16, #tpu.memory_space<vmem>>, vector<1x1x1x8x64xbf16>
      %61 = vector.shape_cast %60 : vector<1x1x1x8x64xbf16> to vector<8x64xbf16>
      %c7 = arith.constant 7 : index
      %c0_62 = arith.constant 0 : index
      %c0_63 = arith.constant 0 : index
      %62 = vector.load %arg3[%c7, %c0_62, %c0_63] : memref<16x64x128xbf16, #tpu.memory_space<vmem>>, vector<1x64x128xbf16>
      %63 = vector.shape_cast %62 : vector<1x64x128xbf16> to vector<64x128xbf16>
      %cst_64 = arith.constant dense<0.000000e+00> : vector<8x128xf32>
      %64 = tpu.matmul %61, %63, %cst_64 {dimension_numbers = #tpu.dot_dimension_numbers<[1], [0], [0], [1], [0, 0, 1, 1], [], []>} : vector<8x64xbf16>, vector<64x128xbf16>, vector<8x128xf32> -> vector<8x128xf32>
      %65 = arith.addf %57, %64 : vector<8x128xf32>
      %c1_i32_65 = arith.constant 1 : i32
      %66 = arith.addi %arg5, %c1_i32_65 : i32
      %c0_66 = arith.constant 0 : index
      %c0_67 = arith.constant 0 : index
      %67 = arith.index_cast %66 : i32 to index
      %c0_68 = arith.constant 0 : index
      %c0_69 = arith.constant 0 : index
      %68 = vector.load %arg2[%c0_66, %c0_67, %67, %c0_68, %c0_69] : memref<1x4x9x9x64xbf16, #tpu.memory_space<vmem>>, vector<1x1x1x8x64xbf16>
      %69 = vector.shape_cast %68 : vector<1x1x1x8x64xbf16> to vector<8x64xbf16>
      %c8 = arith.constant 8 : index
      %c0_70 = arith.constant 0 : index
      %c0_71 = arith.constant 0 : index
      %70 = vector.load %arg3[%c8, %c0_70, %c0_71] : memref<16x64x128xbf16, #tpu.memory_space<vmem>>, vector<1x64x128xbf16>
      %71 = vector.shape_cast %70 : vector<1x64x128xbf16> to vector<64x128xbf16>
      %cst_72 = arith.constant dense<0.000000e+00> : vector<8x128xf32>
      %72 = tpu.matmul %69, %71, %cst_72 {dimension_numbers = #tpu.dot_dimension_numbers<[1], [0], [0], [1], [0, 0, 1, 1], [], []>} : vector<8x64xbf16>, vector<64x128xbf16>, vector<8x128xf32> -> vector<8x128xf32>
      %73 = arith.addf %65, %72 : vector<8x128xf32>
      %c1_i32_73 = arith.constant 1 : i32
      %74 = arith.addi %arg5, %c1_i32_73 : i32
      %c0_74 = arith.constant 0 : index
      %c1_75 = arith.constant 1 : index
      %75 = arith.index_cast %74 : i32 to index
      %c0_76 = arith.constant 0 : index
      %c0_77 = arith.constant 0 : index
      %76 = vector.load %arg2[%c0_74, %c1_75, %75, %c0_76, %c0_77] : memref<1x4x9x9x64xbf16, #tpu.memory_space<vmem>>, vector<1x1x1x8x64xbf16>
      %77 = vector.shape_cast %76 : vector<1x1x1x8x64xbf16> to vector<8x64xbf16>
      %c9 = arith.constant 9 : index
      %c0_78 = arith.constant 0 : index
      %c0_79 = arith.constant 0 : index
      %78 = vector.load %arg3[%c9, %c0_78, %c0_79] : memref<16x64x128xbf16, #tpu.memory_space<vmem>>, vector<1x64x128xbf16>
      %79 = vector.shape_cast %78 : vector<1x64x128xbf16> to vector<64x128xbf16>
      %cst_80 = arith.constant dense<0.000000e+00> : vector<8x128xf32>
      %80 = tpu.matmul %77, %79, %cst_80 {dimension_numbers = #tpu.dot_dimension_numbers<[1], [0], [0], [1], [0, 0, 1, 1], [], []>} : vector<8x64xbf16>, vector<64x128xbf16>, vector<8x128xf32> -> vector<8x128xf32>
      %81 = arith.addf %73, %80 : vector<8x128xf32>
      %c1_i32_81 = arith.constant 1 : i32
      %82 = arith.addi %arg5, %c1_i32_81 : i32
      %c0_82 = arith.constant 0 : index
      %c0_83 = arith.constant 0 : index
      %83 = arith.index_cast %82 : i32 to index
      %c1_84 = arith.constant 1 : index
      %c0_85 = arith.constant 0 : index
      %84 = vector.load %arg2[%c0_82, %c0_83, %83, %c1_84, %c0_85] : memref<1x4x9x9x64xbf16, #tpu.memory_space<vmem>>, vector<1x1x1x8x64xbf16>
      %85 = vector.shape_cast %84 : vector<1x1x1x8x64xbf16> to vector<8x64xbf16>
      %c10 = arith.constant 10 : index
      %c0_86 = arith.constant 0 : index
      %c0_87 = arith.constant 0 : index
      %86 = vector.load %arg3[%c10, %c0_86, %c0_87] : memref<16x64x128xbf16, #tpu.memory_space<vmem>>, vector<1x64x128xbf16>
      %87 = vector.shape_cast %86 : vector<1x64x128xbf16> to vector<64x128xbf16>
      %cst_88 = arith.constant dense<0.000000e+00> : vector<8x128xf32>
      %88 = tpu.matmul %85, %87, %cst_88 {dimension_numbers = #tpu.dot_dimension_numbers<[1], [0], [0], [1], [0, 0, 1, 1], [], []>} : vector<8x64xbf16>, vector<64x128xbf16>, vector<8x128xf32> -> vector<8x128xf32>
      %89 = arith.addf %81, %88 : vector<8x128xf32>
      %c1_i32_89 = arith.constant 1 : i32
      %90 = arith.addi %arg5, %c1_i32_89 : i32
      %c0_90 = arith.constant 0 : index
      %c1_91 = arith.constant 1 : index
      %91 = arith.index_cast %90 : i32 to index
      %c1_92 = arith.constant 1 : index
      %c0_93 = arith.constant 0 : index
      %92 = vector.load %arg2[%c0_90, %c1_91, %91, %c1_92, %c0_93] : memref<1x4x9x9x64xbf16, #tpu.memory_space<vmem>>, vector<1x1x1x8x64xbf16>
      %93 = vector.shape_cast %92 : vector<1x1x1x8x64xbf16> to vector<8x64xbf16>
      %c11 = arith.constant 11 : index
      %c0_94 = arith.constant 0 : index
      %c0_95 = arith.constant 0 : index
      %94 = vector.load %arg3[%c11, %c0_94, %c0_95] : memref<16x64x128xbf16, #tpu.memory_space<vmem>>, vector<1x64x128xbf16>
      %95 = vector.shape_cast %94 : vector<1x64x128xbf16> to vector<64x128xbf16>
      %cst_96 = arith.constant dense<0.000000e+00> : vector<8x128xf32>
      %96 = tpu.matmul %93, %95, %cst_96 {dimension_numbers = #tpu.dot_dimension_numbers<[1], [0], [0], [1], [0, 0, 1, 1], [], []>} : vector<8x64xbf16>, vector<64x128xbf16>, vector<8x128xf32> -> vector<8x128xf32>
      %97 = arith.addf %89, %96 : vector<8x128xf32>
      %c1_i32_97 = arith.constant 1 : i32
      %98 = arith.addi %arg5, %c1_i32_97 : i32
      %c0_98 = arith.constant 0 : index
      %c2_99 = arith.constant 2 : index
      %99 = arith.index_cast %98 : i32 to index
      %c0_100 = arith.constant 0 : index
      %c0_101 = arith.constant 0 : index
      %100 = vector.load %arg2[%c0_98, %c2_99, %99, %c0_100, %c0_101] : memref<1x4x9x9x64xbf16, #tpu.memory_space<vmem>>, vector<1x1x1x8x64xbf16>
      %101 = vector.shape_cast %100 : vector<1x1x1x8x64xbf16> to vector<8x64xbf16>
      %c12 = arith.constant 12 : index
      %c0_102 = arith.constant 0 : index
      %c0_103 = arith.constant 0 : index
      %102 = vector.load %arg3[%c12, %c0_102, %c0_103] : memref<16x64x128xbf16, #tpu.memory_space<vmem>>, vector<1x64x128xbf16>
      %103 = vector.shape_cast %102 : vector<1x64x128xbf16> to vector<64x128xbf16>
      %cst_104 = arith.constant dense<0.000000e+00> : vector<8x128xf32>
      %104 = tpu.matmul %101, %103, %cst_104 {dimension_numbers = #tpu.dot_dimension_numbers<[1], [0], [0], [1], [0, 0, 1, 1], [], []>} : vector<8x64xbf16>, vector<64x128xbf16>, vector<8x128xf32> -> vector<8x128xf32>
      %105 = arith.addf %97, %104 : vector<8x128xf32>
      %c1_i32_105 = arith.constant 1 : i32
      %106 = arith.addi %arg5, %c1_i32_105 : i32
      %c0_106 = arith.constant 0 : index
      %c3_107 = arith.constant 3 : index
      %107 = arith.index_cast %106 : i32 to index
      %c0_108 = arith.constant 0 : index
      %c0_109 = arith.constant 0 : index
      %108 = vector.load %arg2[%c0_106, %c3_107, %107, %c0_108, %c0_109] : memref<1x4x9x9x64xbf16, #tpu.memory_space<vmem>>, vector<1x1x1x8x64xbf16>
      %109 = vector.shape_cast %108 : vector<1x1x1x8x64xbf16> to vector<8x64xbf16>
      %c13 = arith.constant 13 : index
      %c0_110 = arith.constant 0 : index
      %c0_111 = arith.constant 0 : index
      %110 = vector.load %arg3[%c13, %c0_110, %c0_111] : memref<16x64x128xbf16, #tpu.memory_space<vmem>>, vector<1x64x128xbf16>
      %111 = vector.shape_cast %110 : vector<1x64x128xbf16> to vector<64x128xbf16>
      %cst_112 = arith.constant dense<0.000000e+00> : vector<8x128xf32>
      %112 = tpu.matmul %109, %111, %cst_112 {dimension_numbers = #tpu.dot_dimension_numbers<[1], [0], [0], [1], [0, 0, 1, 1], [], []>} : vector<8x64xbf16>, vector<64x128xbf16>, vector<8x128xf32> -> vector<8x128xf32>
      %113 = arith.addf %105, %112 : vector<8x128xf32>
      %c1_i32_113 = arith.constant 1 : i32
      %114 = arith.addi %arg5, %c1_i32_113 : i32
      %c0_114 = arith.constant 0 : index
      %c2_115 = arith.constant 2 : index
      %115 = arith.index_cast %114 : i32 to index
      %c1_116 = arith.constant 1 : index
      %c0_117 = arith.constant 0 : index
      %116 = vector.load %arg2[%c0_114, %c2_115, %115, %c1_116, %c0_117] : memref<1x4x9x9x64xbf16, #tpu.memory_space<vmem>>, vector<1x1x1x8x64xbf16>
      %117 = vector.shape_cast %116 : vector<1x1x1x8x64xbf16> to vector<8x64xbf16>
      %c14 = arith.constant 14 : index
      %c0_118 = arith.constant 0 : index
      %c0_119 = arith.constant 0 : index
      %118 = vector.load %arg3[%c14, %c0_118, %c0_119] : memref<16x64x128xbf16, #tpu.memory_space<vmem>>, vector<1x64x128xbf16>
      %119 = vector.shape_cast %118 : vector<1x64x128xbf16> to vector<64x128xbf16>
      %cst_120 = arith.constant dense<0.000000e+00> : vector<8x128xf32>
      %120 = tpu.matmul %117, %119, %cst_120 {dimension_numbers = #tpu.dot_dimension_numbers<[1], [0], [0], [1], [0, 0, 1, 1], [], []>} : vector<8x64xbf16>, vector<64x128xbf16>, vector<8x128xf32> -> vector<8x128xf32>
      %121 = arith.addf %113, %120 : vector<8x128xf32>
      %c1_i32_121 = arith.constant 1 : i32
      %122 = arith.addi %arg5, %c1_i32_121 : i32
      %c0_122 = arith.constant 0 : index
      %c3_123 = arith.constant 3 : index
      %123 = arith.index_cast %122 : i32 to index
      %c1_124 = arith.constant 1 : index
      %c0_125 = arith.constant 0 : index
      %124 = vector.load %arg2[%c0_122, %c3_123, %123, %c1_124, %c0_125] : memref<1x4x9x9x64xbf16, #tpu.memory_space<vmem>>, vector<1x1x1x8x64xbf16>
      %125 = vector.shape_cast %124 : vector<1x1x1x8x64xbf16> to vector<8x64xbf16>
      %c15 = arith.constant 15 : index
      %c0_126 = arith.constant 0 : index
      %c0_127 = arith.constant 0 : index
      %126 = vector.load %arg3[%c15, %c0_126, %c0_127] : memref<16x64x128xbf16, #tpu.memory_space<vmem>>, vector<1x64x128xbf16>
      %127 = vector.shape_cast %126 : vector<1x64x128xbf16> to vector<64x128xbf16>
      %cst_128 = arith.constant dense<0.000000e+00> : vector<8x128xf32>
      %128 = tpu.matmul %125, %127, %cst_128 {dimension_numbers = #tpu.dot_dimension_numbers<[1], [0], [0], [1], [0, 0, 1, 1], [], []>} : vector<8x64xbf16>, vector<64x128xbf16>, vector<8x128xf32> -> vector<8x128xf32>
      %129 = arith.addf %121, %128 : vector<8x128xf32>
      %cst_129 = arith.constant 0.000000e+00 : f32
      %130 = vector.broadcast %cst_129 : f32 to vector<8x128xf32>
      %131 = arith.cmpf oge, %129, %130 : vector<8x128xf32>
      %cst_130 = arith.constant 2.000000e-01 : f32
      %132 = vector.broadcast %cst_130 : f32 to vector<8x128xf32>
      %133 = arith.mulf %132, %129 : vector<8x128xf32>
      %134 = arith.select %131, %129, %133 : vector<8x128xi1>, vector<8x128xf32>
      %135 = arith.truncf %134 : vector<8x128xf32> to vector<8x128xbf16>
      %c0_131 = arith.constant 0 : index
      %136 = arith.index_cast %arg5 : i32 to index
      %c0_132 = arith.constant 0 : index
      %c0_133 = arith.constant 0 : index
      %137 = vector.load %arg4[%c0_131, %136, %c0_132, %c0_133] : memref<1x8x8x128xbf16, #tpu.memory_space<vmem>>, vector<1x1x8x128xbf16>
      %138 = vector.shape_cast %137 : vector<1x1x8x128xbf16> to vector<8x128xbf16>
      %139 = vector.shape_cast %135 : vector<8x128xbf16> to vector<1x1x8x128xbf16>
      tpu.vector_store %arg4[%c0_131, %136, %c0_132, %c0_133], %139 {strides = array<i32>} : memref<1x8x8x128xbf16, #tpu.memory_space<vmem>>, vector<1x1x8x128xbf16>,
    }
    %c8_i32_0 = arith.constant 8 : i32
    return
  }
  func.func @transform_0(%arg0: i32, %arg1: i32) -> (i32, i32, i32, i32, i32) {
    %c0_i32 = arith.constant 0 : i32
    %c0_i32_0 = arith.constant 0 : i32
    %c0_i32_1 = arith.constant 0 : i32
    %c0_i32_2 = arith.constant 0 : i32
    %c0_i32_3 = arith.constant 0 : i32
    return %arg0, %c0_i32, %c0_i32_0, %c0_i32_1, %c0_i32_2 : i32, i32, i32, i32, i32
  }
  func.func @transform_1(%arg0: i32, %arg1: i32) -> (i32, i32, i32) {
    %c0_i32 = arith.constant 0 : i32
    %c0_i32_0 = arith.constant 0 : i32
    %c0_i32_1 = arith.constant 0 : i32
    return %c0_i32, %c0_i32_0, %arg1 : i32, i32, i32
  }
  func.func @transform_2(%arg0: i32, %arg1: i32) -> (i32, i32, i32, i32) {
    %c0_i32 = arith.constant 0 : i32
    %c0_i32_0 = arith.constant 0 : i32
    %c0_i32_1 = arith.constant 0 : i32
    return %arg0, %c0_i32, %c0_i32_0, %arg1 : i32, i32, i32, i32
  }
}

module attributes {stable_mosaic.version = 11 : i64} {
  func.func @_conv_tap_kernel(%arg0: i32, %arg1: i32, %arg2: memref<1x1x6x6x256xbf16, #tpu.memory_space<vmem>>, %arg3: memref<16x256x256xbf16, #tpu.memory_space<vmem>>, %arg4: memref<1x3x3x256xbf16, #tpu.memory_space<vmem>>) attributes {dimension_semantics = [#tpu.dimension_semantics<parallel>, #tpu.dimension_semantics<parallel>], iteration_bounds = array<i64: 2, 2>, scalar_prefetch = 0 : i64, scratch_operands = 0 : i64, tpu.core_type = #tpu.core_type<tc>, window_params = [{transform_indices = @transform_0, window_bounds = array<i64: 1, 1, 6, 6, 256>}, {transform_indices = @transform_1, window_bounds = array<i64: 16, 256, 256>}, {transform_indices = @transform_2, window_bounds = array<i64: 1, 3, 3, 256>}]} {
    %c0_i32 = arith.constant 0 : i32
    %c3_i32 = arith.constant 3 : i32
    %0 = arith.addi %c0_i32, %c3_i32 : i32
    %c1_i32 = arith.constant 1 : i32
    scf.for %arg5 = %c0_i32 to %0 step %c1_i32  : i32 {
      %cst = arith.constant 0.000000e+00 : f32
      %1 = vector.broadcast %cst : f32 to vector<3x256xf32>
      %c0_i32_1 = arith.constant 0 : i32
      %2 = arith.addi %arg5, %c0_i32_1 : i32
      %c0 = arith.constant 0 : index
      %c0_2 = arith.constant 0 : index
      %3 = arith.index_cast %2 : i32 to index
      %c0_3 = arith.constant 0 : index
      %c0_4 = arith.constant 0 : index
      %4 = vector.load %arg2[%c0, %c0_2, %3, %c0_3, %c0_4] : memref<1x1x6x6x256xbf16, #tpu.memory_space<vmem>>, vector<1x1x1x3x256xbf16>
      %5 = vector.shape_cast %4 : vector<1x1x1x3x256xbf16> to vector<3x256xbf16>
      %c0_5 = arith.constant 0 : index
      %c0_6 = arith.constant 0 : index
      %c0_7 = arith.constant 0 : index
      %6 = vector.load %arg3[%c0_5, %c0_6, %c0_7] : memref<16x256x256xbf16, #tpu.memory_space<vmem>>, vector<1x256x256xbf16>
      %7 = vector.shape_cast %6 : vector<1x256x256xbf16> to vector<256x256xbf16>
      %cst_8 = arith.constant dense<0.000000e+00> : vector<3x256xf32>
      %8 = tpu.matmul %5, %7, %cst_8 {dimension_numbers = #tpu.dot_dimension_numbers<[1], [0], [0], [1], [0, 0, 1, 1], [], []>} : vector<3x256xbf16>, vector<256x256xbf16>, vector<3x256xf32> -> vector<3x256xf32>
      %9 = arith.addf %1, %8 : vector<3x256xf32>
      %c0_i32_9 = arith.constant 0 : i32
      %10 = arith.addi %arg5, %c0_i32_9 : i32
      %c0_10 = arith.constant 0 : index
      %c0_11 = arith.constant 0 : index
      %11 = arith.index_cast %10 : i32 to index
      %c1 = arith.constant 1 : index
      %c0_12 = arith.constant 0 : index
      %12 = vector.load %arg2[%c0_10, %c0_11, %11, %c1, %c0_12] : memref<1x1x6x6x256xbf16, #tpu.memory_space<vmem>>, vector<1x1x1x3x256xbf16>
      %13 = vector.shape_cast %12 : vector<1x1x1x3x256xbf16> to vector<3x256xbf16>
      %c1_13 = arith.constant 1 : index
      %c0_14 = arith.constant 0 : index
      %c0_15 = arith.constant 0 : index
      %14 = vector.load %arg3[%c1_13, %c0_14, %c0_15] : memref<16x256x256xbf16, #tpu.memory_space<vmem>>, vector<1x256x256xbf16>
      %15 = vector.shape_cast %14 : vector<1x256x256xbf16> to vector<256x256xbf16>
      %cst_16 = arith.constant dense<0.000000e+00> : vector<3x256xf32>
      %16 = tpu.matmul %13, %15, %cst_16 {dimension_numbers = #tpu.dot_dimension_numbers<[1], [0], [0], [1], [0, 0, 1, 1], [], []>} : vector<3x256xbf16>, vector<256x256xbf16>, vector<3x256xf32> -> vector<3x256xf32>
      %17 = arith.addf %9, %16 : vector<3x256xf32>
      %c0_i32_17 = arith.constant 0 : i32
      %18 = arith.addi %arg5, %c0_i32_17 : i32
      %c0_18 = arith.constant 0 : index
      %c0_19 = arith.constant 0 : index
      %19 = arith.index_cast %18 : i32 to index
      %c2 = arith.constant 2 : index
      %c0_20 = arith.constant 0 : index
      %20 = vector.load %arg2[%c0_18, %c0_19, %19, %c2, %c0_20] : memref<1x1x6x6x256xbf16, #tpu.memory_space<vmem>>, vector<1x1x1x3x256xbf16>
      %21 = vector.shape_cast %20 : vector<1x1x1x3x256xbf16> to vector<3x256xbf16>
      %c2_21 = arith.constant 2 : index
      %c0_22 = arith.constant 0 : index
      %c0_23 = arith.constant 0 : index
      %22 = vector.load %arg3[%c2_21, %c0_22, %c0_23] : memref<16x256x256xbf16, #tpu.memory_space<vmem>>, vector<1x256x256xbf16>
      %23 = vector.shape_cast %22 : vector<1x256x256xbf16> to vector<256x256xbf16>
      %cst_24 = arith.constant dense<0.000000e+00> : vector<3x256xf32>
      %24 = tpu.matmul %21, %23, %cst_24 {dimension_numbers = #tpu.dot_dimension_numbers<[1], [0], [0], [1], [0, 0, 1, 1], [], []>} : vector<3x256xbf16>, vector<256x256xbf16>, vector<3x256xf32> -> vector<3x256xf32>
      %25 = arith.addf %17, %24 : vector<3x256xf32>
      %c0_i32_25 = arith.constant 0 : i32
      %26 = arith.addi %arg5, %c0_i32_25 : i32
      %c0_26 = arith.constant 0 : index
      %c0_27 = arith.constant 0 : index
      %27 = arith.index_cast %26 : i32 to index
      %c3 = arith.constant 3 : index
      %c0_28 = arith.constant 0 : index
      %28 = vector.load %arg2[%c0_26, %c0_27, %27, %c3, %c0_28] : memref<1x1x6x6x256xbf16, #tpu.memory_space<vmem>>, vector<1x1x1x3x256xbf16>
      %29 = vector.shape_cast %28 : vector<1x1x1x3x256xbf16> to vector<3x256xbf16>
      %c3_29 = arith.constant 3 : index
      %c0_30 = arith.constant 0 : index
      %c0_31 = arith.constant 0 : index
      %30 = vector.load %arg3[%c3_29, %c0_30, %c0_31] : memref<16x256x256xbf16, #tpu.memory_space<vmem>>, vector<1x256x256xbf16>
      %31 = vector.shape_cast %30 : vector<1x256x256xbf16> to vector<256x256xbf16>
      %cst_32 = arith.constant dense<0.000000e+00> : vector<3x256xf32>
      %32 = tpu.matmul %29, %31, %cst_32 {dimension_numbers = #tpu.dot_dimension_numbers<[1], [0], [0], [1], [0, 0, 1, 1], [], []>} : vector<3x256xbf16>, vector<256x256xbf16>, vector<3x256xf32> -> vector<3x256xf32>
      %33 = arith.addf %25, %32 : vector<3x256xf32>
      %c1_i32_33 = arith.constant 1 : i32
      %34 = arith.addi %arg5, %c1_i32_33 : i32
      %c0_34 = arith.constant 0 : index
      %c0_35 = arith.constant 0 : index
      %35 = arith.index_cast %34 : i32 to index
      %c0_36 = arith.constant 0 : index
      %c0_37 = arith.constant 0 : index
      %36 = vector.load %arg2[%c0_34, %c0_35, %35, %c0_36, %c0_37] : memref<1x1x6x6x256xbf16, #tpu.memory_space<vmem>>, vector<1x1x1x3x256xbf16>
      %37 = vector.shape_cast %36 : vector<1x1x1x3x256xbf16> to vector<3x256xbf16>
      %c4 = arith.constant 4 : index
      %c0_38 = arith.constant 0 : index
      %c0_39 = arith.constant 0 : index
      %38 = vector.load %arg3[%c4, %c0_38, %c0_39] : memref<16x256x256xbf16, #tpu.memory_space<vmem>>, vector<1x256x256xbf16>
      %39 = vector.shape_cast %38 : vector<1x256x256xbf16> to vector<256x256xbf16>
      %cst_40 = arith.constant dense<0.000000e+00> : vector<3x256xf32>
      %40 = tpu.matmul %37, %39, %cst_40 {dimension_numbers = #tpu.dot_dimension_numbers<[1], [0], [0], [1], [0, 0, 1, 1], [], []>} : vector<3x256xbf16>, vector<256x256xbf16>, vector<3x256xf32> -> vector<3x256xf32>
      %41 = arith.addf %33, %40 : vector<3x256xf32>
      %c1_i32_41 = arith.constant 1 : i32
      %42 = arith.addi %arg5, %c1_i32_41 : i32
      %c0_42 = arith.constant 0 : index
      %c0_43 = arith.constant 0 : index
      %43 = arith.index_cast %42 : i32 to index
      %c1_44 = arith.constant 1 : index
      %c0_45 = arith.constant 0 : index
      %44 = vector.load %arg2[%c0_42, %c0_43, %43, %c1_44, %c0_45] : memref<1x1x6x6x256xbf16, #tpu.memory_space<vmem>>, vector<1x1x1x3x256xbf16>
      %45 = vector.shape_cast %44 : vector<1x1x1x3x256xbf16> to vector<3x256xbf16>
      %c5 = arith.constant 5 : index
      %c0_46 = arith.constant 0 : index
      %c0_47 = arith.constant 0 : index
      %46 = vector.load %arg3[%c5, %c0_46, %c0_47] : memref<16x256x256xbf16, #tpu.memory_space<vmem>>, vector<1x256x256xbf16>
      %47 = vector.shape_cast %46 : vector<1x256x256xbf16> to vector<256x256xbf16>
      %cst_48 = arith.constant dense<0.000000e+00> : vector<3x256xf32>
      %48 = tpu.matmul %45, %47, %cst_48 {dimension_numbers = #tpu.dot_dimension_numbers<[1], [0], [0], [1], [0, 0, 1, 1], [], []>} : vector<3x256xbf16>, vector<256x256xbf16>, vector<3x256xf32> -> vector<3x256xf32>
      %49 = arith.addf %41, %48 : vector<3x256xf32>
      %c1_i32_49 = arith.constant 1 : i32
      %50 = arith.addi %arg5, %c1_i32_49 : i32
      %c0_50 = arith.constant 0 : index
      %c0_51 = arith.constant 0 : index
      %51 = arith.index_cast %50 : i32 to index
      %c2_52 = arith.constant 2 : index
      %c0_53 = arith.constant 0 : index
      %52 = vector.load %arg2[%c0_50, %c0_51, %51, %c2_52, %c0_53] : memref<1x1x6x6x256xbf16, #tpu.memory_space<vmem>>, vector<1x1x1x3x256xbf16>
      %53 = vector.shape_cast %52 : vector<1x1x1x3x256xbf16> to vector<3x256xbf16>
      %c6 = arith.constant 6 : index
      %c0_54 = arith.constant 0 : index
      %c0_55 = arith.constant 0 : index
      %54 = vector.load %arg3[%c6, %c0_54, %c0_55] : memref<16x256x256xbf16, #tpu.memory_space<vmem>>, vector<1x256x256xbf16>
      %55 = vector.shape_cast %54 : vector<1x256x256xbf16> to vector<256x256xbf16>
      %cst_56 = arith.constant dense<0.000000e+00> : vector<3x256xf32>
      %56 = tpu.matmul %53, %55, %cst_56 {dimension_numbers = #tpu.dot_dimension_numbers<[1], [0], [0], [1], [0, 0, 1, 1], [], []>} : vector<3x256xbf16>, vector<256x256xbf16>, vector<3x256xf32> -> vector<3x256xf32>
      %57 = arith.addf %49, %56 : vector<3x256xf32>
      %c1_i32_57 = arith.constant 1 : i32
      %58 = arith.addi %arg5, %c1_i32_57 : i32
      %c0_58 = arith.constant 0 : index
      %c0_59 = arith.constant 0 : index
      %59 = arith.index_cast %58 : i32 to index
      %c3_60 = arith.constant 3 : index
      %c0_61 = arith.constant 0 : index
      %60 = vector.load %arg2[%c0_58, %c0_59, %59, %c3_60, %c0_61] : memref<1x1x6x6x256xbf16, #tpu.memory_space<vmem>>, vector<1x1x1x3x256xbf16>
      %61 = vector.shape_cast %60 : vector<1x1x1x3x256xbf16> to vector<3x256xbf16>
      %c7 = arith.constant 7 : index
      %c0_62 = arith.constant 0 : index
      %c0_63 = arith.constant 0 : index
      %62 = vector.load %arg3[%c7, %c0_62, %c0_63] : memref<16x256x256xbf16, #tpu.memory_space<vmem>>, vector<1x256x256xbf16>
      %63 = vector.shape_cast %62 : vector<1x256x256xbf16> to vector<256x256xbf16>
      %cst_64 = arith.constant dense<0.000000e+00> : vector<3x256xf32>
      %64 = tpu.matmul %61, %63, %cst_64 {dimension_numbers = #tpu.dot_dimension_numbers<[1], [0], [0], [1], [0, 0, 1, 1], [], []>} : vector<3x256xbf16>, vector<256x256xbf16>, vector<3x256xf32> -> vector<3x256xf32>
      %65 = arith.addf %57, %64 : vector<3x256xf32>
      %c2_i32 = arith.constant 2 : i32
      %66 = arith.addi %arg5, %c2_i32 : i32
      %c0_65 = arith.constant 0 : index
      %c0_66 = arith.constant 0 : index
      %67 = arith.index_cast %66 : i32 to index
      %c0_67 = arith.constant 0 : index
      %c0_68 = arith.constant 0 : index
      %68 = vector.load %arg2[%c0_65, %c0_66, %67, %c0_67, %c0_68] : memref<1x1x6x6x256xbf16, #tpu.memory_space<vmem>>, vector<1x1x1x3x256xbf16>
      %69 = vector.shape_cast %68 : vector<1x1x1x3x256xbf16> to vector<3x256xbf16>
      %c8 = arith.constant 8 : index
      %c0_69 = arith.constant 0 : index
      %c0_70 = arith.constant 0 : index
      %70 = vector.load %arg3[%c8, %c0_69, %c0_70] : memref<16x256x256xbf16, #tpu.memory_space<vmem>>, vector<1x256x256xbf16>
      %71 = vector.shape_cast %70 : vector<1x256x256xbf16> to vector<256x256xbf16>
      %cst_71 = arith.constant dense<0.000000e+00> : vector<3x256xf32>
      %72 = tpu.matmul %69, %71, %cst_71 {dimension_numbers = #tpu.dot_dimension_numbers<[1], [0], [0], [1], [0, 0, 1, 1], [], []>} : vector<3x256xbf16>, vector<256x256xbf16>, vector<3x256xf32> -> vector<3x256xf32>
      %73 = arith.addf %65, %72 : vector<3x256xf32>
      %c2_i32_72 = arith.constant 2 : i32
      %74 = arith.addi %arg5, %c2_i32_72 : i32
      %c0_73 = arith.constant 0 : index
      %c0_74 = arith.constant 0 : index
      %75 = arith.index_cast %74 : i32 to index
      %c1_75 = arith.constant 1 : index
      %c0_76 = arith.constant 0 : index
      %76 = vector.load %arg2[%c0_73, %c0_74, %75, %c1_75, %c0_76] : memref<1x1x6x6x256xbf16, #tpu.memory_space<vmem>>, vector<1x1x1x3x256xbf16>
      %77 = vector.shape_cast %76 : vector<1x1x1x3x256xbf16> to vector<3x256xbf16>
      %c9 = arith.constant 9 : index
      %c0_77 = arith.constant 0 : index
      %c0_78 = arith.constant 0 : index
      %78 = vector.load %arg3[%c9, %c0_77, %c0_78] : memref<16x256x256xbf16, #tpu.memory_space<vmem>>, vector<1x256x256xbf16>
      %79 = vector.shape_cast %78 : vector<1x256x256xbf16> to vector<256x256xbf16>
      %cst_79 = arith.constant dense<0.000000e+00> : vector<3x256xf32>
      %80 = tpu.matmul %77, %79, %cst_79 {dimension_numbers = #tpu.dot_dimension_numbers<[1], [0], [0], [1], [0, 0, 1, 1], [], []>} : vector<3x256xbf16>, vector<256x256xbf16>, vector<3x256xf32> -> vector<3x256xf32>
      %81 = arith.addf %73, %80 : vector<3x256xf32>
      %c2_i32_80 = arith.constant 2 : i32
      %82 = arith.addi %arg5, %c2_i32_80 : i32
      %c0_81 = arith.constant 0 : index
      %c0_82 = arith.constant 0 : index
      %83 = arith.index_cast %82 : i32 to index
      %c2_83 = arith.constant 2 : index
      %c0_84 = arith.constant 0 : index
      %84 = vector.load %arg2[%c0_81, %c0_82, %83, %c2_83, %c0_84] : memref<1x1x6x6x256xbf16, #tpu.memory_space<vmem>>, vector<1x1x1x3x256xbf16>
      %85 = vector.shape_cast %84 : vector<1x1x1x3x256xbf16> to vector<3x256xbf16>
      %c10 = arith.constant 10 : index
      %c0_85 = arith.constant 0 : index
      %c0_86 = arith.constant 0 : index
      %86 = vector.load %arg3[%c10, %c0_85, %c0_86] : memref<16x256x256xbf16, #tpu.memory_space<vmem>>, vector<1x256x256xbf16>
      %87 = vector.shape_cast %86 : vector<1x256x256xbf16> to vector<256x256xbf16>
      %cst_87 = arith.constant dense<0.000000e+00> : vector<3x256xf32>
      %88 = tpu.matmul %85, %87, %cst_87 {dimension_numbers = #tpu.dot_dimension_numbers<[1], [0], [0], [1], [0, 0, 1, 1], [], []>} : vector<3x256xbf16>, vector<256x256xbf16>, vector<3x256xf32> -> vector<3x256xf32>
      %89 = arith.addf %81, %88 : vector<3x256xf32>
      %c2_i32_88 = arith.constant 2 : i32
      %90 = arith.addi %arg5, %c2_i32_88 : i32
      %c0_89 = arith.constant 0 : index
      %c0_90 = arith.constant 0 : index
      %91 = arith.index_cast %90 : i32 to index
      %c3_91 = arith.constant 3 : index
      %c0_92 = arith.constant 0 : index
      %92 = vector.load %arg2[%c0_89, %c0_90, %91, %c3_91, %c0_92] : memref<1x1x6x6x256xbf16, #tpu.memory_space<vmem>>, vector<1x1x1x3x256xbf16>
      %93 = vector.shape_cast %92 : vector<1x1x1x3x256xbf16> to vector<3x256xbf16>
      %c11 = arith.constant 11 : index
      %c0_93 = arith.constant 0 : index
      %c0_94 = arith.constant 0 : index
      %94 = vector.load %arg3[%c11, %c0_93, %c0_94] : memref<16x256x256xbf16, #tpu.memory_space<vmem>>, vector<1x256x256xbf16>
      %95 = vector.shape_cast %94 : vector<1x256x256xbf16> to vector<256x256xbf16>
      %cst_95 = arith.constant dense<0.000000e+00> : vector<3x256xf32>
      %96 = tpu.matmul %93, %95, %cst_95 {dimension_numbers = #tpu.dot_dimension_numbers<[1], [0], [0], [1], [0, 0, 1, 1], [], []>} : vector<3x256xbf16>, vector<256x256xbf16>, vector<3x256xf32> -> vector<3x256xf32>
      %97 = arith.addf %89, %96 : vector<3x256xf32>
      %c3_i32_96 = arith.constant 3 : i32
      %98 = arith.addi %arg5, %c3_i32_96 : i32
      %c0_97 = arith.constant 0 : index
      %c0_98 = arith.constant 0 : index
      %99 = arith.index_cast %98 : i32 to index
      %c0_99 = arith.constant 0 : index
      %c0_100 = arith.constant 0 : index
      %100 = vector.load %arg2[%c0_97, %c0_98, %99, %c0_99, %c0_100] : memref<1x1x6x6x256xbf16, #tpu.memory_space<vmem>>, vector<1x1x1x3x256xbf16>
      %101 = vector.shape_cast %100 : vector<1x1x1x3x256xbf16> to vector<3x256xbf16>
      %c12 = arith.constant 12 : index
      %c0_101 = arith.constant 0 : index
      %c0_102 = arith.constant 0 : index
      %102 = vector.load %arg3[%c12, %c0_101, %c0_102] : memref<16x256x256xbf16, #tpu.memory_space<vmem>>, vector<1x256x256xbf16>
      %103 = vector.shape_cast %102 : vector<1x256x256xbf16> to vector<256x256xbf16>
      %cst_103 = arith.constant dense<0.000000e+00> : vector<3x256xf32>
      %104 = tpu.matmul %101, %103, %cst_103 {dimension_numbers = #tpu.dot_dimension_numbers<[1], [0], [0], [1], [0, 0, 1, 1], [], []>} : vector<3x256xbf16>, vector<256x256xbf16>, vector<3x256xf32> -> vector<3x256xf32>
      %105 = arith.addf %97, %104 : vector<3x256xf32>
      %c3_i32_104 = arith.constant 3 : i32
      %106 = arith.addi %arg5, %c3_i32_104 : i32
      %c0_105 = arith.constant 0 : index
      %c0_106 = arith.constant 0 : index
      %107 = arith.index_cast %106 : i32 to index
      %c1_107 = arith.constant 1 : index
      %c0_108 = arith.constant 0 : index
      %108 = vector.load %arg2[%c0_105, %c0_106, %107, %c1_107, %c0_108] : memref<1x1x6x6x256xbf16, #tpu.memory_space<vmem>>, vector<1x1x1x3x256xbf16>
      %109 = vector.shape_cast %108 : vector<1x1x1x3x256xbf16> to vector<3x256xbf16>
      %c13 = arith.constant 13 : index
      %c0_109 = arith.constant 0 : index
      %c0_110 = arith.constant 0 : index
      %110 = vector.load %arg3[%c13, %c0_109, %c0_110] : memref<16x256x256xbf16, #tpu.memory_space<vmem>>, vector<1x256x256xbf16>
      %111 = vector.shape_cast %110 : vector<1x256x256xbf16> to vector<256x256xbf16>
      %cst_111 = arith.constant dense<0.000000e+00> : vector<3x256xf32>
      %112 = tpu.matmul %109, %111, %cst_111 {dimension_numbers = #tpu.dot_dimension_numbers<[1], [0], [0], [1], [0, 0, 1, 1], [], []>} : vector<3x256xbf16>, vector<256x256xbf16>, vector<3x256xf32> -> vector<3x256xf32>
      %113 = arith.addf %105, %112 : vector<3x256xf32>
      %c3_i32_112 = arith.constant 3 : i32
      %114 = arith.addi %arg5, %c3_i32_112 : i32
      %c0_113 = arith.constant 0 : index
      %c0_114 = arith.constant 0 : index
      %115 = arith.index_cast %114 : i32 to index
      %c2_115 = arith.constant 2 : index
      %c0_116 = arith.constant 0 : index
      %116 = vector.load %arg2[%c0_113, %c0_114, %115, %c2_115, %c0_116] : memref<1x1x6x6x256xbf16, #tpu.memory_space<vmem>>, vector<1x1x1x3x256xbf16>
      %117 = vector.shape_cast %116 : vector<1x1x1x3x256xbf16> to vector<3x256xbf16>
      %c14 = arith.constant 14 : index
      %c0_117 = arith.constant 0 : index
      %c0_118 = arith.constant 0 : index
      %118 = vector.load %arg3[%c14, %c0_117, %c0_118] : memref<16x256x256xbf16, #tpu.memory_space<vmem>>, vector<1x256x256xbf16>
      %119 = vector.shape_cast %118 : vector<1x256x256xbf16> to vector<256x256xbf16>
      %cst_119 = arith.constant dense<0.000000e+00> : vector<3x256xf32>
      %120 = tpu.matmul %117, %119, %cst_119 {dimension_numbers = #tpu.dot_dimension_numbers<[1], [0], [0], [1], [0, 0, 1, 1], [], []>} : vector<3x256xbf16>, vector<256x256xbf16>, vector<3x256xf32> -> vector<3x256xf32>
      %121 = arith.addf %113, %120 : vector<3x256xf32>
      %c3_i32_120 = arith.constant 3 : i32
      %122 = arith.addi %arg5, %c3_i32_120 : i32
      %c0_121 = arith.constant 0 : index
      %c0_122 = arith.constant 0 : index
      %123 = arith.index_cast %122 : i32 to index
      %c3_123 = arith.constant 3 : index
      %c0_124 = arith.constant 0 : index
      %124 = vector.load %arg2[%c0_121, %c0_122, %123, %c3_123, %c0_124] : memref<1x1x6x6x256xbf16, #tpu.memory_space<vmem>>, vector<1x1x1x3x256xbf16>
      %125 = vector.shape_cast %124 : vector<1x1x1x3x256xbf16> to vector<3x256xbf16>
      %c15 = arith.constant 15 : index
      %c0_125 = arith.constant 0 : index
      %c0_126 = arith.constant 0 : index
      %126 = vector.load %arg3[%c15, %c0_125, %c0_126] : memref<16x256x256xbf16, #tpu.memory_space<vmem>>, vector<1x256x256xbf16>
      %127 = vector.shape_cast %126 : vector<1x256x256xbf16> to vector<256x256xbf16>
      %cst_127 = arith.constant dense<0.000000e+00> : vector<3x256xf32>
      %128 = tpu.matmul %125, %127, %cst_127 {dimension_numbers = #tpu.dot_dimension_numbers<[1], [0], [0], [1], [0, 0, 1, 1], [], []>} : vector<3x256xbf16>, vector<256x256xbf16>, vector<3x256xf32> -> vector<3x256xf32>
      %129 = arith.addf %121, %128 : vector<3x256xf32>
      %cst_128 = arith.constant 0.000000e+00 : f32
      %130 = vector.broadcast %cst_128 : f32 to vector<3x256xf32>
      %131 = arith.cmpf oge, %129, %130 : vector<3x256xf32>
      %cst_129 = arith.constant 2.000000e-01 : f32
      %132 = vector.broadcast %cst_129 : f32 to vector<3x256xf32>
      %133 = arith.mulf %132, %129 : vector<3x256xf32>
      %134 = arith.select %131, %129, %133 : vector<3x256xi1>, vector<3x256xf32>
      %135 = arith.truncf %134 : vector<3x256xf32> to vector<3x256xbf16>
      %c0_130 = arith.constant 0 : index
      %136 = arith.index_cast %arg5 : i32 to index
      %c0_131 = arith.constant 0 : index
      %c0_132 = arith.constant 0 : index
      %137 = vector.load %arg4[%c0_130, %136, %c0_131, %c0_132] : memref<1x3x3x256xbf16, #tpu.memory_space<vmem>>, vector<1x1x3x256xbf16>
      %138 = vector.shape_cast %137 : vector<1x1x3x256xbf16> to vector<3x256xbf16>
      %139 = vector.shape_cast %135 : vector<3x256xbf16> to vector<1x1x3x256xbf16>
      tpu.vector_store %arg4[%c0_130, %136, %c0_131, %c0_132], %139 {strides = array<i32>} : memref<1x3x3x256xbf16, #tpu.memory_space<vmem>>, vector<1x1x3x256xbf16>,
    }
    %c3_i32_0 = arith.constant 3 : i32
    return
  }
  func.func @transform_0(%arg0: i32, %arg1: i32) -> (i32, i32, i32, i32, i32) {
    %c0_i32 = arith.constant 0 : i32
    %c0_i32_0 = arith.constant 0 : i32
    %c0_i32_1 = arith.constant 0 : i32
    %c0_i32_2 = arith.constant 0 : i32
    %c0_i32_3 = arith.constant 0 : i32
    return %arg0, %c0_i32, %c0_i32_0, %c0_i32_1, %c0_i32_2 : i32, i32, i32, i32, i32
  }
  func.func @transform_1(%arg0: i32, %arg1: i32) -> (i32, i32, i32) {
    %c0_i32 = arith.constant 0 : i32
    %c0_i32_0 = arith.constant 0 : i32
    %c0_i32_1 = arith.constant 0 : i32
    return %c0_i32, %c0_i32_0, %arg1 : i32, i32, i32
  }
  func.func @transform_2(%arg0: i32, %arg1: i32) -> (i32, i32, i32, i32) {
    %c0_i32 = arith.constant 0 : i32
    %c0_i32_0 = arith.constant 0 : i32
    %c0_i32_1 = arith.constant 0 : i32
    return %arg0, %c0_i32, %c0_i32_0, %arg1 : i32, i32, i32, i32
  }
}

module attributes {stable_mosaic.version = 11 : i64} {
  func.func @_conv_tap_kernel(%arg0: i32, %arg1: i32, %arg2: memref<1x4x5x5x128xbf16, #tpu.memory_space<vmem>>, %arg3: memref<16x128x256xbf16, #tpu.memory_space<vmem>>, %arg4: memref<1x4x4x256xbf16, #tpu.memory_space<vmem>>) attributes {dimension_semantics = [#tpu.dimension_semantics<parallel>, #tpu.dimension_semantics<parallel>], iteration_bounds = array<i64: 2, 1>, scalar_prefetch = 0 : i64, scratch_operands = 0 : i64, tpu.core_type = #tpu.core_type<tc>, window_params = [{transform_indices = @transform_0, window_bounds = array<i64: 1, 4, 5, 5, 128>}, {transform_indices = @transform_1, window_bounds = array<i64: 16, 128, 256>}, {transform_indices = @transform_2, window_bounds = array<i64: 1, 4, 4, 256>}]} {
    %c0_i32 = arith.constant 0 : i32
    %c4_i32 = arith.constant 4 : i32
    %0 = arith.addi %c0_i32, %c4_i32 : i32
    %c1_i32 = arith.constant 1 : i32
    scf.for %arg5 = %c0_i32 to %0 step %c1_i32  : i32 {
      %cst = arith.constant 0.000000e+00 : f32
      %1 = vector.broadcast %cst : f32 to vector<4x256xf32>
      %c0_i32_1 = arith.constant 0 : i32
      %2 = arith.addi %arg5, %c0_i32_1 : i32
      %c0 = arith.constant 0 : index
      %c0_2 = arith.constant 0 : index
      %3 = arith.index_cast %2 : i32 to index
      %c0_3 = arith.constant 0 : index
      %c0_4 = arith.constant 0 : index
      %4 = vector.load %arg2[%c0, %c0_2, %3, %c0_3, %c0_4] : memref<1x4x5x5x128xbf16, #tpu.memory_space<vmem>>, vector<1x1x1x4x128xbf16>
      %5 = vector.shape_cast %4 : vector<1x1x1x4x128xbf16> to vector<4x128xbf16>
      %c0_5 = arith.constant 0 : index
      %c0_6 = arith.constant 0 : index
      %c0_7 = arith.constant 0 : index
      %6 = vector.load %arg3[%c0_5, %c0_6, %c0_7] : memref<16x128x256xbf16, #tpu.memory_space<vmem>>, vector<1x128x256xbf16>
      %7 = vector.shape_cast %6 : vector<1x128x256xbf16> to vector<128x256xbf16>
      %cst_8 = arith.constant dense<0.000000e+00> : vector<4x256xf32>
      %8 = tpu.matmul %5, %7, %cst_8 {dimension_numbers = #tpu.dot_dimension_numbers<[1], [0], [0], [1], [0, 0, 1, 1], [], []>} : vector<4x128xbf16>, vector<128x256xbf16>, vector<4x256xf32> -> vector<4x256xf32>
      %9 = arith.addf %1, %8 : vector<4x256xf32>
      %c0_i32_9 = arith.constant 0 : i32
      %10 = arith.addi %arg5, %c0_i32_9 : i32
      %c0_10 = arith.constant 0 : index
      %c1 = arith.constant 1 : index
      %11 = arith.index_cast %10 : i32 to index
      %c0_11 = arith.constant 0 : index
      %c0_12 = arith.constant 0 : index
      %12 = vector.load %arg2[%c0_10, %c1, %11, %c0_11, %c0_12] : memref<1x4x5x5x128xbf16, #tpu.memory_space<vmem>>, vector<1x1x1x4x128xbf16>
      %13 = vector.shape_cast %12 : vector<1x1x1x4x128xbf16> to vector<4x128xbf16>
      %c1_13 = arith.constant 1 : index
      %c0_14 = arith.constant 0 : index
      %c0_15 = arith.constant 0 : index
      %14 = vector.load %arg3[%c1_13, %c0_14, %c0_15] : memref<16x128x256xbf16, #tpu.memory_space<vmem>>, vector<1x128x256xbf16>
      %15 = vector.shape_cast %14 : vector<1x128x256xbf16> to vector<128x256xbf16>
      %cst_16 = arith.constant dense<0.000000e+00> : vector<4x256xf32>
      %16 = tpu.matmul %13, %15, %cst_16 {dimension_numbers = #tpu.dot_dimension_numbers<[1], [0], [0], [1], [0, 0, 1, 1], [], []>} : vector<4x128xbf16>, vector<128x256xbf16>, vector<4x256xf32> -> vector<4x256xf32>
      %17 = arith.addf %9, %16 : vector<4x256xf32>
      %c0_i32_17 = arith.constant 0 : i32
      %18 = arith.addi %arg5, %c0_i32_17 : i32
      %c0_18 = arith.constant 0 : index
      %c0_19 = arith.constant 0 : index
      %19 = arith.index_cast %18 : i32 to index
      %c1_20 = arith.constant 1 : index
      %c0_21 = arith.constant 0 : index
      %20 = vector.load %arg2[%c0_18, %c0_19, %19, %c1_20, %c0_21] : memref<1x4x5x5x128xbf16, #tpu.memory_space<vmem>>, vector<1x1x1x4x128xbf16>
      %21 = vector.shape_cast %20 : vector<1x1x1x4x128xbf16> to vector<4x128xbf16>
      %c2 = arith.constant 2 : index
      %c0_22 = arith.constant 0 : index
      %c0_23 = arith.constant 0 : index
      %22 = vector.load %arg3[%c2, %c0_22, %c0_23] : memref<16x128x256xbf16, #tpu.memory_space<vmem>>, vector<1x128x256xbf16>
      %23 = vector.shape_cast %22 : vector<1x128x256xbf16> to vector<128x256xbf16>
      %cst_24 = arith.constant dense<0.000000e+00> : vector<4x256xf32>
      %24 = tpu.matmul %21, %23, %cst_24 {dimension_numbers = #tpu.dot_dimension_numbers<[1], [0], [0], [1], [0, 0, 1, 1], [], []>} : vector<4x128xbf16>, vector<128x256xbf16>, vector<4x256xf32> -> vector<4x256xf32>
      %25 = arith.addf %17, %24 : vector<4x256xf32>
      %c0_i32_25 = arith.constant 0 : i32
      %26 = arith.addi %arg5, %c0_i32_25 : i32
      %c0_26 = arith.constant 0 : index
      %c1_27 = arith.constant 1 : index
      %27 = arith.index_cast %26 : i32 to index
      %c1_28 = arith.constant 1 : index
      %c0_29 = arith.constant 0 : index
      %28 = vector.load %arg2[%c0_26, %c1_27, %27, %c1_28, %c0_29] : memref<1x4x5x5x128xbf16, #tpu.memory_space<vmem>>, vector<1x1x1x4x128xbf16>
      %29 = vector.shape_cast %28 : vector<1x1x1x4x128xbf16> to vector<4x128xbf16>
      %c3 = arith.constant 3 : index
      %c0_30 = arith.constant 0 : index
      %c0_31 = arith.constant 0 : index
      %30 = vector.load %arg3[%c3, %c0_30, %c0_31] : memref<16x128x256xbf16, #tpu.memory_space<vmem>>, vector<1x128x256xbf16>
      %31 = vector.shape_cast %30 : vector<1x128x256xbf16> to vector<128x256xbf16>
      %cst_32 = arith.constant dense<0.000000e+00> : vector<4x256xf32>
      %32 = tpu.matmul %29, %31, %cst_32 {dimension_numbers = #tpu.dot_dimension_numbers<[1], [0], [0], [1], [0, 0, 1, 1], [], []>} : vector<4x128xbf16>, vector<128x256xbf16>, vector<4x256xf32> -> vector<4x256xf32>
      %33 = arith.addf %25, %32 : vector<4x256xf32>
      %c0_i32_33 = arith.constant 0 : i32
      %34 = arith.addi %arg5, %c0_i32_33 : i32
      %c0_34 = arith.constant 0 : index
      %c2_35 = arith.constant 2 : index
      %35 = arith.index_cast %34 : i32 to index
      %c0_36 = arith.constant 0 : index
      %c0_37 = arith.constant 0 : index
      %36 = vector.load %arg2[%c0_34, %c2_35, %35, %c0_36, %c0_37] : memref<1x4x5x5x128xbf16, #tpu.memory_space<vmem>>, vector<1x1x1x4x128xbf16>
      %37 = vector.shape_cast %36 : vector<1x1x1x4x128xbf16> to vector<4x128xbf16>
      %c4 = arith.constant 4 : index
      %c0_38 = arith.constant 0 : index
      %c0_39 = arith.constant 0 : index
      %38 = vector.load %arg3[%c4, %c0_38, %c0_39] : memref<16x128x256xbf16, #tpu.memory_space<vmem>>, vector<1x128x256xbf16>
      %39 = vector.shape_cast %38 : vector<1x128x256xbf16> to vector<128x256xbf16>
      %cst_40 = arith.constant dense<0.000000e+00> : vector<4x256xf32>
      %40 = tpu.matmul %37, %39, %cst_40 {dimension_numbers = #tpu.dot_dimension_numbers<[1], [0], [0], [1], [0, 0, 1, 1], [], []>} : vector<4x128xbf16>, vector<128x256xbf16>, vector<4x256xf32> -> vector<4x256xf32>
      %41 = arith.addf %33, %40 : vector<4x256xf32>
      %c0_i32_41 = arith.constant 0 : i32
      %42 = arith.addi %arg5, %c0_i32_41 : i32
      %c0_42 = arith.constant 0 : index
      %c3_43 = arith.constant 3 : index
      %43 = arith.index_cast %42 : i32 to index
      %c0_44 = arith.constant 0 : index
      %c0_45 = arith.constant 0 : index
      %44 = vector.load %arg2[%c0_42, %c3_43, %43, %c0_44, %c0_45] : memref<1x4x5x5x128xbf16, #tpu.memory_space<vmem>>, vector<1x1x1x4x128xbf16>
      %45 = vector.shape_cast %44 : vector<1x1x1x4x128xbf16> to vector<4x128xbf16>
      %c5 = arith.constant 5 : index
      %c0_46 = arith.constant 0 : index
      %c0_47 = arith.constant 0 : index
      %46 = vector.load %arg3[%c5, %c0_46, %c0_47] : memref<16x128x256xbf16, #tpu.memory_space<vmem>>, vector<1x128x256xbf16>
      %47 = vector.shape_cast %46 : vector<1x128x256xbf16> to vector<128x256xbf16>
      %cst_48 = arith.constant dense<0.000000e+00> : vector<4x256xf32>
      %48 = tpu.matmul %45, %47, %cst_48 {dimension_numbers = #tpu.dot_dimension_numbers<[1], [0], [0], [1], [0, 0, 1, 1], [], []>} : vector<4x128xbf16>, vector<128x256xbf16>, vector<4x256xf32> -> vector<4x256xf32>
      %49 = arith.addf %41, %48 : vector<4x256xf32>
      %c0_i32_49 = arith.constant 0 : i32
      %50 = arith.addi %arg5, %c0_i32_49 : i32
      %c0_50 = arith.constant 0 : index
      %c2_51 = arith.constant 2 : index
      %51 = arith.index_cast %50 : i32 to index
      %c1_52 = arith.constant 1 : index
      %c0_53 = arith.constant 0 : index
      %52 = vector.load %arg2[%c0_50, %c2_51, %51, %c1_52, %c0_53] : memref<1x4x5x5x128xbf16, #tpu.memory_space<vmem>>, vector<1x1x1x4x128xbf16>
      %53 = vector.shape_cast %52 : vector<1x1x1x4x128xbf16> to vector<4x128xbf16>
      %c6 = arith.constant 6 : index
      %c0_54 = arith.constant 0 : index
      %c0_55 = arith.constant 0 : index
      %54 = vector.load %arg3[%c6, %c0_54, %c0_55] : memref<16x128x256xbf16, #tpu.memory_space<vmem>>, vector<1x128x256xbf16>
      %55 = vector.shape_cast %54 : vector<1x128x256xbf16> to vector<128x256xbf16>
      %cst_56 = arith.constant dense<0.000000e+00> : vector<4x256xf32>
      %56 = tpu.matmul %53, %55, %cst_56 {dimension_numbers = #tpu.dot_dimension_numbers<[1], [0], [0], [1], [0, 0, 1, 1], [], []>} : vector<4x128xbf16>, vector<128x256xbf16>, vector<4x256xf32> -> vector<4x256xf32>
      %57 = arith.addf %49, %56 : vector<4x256xf32>
      %c0_i32_57 = arith.constant 0 : i32
      %58 = arith.addi %arg5, %c0_i32_57 : i32
      %c0_58 = arith.constant 0 : index
      %c3_59 = arith.constant 3 : index
      %59 = arith.index_cast %58 : i32 to index
      %c1_60 = arith.constant 1 : index
      %c0_61 = arith.constant 0 : index
      %60 = vector.load %arg2[%c0_58, %c3_59, %59, %c1_60, %c0_61] : memref<1x4x5x5x128xbf16, #tpu.memory_space<vmem>>, vector<1x1x1x4x128xbf16>
      %61 = vector.shape_cast %60 : vector<1x1x1x4x128xbf16> to vector<4x128xbf16>
      %c7 = arith.constant 7 : index
      %c0_62 = arith.constant 0 : index
      %c0_63 = arith.constant 0 : index
      %62 = vector.load %arg3[%c7, %c0_62, %c0_63] : memref<16x128x256xbf16, #tpu.memory_space<vmem>>, vector<1x128x256xbf16>
      %63 = vector.shape_cast %62 : vector<1x128x256xbf16> to vector<128x256xbf16>
      %cst_64 = arith.constant dense<0.000000e+00> : vector<4x256xf32>
      %64 = tpu.matmul %61, %63, %cst_64 {dimension_numbers = #tpu.dot_dimension_numbers<[1], [0], [0], [1], [0, 0, 1, 1], [], []>} : vector<4x128xbf16>, vector<128x256xbf16>, vector<4x256xf32> -> vector<4x256xf32>
      %65 = arith.addf %57, %64 : vector<4x256xf32>
      %c1_i32_65 = arith.constant 1 : i32
      %66 = arith.addi %arg5, %c1_i32_65 : i32
      %c0_66 = arith.constant 0 : index
      %c0_67 = arith.constant 0 : index
      %67 = arith.index_cast %66 : i32 to index
      %c0_68 = arith.constant 0 : index
      %c0_69 = arith.constant 0 : index
      %68 = vector.load %arg2[%c0_66, %c0_67, %67, %c0_68, %c0_69] : memref<1x4x5x5x128xbf16, #tpu.memory_space<vmem>>, vector<1x1x1x4x128xbf16>
      %69 = vector.shape_cast %68 : vector<1x1x1x4x128xbf16> to vector<4x128xbf16>
      %c8 = arith.constant 8 : index
      %c0_70 = arith.constant 0 : index
      %c0_71 = arith.constant 0 : index
      %70 = vector.load %arg3[%c8, %c0_70, %c0_71] : memref<16x128x256xbf16, #tpu.memory_space<vmem>>, vector<1x128x256xbf16>
      %71 = vector.shape_cast %70 : vector<1x128x256xbf16> to vector<128x256xbf16>
      %cst_72 = arith.constant dense<0.000000e+00> : vector<4x256xf32>
      %72 = tpu.matmul %69, %71, %cst_72 {dimension_numbers = #tpu.dot_dimension_numbers<[1], [0], [0], [1], [0, 0, 1, 1], [], []>} : vector<4x128xbf16>, vector<128x256xbf16>, vector<4x256xf32> -> vector<4x256xf32>
      %73 = arith.addf %65, %72 : vector<4x256xf32>
      %c1_i32_73 = arith.constant 1 : i32
      %74 = arith.addi %arg5, %c1_i32_73 : i32
      %c0_74 = arith.constant 0 : index
      %c1_75 = arith.constant 1 : index
      %75 = arith.index_cast %74 : i32 to index
      %c0_76 = arith.constant 0 : index
      %c0_77 = arith.constant 0 : index
      %76 = vector.load %arg2[%c0_74, %c1_75, %75, %c0_76, %c0_77] : memref<1x4x5x5x128xbf16, #tpu.memory_space<vmem>>, vector<1x1x1x4x128xbf16>
      %77 = vector.shape_cast %76 : vector<1x1x1x4x128xbf16> to vector<4x128xbf16>
      %c9 = arith.constant 9 : index
      %c0_78 = arith.constant 0 : index
      %c0_79 = arith.constant 0 : index
      %78 = vector.load %arg3[%c9, %c0_78, %c0_79] : memref<16x128x256xbf16, #tpu.memory_space<vmem>>, vector<1x128x256xbf16>
      %79 = vector.shape_cast %78 : vector<1x128x256xbf16> to vector<128x256xbf16>
      %cst_80 = arith.constant dense<0.000000e+00> : vector<4x256xf32>
      %80 = tpu.matmul %77, %79, %cst_80 {dimension_numbers = #tpu.dot_dimension_numbers<[1], [0], [0], [1], [0, 0, 1, 1], [], []>} : vector<4x128xbf16>, vector<128x256xbf16>, vector<4x256xf32> -> vector<4x256xf32>
      %81 = arith.addf %73, %80 : vector<4x256xf32>
      %c1_i32_81 = arith.constant 1 : i32
      %82 = arith.addi %arg5, %c1_i32_81 : i32
      %c0_82 = arith.constant 0 : index
      %c0_83 = arith.constant 0 : index
      %83 = arith.index_cast %82 : i32 to index
      %c1_84 = arith.constant 1 : index
      %c0_85 = arith.constant 0 : index
      %84 = vector.load %arg2[%c0_82, %c0_83, %83, %c1_84, %c0_85] : memref<1x4x5x5x128xbf16, #tpu.memory_space<vmem>>, vector<1x1x1x4x128xbf16>
      %85 = vector.shape_cast %84 : vector<1x1x1x4x128xbf16> to vector<4x128xbf16>
      %c10 = arith.constant 10 : index
      %c0_86 = arith.constant 0 : index
      %c0_87 = arith.constant 0 : index
      %86 = vector.load %arg3[%c10, %c0_86, %c0_87] : memref<16x128x256xbf16, #tpu.memory_space<vmem>>, vector<1x128x256xbf16>
      %87 = vector.shape_cast %86 : vector<1x128x256xbf16> to vector<128x256xbf16>
      %cst_88 = arith.constant dense<0.000000e+00> : vector<4x256xf32>
      %88 = tpu.matmul %85, %87, %cst_88 {dimension_numbers = #tpu.dot_dimension_numbers<[1], [0], [0], [1], [0, 0, 1, 1], [], []>} : vector<4x128xbf16>, vector<128x256xbf16>, vector<4x256xf32> -> vector<4x256xf32>
      %89 = arith.addf %81, %88 : vector<4x256xf32>
      %c1_i32_89 = arith.constant 1 : i32
      %90 = arith.addi %arg5, %c1_i32_89 : i32
      %c0_90 = arith.constant 0 : index
      %c1_91 = arith.constant 1 : index
      %91 = arith.index_cast %90 : i32 to index
      %c1_92 = arith.constant 1 : index
      %c0_93 = arith.constant 0 : index
      %92 = vector.load %arg2[%c0_90, %c1_91, %91, %c1_92, %c0_93] : memref<1x4x5x5x128xbf16, #tpu.memory_space<vmem>>, vector<1x1x1x4x128xbf16>
      %93 = vector.shape_cast %92 : vector<1x1x1x4x128xbf16> to vector<4x128xbf16>
      %c11 = arith.constant 11 : index
      %c0_94 = arith.constant 0 : index
      %c0_95 = arith.constant 0 : index
      %94 = vector.load %arg3[%c11, %c0_94, %c0_95] : memref<16x128x256xbf16, #tpu.memory_space<vmem>>, vector<1x128x256xbf16>
      %95 = vector.shape_cast %94 : vector<1x128x256xbf16> to vector<128x256xbf16>
      %cst_96 = arith.constant dense<0.000000e+00> : vector<4x256xf32>
      %96 = tpu.matmul %93, %95, %cst_96 {dimension_numbers = #tpu.dot_dimension_numbers<[1], [0], [0], [1], [0, 0, 1, 1], [], []>} : vector<4x128xbf16>, vector<128x256xbf16>, vector<4x256xf32> -> vector<4x256xf32>
      %97 = arith.addf %89, %96 : vector<4x256xf32>
      %c1_i32_97 = arith.constant 1 : i32
      %98 = arith.addi %arg5, %c1_i32_97 : i32
      %c0_98 = arith.constant 0 : index
      %c2_99 = arith.constant 2 : index
      %99 = arith.index_cast %98 : i32 to index
      %c0_100 = arith.constant 0 : index
      %c0_101 = arith.constant 0 : index
      %100 = vector.load %arg2[%c0_98, %c2_99, %99, %c0_100, %c0_101] : memref<1x4x5x5x128xbf16, #tpu.memory_space<vmem>>, vector<1x1x1x4x128xbf16>
      %101 = vector.shape_cast %100 : vector<1x1x1x4x128xbf16> to vector<4x128xbf16>
      %c12 = arith.constant 12 : index
      %c0_102 = arith.constant 0 : index
      %c0_103 = arith.constant 0 : index
      %102 = vector.load %arg3[%c12, %c0_102, %c0_103] : memref<16x128x256xbf16, #tpu.memory_space<vmem>>, vector<1x128x256xbf16>
      %103 = vector.shape_cast %102 : vector<1x128x256xbf16> to vector<128x256xbf16>
      %cst_104 = arith.constant dense<0.000000e+00> : vector<4x256xf32>
      %104 = tpu.matmul %101, %103, %cst_104 {dimension_numbers = #tpu.dot_dimension_numbers<[1], [0], [0], [1], [0, 0, 1, 1], [], []>} : vector<4x128xbf16>, vector<128x256xbf16>, vector<4x256xf32> -> vector<4x256xf32>
      %105 = arith.addf %97, %104 : vector<4x256xf32>
      %c1_i32_105 = arith.constant 1 : i32
      %106 = arith.addi %arg5, %c1_i32_105 : i32
      %c0_106 = arith.constant 0 : index
      %c3_107 = arith.constant 3 : index
      %107 = arith.index_cast %106 : i32 to index
      %c0_108 = arith.constant 0 : index
      %c0_109 = arith.constant 0 : index
      %108 = vector.load %arg2[%c0_106, %c3_107, %107, %c0_108, %c0_109] : memref<1x4x5x5x128xbf16, #tpu.memory_space<vmem>>, vector<1x1x1x4x128xbf16>
      %109 = vector.shape_cast %108 : vector<1x1x1x4x128xbf16> to vector<4x128xbf16>
      %c13 = arith.constant 13 : index
      %c0_110 = arith.constant 0 : index
      %c0_111 = arith.constant 0 : index
      %110 = vector.load %arg3[%c13, %c0_110, %c0_111] : memref<16x128x256xbf16, #tpu.memory_space<vmem>>, vector<1x128x256xbf16>
      %111 = vector.shape_cast %110 : vector<1x128x256xbf16> to vector<128x256xbf16>
      %cst_112 = arith.constant dense<0.000000e+00> : vector<4x256xf32>
      %112 = tpu.matmul %109, %111, %cst_112 {dimension_numbers = #tpu.dot_dimension_numbers<[1], [0], [0], [1], [0, 0, 1, 1], [], []>} : vector<4x128xbf16>, vector<128x256xbf16>, vector<4x256xf32> -> vector<4x256xf32>
      %113 = arith.addf %105, %112 : vector<4x256xf32>
      %c1_i32_113 = arith.constant 1 : i32
      %114 = arith.addi %arg5, %c1_i32_113 : i32
      %c0_114 = arith.constant 0 : index
      %c2_115 = arith.constant 2 : index
      %115 = arith.index_cast %114 : i32 to index
      %c1_116 = arith.constant 1 : index
      %c0_117 = arith.constant 0 : index
      %116 = vector.load %arg2[%c0_114, %c2_115, %115, %c1_116, %c0_117] : memref<1x4x5x5x128xbf16, #tpu.memory_space<vmem>>, vector<1x1x1x4x128xbf16>
      %117 = vector.shape_cast %116 : vector<1x1x1x4x128xbf16> to vector<4x128xbf16>
      %c14 = arith.constant 14 : index
      %c0_118 = arith.constant 0 : index
      %c0_119 = arith.constant 0 : index
      %118 = vector.load %arg3[%c14, %c0_118, %c0_119] : memref<16x128x256xbf16, #tpu.memory_space<vmem>>, vector<1x128x256xbf16>
      %119 = vector.shape_cast %118 : vector<1x128x256xbf16> to vector<128x256xbf16>
      %cst_120 = arith.constant dense<0.000000e+00> : vector<4x256xf32>
      %120 = tpu.matmul %117, %119, %cst_120 {dimension_numbers = #tpu.dot_dimension_numbers<[1], [0], [0], [1], [0, 0, 1, 1], [], []>} : vector<4x128xbf16>, vector<128x256xbf16>, vector<4x256xf32> -> vector<4x256xf32>
      %121 = arith.addf %113, %120 : vector<4x256xf32>
      %c1_i32_121 = arith.constant 1 : i32
      %122 = arith.addi %arg5, %c1_i32_121 : i32
      %c0_122 = arith.constant 0 : index
      %c3_123 = arith.constant 3 : index
      %123 = arith.index_cast %122 : i32 to index
      %c1_124 = arith.constant 1 : index
      %c0_125 = arith.constant 0 : index
      %124 = vector.load %arg2[%c0_122, %c3_123, %123, %c1_124, %c0_125] : memref<1x4x5x5x128xbf16, #tpu.memory_space<vmem>>, vector<1x1x1x4x128xbf16>
      %125 = vector.shape_cast %124 : vector<1x1x1x4x128xbf16> to vector<4x128xbf16>
      %c15 = arith.constant 15 : index
      %c0_126 = arith.constant 0 : index
      %c0_127 = arith.constant 0 : index
      %126 = vector.load %arg3[%c15, %c0_126, %c0_127] : memref<16x128x256xbf16, #tpu.memory_space<vmem>>, vector<1x128x256xbf16>
      %127 = vector.shape_cast %126 : vector<1x128x256xbf16> to vector<128x256xbf16>
      %cst_128 = arith.constant dense<0.000000e+00> : vector<4x256xf32>
      %128 = tpu.matmul %125, %127, %cst_128 {dimension_numbers = #tpu.dot_dimension_numbers<[1], [0], [0], [1], [0, 0, 1, 1], [], []>} : vector<4x128xbf16>, vector<128x256xbf16>, vector<4x256xf32> -> vector<4x256xf32>
      %129 = arith.addf %121, %128 : vector<4x256xf32>
      %cst_129 = arith.constant 0.000000e+00 : f32
      %130 = vector.broadcast %cst_129 : f32 to vector<4x256xf32>
      %131 = arith.cmpf oge, %129, %130 : vector<4x256xf32>
      %cst_130 = arith.constant 2.000000e-01 : f32
      %132 = vector.broadcast %cst_130 : f32 to vector<4x256xf32>
      %133 = arith.mulf %132, %129 : vector<4x256xf32>
      %134 = arith.select %131, %129, %133 : vector<4x256xi1>, vector<4x256xf32>
      %135 = arith.truncf %134 : vector<4x256xf32> to vector<4x256xbf16>
      %c0_131 = arith.constant 0 : index
      %136 = arith.index_cast %arg5 : i32 to index
      %c0_132 = arith.constant 0 : index
      %c0_133 = arith.constant 0 : index
      %137 = vector.load %arg4[%c0_131, %136, %c0_132, %c0_133] : memref<1x4x4x256xbf16, #tpu.memory_space<vmem>>, vector<1x1x4x256xbf16>
      %138 = vector.shape_cast %137 : vector<1x1x4x256xbf16> to vector<4x256xbf16>
      %139 = vector.shape_cast %135 : vector<4x256xbf16> to vector<1x1x4x256xbf16>
      tpu.vector_store %arg4[%c0_131, %136, %c0_132, %c0_133], %139 {strides = array<i32>} : memref<1x4x4x256xbf16, #tpu.memory_space<vmem>>, vector<1x1x4x256xbf16>,
    }
    %c4_i32_0 = arith.constant 4 : i32
    return
  }
  func.func @transform_0(%arg0: i32, %arg1: i32) -> (i32, i32, i32, i32, i32) {
    %c0_i32 = arith.constant 0 : i32
    %c0_i32_0 = arith.constant 0 : i32
    %c0_i32_1 = arith.constant 0 : i32
    %c0_i32_2 = arith.constant 0 : i32
    %c0_i32_3 = arith.constant 0 : i32
    return %arg0, %c0_i32, %c0_i32_0, %c0_i32_1, %c0_i32_2 : i32, i32, i32, i32, i32
  }
  func.func @transform_1(%arg0: i32, %arg1: i32) -> (i32, i32, i32) {
    %c0_i32 = arith.constant 0 : i32
    %c0_i32_0 = arith.constant 0 : i32
    %c0_i32_1 = arith.constant 0 : i32
    return %c0_i32, %c0_i32_0, %arg1 : i32, i32, i32
  }
  func.func @transform_2(%arg0: i32, %arg1: i32) -> (i32, i32, i32, i32) {
    %c0_i32 = arith.constant 0 : i32
    %c0_i32_0 = arith.constant 0 : i32
    %c0_i32_1 = arith.constant 0 : i32
    return %arg0, %c0_i32, %c0_i32_0, %arg1 : i32, i32, i32, i32
  }
}

module attributes {stable_mosaic.version = 11 : i64} {
  func.func @_conv_tap_kernel(%arg0: i32, %arg1: i32, %arg2: memref<1x1x5x5x512xbf16, #tpu.memory_space<vmem>>, %arg3: memref<16x512x128xbf16, #tpu.memory_space<vmem>>, %arg4: memref<1x2x2x128xf32, #tpu.memory_space<vmem>>) attributes {dimension_semantics = [#tpu.dimension_semantics<parallel>, #tpu.dimension_semantics<parallel>], iteration_bounds = array<i64: 2, 1>, scalar_prefetch = 0 : i64, scratch_operands = 0 : i64, tpu.core_type = #tpu.core_type<tc>, window_params = [{transform_indices = @transform_0, window_bounds = array<i64: 1, 1, 5, 5, 512>}, {transform_indices = @transform_1, window_bounds = array<i64: 16, 512, 128>}, {transform_indices = @transform_2, window_bounds = array<i64: 1, 2, 2, 128>}]} {
    %c0_i32 = arith.constant 0 : i32
    %c2_i32 = arith.constant 2 : i32
    %0 = arith.addi %c0_i32, %c2_i32 : i32
    %c1_i32 = arith.constant 1 : i32
    scf.for %arg5 = %c0_i32 to %0 step %c1_i32  : i32 {
      %cst = arith.constant 0.000000e+00 : f32
      %1 = vector.broadcast %cst : f32 to vector<2x128xf32>
      %c0_i32_1 = arith.constant 0 : i32
      %2 = arith.addi %arg5, %c0_i32_1 : i32
      %c0 = arith.constant 0 : index
      %c0_2 = arith.constant 0 : index
      %3 = arith.index_cast %2 : i32 to index
      %c0_3 = arith.constant 0 : index
      %c0_4 = arith.constant 0 : index
      %4 = vector.load %arg2[%c0, %c0_2, %3, %c0_3, %c0_4] : memref<1x1x5x5x512xbf16, #tpu.memory_space<vmem>>, vector<1x1x1x2x512xbf16>
      %5 = vector.shape_cast %4 : vector<1x1x1x2x512xbf16> to vector<2x512xbf16>
      %c0_5 = arith.constant 0 : index
      %c0_6 = arith.constant 0 : index
      %c0_7 = arith.constant 0 : index
      %6 = vector.load %arg3[%c0_5, %c0_6, %c0_7] : memref<16x512x128xbf16, #tpu.memory_space<vmem>>, vector<1x512x128xbf16>
      %7 = vector.shape_cast %6 : vector<1x512x128xbf16> to vector<512x128xbf16>
      %cst_8 = arith.constant dense<0.000000e+00> : vector<2x128xf32>
      %8 = tpu.matmul %5, %7, %cst_8 {dimension_numbers = #tpu.dot_dimension_numbers<[1], [0], [0], [1], [0, 0, 1, 1], [], []>} : vector<2x512xbf16>, vector<512x128xbf16>, vector<2x128xf32> -> vector<2x128xf32>
      %9 = arith.addf %1, %8 : vector<2x128xf32>
      %c0_i32_9 = arith.constant 0 : i32
      %10 = arith.addi %arg5, %c0_i32_9 : i32
      %c0_10 = arith.constant 0 : index
      %c0_11 = arith.constant 0 : index
      %11 = arith.index_cast %10 : i32 to index
      %c1 = arith.constant 1 : index
      %c0_12 = arith.constant 0 : index
      %12 = vector.load %arg2[%c0_10, %c0_11, %11, %c1, %c0_12] : memref<1x1x5x5x512xbf16, #tpu.memory_space<vmem>>, vector<1x1x1x2x512xbf16>
      %13 = vector.shape_cast %12 : vector<1x1x1x2x512xbf16> to vector<2x512xbf16>
      %c1_13 = arith.constant 1 : index
      %c0_14 = arith.constant 0 : index
      %c0_15 = arith.constant 0 : index
      %14 = vector.load %arg3[%c1_13, %c0_14, %c0_15] : memref<16x512x128xbf16, #tpu.memory_space<vmem>>, vector<1x512x128xbf16>
      %15 = vector.shape_cast %14 : vector<1x512x128xbf16> to vector<512x128xbf16>
      %cst_16 = arith.constant dense<0.000000e+00> : vector<2x128xf32>
      %16 = tpu.matmul %13, %15, %cst_16 {dimension_numbers = #tpu.dot_dimension_numbers<[1], [0], [0], [1], [0, 0, 1, 1], [], []>} : vector<2x512xbf16>, vector<512x128xbf16>, vector<2x128xf32> -> vector<2x128xf32>
      %17 = arith.addf %9, %16 : vector<2x128xf32>
      %c0_i32_17 = arith.constant 0 : i32
      %18 = arith.addi %arg5, %c0_i32_17 : i32
      %c0_18 = arith.constant 0 : index
      %c0_19 = arith.constant 0 : index
      %19 = arith.index_cast %18 : i32 to index
      %c2 = arith.constant 2 : index
      %c0_20 = arith.constant 0 : index
      %20 = vector.load %arg2[%c0_18, %c0_19, %19, %c2, %c0_20] : memref<1x1x5x5x512xbf16, #tpu.memory_space<vmem>>, vector<1x1x1x2x512xbf16>
      %21 = vector.shape_cast %20 : vector<1x1x1x2x512xbf16> to vector<2x512xbf16>
      %c2_21 = arith.constant 2 : index
      %c0_22 = arith.constant 0 : index
      %c0_23 = arith.constant 0 : index
      %22 = vector.load %arg3[%c2_21, %c0_22, %c0_23] : memref<16x512x128xbf16, #tpu.memory_space<vmem>>, vector<1x512x128xbf16>
      %23 = vector.shape_cast %22 : vector<1x512x128xbf16> to vector<512x128xbf16>
      %cst_24 = arith.constant dense<0.000000e+00> : vector<2x128xf32>
      %24 = tpu.matmul %21, %23, %cst_24 {dimension_numbers = #tpu.dot_dimension_numbers<[1], [0], [0], [1], [0, 0, 1, 1], [], []>} : vector<2x512xbf16>, vector<512x128xbf16>, vector<2x128xf32> -> vector<2x128xf32>
      %25 = arith.addf %17, %24 : vector<2x128xf32>
      %c0_i32_25 = arith.constant 0 : i32
      %26 = arith.addi %arg5, %c0_i32_25 : i32
      %c0_26 = arith.constant 0 : index
      %c0_27 = arith.constant 0 : index
      %27 = arith.index_cast %26 : i32 to index
      %c3 = arith.constant 3 : index
      %c0_28 = arith.constant 0 : index
      %28 = vector.load %arg2[%c0_26, %c0_27, %27, %c3, %c0_28] : memref<1x1x5x5x512xbf16, #tpu.memory_space<vmem>>, vector<1x1x1x2x512xbf16>
      %29 = vector.shape_cast %28 : vector<1x1x1x2x512xbf16> to vector<2x512xbf16>
      %c3_29 = arith.constant 3 : index
      %c0_30 = arith.constant 0 : index
      %c0_31 = arith.constant 0 : index
      %30 = vector.load %arg3[%c3_29, %c0_30, %c0_31] : memref<16x512x128xbf16, #tpu.memory_space<vmem>>, vector<1x512x128xbf16>
      %31 = vector.shape_cast %30 : vector<1x512x128xbf16> to vector<512x128xbf16>
      %cst_32 = arith.constant dense<0.000000e+00> : vector<2x128xf32>
      %32 = tpu.matmul %29, %31, %cst_32 {dimension_numbers = #tpu.dot_dimension_numbers<[1], [0], [0], [1], [0, 0, 1, 1], [], []>} : vector<2x512xbf16>, vector<512x128xbf16>, vector<2x128xf32> -> vector<2x128xf32>
      %33 = arith.addf %25, %32 : vector<2x128xf32>
      %c1_i32_33 = arith.constant 1 : i32
      %34 = arith.addi %arg5, %c1_i32_33 : i32
      %c0_34 = arith.constant 0 : index
      %c0_35 = arith.constant 0 : index
      %35 = arith.index_cast %34 : i32 to index
      %c0_36 = arith.constant 0 : index
      %c0_37 = arith.constant 0 : index
      %36 = vector.load %arg2[%c0_34, %c0_35, %35, %c0_36, %c0_37] : memref<1x1x5x5x512xbf16, #tpu.memory_space<vmem>>, vector<1x1x1x2x512xbf16>
      %37 = vector.shape_cast %36 : vector<1x1x1x2x512xbf16> to vector<2x512xbf16>
      %c4 = arith.constant 4 : index
      %c0_38 = arith.constant 0 : index
      %c0_39 = arith.constant 0 : index
      %38 = vector.load %arg3[%c4, %c0_38, %c0_39] : memref<16x512x128xbf16, #tpu.memory_space<vmem>>, vector<1x512x128xbf16>
      %39 = vector.shape_cast %38 : vector<1x512x128xbf16> to vector<512x128xbf16>
      %cst_40 = arith.constant dense<0.000000e+00> : vector<2x128xf32>
      %40 = tpu.matmul %37, %39, %cst_40 {dimension_numbers = #tpu.dot_dimension_numbers<[1], [0], [0], [1], [0, 0, 1, 1], [], []>} : vector<2x512xbf16>, vector<512x128xbf16>, vector<2x128xf32> -> vector<2x128xf32>
      %41 = arith.addf %33, %40 : vector<2x128xf32>
      %c1_i32_41 = arith.constant 1 : i32
      %42 = arith.addi %arg5, %c1_i32_41 : i32
      %c0_42 = arith.constant 0 : index
      %c0_43 = arith.constant 0 : index
      %43 = arith.index_cast %42 : i32 to index
      %c1_44 = arith.constant 1 : index
      %c0_45 = arith.constant 0 : index
      %44 = vector.load %arg2[%c0_42, %c0_43, %43, %c1_44, %c0_45] : memref<1x1x5x5x512xbf16, #tpu.memory_space<vmem>>, vector<1x1x1x2x512xbf16>
      %45 = vector.shape_cast %44 : vector<1x1x1x2x512xbf16> to vector<2x512xbf16>
      %c5 = arith.constant 5 : index
      %c0_46 = arith.constant 0 : index
      %c0_47 = arith.constant 0 : index
      %46 = vector.load %arg3[%c5, %c0_46, %c0_47] : memref<16x512x128xbf16, #tpu.memory_space<vmem>>, vector<1x512x128xbf16>
      %47 = vector.shape_cast %46 : vector<1x512x128xbf16> to vector<512x128xbf16>
      %cst_48 = arith.constant dense<0.000000e+00> : vector<2x128xf32>
      %48 = tpu.matmul %45, %47, %cst_48 {dimension_numbers = #tpu.dot_dimension_numbers<[1], [0], [0], [1], [0, 0, 1, 1], [], []>} : vector<2x512xbf16>, vector<512x128xbf16>, vector<2x128xf32> -> vector<2x128xf32>
      %49 = arith.addf %41, %48 : vector<2x128xf32>
      %c1_i32_49 = arith.constant 1 : i32
      %50 = arith.addi %arg5, %c1_i32_49 : i32
      %c0_50 = arith.constant 0 : index
      %c0_51 = arith.constant 0 : index
      %51 = arith.index_cast %50 : i32 to index
      %c2_52 = arith.constant 2 : index
      %c0_53 = arith.constant 0 : index
      %52 = vector.load %arg2[%c0_50, %c0_51, %51, %c2_52, %c0_53] : memref<1x1x5x5x512xbf16, #tpu.memory_space<vmem>>, vector<1x1x1x2x512xbf16>
      %53 = vector.shape_cast %52 : vector<1x1x1x2x512xbf16> to vector<2x512xbf16>
      %c6 = arith.constant 6 : index
      %c0_54 = arith.constant 0 : index
      %c0_55 = arith.constant 0 : index
      %54 = vector.load %arg3[%c6, %c0_54, %c0_55] : memref<16x512x128xbf16, #tpu.memory_space<vmem>>, vector<1x512x128xbf16>
      %55 = vector.shape_cast %54 : vector<1x512x128xbf16> to vector<512x128xbf16>
      %cst_56 = arith.constant dense<0.000000e+00> : vector<2x128xf32>
      %56 = tpu.matmul %53, %55, %cst_56 {dimension_numbers = #tpu.dot_dimension_numbers<[1], [0], [0], [1], [0, 0, 1, 1], [], []>} : vector<2x512xbf16>, vector<512x128xbf16>, vector<2x128xf32> -> vector<2x128xf32>
      %57 = arith.addf %49, %56 : vector<2x128xf32>
      %c1_i32_57 = arith.constant 1 : i32
      %58 = arith.addi %arg5, %c1_i32_57 : i32
      %c0_58 = arith.constant 0 : index
      %c0_59 = arith.constant 0 : index
      %59 = arith.index_cast %58 : i32 to index
      %c3_60 = arith.constant 3 : index
      %c0_61 = arith.constant 0 : index
      %60 = vector.load %arg2[%c0_58, %c0_59, %59, %c3_60, %c0_61] : memref<1x1x5x5x512xbf16, #tpu.memory_space<vmem>>, vector<1x1x1x2x512xbf16>
      %61 = vector.shape_cast %60 : vector<1x1x1x2x512xbf16> to vector<2x512xbf16>
      %c7 = arith.constant 7 : index
      %c0_62 = arith.constant 0 : index
      %c0_63 = arith.constant 0 : index
      %62 = vector.load %arg3[%c7, %c0_62, %c0_63] : memref<16x512x128xbf16, #tpu.memory_space<vmem>>, vector<1x512x128xbf16>
      %63 = vector.shape_cast %62 : vector<1x512x128xbf16> to vector<512x128xbf16>
      %cst_64 = arith.constant dense<0.000000e+00> : vector<2x128xf32>
      %64 = tpu.matmul %61, %63, %cst_64 {dimension_numbers = #tpu.dot_dimension_numbers<[1], [0], [0], [1], [0, 0, 1, 1], [], []>} : vector<2x512xbf16>, vector<512x128xbf16>, vector<2x128xf32> -> vector<2x128xf32>
      %65 = arith.addf %57, %64 : vector<2x128xf32>
      %c2_i32_65 = arith.constant 2 : i32
      %66 = arith.addi %arg5, %c2_i32_65 : i32
      %c0_66 = arith.constant 0 : index
      %c0_67 = arith.constant 0 : index
      %67 = arith.index_cast %66 : i32 to index
      %c0_68 = arith.constant 0 : index
      %c0_69 = arith.constant 0 : index
      %68 = vector.load %arg2[%c0_66, %c0_67, %67, %c0_68, %c0_69] : memref<1x1x5x5x512xbf16, #tpu.memory_space<vmem>>, vector<1x1x1x2x512xbf16>
      %69 = vector.shape_cast %68 : vector<1x1x1x2x512xbf16> to vector<2x512xbf16>
      %c8 = arith.constant 8 : index
      %c0_70 = arith.constant 0 : index
      %c0_71 = arith.constant 0 : index
      %70 = vector.load %arg3[%c8, %c0_70, %c0_71] : memref<16x512x128xbf16, #tpu.memory_space<vmem>>, vector<1x512x128xbf16>
      %71 = vector.shape_cast %70 : vector<1x512x128xbf16> to vector<512x128xbf16>
      %cst_72 = arith.constant dense<0.000000e+00> : vector<2x128xf32>
      %72 = tpu.matmul %69, %71, %cst_72 {dimension_numbers = #tpu.dot_dimension_numbers<[1], [0], [0], [1], [0, 0, 1, 1], [], []>} : vector<2x512xbf16>, vector<512x128xbf16>, vector<2x128xf32> -> vector<2x128xf32>
      %73 = arith.addf %65, %72 : vector<2x128xf32>
      %c2_i32_73 = arith.constant 2 : i32
      %74 = arith.addi %arg5, %c2_i32_73 : i32
      %c0_74 = arith.constant 0 : index
      %c0_75 = arith.constant 0 : index
      %75 = arith.index_cast %74 : i32 to index
      %c1_76 = arith.constant 1 : index
      %c0_77 = arith.constant 0 : index
      %76 = vector.load %arg2[%c0_74, %c0_75, %75, %c1_76, %c0_77] : memref<1x1x5x5x512xbf16, #tpu.memory_space<vmem>>, vector<1x1x1x2x512xbf16>
      %77 = vector.shape_cast %76 : vector<1x1x1x2x512xbf16> to vector<2x512xbf16>
      %c9 = arith.constant 9 : index
      %c0_78 = arith.constant 0 : index
      %c0_79 = arith.constant 0 : index
      %78 = vector.load %arg3[%c9, %c0_78, %c0_79] : memref<16x512x128xbf16, #tpu.memory_space<vmem>>, vector<1x512x128xbf16>
      %79 = vector.shape_cast %78 : vector<1x512x128xbf16> to vector<512x128xbf16>
      %cst_80 = arith.constant dense<0.000000e+00> : vector<2x128xf32>
      %80 = tpu.matmul %77, %79, %cst_80 {dimension_numbers = #tpu.dot_dimension_numbers<[1], [0], [0], [1], [0, 0, 1, 1], [], []>} : vector<2x512xbf16>, vector<512x128xbf16>, vector<2x128xf32> -> vector<2x128xf32>
      %81 = arith.addf %73, %80 : vector<2x128xf32>
      %c2_i32_81 = arith.constant 2 : i32
      %82 = arith.addi %arg5, %c2_i32_81 : i32
      %c0_82 = arith.constant 0 : index
      %c0_83 = arith.constant 0 : index
      %83 = arith.index_cast %82 : i32 to index
      %c2_84 = arith.constant 2 : index
      %c0_85 = arith.constant 0 : index
      %84 = vector.load %arg2[%c0_82, %c0_83, %83, %c2_84, %c0_85] : memref<1x1x5x5x512xbf16, #tpu.memory_space<vmem>>, vector<1x1x1x2x512xbf16>
      %85 = vector.shape_cast %84 : vector<1x1x1x2x512xbf16> to vector<2x512xbf16>
      %c10 = arith.constant 10 : index
      %c0_86 = arith.constant 0 : index
      %c0_87 = arith.constant 0 : index
      %86 = vector.load %arg3[%c10, %c0_86, %c0_87] : memref<16x512x128xbf16, #tpu.memory_space<vmem>>, vector<1x512x128xbf16>
      %87 = vector.shape_cast %86 : vector<1x512x128xbf16> to vector<512x128xbf16>
      %cst_88 = arith.constant dense<0.000000e+00> : vector<2x128xf32>
      %88 = tpu.matmul %85, %87, %cst_88 {dimension_numbers = #tpu.dot_dimension_numbers<[1], [0], [0], [1], [0, 0, 1, 1], [], []>} : vector<2x512xbf16>, vector<512x128xbf16>, vector<2x128xf32> -> vector<2x128xf32>
      %89 = arith.addf %81, %88 : vector<2x128xf32>
      %c2_i32_89 = arith.constant 2 : i32
      %90 = arith.addi %arg5, %c2_i32_89 : i32
      %c0_90 = arith.constant 0 : index
      %c0_91 = arith.constant 0 : index
      %91 = arith.index_cast %90 : i32 to index
      %c3_92 = arith.constant 3 : index
      %c0_93 = arith.constant 0 : index
      %92 = vector.load %arg2[%c0_90, %c0_91, %91, %c3_92, %c0_93] : memref<1x1x5x5x512xbf16, #tpu.memory_space<vmem>>, vector<1x1x1x2x512xbf16>
      %93 = vector.shape_cast %92 : vector<1x1x1x2x512xbf16> to vector<2x512xbf16>
      %c11 = arith.constant 11 : index
      %c0_94 = arith.constant 0 : index
      %c0_95 = arith.constant 0 : index
      %94 = vector.load %arg3[%c11, %c0_94, %c0_95] : memref<16x512x128xbf16, #tpu.memory_space<vmem>>, vector<1x512x128xbf16>
      %95 = vector.shape_cast %94 : vector<1x512x128xbf16> to vector<512x128xbf16>
      %cst_96 = arith.constant dense<0.000000e+00> : vector<2x128xf32>
      %96 = tpu.matmul %93, %95, %cst_96 {dimension_numbers = #tpu.dot_dimension_numbers<[1], [0], [0], [1], [0, 0, 1, 1], [], []>} : vector<2x512xbf16>, vector<512x128xbf16>, vector<2x128xf32> -> vector<2x128xf32>
      %97 = arith.addf %89, %96 : vector<2x128xf32>
      %c3_i32 = arith.constant 3 : i32
      %98 = arith.addi %arg5, %c3_i32 : i32
      %c0_97 = arith.constant 0 : index
      %c0_98 = arith.constant 0 : index
      %99 = arith.index_cast %98 : i32 to index
      %c0_99 = arith.constant 0 : index
      %c0_100 = arith.constant 0 : index
      %100 = vector.load %arg2[%c0_97, %c0_98, %99, %c0_99, %c0_100] : memref<1x1x5x5x512xbf16, #tpu.memory_space<vmem>>, vector<1x1x1x2x512xbf16>
      %101 = vector.shape_cast %100 : vector<1x1x1x2x512xbf16> to vector<2x512xbf16>
      %c12 = arith.constant 12 : index
      %c0_101 = arith.constant 0 : index
      %c0_102 = arith.constant 0 : index
      %102 = vector.load %arg3[%c12, %c0_101, %c0_102] : memref<16x512x128xbf16, #tpu.memory_space<vmem>>, vector<1x512x128xbf16>
      %103 = vector.shape_cast %102 : vector<1x512x128xbf16> to vector<512x128xbf16>
      %cst_103 = arith.constant dense<0.000000e+00> : vector<2x128xf32>
      %104 = tpu.matmul %101, %103, %cst_103 {dimension_numbers = #tpu.dot_dimension_numbers<[1], [0], [0], [1], [0, 0, 1, 1], [], []>} : vector<2x512xbf16>, vector<512x128xbf16>, vector<2x128xf32> -> vector<2x128xf32>
      %105 = arith.addf %97, %104 : vector<2x128xf32>
      %c3_i32_104 = arith.constant 3 : i32
      %106 = arith.addi %arg5, %c3_i32_104 : i32
      %c0_105 = arith.constant 0 : index
      %c0_106 = arith.constant 0 : index
      %107 = arith.index_cast %106 : i32 to index
      %c1_107 = arith.constant 1 : index
      %c0_108 = arith.constant 0 : index
      %108 = vector.load %arg2[%c0_105, %c0_106, %107, %c1_107, %c0_108] : memref<1x1x5x5x512xbf16, #tpu.memory_space<vmem>>, vector<1x1x1x2x512xbf16>
      %109 = vector.shape_cast %108 : vector<1x1x1x2x512xbf16> to vector<2x512xbf16>
      %c13 = arith.constant 13 : index
      %c0_109 = arith.constant 0 : index
      %c0_110 = arith.constant 0 : index
      %110 = vector.load %arg3[%c13, %c0_109, %c0_110] : memref<16x512x128xbf16, #tpu.memory_space<vmem>>, vector<1x512x128xbf16>
      %111 = vector.shape_cast %110 : vector<1x512x128xbf16> to vector<512x128xbf16>
      %cst_111 = arith.constant dense<0.000000e+00> : vector<2x128xf32>
      %112 = tpu.matmul %109, %111, %cst_111 {dimension_numbers = #tpu.dot_dimension_numbers<[1], [0], [0], [1], [0, 0, 1, 1], [], []>} : vector<2x512xbf16>, vector<512x128xbf16>, vector<2x128xf32> -> vector<2x128xf32>
      %113 = arith.addf %105, %112 : vector<2x128xf32>
      %c3_i32_112 = arith.constant 3 : i32
      %114 = arith.addi %arg5, %c3_i32_112 : i32
      %c0_113 = arith.constant 0 : index
      %c0_114 = arith.constant 0 : index
      %115 = arith.index_cast %114 : i32 to index
      %c2_115 = arith.constant 2 : index
      %c0_116 = arith.constant 0 : index
      %116 = vector.load %arg2[%c0_113, %c0_114, %115, %c2_115, %c0_116] : memref<1x1x5x5x512xbf16, #tpu.memory_space<vmem>>, vector<1x1x1x2x512xbf16>
      %117 = vector.shape_cast %116 : vector<1x1x1x2x512xbf16> to vector<2x512xbf16>
      %c14 = arith.constant 14 : index
      %c0_117 = arith.constant 0 : index
      %c0_118 = arith.constant 0 : index
      %118 = vector.load %arg3[%c14, %c0_117, %c0_118] : memref<16x512x128xbf16, #tpu.memory_space<vmem>>, vector<1x512x128xbf16>
      %119 = vector.shape_cast %118 : vector<1x512x128xbf16> to vector<512x128xbf16>
      %cst_119 = arith.constant dense<0.000000e+00> : vector<2x128xf32>
      %120 = tpu.matmul %117, %119, %cst_119 {dimension_numbers = #tpu.dot_dimension_numbers<[1], [0], [0], [1], [0, 0, 1, 1], [], []>} : vector<2x512xbf16>, vector<512x128xbf16>, vector<2x128xf32> -> vector<2x128xf32>
      %121 = arith.addf %113, %120 : vector<2x128xf32>
      %c3_i32_120 = arith.constant 3 : i32
      %122 = arith.addi %arg5, %c3_i32_120 : i32
      %c0_121 = arith.constant 0 : index
      %c0_122 = arith.constant 0 : index
      %123 = arith.index_cast %122 : i32 to index
      %c3_123 = arith.constant 3 : index
      %c0_124 = arith.constant 0 : index
      %124 = vector.load %arg2[%c0_121, %c0_122, %123, %c3_123, %c0_124] : memref<1x1x5x5x512xbf16, #tpu.memory_space<vmem>>, vector<1x1x1x2x512xbf16>
      %125 = vector.shape_cast %124 : vector<1x1x1x2x512xbf16> to vector<2x512xbf16>
      %c15 = arith.constant 15 : index
      %c0_125 = arith.constant 0 : index
      %c0_126 = arith.constant 0 : index
      %126 = vector.load %arg3[%c15, %c0_125, %c0_126] : memref<16x512x128xbf16, #tpu.memory_space<vmem>>, vector<1x512x128xbf16>
      %127 = vector.shape_cast %126 : vector<1x512x128xbf16> to vector<512x128xbf16>
      %cst_127 = arith.constant dense<0.000000e+00> : vector<2x128xf32>
      %128 = tpu.matmul %125, %127, %cst_127 {dimension_numbers = #tpu.dot_dimension_numbers<[1], [0], [0], [1], [0, 0, 1, 1], [], []>} : vector<2x512xbf16>, vector<512x128xbf16>, vector<2x128xf32> -> vector<2x128xf32>
      %129 = arith.addf %121, %128 : vector<2x128xf32>
      %c0_128 = arith.constant 0 : index
      %130 = arith.index_cast %arg5 : i32 to index
      %c0_129 = arith.constant 0 : index
      %c0_130 = arith.constant 0 : index
      %131 = vector.load %arg4[%c0_128, %130, %c0_129, %c0_130] : memref<1x2x2x128xf32, #tpu.memory_space<vmem>>, vector<1x1x2x128xf32>
      %132 = vector.shape_cast %131 : vector<1x1x2x128xf32> to vector<2x128xf32>
      %133 = vector.shape_cast %129 : vector<2x128xf32> to vector<1x1x2x128xf32>
      tpu.vector_store %arg4[%c0_128, %130, %c0_129, %c0_130], %133 {strides = array<i32>} : memref<1x2x2x128xf32, #tpu.memory_space<vmem>>, vector<1x1x2x128xf32>,
    }
    %c2_i32_0 = arith.constant 2 : i32
    return
  }
  func.func @transform_0(%arg0: i32, %arg1: i32) -> (i32, i32, i32, i32, i32) {
    %c0_i32 = arith.constant 0 : i32
    %c0_i32_0 = arith.constant 0 : i32
    %c0_i32_1 = arith.constant 0 : i32
    %c0_i32_2 = arith.constant 0 : i32
    %c0_i32_3 = arith.constant 0 : i32
    return %arg0, %c0_i32, %c0_i32_0, %c0_i32_1, %c0_i32_2 : i32, i32, i32, i32, i32
  }
  func.func @transform_1(%arg0: i32, %arg1: i32) -> (i32, i32, i32) {
    %c0_i32 = arith.constant 0 : i32
    %c0_i32_0 = arith.constant 0 : i32
    %c0_i32_1 = arith.constant 0 : i32
    return %c0_i32, %c0_i32_0, %arg1 : i32, i32, i32
  }
  func.func @transform_2(%arg0: i32, %arg1: i32) -> (i32, i32, i32, i32) {
    %c0_i32 = arith.constant 0 : i32
    %c0_i32_0 = arith.constant 0 : i32
    %c0_i32_1 = arith.constant 0 : i32
    return %arg0, %c0_i32, %c0_i32_0, %arg1 : i32, i32, i32, i32
  }
}

</mosaic_0001>

<bundles_post_ra>
// kernel: discriminator_forward.5
= control target key start
LH: loop header
LB: loop body
LE: loop exit
PB: predicated region body
PF: predicated region fallthrough
CT: control target
= control target key end

     0   :  { %7 = vsyncpa [#allocation3], 0  ;;  %s1805_s9 = smov 0   ;;  %s1807_s10 = smov 0   ;;  %s1994_s0 = inlined_call_operand.vmem [shape: bf16[2,4,17,17,4], index: 0, kind: input, shape index: {}]   ;;  %s1995_s1 = inlined_call_operand.hbm [shape: bf16[16,4,64], index: 1, kind: input, shape index: {}]   ;;  %s1996_s2 = inlined_call_operand.vmem [shape: bf16[2,16,16,64], index: 2, kind: output, shape index: {}]  }
   0x1   :  { %s1809_s11 = smov 0  }
   0x2 LB: > { %s1420_s12 = sadd.s32 4294967295, %s1779_s11   ;;  %s25_s13 = sadd.s32 1, %s1775_s10  ;;  %s1779_s11 = sphi %s1809_s11, %s13_s11   ;;  %s1775_s10 = sphi %s1807_s10, %s2000_s10   ;;  %s1771_s9 = sphi %s1805_s9, %s1999_s9  }
   0x3   : > { %p27_p0 = scmp.ge.s32.totalorder %s25_s13, 2  ;;  %p1422_p1 = scmp.ge.s32.totalorder %s1779_s11, 1 }
   0x4   : > { %p110_p2 = scmp.lt.s32.totalorder %s1779_s11, 3  ;;  %p1830_p4 = scmp.eq.s32.totalorder %s1420_s12, 0 }
   0x5   : > { %s2002_s13 = smov (%p27_p0, %s25_s13), 0  ;;  %s1785_s16 = smov [#allocation2]  }
   0x6   : > { %p1826_p3 = pnand %p1422_p1, %p110_p2  ;;  %s124_s17 = sshll.u32 %s1785_s16, 4  ;;  %s125_s17 = int_to_ptr.vmem [resolvable:$true] %s124_s17 }
   0x7   : > { %s1734_s18 = scalar_lea.vmem %s125_s17, 512  ;;  %p1742_p11 = scmp.lt.s32.totalorder %s125_s17, %s125_s17 }
   0x8   : > { %p1656_p5 = pneg %p1826_p3  ;;  %p1735_p8 = scmp.ne.s32.totalorder %s125_s17, %s1734_s18 }
   0x9   : > { %p1743_p12 = scmp.lt.s32.totalorder %s1734_s18, %s1734_s18 }
   0xa   : > { %p1657_p6 = pnand %p1830_p4, %p1656_p5 }
   0xb   : > { %p1744_p13 = por %p1743_p12, %p1742_p11 }
   0xc   : > { %p1725_p7 = pneg %p1657_p6 }
   0xe   : > { %p1737_p9 = pnand %p1735_p8, %p1725_p7 }
  0x10   : > { %p1738_p10 = pneg %p1737_p9 }
  0x12   : > { %p1745_p0 = pnand %p1744_p13, %p1738_p10 }
  0x14   : > { %1748 = shalt.err (!%p1745_p0)
}
  0x15   : > { %s1786_s19 = smov 32   ;;  %s1787_s20 = smov 2  }
  0x16   : > { %1659 = dma.hbm_to_vmem [thread:$0]  (!%p1657_p6), %s1995_s1, 512, %s125_s17, [#allocation3], %s1786_s19, %s1786_s19, %s1787_s20  }
  0x17   : > { %148 = sbr.rel (%p1826_p3) target bundleno = 303 (0x12f), region = 28 }
  0x1c   : > { %1766 = dma.done.wait (%p1830_p4), [#allocation3], 512  }
  0x1d   : > { %1768 = vsyncadd (%p1830_p4), [#allocation3], 4294966784  ;;  %p173_p1 = scmp.lt.s32.totalorder %s1771_s9, 1  ;;  %s1859_s3 = smov 0  }
  0x1f   : > { %s2004_s9 = smov (!%p173_p1, %s1771_s9), 1 }
  0x20   : > { %s1651_s23 = smul.u32 816, %s2004_s9  ;;  %s1518_s24 = sshll.u32 %s2004_s9, 7 }
  0x21   : > { %s1852_s27 = scalar_lea.vmem %s1996_s2, %s1518_s24 }
  0x22   : > { %s1857_s30 = scalar_lea.vmem %s1994_s0, %s1651_s23 }
  0x23 LB: >> { %v205_v0 = vld [vmem:[#allocation2 + $0x2] sm:$0x3]  ;;  %vm215_vm0 = vcmask 1041408   ;;  %v198_v1 = vld [vmem:[#allocation2] sm:$0x3]  ;;  %v1788_v2 = vmov 0.0   ;;  %s1783_s3 = sphi %s1859_s3, %s192_s3  }
  0x24   : >> { %1555 = vmatprep.subr.bf16.mxu0 %v1788_v2  ;;  %v217_v3 = vsel %vm215_vm0, %v205_v0, 0  ;;  %1561 = vmatprep.subr.bf16.mxu1 %v1788_v2  ;;  %v269_v4 = vsel %vm215_vm0, %v198_v1, 0  ;;  %s1519_s4 = smul.u32 12, %s1783_s3  ;;  %v316_v5 = vld [vmem:[#allocation2 + $0x4] sm:$0x3]  ;;  %vm1789_vm1 = vmmov 0  }
  0x25   : >> { %1556 = vmatpush3.bf16.msra.mxu0 %v217_v3  ;;  %1562 = vmatpush3.bf16.msra.mxu1 %v269_v4  ;;  %v391_v6 = vld [vmem:[#allocation2 + $0x6] sm:$0x3]  ;;  %vm211_vm2 = vcmask 31744   ;;  %v342_v8 = vsel %vm215_vm0, %v316_v5, 0  ;;  %vm325_vm3 = vsmask.f32 7424 }
  0x26   : >> { %1557 = vmatprep.mubr.msk.bf16.mxu0 %vm1789_vm1, %v1788_v2  ;;  %1563 = vmatprep.mubr.msk.bf16.mxu1 %vm1789_vm1, %v1788_v2  ;;  %s1875_s5 = scalar_lea.vmem %s1857_s30, %s1519_s4  ;;  %v416_v10 = vsel %vm215_vm0, %v391_v6, 0  ;;  %v467_v18 = vld [vmem:[#allocation2 + $0x8] sm:$0x3]  ;;  %v528_v21 = vld [vmem:[#allocation2 + $0xa] sm:$0x3]  ;;  %s1522_s6 = sshll.u32 %s1783_s3, 3 }
  0x27   : >> { %1567 = vmatprep.subr.bf16.mxu0 %v1788_v2  ;;  %1573 = vmatprep.subr.bf16.mxu1 %v1788_v2  ;;  %v1699_v7 = vld [vmem:[%s1875_s5 + $0xcc] sm:$0xff]   ;;  %v1700_v9 = vld [vmem:[%s1875_s5] sm:$0xff]   ;;  %v1702_v12 = vld [vmem:[%s1875_s5 + $0x8] ss:$0 sps:$4 sm:$0x11]   ;;  %v477_v30 = vsel %vm215_vm0, %v467_v18, 0  ;;  %s1288_s7 = scalar_lea.vmem %s1852_s27, %s1522_s6 }
  0x28   : >> { %1558 = vmatmul.mubr.msk.bf16.vlgmr.msra.gmra.mxu0 %vm211_vm2, %v1699_v7  ;;  %1564 = vmatmul.mubr.msk.bf16.vlgmr.msra.gmra.mxu1 %vm211_vm2, %v1700_v9  ;;  %v1701_v11 = vld [vmem:[%s1875_s5] sm:$0xff]   ;;  %v1703_v13 = vld [vmem:[%s1875_s5 + $0xcc] sm:$0xff]   ;;  %v334_v16 = vshll.u32 %v1702_v12, 16  ;;  %v1704_v17 = vld [vmem:[%s1875_s5 + $0xd4] ss:$0 sps:$4 sm:$0x11]  }
  0x29   : >> { %1568 = vmatpush3.bf16.msra.mxu0 %v342_v8  ;;  %1574 = vmatpush3.bf16.msra.mxu1 %v416_v10  ;;  %v327_v14 = vshrl.u32 %v1701_v11, 16  ;;  %v329_v15 = vshll.u32 %v1701_v11, 16  ;;  %v401_v19 = vshrl.u32 %v1703_v13, 16  ;;  %v403_v20 = vshll.u32 %v1703_v13, 16  ;;  %v1707_v28 = vld [vmem:[%s1875_s5 + $0x198] sm:$0xff]   ;;  %v1709_v31 = vld [vmem:[%s1875_s5 + $0x264] sm:$0xff]  }
  0x2a   : >> { %1569 = vmatprep.mubr.msk.bf16.mxu0 %vm1789_vm1, %v1788_v2  ;;  %1575 = vmatprep.mubr.msk.bf16.mxu1 %vm1789_vm1, %v1788_v2  ;;  %v336_v23 = vrot.slane %v334_v16, 1  ;;  %v408_v24 = vshll.u32 %v1704_v17, 16  ;;  %v538_v33 = vsel %vm215_vm0, %v528_v21, 0  ;;  %v587_v35 = vld [vmem:[#allocation2 + $0xc] sm:$0x3]  ;;  %v599_v37 = vshll.u32 %v1707_v28, 16 }
  0x2b   : >> { %1579 = vmatprep.subr.bf16.mxu0 %v1788_v2  ;;  %1585 = vmatprep.subr.bf16.mxu1 %v1788_v2  ;;  %v331_v22 = vrot.slane %v329_v15, 1  ;;  %v405_v25 = vrot.slane %v403_v20, 1  ;;  %v1708_v36 = vld [vmem:[%s1875_s5 + $0x1a0] ss:$0 sps:$4 sm:$0x11]   ;;  %v673_v39 = vshll.u32 %v1709_v31, 16 }
  0x2c   : >> { %v410_v27 = vrot.slane %v408_v24, 1  ;;  %v1710_v38 = vld [vmem:[%s1875_s5 + $0x26c] ss:$0 sps:$4 sm:$0x11]   ;;  %v661_v40 = vld [vmem:[#allocation2 + $0xe] sm:$0x3] }
  0x2d   : >> { %v332_v26 = vor.u32 %v331_v22, %v327_v14  ;;  %v406_v29 = vor.u32 %v405_v25, %v401_v19  ;;  %v1705_v41 = vld [vmem:[%s1875_s5 + $0x198] sm:$0xff]   ;;  %v1706_v42 = vld [vmem:[%s1875_s5 + $0x264] sm:$0xff]   ;;  %v612_v43 = vsel %vm215_vm0, %v587_v35, 0  ;;  %v597_v44 = vshrl.u32 %v1707_v28, 16  ;;  %v738_v55 = vld [vmem:[#allocation2 + $0x10] sm:$0x3] }
  0x2e   : >> { %v601_v45 = vrot.slane %v599_v37, 1  ;;  %v604_v46 = vshll.u32 %v1708_v36, 16  ;;  %v671_v47 = vshrl.u32 %v1709_v31, 16  ;;  %v675_v48 = vrot.slane %v673_v39, 1  ;;  %v799_v56 = vld [vmem:[#allocation2 + $0x12] sm:$0x3] }
  0x2f   : >> { %v337_v32 = vsel %vm325_vm3, %v332_v26, %v336_v23  ;;  %v411_v34 = vsel %vm325_vm3, %v406_v29, %v410_v27  ;;  %v678_v49 = vshll.u32 %v1710_v38, 16  ;;  %v686_v50 = vsel %vm215_vm0, %v661_v40, 0  ;;  %v1713_v58 = vld [vmem:[%s1875_s5 + $0xc] sm:$0xff]   ;;  %v1715_v61 = vld [vmem:[%s1875_s5 + $0xd8] sm:$0xff]   ;;  %v858_v4 = vld [vmem:[#allocation2 + $0x14] sm:$0x3] }
  0x30   : >> { %1570 = vmatmul.mubr.msk.bf16.vlgmr.msra.gmra.mxu0 %vm211_vm2, %v337_v32  ;;  %1576 = vmatmul.mubr.msk.bf16.vlgmr.msra.gmra.mxu1 %vm211_vm2, %v411_v34  ;;  %v602_v51 = vor.u32 %v601_v45, %v597_v44  ;;  %v606_v52 = vrot.slane %v604_v46, 1  ;;  %v676_v53 = vor.u32 %v675_v48, %v671_v47  ;;  %v748_v60 = vsel %vm215_vm0, %v738_v55, 0  ;;  %v1714_v63 = vld [vmem:[%s1875_s5 + $0x14] ss:$0 sps:$4 sm:$0x11]   ;;  %v1711_v5 = vld [vmem:[%s1875_s5 + $0xc] sm:$0xff]  }
  0x31   : >> { %1580 = vmatpush3.bf16.msra.mxu0 %v477_v30  ;;  %1586 = vmatpush3.bf16.msra.mxu1 %v538_v33  ;;  %v680_v54 = vrot.slane %v678_v49, 1  ;;  %v809_v62 = vsel %vm215_vm0, %v799_v56, 0  ;;  %v870_v0 = vshll.u32 %v1713_v58, 16  ;;  %v1716_v1 = vld [vmem:[%s1875_s5 + $0xe0] ss:$0 sps:$4 sm:$0x11]  }
  0x32   : >> { %1581 = vmatprep.mubr.msk.bf16.mxu0 %vm1789_vm1, %v1788_v2  ;;  %1587 = vmatprep.mubr.msk.bf16.mxu1 %vm1789_vm1, %v1788_v2  ;;  %v607_v57 = vsel %vm325_vm3, %v602_v51, %v606_v52  ;;  %v944_v3 = vshll.u32 %v1715_v61, 16  ;;  %v932_v6 = vld [vmem:[#allocation2 + $0x16] sm:$0x3]  ;;  %v1712_v7 = vld [vmem:[%s1875_s5 + $0xd8] sm:$0xff]   ;;  %v868_v8 = vshrl.u32 %v1713_v58, 16  ;;  %v875_v10 = vshll.u32 %v1714_v63, 16 }
  0x33   : >> { %1591 = vmatprep.subr.bf16.mxu0 %v1788_v2  ;;  %1597 = vmatprep.subr.bf16.mxu1 %v1788_v2  ;;  %v681_v59 = vsel %vm325_vm3, %v676_v53, %v680_v54  ;;  %v872_v9 = vrot.slane %v870_v0, 1  ;;  %v883_v11 = vsel %vm215_vm0, %v858_v4, 0  ;;  %v942_v12 = vshrl.u32 %v1715_v61, 16  ;;  %v1008_v20 = vld [vmem:[#allocation2 + $0x18] sm:$0x3]  ;;  %v1719_v23 = vld [vmem:[%s1875_s5 + $0x1a4] sm:$0xff]  }
  0x34   : >> { %v946_v13 = vrot.slane %v944_v3, 1  ;;  %v949_v14 = vshll.u32 %v1716_v1, 16  ;;  %v957_v15 = vsel %vm215_vm0, %v932_v6, 0  ;;  %v877_v17 = vrot.slane %v875_v10, 1  ;;  %v1069_v21 = vld [vmem:[#allocation2 + $0x1a] sm:$0x3] }
  0x35   : >> { %v873_v16 = vor.u32 %v872_v9, %v868_v8  ;;  %v1018_v25 = vsel %vm215_vm0, %v1008_v20, 0  ;;  %v1721_v26 = vld [vmem:[%s1875_s5 + $0x270] sm:$0xff]   ;;  %v1079_v27 = vsel %vm215_vm0, %v1069_v21, 0  ;;  %v1720_v28 = vld [vmem:[%s1875_s5 + $0x1ac] ss:$0 sps:$4 sm:$0x11]  }
  0x36   : >> { %v947_v18 = vor.u32 %v946_v13, %v942_v12  ;;  %v951_v19 = vrot.slane %v949_v14, 1  ;;  %v1140_v29 = vshll.u32 %v1719_v23, 16  ;;  %v1722_v30 = vld [vmem:[%s1875_s5 + $0x278] ss:$0 sps:$4 sm:$0x11]   ;;  %v1214_v31 = vshll.u32 %v1721_v26, 16 }
  0x37   : >> { %v878_v22 = vsel %vm325_vm3, %v873_v16, %v877_v17  ;;  %v1128_v32 = vld [vmem:[#allocation2 + $0x1c] sm:$0x3]  ;;  %v1717_v33 = vld [vmem:[%s1875_s5 + $0x1a4] sm:$0xff]   ;;  %v1202_v34 = vld [vmem:[#allocation2 + $0x1e] sm:$0x3]  ;;  %v1138_v36 = vshrl.u32 %v1719_v23, 16 }
  0x38   : >> { %1582 = vmatmul.mubr.msk.bf16.vlgmr.msra.gmra.mxu0 %vm211_vm2, %v1705_v41  ;;  %1588 = vmatmul.mubr.msk.bf16.vlgmr.msra.gmra.mxu1 %vm211_vm2, %v1706_v42  ;;  %v952_v24 = vsel %vm325_vm3, %v947_v18, %v951_v19  ;;  %v1718_v35 = vld [vmem:[%s1875_s5 + $0x270] sm:$0xff]   ;;  %v1142_v37 = vrot.slane %v1140_v29, 1  ;;  %v1145_v38 = vshll.u32 %v1720_v28, 16  ;;  %v1153_v39 = vsel %vm215_vm0, %v1128_v32, 0  ;;  %s192_s3 = sadd.s32 1, %s1783_s3  }
  0x39   : >> { %1592 = vmatpush3.bf16.msra.mxu0 %v612_v43  ;;  %1598 = vmatpush3.bf16.msra.mxu1 %v686_v50  ;;  %v1212_v40 = vshrl.u32 %v1721_v26, 16  ;;  %v1216_v41 = vrot.slane %v1214_v31, 1  ;;  %v1219_v42 = vshll.u32 %v1722_v30, 16  ;;  %v1227_v43 = vsel %vm215_vm0, %v1202_v34, 0  ;;  %p189_p2 = scmp.ge.s32.totalorder %s192_s3, 16  }
  0x3a   : >> { %1593 = vmatprep.mubr.msk.bf16.mxu0 %vm1789_vm1, %v1788_v2  ;;  %1599 = vmatprep.mubr.msk.bf16.mxu1 %vm1789_vm1, %v1788_v2  ;;  %v1143_v44 = vor.u32 %v1142_v37, %v1138_v36  ;;  %v1147_v45 = vrot.slane %v1145_v38, 1  ;;  %vm1289_vm5 = vcmask 519168  }
  0x3b   : >> { %1603 = vmatprep.subr.bf16.mxu0 %v1788_v2  ;;  %1609 = vmatprep.subr.bf16.mxu1 %v1788_v2  ;;  %v1217_v46 = vor.u32 %v1216_v41, %v1212_v40  ;;  %v1221_v47 = vrot.slane %v1219_v42, 1 }
  0x3c   : >> { %v1148_v48 = vsel %vm325_vm3, %v1143_v44, %v1147_v45 }
  0x3d   : >> { %v1222_v49 = vsel %vm325_vm3, %v1217_v46, %v1221_v47 }
  0x40   : >> { %1594 = vmatmul.mubr.msk.bf16.vlgmr.msra.gmra.mxu0 %vm211_vm2, %v607_v57  ;;  %1600 = vmatmul.mubr.msk.bf16.vlgmr.msra.gmra.mxu1 %vm211_vm2, %v681_v59 }
  0x41   : >> { %1604 = vmatpush3.bf16.msra.mxu0 %v748_v60  ;;  %1610 = vmatpush3.bf16.msra.mxu1 %v809_v62 }
  0x42   : >> { %1605 = vmatprep.mubr.msk.bf16.mxu0 %vm1789_vm1, %v1788_v2  ;;  %1611 = vmatprep.mubr.msk.bf16.mxu1 %vm1789_vm1, %v1788_v2 }
  0x43   : >> { %1615 = vmatprep.subr.bf16.mxu0 %v1788_v2  ;;  %1621 = vmatprep.subr.bf16.mxu1 %v1788_v2 }
  0x48   : >> { %1606 = vmatmul.mubr.msk.bf16.vlgmr.msra.gmra.mxu0 %vm211_vm2, %v1711_v5  ;;  %1612 = vmatmul.mubr.msk.bf16.vlgmr.msra.gmra.mxu1 %vm211_vm2, %v1712_v7 }
  0x49   : >> { %1616 = vmatpush3.bf16.msra.mxu0 %v883_v11  ;;  %1622 = vmatpush3.bf16.msra.mxu1 %v957_v15 }
  0x4a   : >> { %1617 = vmatprep.mubr.msk.bf16.mxu0 %vm1789_vm1, %v1788_v2  ;;  %1623 = vmatprep.mubr.msk.bf16.mxu1 %vm1789_vm1, %v1788_v2 }
  0x4b   : >> { %1627 = vmatprep.subr.bf16.mxu0 %v1788_v2  ;;  %1633 = vmatprep.subr.bf16.mxu1 %v1788_v2 }
  0x50   : >> { %1618 = vmatmul.mubr.msk.bf16.vlgmr.msra.gmra.mxu0 %vm211_vm2, %v878_v22  ;;  %1624 = vmatmul.mubr.msk.bf16.vlgmr.msra.gmra.mxu1 %vm211_vm2, %v952_v24 }
  0x51   : >> { %1628 = vmatpush3.bf16.msra.mxu0 %v1018_v25  ;;  %1634 = vmatpush3.bf16.msra.mxu1 %v1079_v27 }
  0x52   : >> { %1629 = vmatprep.mubr.msk.bf16.mxu0 %vm1789_vm1, %v1788_v2  ;;  %1635 = vmatprep.mubr.msk.bf16.mxu1 %vm1789_vm1, %v1788_v2 }
  0x53   : >> { %1639 = vmatprep.subr.bf16.mxu0 %v1788_v2  ;;  %1645 = vmatprep.subr.bf16.mxu1 %v1788_v2 }
  0x58   : >> { %1630 = vmatmul.mubr.msk.bf16.vlgmr.msra.gmra.mxu0 %vm211_vm2, %v1717_v33  ;;  %1636 = vmatmul.mubr.msk.bf16.vlgmr.msra.gmra.mxu1 %vm211_vm2, %v1718_v35 }
  0x59   : >> { %1640 = vmatpush3.bf16.msra.mxu0 %v1153_v39  ;;  %1646 = vmatpush3.bf16.msra.mxu1 %v1227_v43 }
  0x5a   : >> { %1641 = vmatprep.mubr.msk.bf16.mxu0 %vm1789_vm1, %v1788_v2  ;;  %1647 = vmatprep.mubr.msk.bf16.mxu1 %vm1789_vm1, %v1788_v2 }
  0x60   : >> { %1642 = vmatmul.mubr.msk.bf16.vlgmr.msra.gmra.mxu0 %vm211_vm2, %v1148_v48  ;;  %1648 = vmatmul.mubr.msk.bf16.vlgmr.msra.gmra.mxu1 %vm211_vm2, %v1222_v49 }
  0xe8   : >> { %v253_v50 = vpop.f32.mrf.mxu0  ;;  %v305_v51 = vpop.f32.mrf.mxu1 }
  0xe9   : >> { %v306_v5 = vadd.f32 %v305_v51, %v253_v50 }
  0xea   : >> { %v1559_v52 = vpop.f32.mrf.mxu0  ;;  %v1565_v53 = vpop.f32.mrf.mxu1 }
  0xec   : >> { %v256_v54 = vpop.f32.mrf.mxu0  ;;  %v308_v55 = vpop.f32.mrf.mxu1 }
  0xed   : >> { %v309_v11 = vadd.f32 %v308_v55, %v256_v54 }
  0xee   : >> { %v1560_v56 = vpop.f32.mrf.mxu0  ;;  %v1566_v57 = vpop.f32.mrf.mxu1 }
  0xf0   : >> { %v378_v58 = vpop.f32.mrf.mxu0  ;;  %v452_v59 = vpop.f32.mrf.mxu1 }
  0xf1   : >> { %v385_v8 = vadd.f32 %v378_v58, %v306_v5 }
  0xf2   : >> { %v1571_v60 = vpop.f32.mrf.mxu0  ;;  %v1577_v2 = vpop.f32.mrf.mxu1 }
  0xf3   : >> { %v459_v14 = vadd.f32 %v452_v59, %v385_v8 }
  0xf4   : >> { %v381_v61 = vpop.f32.mrf.mxu0  ;;  %v455_v62 = vpop.f32.mrf.mxu1 }
  0xf5   : >> { %v386_v15 = vadd.f32 %v381_v61, %v309_v11 }
  0xf6   : >> { %v1572_v63 = vpop.f32.mrf.mxu0  ;;  %v1578_v0 = vpop.f32.mrf.mxu1 }
  0xf7   : >> { %v460_v21 = vadd.f32 %v455_v62, %v386_v15 }
  0xf8   : >> { %v513_v1 = vpop.f32.mrf.mxu0  ;;  %v574_v3 = vpop.f32.mrf.mxu1 }
  0xf9   : >> { %v520_v18 = vadd.f32 %v513_v1, %v459_v14 }
  0xfa   : >> { %v1583_v4 = vpop.f32.mrf.mxu0  ;;  %v1589_v6 = vpop.f32.mrf.mxu1 }
  0xfb   : >> { %v581_v24 = vadd.f32 %v574_v3, %v520_v18 }
  0xfc   : >> { %v516_v7 = vpop.f32.mrf.mxu0  ;;  %v577_v9 = vpop.f32.mrf.mxu1 }
  0xfd   : >> { %v521_v25 = vadd.f32 %v516_v7, %v460_v21 }
  0xfe   : >> { %v1584_v10 = vpop.f32.mrf.mxu0  ;;  %v1590_v12 = vpop.f32.mrf.mxu1 }
  0xff   : >> { %v582_v31 = vadd.f32 %v577_v9, %v521_v25 }
 0x100   : >> { %v648_v13 = vpop.f32.mrf.mxu0  ;;  %v722_v16 = vpop.f32.mrf.mxu1 }
 0x101   : >> { %v655_v28 = vadd.f32 %v648_v13, %v581_v24 }
 0x102   : >> { %v1595_v17 = vpop.f32.mrf.mxu0  ;;  %v1601_v19 = vpop.f32.mrf.mxu1 }
 0x103   : >> { %v729_v34 = vadd.f32 %v722_v16, %v655_v28 }
 0x104   : >> { %v651_v20 = vpop.f32.mrf.mxu0  ;;  %v725_v22 = vpop.f32.mrf.mxu1 }
 0x105   : >> { %v656_v35 = vadd.f32 %v651_v20, %v582_v31 }
 0x106   : >> { %v1596_v23 = vpop.f32.mrf.mxu0  ;;  %v1602_v26 = vpop.f32.mrf.mxu1 }
 0x107   : >> { %v730_v41 = vadd.f32 %v725_v22, %v656_v35 }
 0x108   : >> { %v784_v27 = vpop.f32.mrf.mxu0  ;;  %v845_v29 = vpop.f32.mrf.mxu1 }
 0x109   : >> { %v791_v38 = vadd.f32 %v784_v27, %v729_v34 }
 0x10a   : >> { %v1607_v30 = vpop.f32.mrf.mxu0  ;;  %v1613_v32 = vpop.f32.mrf.mxu1 }
 0x10b   : >> { %v852_v44 = vadd.f32 %v845_v29, %v791_v38 }
 0x10c   : >> { %v787_v33 = vpop.f32.mrf.mxu0  ;;  %v848_v36 = vpop.f32.mrf.mxu1 }
 0x10d   : >> { %v792_v45 = vadd.f32 %v787_v33, %v730_v41 }
 0x10e   : >> { %v1608_v37 = vpop.f32.mrf.mxu0  ;;  %v1614_v39 = vpop.f32.mrf.mxu1 }
 0x10f   : >> { %v853_v51 = vadd.f32 %v848_v36, %v792_v45 }
 0x110   : >> { %v919_v40 = vpop.f32.mrf.mxu0  ;;  %v993_v42 = vpop.f32.mrf.mxu1 }
 0x111   : >> { %v926_v48 = vadd.f32 %v919_v40, %v852_v44 }
 0x112   : >> { %v1619_v43 = vpop.f32.mrf.mxu0  ;;  %v1625_v46 = vpop.f32.mrf.mxu1 }
 0x113   : >> { %v1000_v54 = vadd.f32 %v993_v42, %v926_v48 }
 0x114   : >> { %v922_v47 = vpop.f32.mrf.mxu0  ;;  %v996_v49 = vpop.f32.mrf.mxu1 }
 0x115   : >> { %v927_v55 = vadd.f32 %v922_v47, %v853_v51 }
 0x116   : >> { %v1620_v50 = vpop.f32.mrf.mxu0  ;;  %v1626_v52 = vpop.f32.mrf.mxu1 }
 0x117   : >> { %v1001_v2 = vadd.f32 %v996_v49, %v927_v55 }
 0x118   : >> { %v1054_v53 = vpop.f32.mrf.mxu0  ;;  %v1115_v56 = vpop.f32.mrf.mxu1 }
 0x119   : >> { %v1061_v58 = vadd.f32 %v1054_v53, %v1000_v54 }
 0x11a   : >> { %v1631_v57 = vpop.f32.mrf.mxu0  ;;  %v1637_v59 = vpop.f32.mrf.mxu1 }
 0x11b   : >> { %v1122_v63 = vadd.f32 %v1115_v56, %v1061_v58 }
 0x11c   : >> { %v1057_v60 = vpop.f32.mrf.mxu0  ;;  %v1118_v61 = vpop.f32.mrf.mxu1 }
 0x11d   : >> { %v1062_v0 = vadd.f32 %v1057_v60, %v1001_v2 }
 0x11e   : >> { %v1632_v62 = vpop.f32.mrf.mxu0  ;;  %v1638_v1 = vpop.f32.mrf.mxu1 }
 0x11f   : >> { %v1123_v7 = vadd.f32 %v1118_v61, %v1062_v0 }
 0x120   : >> { %v1189_v3 = vpop.f32.mrf.mxu0  ;;  %v1263_v5 = vpop.f32.mrf.mxu1 }
 0x121   : >> { %v1196_v4 = vadd.f32 %v1189_v3, %v1122_v63 }
 0x122   : >> { %v1643_v6 = vpop.f32.mrf.mxu0  ;;  %v1649_v9 = vpop.f32.mrf.mxu1 }
 0x123   : >> { %v1270_v8 = vadd.f32 %v1263_v5, %v1196_v4 }
 0x124   : >> { %v1192_v10 = vpop.f32.mrf.mxu0  ;;  %v1266_v13 = vpop.f32.mrf.mxu1 }
 0x125   : >> { %vm1272_vm4 = vcmp.ge.f32.partialorder %v1270_v8, 0.0  ;;  %v1274_v11 = vmul.f32 0.2, %v1270_v8  ;;  %v1197_v12 = vadd.f32 %v1192_v10, %v1123_v7 }
 0x126   : >> { %v1644_v14 = vpop.f32.mrf.mxu0  ;;  %v1650_v17 = vpop.f32.mrf.mxu1 }
 0x127   : >> { %v1276_v15 = vsel %vm1272_vm4, %v1270_v8, %v1274_v11  ;;  %v1271_v16 = vadd.f32 %v1266_v13, %v1197_v12 }
 0x128   : >> { %v1520_v18 = vpack.c.bf16 %v1276_v15, %v1276_v15 }
 0x129   : >> { %vm1273_vm6 = vcmp.ge.f32.partialorder %v1271_v16, 0.0  ;;  %v1275_v19 = vmul.f32 0.2, %v1271_v16 }
 0x12a   : >> { %1290 = vst.msk [vmem:[%s1288_s7] sm:$0xf] %vm1289_vm5, %v1520_v18  ;;  %191 = sbr.rel (!%p189_p2) target bundleno = 35 (0x23), region = 95 }
 0x12b   : >> { %v1277_v20 = vsel %vm1273_vm6, %v1271_v16, %v1275_v19 }
 0x12c   : >> { %v1521_v21 = vpack.c.bf16 %v1277_v20, %v1277_v20 }
 0x12e   : >> { %1291 = vst.msk [vmem:[%s1288_s7 + $0x4] sm:$0xf] %vm1289_vm5, %v1521_v21 }
 0x12f PF: > { %s13_s11 = sadd.s32 1, %s1779_s11   ;;  %s1999_s9 = smov %s1775_s10 }
 0x130   : > { %p10_p3 = scmp.ge.s32.totalorder %s13_s11, 4   ;;  %s2000_s10 = smov %s2002_s13 }
 0x132   :  { %12 = sbr.rel (!%p10_p3) target bundleno = 2 (0x2), region = 106 }
 0x137   :  { %1319 = vsyncpa [#allocation3], 1 }
 0x138   :  { %1321 = vsyncpa [#allocation3 + $0x1], 1 }

// kernel: discriminator_forward.6
= control target key start
LH: loop header
LB: loop body
LE: loop exit
PB: predicated region body
PF: predicated region fallthrough
CT: control target
= control target key end

     0   :  { %7 = vsyncpa [#allocation3], 0  ;;  %s2322_s9 = smov 0   ;;  %s2324_s10 = smov 0   ;;  %s2527_s0 = inlined_call_operand.vmem [shape: bf16[2,4,9,9,64], index: 0, kind: input, shape index: {}]   ;;  %s2528_s1 = inlined_call_operand.hbm [shape: bf16[16,64,128], index: 1, kind: input, shape index: {}]   ;;  %s2529_s2 = inlined_call_operand.vmem [shape: bf16[2,8,8,128], index: 2, kind: output, shape index: {}]  }
   0x1   :  { %s2326_s11 = smov 0  }
   0x2 LB: > { %s1703_s12 = sadd.s32 4294967295, %s2296_s11   ;;  %s25_s13 = sadd.s32 1, %s2292_s10  ;;  %s2296_s11 = sphi %s2326_s11, %s13_s11   ;;  %s2292_s10 = sphi %s2324_s10, %s2533_s10   ;;  %s2288_s9 = sphi %s2322_s9, %s2532_s9  }
   0x3   : > { %p27_p0 = scmp.ge.s32.totalorder %s25_s13, 2  ;;  %p1705_p1 = scmp.ge.s32.totalorder %s2296_s11, 1 }
   0x4   : > { %p110_p2 = scmp.lt.s32.totalorder %s2296_s11, 3  ;;  %p2347_p4 = scmp.eq.s32.totalorder %s1703_s12, 0 }
   0x5   : > { %s2535_s13 = smov (%p27_p0, %s25_s13), 0  ;;  %s2302_s16 = smov [#allocation2]  }
   0x6   : > { %p2343_p3 = pnand %p1705_p1, %p110_p2  ;;  %s124_s17 = sshll.u32 %s2302_s16, 4  ;;  %s125_s17 = int_to_ptr.vmem [resolvable:$true] %s124_s17 }
   0x7   : > { %s2251_s18 = scalar_lea.vmem %s125_s17, 8192  ;;  %p2259_p11 = scmp.lt.s32.totalorder %s125_s17, %s125_s17 }
   0x8   : > { %p2125_p5 = pneg %p2343_p3  ;;  %p2252_p8 = scmp.ne.s32.totalorder %s125_s17, %s2251_s18 }
   0x9   : > { %p2260_p12 = scmp.lt.s32.totalorder %s2251_s18, %s2251_s18 }
   0xa   : > { %p2126_p6 = pnand %p2347_p4, %p2125_p5 }
   0xb   : > { %p2261_p13 = por %p2260_p12, %p2259_p11 }
   0xc   : > { %p2242_p7 = pneg %p2126_p6 }
   0xe   : > { %p2254_p9 = pnand %p2252_p8, %p2242_p7 }
  0x10   : > { %p2255_p10 = pneg %p2254_p9 }
  0x12   : > { %p2262_p0 = pnand %p2261_p13, %p2255_p10 }
  0x14   : > { %2265 = shalt.err (!%p2262_p0)
}
  0x15   : > { %s2303_s19 = smov 64   ;;  %s2304_s20 = smov 4  }
  0x16   : > { %2128 = dma.hbm_to_vmem [thread:$0]  (!%p2126_p6), %s2528_s1, 8192, %s125_s17, [#allocation3], %s2303_s19, %s2303_s19, %s2304_s20  }
  0x17   : > { %148 = sbr.rel (%p2343_p3) target bundleno = 367 (0x16f), region = 28 }
  0x1c   : > { %2283 = dma.done.wait (%p2347_p4), [#allocation3], 8192  }
  0x1d   : > { %2285 = vsyncadd (%p2347_p4), [#allocation3], 4294959104  ;;  %p173_p1 = scmp.lt.s32.totalorder %s2288_s9, 1  ;;  %s2376_s3 = smov 0  }
  0x1f   : > { %s2537_s9 = smov (!%p173_p1, %s2288_s9), 1 }
  0x20   : > { %s2120_s23 = smul.u32 288, %s2537_s9  ;;  %s1840_s24 = sshll.u32 %s2537_s9, 5 }
  0x21   : > { %s2369_s27 = scalar_lea.vmem %s2529_s2, %s1840_s24 }
  0x22   : > { %s2374_s30 = scalar_lea.vmem %s2527_s0, %s2120_s23 }
  0x23 LB: >> { %v2168_v0 = vld [vmem:[#allocation2 + $0x38] sm:$0xff]   ;;  %v2305_v1 = vmov 0.0   ;;  %v2170_v3 = vld [vmem:[#allocation2 + $0x30] sm:$0xff]   ;;  %vm2306_vm0 = vmmov 0   ;;  %v2172_v5 = vld [vmem:[#allocation2 + $0x28] sm:$0xff]   ;;  %s1841_s4 = sshll.u32 %s2300_s3, 3  ;;  %s2300_s3 = sphi %s2376_s3, %s192_s3  }
  0x24   : >> { %1928 = vmatprep.subr.bf16.mxu0 %v2305_v1  ;;  %1940 = vmatprep.subr.bf16.mxu1 %v2305_v1  ;;  %v2169_v2 = vld [vmem:[#allocation2 + $0x18] sm:$0xff]   ;;  %v2171_v4 = vld [vmem:[#allocation2 + $0x10] sm:$0xff]   ;;  %v2173_v6 = vld [vmem:[#allocation2 + $0x8] sm:$0xff]   ;;  %s2393_s5 = scalar_lea.vmem %s2374_s30, %s1841_s4  ;;  %vm242_vm1 = vcmask 523264   ;;  %s1837_s6 = sshll.u32 %s2300_s3, 2 }
  0x25   : >> { %1929 = vmatpush3.bf16.msra.mxu0 %v2168_v0  ;;  %1936 = vmatprep.mubr.msk.bf16.mxu0 %vm2306_vm0, %v2305_v1  ;;  %v2174_v7 = vld [vmem:[#allocation2 + $0x20] sm:$0xff]   ;;  %v1717_v9 = vld [vmem:[%s2393_s5 + $0x48] sm:$0xf]  ;;  %v2176_v11 = vld [vmem:[#allocation2 + $0x58] sm:$0xff]   ;;  %s1573_s7 = scalar_lea.vmem %s2369_s27, %s1837_s6  ;;  %s192_s3 = sadd.s32 1, %s2300_s3  }
  0x26   : >> { %1941 = vmatpush3.bf16.msra.mxu1 %v2169_v2  ;;  %1930 = vmatprep.subr.bf16.mxu0 %v2305_v1  ;;  %v2175_v8 = vld [vmem:[#allocation2] sm:$0xff]   ;;  %v2177_v12 = vld [vmem:[#allocation2 + $0x78] sm:$0xff]   ;;  %v2178_v13 = vld [vmem:[#allocation2 + $0x50] sm:$0xff]   ;;  %p189_p2 = scmp.ge.s32.totalorder %s192_s3, 8  }
  0x27   : >> { %1942 = vmatprep.subr.bf16.mxu1 %v2305_v1  ;;  %1948 = vmatprep.mubr.msk.bf16.mxu1 %vm2306_vm0, %v2305_v1  ;;  %v196_v10 = vld [vmem:[%s2393_s5] sm:$0xf]  ;;  %v2185_v15 = vld [vmem:[%s2393_s5 + $0x48] sm:$0x1f]   ;;  %v2179_v16 = vld [vmem:[#allocation2 + $0x70] sm:$0xff]  }
  0x28   : >> { %v2184_v14 = vld [vmem:[%s2393_s5] sm:$0x1f]   ;;  %v2180_v18 = vld [vmem:[#allocation2 + $0x48] sm:$0xff]   ;;  %v463_v19 = vshll.u32 %v2185_v15, 16  ;;  %v461_v24 = vshrl.u32 %v2185_v15, 16  ;;  %v2186_v29 = vld [vmem:[#allocation2 + $0x98] sm:$0xff]  }
  0x29   : >> { %1931 = vmatpush3.bf16.msra.mxu0 %v2170_v3  ;;  %v372_v17 = vshll.u32 %v2184_v14, 16  ;;  %v2181_v20 = vld [vmem:[#allocation2 + $0x68] sm:$0xff]   ;;  %v2182_v21 = vld [vmem:[#allocation2 + $0x40] sm:$0xff]   ;;  %v370_v22 = vshrl.u32 %v2184_v14, 16  ;;  %v2187_v30 = vld [vmem:[#allocation2 + $0xb8] sm:$0xff]  }
  0x2a   : >> { %1943 = vmatpush3.bf16.msra.mxu1 %v2171_v4  ;;  %1932 = vmatprep.subr.bf16.mxu0 %v2305_v1  ;;  %v465_v25 = vrot.slane %v463_v19, 1  ;;  %v2183_v26 = vld [vmem:[#allocation2 + $0x60] sm:$0xff]   ;;  %v2188_v31 = vld [vmem:[#allocation2 + $0x90] sm:$0xff]   ;;  %v2190_v33 = vld [vmem:[#allocation2 + $0x88] sm:$0xff]  }
  0x2b   : >> { %1944 = vmatprep.subr.bf16.mxu1 %v2305_v1  ;;  %v374_v23 = vrot.slane %v372_v17, 1  ;;  %v2189_v32 = vld [vmem:[#allocation2 + $0xb0] sm:$0xff]   ;;  %v2191_v34 = vld [vmem:[#allocation2 + $0xa8] sm:$0xff]   ;;  %v2192_v35 = vld [vmem:[#allocation2 + $0x80] sm:$0xff]  }
  0x2c   : >> { %v466_v28 = vor.u32 %v465_v25, %v461_v24  ;;  %v2193_v36 = vld [vmem:[#allocation2 + $0xa0] sm:$0xff]   ;;  %v1744_v37 = vld [vmem:[%s2393_s5 + $0x90] sm:$0xf]  ;;  %v1752_v38 = vld [vmem:[%s2393_s5 + $0xd8] sm:$0xf] }
  0x2d   : >> { %1933 = vmatpush3.bf16.msra.mxu0 %v2172_v5  ;;  %v375_v27 = vor.u32 %v374_v23, %v370_v22  ;;  %v2194_v39 = vld [vmem:[#allocation2 + $0xd8] sm:$0xff]   ;;  %v2196_v41 = vld [vmem:[#allocation2 + $0xd0] sm:$0xff]   ;;  %v2198_v46 = vld [vmem:[#allocation2 + $0xc8] sm:$0xff]  }
  0x2e   : >> { %1945 = vmatpush3.bf16.msra.mxu1 %v2173_v6  ;;  %1934 = vmatprep.subr.bf16.mxu0 %v2305_v1  ;;  %v2195_v40 = vld [vmem:[#allocation2 + $0xf8] sm:$0xff]   ;;  %v2202_v42 = vld [vmem:[%s2393_s5 + $0x90] sm:$0x1f]   ;;  %v2199_v48 = vld [vmem:[#allocation2 + $0xe8] sm:$0xff]  }
  0x2f   : >> { %1946 = vmatprep.subr.bf16.mxu1 %v2305_v1  ;;  %v2203_v43 = vld [vmem:[%s2393_s5 + $0xd8] sm:$0x1f]   ;;  %v2197_v44 = vld [vmem:[#allocation2 + $0xf0] sm:$0xff]   ;;  %v716_v45 = vshll.u32 %v2202_v42, 16  ;;  %v2200_v49 = vld [vmem:[#allocation2 + $0xc0] sm:$0xff]   ;;  %v714_v50 = vshrl.u32 %v2202_v42, 16 }
  0x30   : >> { %v807_v47 = vshll.u32 %v2203_v43, 16  ;;  %v805_v52 = vshrl.u32 %v2203_v43, 16  ;;  %v2201_v54 = vld [vmem:[#allocation2 + $0xe0] sm:$0xff]   ;;  %v2204_v57 = vld [vmem:[#allocation2 + $0x118] sm:$0xff]   ;;  %v2206_v59 = vld [vmem:[#allocation2 + $0x110] sm:$0xff]  }
  0x31   : >> { %1935 = vmatpush3.bf16.msra.mxu0 %v2174_v7  ;;  %v718_v51 = vrot.slane %v716_v45, 1  ;;  %v2205_v58 = vld [vmem:[#allocation2 + $0x138] sm:$0xff]   ;;  %v2207_v60 = vld [vmem:[#allocation2 + $0x130] sm:$0xff]   ;;  %v2208_v61 = vld [vmem:[#allocation2 + $0x108] sm:$0xff]  }
  0x32   : >> { %1947 = vmatpush3.bf16.msra.mxu1 %v2175_v8  ;;  %1952 = vmatprep.subr.bf16.mxu0 %v2305_v1  ;;  %v809_v53 = vrot.slane %v807_v47, 1  ;;  %v2209_v62 = vld [vmem:[#allocation2 + $0x128] sm:$0xff]   ;;  %v2210_v63 = vld [vmem:[#allocation2 + $0x100] sm:$0xff]   ;;  %v2212_v3 = vld [vmem:[#allocation2 + $0x158] sm:$0xff]  }
  0x33   : >> { %1964 = vmatprep.subr.bf16.mxu1 %v2305_v1  ;;  %v719_v55 = vor.u32 %v718_v51, %v714_v50  ;;  %v2211_v0 = vld [vmem:[#allocation2 + $0x120] sm:$0xff]   ;;  %v1775_v2 = vld [vmem:[%s2393_s5 + $0x8] sm:$0xf]  ;;  %v1783_v4 = vld [vmem:[%s2393_s5 + $0x50] sm:$0xf] }
  0x34   : >> { %1937 = vmatmul.mubr.msk.bf16.vlgmr.msra.gmra.mxu0 %vm242_vm1, %v1717_v9  ;;  %v810_v56 = vor.u32 %v809_v53, %v805_v52  ;;  %v2213_v5 = vld [vmem:[#allocation2 + $0x178] sm:$0xff]   ;;  %v2220_v6 = vld [vmem:[%s2393_s5 + $0x8] sm:$0x1f]   ;;  %v2214_v7 = vld [vmem:[#allocation2 + $0x150] sm:$0xff]  }
  0x35   : >> { %1949 = vmatmul.mubr.msk.bf16.vlgmr.msra.gmra.mxu1 %vm242_vm1, %v196_v10  ;;  %1953 = vmatpush3.bf16.msra.mxu0 %v2176_v11  ;;  %v2221_v8 = vld [vmem:[%s2393_s5 + $0x50] sm:$0x1f]   ;;  %v1061_v10 = vshll.u32 %v2220_v6, 16  ;;  %v2216_v11 = vld [vmem:[#allocation2 + $0x148] sm:$0xff]   ;;  %v1059_v14 = vshrl.u32 %v2220_v6, 16  ;;  %v2219_v19 = vld [vmem:[#allocation2 + $0x160] sm:$0xff]  }
  0x36   : >> { %1965 = vmatpush3.bf16.msra.mxu1 %v2177_v12  ;;  %1954 = vmatprep.subr.bf16.mxu0 %v2305_v1  ;;  %v2215_v9 = vld [vmem:[#allocation2 + $0x170] sm:$0xff]   ;;  %v1152_v12 = vshll.u32 %v2221_v8, 16  ;;  %v1150_v17 = vshrl.u32 %v2221_v8, 16  ;;  %v2222_v22 = vld [vmem:[#allocation2 + $0x198] sm:$0xff]   ;;  %v2237_v47 = vld [vmem:[#allocation2 + $0x1e0] sm:$0xff]  }
  0x37   : >> { %1966 = vmatprep.subr.bf16.mxu1 %v2305_v1  ;;  %1960 = vmatprep.mubr.msk.bf16.mxu0 %vm2306_vm0, %v2305_v1  ;;  %v1063_v15 = vrot.slane %v1061_v10, 1  ;;  %v2223_v23 = vld [vmem:[#allocation2 + $0x1b8] sm:$0xff]   ;;  %v2224_v24 = vld [vmem:[#allocation2 + $0x190] sm:$0xff]  }
  0x38   : >> { %1972 = vmatprep.mubr.msk.bf16.mxu1 %vm2306_vm0, %v2305_v1  ;;  %v2225_v25 = vld [vmem:[#allocation2 + $0x1b0] sm:$0xff]  }
  0x39   : >> { %1955 = vmatpush3.bf16.msra.mxu0 %v2178_v13  ;;  %v2217_v13 = vld [vmem:[#allocation2 + $0x168] sm:$0xff]  }
  0x3a   : >> { %1967 = vmatpush3.bf16.msra.mxu1 %v2179_v16  ;;  %1956 = vmatprep.subr.bf16.mxu0 %v2305_v1  ;;  %v2218_v16 = vld [vmem:[#allocation2 + $0x140] sm:$0xff]  }
  0x3b   : >> { %1968 = vmatprep.subr.bf16.mxu1 %v2305_v1 }
  0x3d   : >> { %1957 = vmatpush3.bf16.msra.mxu0 %v2180_v18  ;;  %v1154_v18 = vrot.slane %v1152_v12, 1 }
  0x3e   : >> { %1969 = vmatpush3.bf16.msra.mxu1 %v2181_v20  ;;  %1958 = vmatprep.subr.bf16.mxu0 %v2305_v1  ;;  %v1064_v20 = vor.u32 %v1063_v15, %v1059_v14 }
  0x3f   : >> { %1970 = vmatprep.subr.bf16.mxu1 %v2305_v1 }
  0x41   : >> { %1959 = vmatpush3.bf16.msra.mxu0 %v2182_v21  ;;  %v1155_v21 = vor.u32 %v1154_v18, %v1150_v17 }
  0x42   : >> { %1971 = vmatpush3.bf16.msra.mxu1 %v2183_v26  ;;  %1976 = vmatprep.subr.bf16.mxu0 %v2305_v1  ;;  %v2226_v26 = vld [vmem:[#allocation2 + $0x188] sm:$0xff]  }
  0x43   : >> { %1988 = vmatprep.subr.bf16.mxu1 %v2305_v1 }
  0x44   : >> { %1961 = vmatmul.mubr.msk.bf16.vlgmr.msra.gmra.mxu0 %vm242_vm1, %v375_v27  ;;  %v2227_v27 = vld [vmem:[#allocation2 + $0x1a8] sm:$0xff]  }
  0x45   : >> { %1973 = vmatmul.mubr.msk.bf16.vlgmr.msra.gmra.mxu1 %vm242_vm1, %v466_v28  ;;  %1977 = vmatpush3.bf16.msra.mxu0 %v2186_v29  ;;  %v2228_v28 = vld [vmem:[#allocation2 + $0x180] sm:$0xff]  }
  0x46   : >> { %1989 = vmatpush3.bf16.msra.mxu1 %v2187_v30  ;;  %1978 = vmatprep.subr.bf16.mxu0 %v2305_v1  ;;  %v2229_v29 = vld [vmem:[#allocation2 + $0x1a0] sm:$0xff]   ;;  %v1807_v30 = vld [vmem:[%s2393_s5 + $0x98] sm:$0xf] }
  0x47   : >> { %1990 = vmatprep.subr.bf16.mxu1 %v2305_v1  ;;  %1984 = vmatprep.mubr.msk.bf16.mxu0 %vm2306_vm0, %v2305_v1 }
  0x48   : >> { %1996 = vmatprep.mubr.msk.bf16.mxu1 %vm2306_vm0, %v2305_v1 }
  0x49   : >> { %1979 = vmatpush3.bf16.msra.mxu0 %v2188_v31  ;;  %v2230_v31 = vld [vmem:[#allocation2 + $0x1d8] sm:$0xff]  }
  0x4a   : >> { %1991 = vmatpush3.bf16.msra.mxu1 %v2189_v32  ;;  %1980 = vmatprep.subr.bf16.mxu0 %v2305_v1  ;;  %v1815_v32 = vld [vmem:[%s2393_s5 + $0xe0] sm:$0xf] }
  0x4b   : >> { %1992 = vmatprep.subr.bf16.mxu1 %v2305_v1 }
  0x4d   : >> { %1981 = vmatpush3.bf16.msra.mxu0 %v2190_v33  ;;  %v2231_v33 = vld [vmem:[#allocation2 + $0x1f8] sm:$0xff]  }
  0x4e   : >> { %1993 = vmatpush3.bf16.msra.mxu1 %v2191_v34  ;;  %1982 = vmatprep.subr.bf16.mxu0 %v2305_v1  ;;  %v2238_v34 = vld [vmem:[%s2393_s5 + $0x98] sm:$0x1f]  }
  0x4f   : >> { %1994 = vmatprep.subr.bf16.mxu1 %v2305_v1  ;;  %v1403_v42 = vshrl.u32 %v2238_v34, 16 }
  0x51   : >> { %1983 = vmatpush3.bf16.msra.mxu0 %v2192_v35  ;;  %v2232_v35 = vld [vmem:[#allocation2 + $0x1d0] sm:$0xff]  }
  0x52   : >> { %1995 = vmatpush3.bf16.msra.mxu1 %v2193_v36  ;;  %2000 = vmatprep.subr.bf16.mxu0 %v2305_v1  ;;  %v2239_v36 = vld [vmem:[%s2393_s5 + $0xe0] sm:$0x1f]  }
  0x53   : >> { %2012 = vmatprep.subr.bf16.mxu1 %v2305_v1  ;;  %v1494_v45 = vshrl.u32 %v2239_v36, 16 }
  0x54   : >> { %1985 = vmatmul.mubr.msk.bf16.vlgmr.msra.gmra.mxu0 %vm242_vm1, %v1744_v37  ;;  %v2233_v37 = vld [vmem:[#allocation2 + $0x1f0] sm:$0xff]  }
  0x55   : >> { %1997 = vmatmul.mubr.msk.bf16.vlgmr.msra.gmra.mxu1 %vm242_vm1, %v1752_v38  ;;  %2001 = vmatpush3.bf16.msra.mxu0 %v2194_v39  ;;  %v1405_v38 = vshll.u32 %v2238_v34, 16  ;;  %v2234_v39 = vld [vmem:[#allocation2 + $0x1c8] sm:$0xff]  }
  0x56   : >> { %2013 = vmatpush3.bf16.msra.mxu1 %v2195_v40  ;;  %2002 = vmatprep.subr.bf16.mxu0 %v2305_v1  ;;  %v1496_v40 = vshll.u32 %v2239_v36, 16 }
  0x57   : >> { %2014 = vmatprep.subr.bf16.mxu1 %v2305_v1  ;;  %2008 = vmatprep.mubr.msk.bf16.mxu0 %vm2306_vm0, %v2305_v1  ;;  %v1407_v43 = vrot.slane %v1405_v38, 1 }
  0x58   : >> { %2020 = vmatprep.mubr.msk.bf16.mxu1 %vm2306_vm0, %v2305_v1 }
  0x59   : >> { %2003 = vmatpush3.bf16.msra.mxu0 %v2196_v41  ;;  %v2235_v41 = vld [vmem:[#allocation2 + $0x1e8] sm:$0xff]  }
  0x5a   : >> { %2015 = vmatpush3.bf16.msra.mxu1 %v2197_v44  ;;  %2004 = vmatprep.subr.bf16.mxu0 %v2305_v1  ;;  %v2236_v44 = vld [vmem:[#allocation2 + $0x1c0] sm:$0xff]  }
  0x5b   : >> { %2016 = vmatprep.subr.bf16.mxu1 %v2305_v1 }
  0x5d   : >> { %2005 = vmatpush3.bf16.msra.mxu0 %v2198_v46  ;;  %v1498_v46 = vrot.slane %v1496_v40, 1 }
  0x5e   : >> { %2017 = vmatpush3.bf16.msra.mxu1 %v2199_v48  ;;  %2006 = vmatprep.subr.bf16.mxu0 %v2305_v1  ;;  %v1408_v48 = vor.u32 %v1407_v43, %v1403_v42 }
  0x5f   : >> { %2018 = vmatprep.subr.bf16.mxu1 %v2305_v1 }
  0x61   : >> { %2007 = vmatpush3.bf16.msra.mxu0 %v2200_v49  ;;  %v1499_v49 = vor.u32 %v1498_v46, %v1494_v45 }
  0x62   : >> { %2019 = vmatpush3.bf16.msra.mxu1 %v2201_v54  ;;  %2024 = vmatprep.subr.bf16.mxu0 %v2305_v1 }
  0x63   : >> { %2036 = vmatprep.subr.bf16.mxu1 %v2305_v1 }
  0x64   : >> { %2009 = vmatmul.mubr.msk.bf16.vlgmr.msra.gmra.mxu0 %vm242_vm1, %v719_v55 }
  0x65   : >> { %2021 = vmatmul.mubr.msk.bf16.vlgmr.msra.gmra.mxu1 %vm242_vm1, %v810_v56  ;;  %2025 = vmatpush3.bf16.msra.mxu0 %v2204_v57 }
  0x66   : >> { %2037 = vmatpush3.bf16.msra.mxu1 %v2205_v58  ;;  %2026 = vmatprep.subr.bf16.mxu0 %v2305_v1 }
  0x67   : >> { %2038 = vmatprep.subr.bf16.mxu1 %v2305_v1  ;;  %2032 = vmatprep.mubr.msk.bf16.mxu0 %vm2306_vm0, %v2305_v1 }
  0x68   : >> { %2044 = vmatprep.mubr.msk.bf16.mxu1 %vm2306_vm0, %v2305_v1 }
  0x69   : >> { %2027 = vmatpush3.bf16.msra.mxu0 %v2206_v59 }
  0x6a   : >> { %2039 = vmatpush3.bf16.msra.mxu1 %v2207_v60  ;;  %2028 = vmatprep.subr.bf16.mxu0 %v2305_v1 }
  0x6b   : >> { %2040 = vmatprep.subr.bf16.mxu1 %v2305_v1 }
  0x6d   : >> { %2029 = vmatpush3.bf16.msra.mxu0 %v2208_v61 }
  0x6e   : >> { %2041 = vmatpush3.bf16.msra.mxu1 %v2209_v62  ;;  %2030 = vmatprep.subr.bf16.mxu0 %v2305_v1 }
  0x6f   : >> { %2042 = vmatprep.subr.bf16.mxu1 %v2305_v1 }
  0x71   : >> { %2031 = vmatpush3.bf16.msra.mxu0 %v2210_v63 }
  0x72   : >> { %2043 = vmatpush3.bf16.msra.mxu1 %v2211_v0  ;;  %2048 = vmatprep.subr.bf16.mxu0 %v2305_v1 }
  0x73   : >> { %2060 = vmatprep.subr.bf16.mxu1 %v2305_v1 }
  0x74   : >> { %2033 = vmatmul.mubr.msk.bf16.vlgmr.msra.gmra.mxu0 %vm242_vm1, %v1775_v2 }
  0x75   : >> { %2045 = vmatmul.mubr.msk.bf16.vlgmr.msra.gmra.mxu1 %vm242_vm1, %v1783_v4  ;;  %2049 = vmatpush3.bf16.msra.mxu0 %v2212_v3 }
  0x76   : >> { %2061 = vmatpush3.bf16.msra.mxu1 %v2213_v5  ;;  %2050 = vmatprep.subr.bf16.mxu0 %v2305_v1 }
  0x77   : >> { %2062 = vmatprep.subr.bf16.mxu1 %v2305_v1  ;;  %2056 = vmatprep.mubr.msk.bf16.mxu0 %vm2306_vm0, %v2305_v1 }
  0x78   : >> { %2068 = vmatprep.mubr.msk.bf16.mxu1 %vm2306_vm0, %v2305_v1 }
  0x79   : >> { %2051 = vmatpush3.bf16.msra.mxu0 %v2214_v7 }
  0x7a   : >> { %2063 = vmatpush3.bf16.msra.mxu1 %v2215_v9  ;;  %2052 = vmatprep.subr.bf16.mxu0 %v2305_v1 }
  0x7b   : >> { %2064 = vmatprep.subr.bf16.mxu1 %v2305_v1 }
  0x7d   : >> { %2053 = vmatpush3.bf16.msra.mxu0 %v2216_v11 }
  0x7e   : >> { %2065 = vmatpush3.bf16.msra.mxu1 %v2217_v13  ;;  %2054 = vmatprep.subr.bf16.mxu0 %v2305_v1 }
  0x7f   : >> { %2066 = vmatprep.subr.bf16.mxu1 %v2305_v1 }
  0x81   : >> { %2055 = vmatpush3.bf16.msra.mxu0 %v2218_v16 }
  0x82   : >> { %2067 = vmatpush3.bf16.msra.mxu1 %v2219_v19  ;;  %2072 = vmatprep.subr.bf16.mxu0 %v2305_v1 }
  0x83   : >> { %2084 = vmatprep.subr.bf16.mxu1 %v2305_v1 }
  0x84   : >> { %2057 = vmatmul.mubr.msk.bf16.vlgmr.msra.gmra.mxu0 %vm242_vm1, %v1064_v20 }
  0x85   : >> { %2069 = vmatmul.mubr.msk.bf16.vlgmr.msra.gmra.mxu1 %vm242_vm1, %v1155_v21  ;;  %2073 = vmatpush3.bf16.msra.mxu0 %v2222_v22 }
  0x86   : >> { %2085 = vmatpush3.bf16.msra.mxu1 %v2223_v23  ;;  %2074 = vmatprep.subr.bf16.mxu0 %v2305_v1 }
  0x87   : >> { %2086 = vmatprep.subr.bf16.mxu1 %v2305_v1  ;;  %2080 = vmatprep.mubr.msk.bf16.mxu0 %vm2306_vm0, %v2305_v1 }
  0x88   : >> { %2092 = vmatprep.mubr.msk.bf16.mxu1 %vm2306_vm0, %v2305_v1 }
  0x89   : >> { %2075 = vmatpush3.bf16.msra.mxu0 %v2224_v24 }
  0x8a   : >> { %2087 = vmatpush3.bf16.msra.mxu1 %v2225_v25  ;;  %2076 = vmatprep.subr.bf16.mxu0 %v2305_v1 }
  0x8b   : >> { %2088 = vmatprep.subr.bf16.mxu1 %v2305_v1 }
  0x8d   : >> { %2077 = vmatpush3.bf16.msra.mxu0 %v2226_v26 }
  0x8e   : >> { %2089 = vmatpush3.bf16.msra.mxu1 %v2227_v27  ;;  %2078 = vmatprep.subr.bf16.mxu0 %v2305_v1 }
  0x8f   : >> { %2090 = vmatprep.subr.bf16.mxu1 %v2305_v1 }
  0x91   : >> { %2079 = vmatpush3.bf16.msra.mxu0 %v2228_v28 }
  0x92   : >> { %2091 = vmatpush3.bf16.msra.mxu1 %v2229_v29  ;;  %2096 = vmatprep.subr.bf16.mxu0 %v2305_v1 }
  0x93   : >> { %2108 = vmatprep.subr.bf16.mxu1 %v2305_v1 }
  0x94   : >> { %2081 = vmatmul.mubr.msk.bf16.vlgmr.msra.gmra.mxu0 %vm242_vm1, %v1807_v30 }
  0x95   : >> { %2093 = vmatmul.mubr.msk.bf16.vlgmr.msra.gmra.mxu1 %vm242_vm1, %v1815_v32  ;;  %2097 = vmatpush3.bf16.msra.mxu0 %v2230_v31 }
  0x96   : >> { %2109 = vmatpush3.bf16.msra.mxu1 %v2231_v33  ;;  %2098 = vmatprep.subr.bf16.mxu0 %v2305_v1 }
  0x97   : >> { %2110 = vmatprep.subr.bf16.mxu1 %v2305_v1  ;;  %2104 = vmatprep.mubr.msk.bf16.mxu0 %vm2306_vm0, %v2305_v1 }
  0x98   : >> { %2116 = vmatprep.mubr.msk.bf16.mxu1 %vm2306_vm0, %v2305_v1 }
  0x99   : >> { %2099 = vmatpush3.bf16.msra.mxu0 %v2232_v35 }
  0x9a   : >> { %2111 = vmatpush3.bf16.msra.mxu1 %v2233_v37  ;;  %2100 = vmatprep.subr.bf16.mxu0 %v2305_v1 }
  0x9b   : >> { %2112 = vmatprep.subr.bf16.mxu1 %v2305_v1 }
  0x9d   : >> { %2101 = vmatpush3.bf16.msra.mxu0 %v2234_v39 }
  0x9e   : >> { %2113 = vmatpush3.bf16.msra.mxu1 %v2235_v41  ;;  %2102 = vmatprep.subr.bf16.mxu0 %v2305_v1 }
  0x9f   : >> { %2114 = vmatprep.subr.bf16.mxu1 %v2305_v1 }
  0xa1   : >> { %2103 = vmatpush3.bf16.msra.mxu0 %v2236_v44 }
  0xa2   : >> { %2115 = vmatpush3.bf16.msra.mxu1 %v2237_v47 }
  0xa4   : >> { %2105 = vmatmul.mubr.msk.bf16.vlgmr.msra.gmra.mxu0 %vm242_vm1, %v1408_v48 }
  0xa5   : >> { %2117 = vmatmul.mubr.msk.bf16.vlgmr.msra.gmra.mxu1 %vm242_vm1, %v1499_v49 }
  0xf4   : >> { %v280_v50 = vpop.f32.mrf.mxu0 }
  0xf5   : >> { %v347_v51 = vpop.f32.mrf.mxu1 }
  0xf6   : >> { %v348_v52 = vadd.f32 %v347_v51, %v280_v50  ;;  %v1938_v53 = vpop.f32.mrf.mxu0 }
  0xf7   : >> { %v1950_v54 = vpop.f32.mrf.mxu1 }
  0xf8   : >> { %v283_v55 = vpop.f32.mrf.mxu0 }
  0xf9   : >> { %v350_v56 = vpop.f32.mrf.mxu1 }
  0xfa   : >> { %v1939_v57 = vpop.f32.mrf.mxu0 }
  0xfb   : >> { %v1951_v58 = vpop.f32.mrf.mxu1 }
 0x104   : >> { %v437_v59 = vpop.f32.mrf.mxu0 }
 0x105   : >> { %v443_v60 = vadd.f32 %v437_v59, %v348_v52  ;;  %v528_v1 = vpop.f32.mrf.mxu1 }
 0x106   : >> { %v1962_v61 = vpop.f32.mrf.mxu0 }
 0x107   : >> { %v534_v62 = vadd.f32 %v528_v1, %v443_v60  ;;  %v1974_v63 = vpop.f32.mrf.mxu1 }
 0x108   : >> { %v440_v0 = vpop.f32.mrf.mxu0 }
 0x109   : >> { %v531_v2 = vpop.f32.mrf.mxu1 }
 0x10a   : >> { %v1963_v3 = vpop.f32.mrf.mxu0 }
 0x10b   : >> { %v1975_v4 = vpop.f32.mrf.mxu1 }
 0x114   : >> { %v609_v5 = vpop.f32.mrf.mxu0 }
 0x115   : >> { %v690_v6 = vpop.f32.mrf.mxu1  ;;  %v615_v32 = vadd.f32 %v609_v5, %v534_v62 }
 0x116   : >> { %v1986_v7 = vpop.f32.mrf.mxu0 }
 0x117   : >> { %v1998_v8 = vpop.f32.mrf.mxu1  ;;  %v696_v37 = vadd.f32 %v690_v6, %v615_v32 }
 0x118   : >> { %v612_v9 = vpop.f32.mrf.mxu0 }
 0x119   : >> { %v693_v10 = vpop.f32.mrf.mxu1 }
 0x11a   : >> { %v1987_v11 = vpop.f32.mrf.mxu0 }
 0x11b   : >> { %v1999_v12 = vpop.f32.mrf.mxu1 }
 0x124   : >> { %v781_v13 = vpop.f32.mrf.mxu0 }
 0x125   : >> { %v872_v14 = vpop.f32.mrf.mxu1  ;;  %v787_v39 = vadd.f32 %v781_v13, %v696_v37 }
 0x126   : >> { %v2010_v15 = vpop.f32.mrf.mxu0 }
 0x127   : >> { %v2022_v16 = vpop.f32.mrf.mxu1  ;;  %v878_v40 = vadd.f32 %v872_v14, %v787_v39 }
 0x128   : >> { %v784_v17 = vpop.f32.mrf.mxu0 }
 0x129   : >> { %v875_v18 = vpop.f32.mrf.mxu1 }
 0x12a   : >> { %v2011_v19 = vpop.f32.mrf.mxu0 }
 0x12b   : >> { %v2023_v20 = vpop.f32.mrf.mxu1 }
 0x134   : >> { %v954_v21 = vpop.f32.mrf.mxu0 }
 0x135   : >> { %v1035_v22 = vpop.f32.mrf.mxu1  ;;  %v960_v41 = vadd.f32 %v954_v21, %v878_v40 }
 0x136   : >> { %v2034_v23 = vpop.f32.mrf.mxu0 }
 0x137   : >> { %v2046_v24 = vpop.f32.mrf.mxu1  ;;  %v1041_v45 = vadd.f32 %v1035_v22, %v960_v41 }
 0x138   : >> { %v957_v25 = vpop.f32.mrf.mxu0 }
 0x139   : >> { %v1038_v26 = vpop.f32.mrf.mxu1 }
 0x13a   : >> { %v2035_v27 = vpop.f32.mrf.mxu0 }
 0x13b   : >> { %v2047_v28 = vpop.f32.mrf.mxu1 }
 0x144   : >> { %v1126_v29 = vpop.f32.mrf.mxu0 }
 0x145   : >> { %v1217_v30 = vpop.f32.mrf.mxu1  ;;  %v1132_v48 = vadd.f32 %v1126_v29, %v1041_v45 }
 0x146   : >> { %v2058_v31 = vpop.f32.mrf.mxu0 }
 0x147   : >> { %v2070_v33 = vpop.f32.mrf.mxu1  ;;  %v1223_v52 = vadd.f32 %v1217_v30, %v1132_v48 }
 0x148   : >> { %v1129_v34 = vpop.f32.mrf.mxu0 }
 0x149   : >> { %v1220_v35 = vpop.f32.mrf.mxu1 }
 0x14a   : >> { %v2059_v36 = vpop.f32.mrf.mxu0 }
 0x14b   : >> { %v2071_v38 = vpop.f32.mrf.mxu1 }
 0x154   : >> { %v1298_v42 = vpop.f32.mrf.mxu0 }
 0x155   : >> { %v1379_v43 = vpop.f32.mrf.mxu1  ;;  %v1304_v53 = vadd.f32 %v1298_v42, %v1223_v52 }
 0x156   : >> { %v2082_v44 = vpop.f32.mrf.mxu0 }
 0x157   : >> { %v2094_v46 = vpop.f32.mrf.mxu1  ;;  %v1385_v54 = vadd.f32 %v1379_v43, %v1304_v53 }
 0x158   : >> { %v1301_v47 = vpop.f32.mrf.mxu0 }
 0x159   : >> { %v1382_v49 = vpop.f32.mrf.mxu1 }
 0x15a   : >> { %v2083_v50 = vpop.f32.mrf.mxu0 }
 0x15b   : >> { %v2095_v51 = vpop.f32.mrf.mxu1 }
 0x164   : >> { %v1470_v55 = vpop.f32.mrf.mxu0 }
 0x165   : >> { %v1476_v56 = vadd.f32 %v1470_v55, %v1385_v54  ;;  %v1561_v57 = vpop.f32.mrf.mxu1 }
 0x166   : >> { %v2106_v58 = vpop.f32.mrf.mxu0 }
 0x167   : >> { %v1567_v59 = vadd.f32 %v1561_v57, %v1476_v56  ;;  %v2118_v60 = vpop.f32.mrf.mxu1 }
 0x168   : >> { %v1473_v1 = vpop.f32.mrf.mxu0 }
 0x169   : >> { %vm1568_vm2 = vcmp.ge.f32.partialorder %v1567_v59, 0.0  ;;  %v1569_v61 = vmul.f32 0.2, %v1567_v59  ;;  %v1564_v62 = vpop.f32.mrf.mxu1 }
 0x16a   : >> { %v2107_v63 = vpop.f32.mrf.mxu0  ;;  %191 = sbr.rel (!%p189_p2) target bundleno = 35 (0x23), region = 95 }
 0x16b   : >> { %v1570_v0 = vsel %vm1568_vm2, %v1567_v59, %v1569_v61  ;;  %v2119_v2 = vpop.f32.mrf.mxu1 }
 0x16c   : >> { %v1571_v3 = vpack.c.bf16 %v1570_v0, %v1570_v0 }
 0x16e   : >> { %1574 = vst [vmem:[%s1573_s7] sm:$0xf] %v1571_v3 }
 0x16f PF: > { %s13_s11 = sadd.s32 1, %s2296_s11   ;;  %s2532_s9 = smov %s2292_s10 }
 0x170   : > { %p10_p3 = scmp.ge.s32.totalorder %s13_s11, 4   ;;  %s2533_s10 = smov %s2535_s13 }
 0x172   :  { %12 = sbr.rel (!%p10_p3) target bundleno = 2 (0x2), region = 106 }
 0x177   :  { %1602 = vsyncpa [#allocation3], 1 }
 0x178   :  { %1604 = vsyncpa [#allocation3 + $0x1], 1 }

// kernel: discriminator_forward.7
= control target key start
LH: loop header
LB: loop body
LE: loop exit
PB: predicated region body
PF: predicated region fallthrough
CT: control target
= control target key end

     0   :  { %s3724_s9 = smov 0   ;;  %s3726_s10 = smov 0   ;;  %s4584_s0 = inlined_call_operand.vmem [shape: bf16[2,4,5,5,128], index: 0, kind: input, shape index: {}]   ;;  %s4585_s1 = inlined_call_operand.vmem [shape: bf16[16,128,256], index: 1, kind: input, shape index: {}]   ;;  %s4586_s2 = inlined_call_operand.vmem [shape: bf16[2,4,4,256], index: 2, kind: output, shape index: {}]  }
   0x1   :  { %s3728_s11 = smov 0  }
   0x2 LB: > { %s24_s12 = sadd.s32 1, %s3698_s10  ;;  %p2712_p0 = scmp.ge.s32.totalorder %s3702_s11, 1  ;;  %s3702_s11 = sphi %s3728_s11, %s12_s11   ;;  %s3698_s10 = sphi %s3726_s10, %s4588_s10   ;;  %s3694_s9 = sphi %s3724_s9, %s4587_s9  }
   0x3   : > { %p26_p1 = scmp.ge.s32.totalorder %s24_s12, 2  ;;  %p137_p2 = scmp.lt.s32.totalorder %s3702_s11, 3 }
   0x5   : > { %s4590_s12 = smov (%p26_p1, %s24_s12), 0  ;;  %p138_p3 = pnand %p2712_p0, %p137_p2 }
   0x6   : > { %p168_p4 = scmp.lt.s32.totalorder (!%p138_p3), %s3694_s9, 1  ;;  %s3752_s21 = smov (!%p138_p3), 0  }
   0x7   : > { %141 = sbr.rel (%p138_p3) target bundleno = 479 (0x1df), region = 28 }
   0xc   : > { %s4592_s9 = smov (!%p168_p4, %s3694_s9), 1 }
   0xd   : > { %s3250_s13 = smul.u32 80, %s4592_s9  ;;  %s3248_s14 = sshll.u32 %s4592_s9, 4 }
   0xe   : > { %s3745_s17 = scalar_lea.vmem %s4586_s2, %s3248_s14 }
   0xf   : > { %s3750_s20 = scalar_lea.vmem %s4584_s0, %s3250_s13 }
  0x10 LB: >> { %v3284_v0 = vld [vmem:[%s4585_s1 + $0xf4] ss:$8 sps:$4 sm:$0xff]   ;;  %v3708_v2 = vmov 0   ;;  %v3288_v3 = vld [vmem:[%s4585_s1 + $0xf0] ss:$8 sps:$4 sm:$0xff]   ;;  %s2716_s6 = sshll.u32 %s3706_s21, 2  ;;  %s3706_s21 = sphi %s3752_s21, %s195_s21  }
  0x11   : >> { %v3286_v1 = vld [vmem:[%s4585_s1 + $0x74] ss:$8 sps:$4 sm:$0xff]   ;;  %348 = vmatprep.mubr.bf16.mxu0 %v3708_v2  ;;  %469 = vmatprep.mubr.bf16.mxu1 %v3708_v2  ;;  %v3289_v4 = vld [vmem:[%s4585_s1 + $0x70] ss:$8 sps:$4 sm:$0xff]   ;;  %v3290_v5 = vld [vmem:[%s4585_s1 + $0xe4] ss:$8 sps:$4 sm:$0xff]   ;;  %s3853_s14 = scalar_lea.vmem %s3750_s20, %s2716_s6  ;;  %s2579_s29 = scalar_lea.vmem %s3745_s17, %s2716_s6 }
  0x12   : >> { %316 = vmatprep.subr.bf16.mxu0 %v3284_v0  ;;  %437 = vmatprep.subr.bf16.mxu1 %v3286_v1  ;;  %v3292_v6 = vld [vmem:[%s4585_s1 + $0x64] ss:$8 sps:$4 sm:$0xff]   ;;  %v3294_v7 = vld [vmem:[%s4585_s1 + $0xe0] ss:$8 sps:$4 sm:$0xff]   ;;  %v3296_v9 = vld [vmem:[%s4585_s1 + $0xd4] ss:$8 sps:$4 sm:$0xff]  }
  0x13   : >> { %317 = vmatpush1.bf16.msra.mxu0 %v3288_v3  ;;  %438 = vmatpush1.bf16.msra.mxu1 %v3289_v4  ;;  %v3295_v8 = vld [vmem:[%s4585_s1 + $0x60] ss:$8 sps:$4 sm:$0xff]   ;;  %v3298_v10 = vld [vmem:[%s4585_s1 + $0x54] ss:$8 sps:$4 sm:$0xff]   ;;  %v3300_v11 = vld [vmem:[%s4585_s1 + $0xd0] ss:$8 sps:$4 sm:$0xff]  }
  0x14   : >> { %318 = vmatprep.subr.bf16.mxu0 %v3290_v5  ;;  %439 = vmatprep.subr.bf16.mxu1 %v3292_v6  ;;  %v3301_v12 = vld [vmem:[%s4585_s1 + $0x50] ss:$8 sps:$4 sm:$0xff]   ;;  %v3302_v13 = vld [vmem:[%s4585_s1 + $0xc4] ss:$8 sps:$4 sm:$0xff]   ;;  %v3306_v15 = vld [vmem:[%s4585_s1 + $0xc0] ss:$8 sps:$4 sm:$0xff]  }
  0x15   : >> { %v3304_v14 = vld [vmem:[%s4585_s1 + $0x44] ss:$8 sps:$4 sm:$0xff]   ;;  %v3307_v16 = vld [vmem:[%s4585_s1 + $0x40] ss:$8 sps:$4 sm:$0xff]   ;;  %v3308_v17 = vld [vmem:[%s4585_s1 + $0xb4] ss:$8 sps:$4 sm:$0xff]  }
  0x16   : >> { %v3310_v18 = vld [vmem:[%s4585_s1 + $0x34] ss:$8 sps:$4 sm:$0xff]   ;;  %v3312_v19 = vld [vmem:[%s4585_s1 + $0xb0] ss:$8 sps:$4 sm:$0xff]   ;;  %v3314_v21 = vld [vmem:[%s4585_s1 + $0xa4] ss:$8 sps:$4 sm:$0xff]  }
  0x17   : >> { %319 = vmatpush1.bf16.msra.mxu0 %v3294_v7  ;;  %440 = vmatpush1.bf16.msra.mxu1 %v3295_v8  ;;  %v3313_v20 = vld [vmem:[%s4585_s1 + $0x30] ss:$8 sps:$4 sm:$0xff]   ;;  %v3316_v22 = vld [vmem:[%s4585_s1 + $0x24] ss:$8 sps:$4 sm:$0xff]   ;;  %v3318_v23 = vld [vmem:[%s4585_s1 + $0xa0] ss:$8 sps:$4 sm:$0xff]  }
  0x18   : >> { %320 = vmatprep.subr.bf16.mxu0 %v3296_v9  ;;  %441 = vmatprep.subr.bf16.mxu1 %v3298_v10  ;;  %v3319_v24 = vld [vmem:[%s4585_s1 + $0x20] ss:$8 sps:$4 sm:$0xff]   ;;  %v3320_v25 = vld [vmem:[%s4585_s1 + $0x94] ss:$8 sps:$4 sm:$0xff]   ;;  %v3324_v27 = vld [vmem:[%s4585_s1 + $0x90] ss:$8 sps:$4 sm:$0xff]  }
  0x19   : >> { %v3322_v26 = vld [vmem:[%s4585_s1 + $0x14] ss:$8 sps:$4 sm:$0xff]   ;;  %v3325_v28 = vld [vmem:[%s4585_s1 + $0x10] ss:$8 sps:$4 sm:$0xff]   ;;  %v3326_v29 = vld [vmem:[%s4585_s1 + $0x84] ss:$8 sps:$4 sm:$0xff]  }
  0x1a   : >> { %v3328_v30 = vld [vmem:[%s4585_s1 + $0x4] ss:$8 sps:$4 sm:$0xff]   ;;  %v3330_v31 = vld [vmem:[%s4585_s1 + $0x80] ss:$8 sps:$4 sm:$0xff]   ;;  %v3334_v33 = vld [vmem:[%s4585_s1 + $0x174] ss:$8 sps:$4 sm:$0xff]  }
  0x1b   : >> { %321 = vmatpush1.bf16.msra.mxu0 %v3300_v11  ;;  %442 = vmatpush1.bf16.msra.mxu1 %v3301_v12  ;;  %v3331_v32 = vld [vmem:[%s4585_s1] ss:$8 sps:$4 sm:$0xff]   ;;  %v3337_v34 = vld [vmem:[%s4585_s1 + $0x1f4] ss:$8 sps:$4 sm:$0xff]   ;;  %v3332_v37 = vld [vmem:[%s4585_s1 + $0x170] ss:$8 sps:$4 sm:$0xff]  }
  0x1c   : >> { %322 = vmatprep.subr.bf16.mxu0 %v3302_v13  ;;  %443 = vmatprep.subr.bf16.mxu1 %v3304_v14  ;;  %v2718_v35 = vld [vmem:[%s3853_s14 + $0x14] sm:$0x3]  ;;  %v198_v36 = vld [vmem:[%s3853_s14] sm:$0x3]  ;;  %v3335_v38 = vld [vmem:[%s4585_s1 + $0x1f0] ss:$8 sps:$4 sm:$0xff]  }
  0x1d   : >> { %v3340_v39 = vld [vmem:[%s4585_s1 + $0x164] ss:$8 sps:$4 sm:$0xff]   ;;  %v3338_v41 = vld [vmem:[%s4585_s1 + $0x160] ss:$8 sps:$4 sm:$0xff]   ;;  %v3346_v43 = vld [vmem:[%s4585_s1 + $0x154] ss:$8 sps:$4 sm:$0xff]  }
  0x1e   : >> { %v3343_v40 = vld [vmem:[%s4585_s1 + $0x1e4] ss:$8 sps:$4 sm:$0xff]   ;;  %v3341_v42 = vld [vmem:[%s4585_s1 + $0x1e0] ss:$8 sps:$4 sm:$0xff]   ;;  %v3349_v44 = vld [vmem:[%s4585_s1 + $0x1d4] ss:$8 sps:$4 sm:$0xff]  }
  0x1f   : >> { %323 = vmatpush1.bf16.msra.mxu0 %v3306_v15  ;;  %444 = vmatpush1.bf16.msra.mxu1 %v3307_v16  ;;  %v3344_v45 = vld [vmem:[%s4585_s1 + $0x150] ss:$8 sps:$4 sm:$0xff]   ;;  %v3352_v47 = vld [vmem:[%s4585_s1 + $0x144] ss:$8 sps:$4 sm:$0xff]   ;;  %v3350_v49 = vld [vmem:[%s4585_s1 + $0x140] ss:$8 sps:$4 sm:$0xff]  }
  0x20   : >> { %324 = vmatprep.subr.bf16.mxu0 %v3308_v17  ;;  %445 = vmatprep.subr.bf16.mxu1 %v3310_v18  ;;  %v3347_v46 = vld [vmem:[%s4585_s1 + $0x1d0] ss:$8 sps:$4 sm:$0xff]   ;;  %v3355_v48 = vld [vmem:[%s4585_s1 + $0x1c4] ss:$8 sps:$4 sm:$0xff]   ;;  %v3353_v50 = vld [vmem:[%s4585_s1 + $0x1c0] ss:$8 sps:$4 sm:$0xff]  }
  0x21   : >> { %v3358_v51 = vld [vmem:[%s4585_s1 + $0x134] ss:$8 sps:$4 sm:$0xff]   ;;  %v3356_v53 = vld [vmem:[%s4585_s1 + $0x130] ss:$8 sps:$4 sm:$0xff]   ;;  %v3364_v55 = vld [vmem:[%s4585_s1 + $0x124] ss:$8 sps:$4 sm:$0xff]  }
  0x22   : >> { %v3361_v52 = vld [vmem:[%s4585_s1 + $0x1b4] ss:$8 sps:$4 sm:$0xff]   ;;  %v3359_v54 = vld [vmem:[%s4585_s1 + $0x1b0] ss:$8 sps:$4 sm:$0xff]   ;;  %v3367_v56 = vld [vmem:[%s4585_s1 + $0x1a4] ss:$8 sps:$4 sm:$0xff]  }
  0x23   : >> { %325 = vmatpush1.bf16.msra.mxu0 %v3312_v19  ;;  %446 = vmatpush1.bf16.msra.mxu1 %v3313_v20  ;;  %v3362_v57 = vld [vmem:[%s4585_s1 + $0x120] ss:$8 sps:$4 sm:$0xff]   ;;  %v3381_v59 = vld [vmem:[%s3853_s14 + $0x14] ss:$0 sps:$4 sm:$0x77]   ;;  %s195_s21 = sadd.s32 1, %s3706_s21  }
  0x24   : >> { %326 = vmatprep.subr.bf16.mxu0 %v3314_v21  ;;  %447 = vmatprep.subr.bf16.mxu1 %v3316_v22  ;;  %v3380_v58 = vld [vmem:[%s3853_s14] ss:$0 sps:$4 sm:$0x77]   ;;  %v3370_v61 = vld [vmem:[%s4585_s1 + $0x114] ss:$8 sps:$4 sm:$0xff]   ;;  %v654_v1 = vshll.u32 %v3381_v59, 16 }
  0x25   : >> { %v3365_v60 = vld [vmem:[%s4585_s1 + $0x1a0] ss:$8 sps:$4 sm:$0xff]   ;;  %v3373_v62 = vld [vmem:[%s4585_s1 + $0x194] ss:$8 sps:$4 sm:$0xff]   ;;  %v3368_v63 = vld [vmem:[%s4585_s1 + $0x110] ss:$8 sps:$4 sm:$0xff]  }
  0x26   : >> { %v502_v0 = vshll.u32 %v3380_v58, 16  ;;  %v3371_v3 = vld [vmem:[%s4585_s1 + $0x190] ss:$8 sps:$4 sm:$0xff]   ;;  %v3376_v4 = vld [vmem:[%s4585_s1 + $0x104] ss:$8 sps:$4 sm:$0xff]   ;;  %v500_v7 = vshrl.u32 %v3380_v58, 16 }
  0x27   : >> { %327 = vmatpush1.bf16.msra.mxu0 %v3318_v23  ;;  %448 = vmatpush1.bf16.msra.mxu1 %v3319_v24  ;;  %v3379_v5 = vld [vmem:[%s4585_s1 + $0x184] ss:$8 sps:$4 sm:$0xff]   ;;  %v3374_v6 = vld [vmem:[%s4585_s1 + $0x100] ss:$8 sps:$4 sm:$0xff]   ;;  %v652_v9 = vshrl.u32 %v3381_v59, 16  ;;  %v656_v10 = vrot.slane %v654_v1, 1 }
  0x28   : >> { %328 = vmatprep.subr.bf16.mxu0 %v3320_v25  ;;  %449 = vmatprep.subr.bf16.mxu1 %v3322_v26  ;;  %v504_v8 = vrot.slane %v502_v0, 1  ;;  %v3377_v11 = vld [vmem:[%s4585_s1 + $0x180] ss:$8 sps:$4 sm:$0xff]   ;;  %v3384_v12 = vld [vmem:[%s4585_s1 + $0x274] ss:$8 sps:$4 sm:$0xff]   ;;  %p192_p5 = scmp.ge.s32.totalorder %s195_s21, 4  }
  0x29   : >> { %v3387_v13 = vld [vmem:[%s4585_s1 + $0x2f4] ss:$8 sps:$4 sm:$0xff]   ;;  %v657_v15 = vor.u32 %v656_v10, %v652_v9  ;;  %v3382_v16 = vld [vmem:[%s4585_s1 + $0x270] ss:$8 sps:$4 sm:$0xff]   ;;  %v3390_v18 = vld [vmem:[%s4585_s1 + $0x264] ss:$8 sps:$4 sm:$0xff]  }
  0x2a   : >> { %v505_v14 = vor.u32 %v504_v8, %v500_v7  ;;  %v3385_v17 = vld [vmem:[%s4585_s1 + $0x2f0] ss:$8 sps:$4 sm:$0xff]   ;;  %v3393_v19 = vld [vmem:[%s4585_s1 + $0x2e4] ss:$8 sps:$4 sm:$0xff]   ;;  %v3388_v20 = vld [vmem:[%s4585_s1 + $0x260] ss:$8 sps:$4 sm:$0xff]  }
  0x2b   : >> { %329 = vmatpush1.bf16.msra.mxu0 %v3324_v27  ;;  %450 = vmatpush1.bf16.msra.mxu1 %v3325_v28  ;;  %v3391_v21 = vld [vmem:[%s4585_s1 + $0x2e0] ss:$8 sps:$4 sm:$0xff]   ;;  %v3396_v22 = vld [vmem:[%s4585_s1 + $0x254] ss:$8 sps:$4 sm:$0xff]   ;;  %v3394_v24 = vld [vmem:[%s4585_s1 + $0x250] ss:$8 sps:$4 sm:$0xff]  }
  0x2c   : >> { %330 = vmatprep.subr.bf16.mxu0 %v3326_v29  ;;  %451 = vmatprep.subr.bf16.mxu1 %v3328_v30  ;;  %v3399_v23 = vld [vmem:[%s4585_s1 + $0x2d4] ss:$8 sps:$4 sm:$0xff]   ;;  %v3397_v25 = vld [vmem:[%s4585_s1 + $0x2d0] ss:$8 sps:$4 sm:$0xff]   ;;  %v3402_v26 = vld [vmem:[%s4585_s1 + $0x244] ss:$8 sps:$4 sm:$0xff]  }
  0x2d   : >> { %v3405_v27 = vld [vmem:[%s4585_s1 + $0x2c4] ss:$8 sps:$4 sm:$0xff]   ;;  %v3400_v28 = vld [vmem:[%s4585_s1 + $0x240] ss:$8 sps:$4 sm:$0xff]   ;;  %v3408_v30 = vld [vmem:[%s4585_s1 + $0x234] ss:$8 sps:$4 sm:$0xff]  }
  0x2e   : >> { %v3403_v29 = vld [vmem:[%s4585_s1 + $0x2c0] ss:$8 sps:$4 sm:$0xff]   ;;  %v3442_v58 = vld [vmem:[%s4585_s1 + $0x350] ss:$8 sps:$4 sm:$0xff]   ;;  %v3456_v0 = vld [vmem:[%s4585_s1 + $0x334] ss:$8 sps:$4 sm:$0xff]  }
  0x2f   : >> { %331 = vmatpush1.bf16.msra.mxu0 %v3330_v31  ;;  %452 = vmatpush1.bf16.msra.mxu1 %v3331_v32  ;;  %v3411_v31 = vld [vmem:[%s4585_s1 + $0x2b4] ss:$8 sps:$4 sm:$0xff]   ;;  %v3406_v32 = vld [vmem:[%s4585_s1 + $0x230] ss:$8 sps:$4 sm:$0xff]   ;;  %v3460_v9 = vld [vmem:[%s4585_s1 + $0x320] ss:$8 sps:$4 sm:$0xff]  }
  0x30   : >> { %587 = vmatprep.subr.bf16.mxu0 %v3334_v33  ;;  %739 = vmatprep.subr.bf16.mxu1 %v3337_v34  ;;  %v3409_v33 = vld [vmem:[%s4585_s1 + $0x2b0] ss:$8 sps:$4 sm:$0xff]   ;;  %v3414_v34 = vld [vmem:[%s4585_s1 + $0x224] ss:$8 sps:$4 sm:$0xff]   ;;  %v3459_v1 = vld [vmem:[%s4585_s1 + $0x3b4] ss:$8 sps:$4 sm:$0xff]  }
  0x31   : >> { %v3445_v59 = vld [vmem:[%s4585_s1 + $0x3d0] ss:$8 sps:$4 sm:$0xff]   ;;  %v3478_v7 = vld [vmem:[%s3853_s14 + $0x28] ss:$0 sps:$4 sm:$0x77]  }
  0x32   : >> { %349 = vmatmul.mubr.bf16.vlgmr.msra.gmra.mxu0 %v2718_v35  ;;  %470 = vmatmul.mubr.bf16.vlgmr.msra.gmra.mxu1 %v198_v36  ;;  %v3417_v35 = vld [vmem:[%s4585_s1 + $0x2a4] ss:$8 sps:$4 sm:$0xff]   ;;  %v3412_v36 = vld [vmem:[%s4585_s1 + $0x220] ss:$8 sps:$4 sm:$0xff]  }
  0x33   : >> { %588 = vmatpush1.bf16.msra.mxu0 %v3332_v37  ;;  %740 = vmatpush1.bf16.msra.mxu1 %v3335_v38  ;;  %v3415_v37 = vld [vmem:[%s4585_s1 + $0x2a0] ss:$8 sps:$4 sm:$0xff]   ;;  %v3420_v38 = vld [vmem:[%s4585_s1 + $0x214] ss:$8 sps:$4 sm:$0xff]  }
  0x34   : >> { %589 = vmatprep.subr.bf16.mxu0 %v3340_v39  ;;  %741 = vmatprep.subr.bf16.mxu1 %v3343_v40  ;;  %v3423_v39 = vld [vmem:[%s4585_s1 + $0x294] ss:$8 sps:$4 sm:$0xff]   ;;  %v3418_v40 = vld [vmem:[%s4585_s1 + $0x210] ss:$8 sps:$4 sm:$0xff]   ;;  %v3463_v10 = vld [vmem:[%s4585_s1 + $0x3a0] ss:$8 sps:$4 sm:$0xff]  }
  0x35   : >> { %619 = vmatprep.mubr.bf16.mxu0 %v3708_v2  ;;  %771 = vmatprep.mubr.bf16.mxu1 %v3708_v2  ;;  %v3479_v8 = vld [vmem:[%s3853_s14 + $0x3c] ss:$0 sps:$4 sm:$0x77]  }
  0x37   : >> { %590 = vmatpush1.bf16.msra.mxu0 %v3338_v41  ;;  %742 = vmatpush1.bf16.msra.mxu1 %v3341_v42  ;;  %v3421_v41 = vld [vmem:[%s4585_s1 + $0x290] ss:$8 sps:$4 sm:$0xff]   ;;  %v3426_v42 = vld [vmem:[%s4585_s1 + $0x204] ss:$8 sps:$4 sm:$0xff]  }
  0x38   : >> { %591 = vmatprep.subr.bf16.mxu0 %v3346_v43  ;;  %743 = vmatprep.subr.bf16.mxu1 %v3349_v44  ;;  %v3429_v43 = vld [vmem:[%s4585_s1 + $0x284] ss:$8 sps:$4 sm:$0xff]   ;;  %v3424_v44 = vld [vmem:[%s4585_s1 + $0x200] ss:$8 sps:$4 sm:$0xff]  }
  0x3b   : >> { %592 = vmatpush1.bf16.msra.mxu0 %v3344_v45  ;;  %744 = vmatpush1.bf16.msra.mxu1 %v3347_v46  ;;  %v3427_v45 = vld [vmem:[%s4585_s1 + $0x280] ss:$8 sps:$4 sm:$0xff]   ;;  %v3432_v46 = vld [vmem:[%s4585_s1 + $0x374] ss:$8 sps:$4 sm:$0xff]  }
  0x3c   : >> { %593 = vmatprep.subr.bf16.mxu0 %v3352_v47  ;;  %745 = vmatprep.subr.bf16.mxu1 %v3355_v48  ;;  %v3435_v47 = vld [vmem:[%s4585_s1 + $0x3f4] ss:$8 sps:$4 sm:$0xff]   ;;  %v2835_v48 = vld [vmem:[%s3853_s14 + $0x28] sm:$0x3] }
  0x3f   : >> { %594 = vmatpush1.bf16.msra.mxu0 %v3350_v49  ;;  %746 = vmatpush1.bf16.msra.mxu1 %v3353_v50  ;;  %v2869_v49 = vld [vmem:[%s3853_s14 + $0x3c] sm:$0x3]  ;;  %v3430_v50 = vld [vmem:[%s4585_s1 + $0x370] ss:$8 sps:$4 sm:$0xff]  }
  0x40   : >> { %595 = vmatprep.subr.bf16.mxu0 %v3358_v51  ;;  %747 = vmatprep.subr.bf16.mxu1 %v3361_v52  ;;  %v3433_v51 = vld [vmem:[%s4585_s1 + $0x3f0] ss:$8 sps:$4 sm:$0xff]   ;;  %v3438_v52 = vld [vmem:[%s4585_s1 + $0x364] ss:$8 sps:$4 sm:$0xff]  }
  0x43   : >> { %596 = vmatpush1.bf16.msra.mxu0 %v3356_v53  ;;  %748 = vmatpush1.bf16.msra.mxu1 %v3359_v54  ;;  %v3441_v53 = vld [vmem:[%s4585_s1 + $0x3e4] ss:$8 sps:$4 sm:$0xff]   ;;  %v3436_v54 = vld [vmem:[%s4585_s1 + $0x360] ss:$8 sps:$4 sm:$0xff]  }
  0x44   : >> { %597 = vmatprep.subr.bf16.mxu0 %v3364_v55  ;;  %749 = vmatprep.subr.bf16.mxu1 %v3367_v56  ;;  %v3439_v55 = vld [vmem:[%s4585_s1 + $0x3e0] ss:$8 sps:$4 sm:$0xff]   ;;  %v3444_v56 = vld [vmem:[%s4585_s1 + $0x354] ss:$8 sps:$4 sm:$0xff]  }
  0x47   : >> { %598 = vmatpush1.bf16.msra.mxu0 %v3362_v57  ;;  %750 = vmatpush1.bf16.msra.mxu1 %v3365_v60  ;;  %v3447_v57 = vld [vmem:[%s4585_s1 + $0x3d4] ss:$8 sps:$4 sm:$0xff]   ;;  %v3450_v60 = vld [vmem:[%s4585_s1 + $0x344] ss:$8 sps:$4 sm:$0xff]  }
  0x48   : >> { %599 = vmatprep.subr.bf16.mxu0 %v3370_v61  ;;  %751 = vmatprep.subr.bf16.mxu1 %v3373_v62  ;;  %v3453_v61 = vld [vmem:[%s4585_s1 + $0x3c4] ss:$8 sps:$4 sm:$0xff]   ;;  %v3448_v62 = vld [vmem:[%s4585_s1 + $0x340] ss:$8 sps:$4 sm:$0xff]  }
  0x4b   : >> { %600 = vmatpush1.bf16.msra.mxu0 %v3368_v63  ;;  %752 = vmatpush1.bf16.msra.mxu1 %v3371_v3  ;;  %v3451_v63 = vld [vmem:[%s4585_s1 + $0x3c0] ss:$8 sps:$4 sm:$0xff]   ;;  %v3454_v3 = vld [vmem:[%s4585_s1 + $0x330] ss:$8 sps:$4 sm:$0xff]  }
  0x4c   : >> { %601 = vmatprep.subr.bf16.mxu0 %v3376_v4  ;;  %753 = vmatprep.subr.bf16.mxu1 %v3379_v5  ;;  %v3457_v4 = vld [vmem:[%s4585_s1 + $0x3b0] ss:$8 sps:$4 sm:$0xff]   ;;  %v3462_v5 = vld [vmem:[%s4585_s1 + $0x324] ss:$8 sps:$4 sm:$0xff]  }
  0x4f   : >> { %602 = vmatpush1.bf16.msra.mxu0 %v3374_v6  ;;  %754 = vmatpush1.bf16.msra.mxu1 %v3377_v11  ;;  %v3465_v6 = vld [vmem:[%s4585_s1 + $0x3a4] ss:$8 sps:$4 sm:$0xff]   ;;  %v3468_v11 = vld [vmem:[%s4585_s1 + $0x314] ss:$8 sps:$4 sm:$0xff]  }
  0x50   : >> { %883 = vmatprep.subr.bf16.mxu0 %v3384_v12  ;;  %1027 = vmatprep.subr.bf16.mxu1 %v3387_v13  ;;  %v3471_v12 = vld [vmem:[%s4585_s1 + $0x394] ss:$8 sps:$4 sm:$0xff]   ;;  %v1094_v13 = vshll.u32 %v3478_v7, 16 }
  0x52   : >> { %620 = vmatmul.mubr.bf16.vlgmr.msra.gmra.mxu0 %v505_v14  ;;  %772 = vmatmul.mubr.bf16.vlgmr.msra.gmra.mxu1 %v657_v15  ;;  %v1246_v14 = vshll.u32 %v3479_v8, 16  ;;  %v3466_v15 = vld [vmem:[%s4585_s1 + $0x310] ss:$8 sps:$4 sm:$0xff]  }
  0x53   : >> { %884 = vmatpush1.bf16.msra.mxu0 %v3382_v16  ;;  %1028 = vmatpush1.bf16.msra.mxu1 %v3385_v17  ;;  %v3469_v16 = vld [vmem:[%s4585_s1 + $0x390] ss:$8 sps:$4 sm:$0xff]   ;;  %v3474_v17 = vld [vmem:[%s4585_s1 + $0x304] ss:$8 sps:$4 sm:$0xff]  }
  0x54   : >> { %885 = vmatprep.subr.bf16.mxu0 %v3390_v18  ;;  %1029 = vmatprep.subr.bf16.mxu1 %v3393_v19  ;;  %v3477_v18 = vld [vmem:[%s4585_s1 + $0x384] ss:$8 sps:$4 sm:$0xff]   ;;  %v1092_v19 = vshrl.u32 %v3478_v7, 16  ;;  %v3545_v7 = vld [vmem:[%s4585_s1 + $0x5d4] ss:$8 sps:$4 sm:$0xff]  }
  0x55   : >> { %915 = vmatprep.mubr.bf16.mxu0 %v3708_v2  ;;  %1059 = vmatprep.mubr.bf16.mxu1 %v3708_v2 }
  0x57   : >> { %886 = vmatpush1.bf16.msra.mxu0 %v3388_v20  ;;  %1030 = vmatpush1.bf16.msra.mxu1 %v3391_v21  ;;  %v1096_v20 = vrot.slane %v1094_v13, 1  ;;  %v1244_v21 = vshrl.u32 %v3479_v8, 16  ;;  %v3540_v8 = vld [vmem:[%s4585_s1 + $0x550] ss:$8 sps:$4 sm:$0xff]   ;;  %v3549_v13 = vld [vmem:[%s4585_s1 + $0x5c0] ss:$8 sps:$4 sm:$0xff]  }
  0x58   : >> { %887 = vmatprep.subr.bf16.mxu0 %v3396_v22  ;;  %1031 = vmatprep.subr.bf16.mxu1 %v3399_v23  ;;  %v1248_v22 = vrot.slane %v1246_v14, 1  ;;  %v3472_v23 = vld [vmem:[%s4585_s1 + $0x300] ss:$8 sps:$4 sm:$0xff]   ;;  %v3554_v14 = vld [vmem:[%s4585_s1 + $0x534] ss:$8 sps:$4 sm:$0xff]  }
  0x5b   : >> { %888 = vmatpush1.bf16.msra.mxu0 %v3394_v24  ;;  %1032 = vmatpush1.bf16.msra.mxu1 %v3397_v25  ;;  %v3475_v24 = vld [vmem:[%s4585_s1 + $0x380] ss:$8 sps:$4 sm:$0xff]   ;;  %v3482_v25 = vld [vmem:[%s4585_s1 + $0x474] ss:$8 sps:$4 sm:$0xff]  }
  0x5c   : >> { %889 = vmatprep.subr.bf16.mxu0 %v3402_v26  ;;  %1033 = vmatprep.subr.bf16.mxu1 %v3405_v27  ;;  %v3485_v26 = vld [vmem:[%s4585_s1 + $0x4f4] ss:$8 sps:$4 sm:$0xff]   ;;  %v1097_v27 = vor.u32 %v1096_v20, %v1092_v19  ;;  %v3563_v19 = vld [vmem:[%s4585_s1 + $0x5a4] ss:$8 sps:$4 sm:$0xff]  }
  0x5d   : >> { %v3576_v20 = vld [vmem:[%s3853_s14 + $0x4] ss:$0 sps:$4 sm:$0x77]  }
  0x5f   : >> { %890 = vmatpush1.bf16.msra.mxu0 %v3400_v28  ;;  %1034 = vmatpush1.bf16.msra.mxu1 %v3403_v29  ;;  %v1249_v28 = vor.u32 %v1248_v22, %v1244_v21  ;;  %v3480_v29 = vld [vmem:[%s4585_s1 + $0x470] ss:$8 sps:$4 sm:$0xff]   ;;  %v3558_v22 = vld [vmem:[%s4585_s1 + $0x520] ss:$8 sps:$4 sm:$0xff]  }
  0x60   : >> { %891 = vmatprep.subr.bf16.mxu0 %v3408_v30  ;;  %1035 = vmatprep.subr.bf16.mxu1 %v3411_v31  ;;  %v3483_v30 = vld [vmem:[%s4585_s1 + $0x4f0] ss:$8 sps:$4 sm:$0xff]   ;;  %v3488_v31 = vld [vmem:[%s4585_s1 + $0x464] ss:$8 sps:$4 sm:$0xff]  }
  0x61   : >> { %v3577_v21 = vld [vmem:[%s3853_s14 + $0x18] ss:$0 sps:$4 sm:$0x77]  }
  0x63   : >> { %892 = vmatpush1.bf16.msra.mxu0 %v3406_v32  ;;  %1036 = vmatpush1.bf16.msra.mxu1 %v3409_v33  ;;  %v3491_v32 = vld [vmem:[%s4585_s1 + $0x4e4] ss:$8 sps:$4 sm:$0xff]   ;;  %v3486_v33 = vld [vmem:[%s4585_s1 + $0x460] ss:$8 sps:$4 sm:$0xff]  }
  0x64   : >> { %893 = vmatprep.subr.bf16.mxu0 %v3414_v34  ;;  %1037 = vmatprep.subr.bf16.mxu1 %v3417_v35  ;;  %v3489_v34 = vld [vmem:[%s4585_s1 + $0x4e0] ss:$8 sps:$4 sm:$0xff]   ;;  %v3494_v35 = vld [vmem:[%s4585_s1 + $0x454] ss:$8 sps:$4 sm:$0xff]  }
  0x67   : >> { %894 = vmatpush1.bf16.msra.mxu0 %v3412_v36  ;;  %1038 = vmatpush1.bf16.msra.mxu1 %v3415_v37  ;;  %v3497_v36 = vld [vmem:[%s4585_s1 + $0x4d4] ss:$8 sps:$4 sm:$0xff]   ;;  %v3492_v37 = vld [vmem:[%s4585_s1 + $0x450] ss:$8 sps:$4 sm:$0xff]  }
  0x68   : >> { %895 = vmatprep.subr.bf16.mxu0 %v3420_v38  ;;  %1039 = vmatprep.subr.bf16.mxu1 %v3423_v39  ;;  %v3495_v38 = vld [vmem:[%s4585_s1 + $0x4d0] ss:$8 sps:$4 sm:$0xff]   ;;  %v3500_v39 = vld [vmem:[%s4585_s1 + $0x444] ss:$8 sps:$4 sm:$0xff]  }
  0x6b   : >> { %896 = vmatpush1.bf16.msra.mxu0 %v3418_v40  ;;  %1040 = vmatpush1.bf16.msra.mxu1 %v3421_v41  ;;  %v3503_v40 = vld [vmem:[%s4585_s1 + $0x4c4] ss:$8 sps:$4 sm:$0xff]   ;;  %v3498_v41 = vld [vmem:[%s4585_s1 + $0x440] ss:$8 sps:$4 sm:$0xff]  }
  0x6c   : >> { %897 = vmatprep.subr.bf16.mxu0 %v3426_v42  ;;  %1041 = vmatprep.subr.bf16.mxu1 %v3429_v43  ;;  %v3501_v42 = vld [vmem:[%s4585_s1 + $0x4c0] ss:$8 sps:$4 sm:$0xff]   ;;  %v3506_v43 = vld [vmem:[%s4585_s1 + $0x434] ss:$8 sps:$4 sm:$0xff]  }
  0x6f   : >> { %898 = vmatpush1.bf16.msra.mxu0 %v3424_v44  ;;  %1042 = vmatpush1.bf16.msra.mxu1 %v3427_v45  ;;  %v3509_v44 = vld [vmem:[%s4585_s1 + $0x4b4] ss:$8 sps:$4 sm:$0xff]   ;;  %v3504_v45 = vld [vmem:[%s4585_s1 + $0x430] ss:$8 sps:$4 sm:$0xff]  }
  0x70   : >> { %1179 = vmatprep.subr.bf16.mxu0 %v3432_v46  ;;  %1331 = vmatprep.subr.bf16.mxu1 %v3435_v47  ;;  %v3507_v46 = vld [vmem:[%s4585_s1 + $0x4b0] ss:$8 sps:$4 sm:$0xff]   ;;  %v3512_v47 = vld [vmem:[%s4585_s1 + $0x424] ss:$8 sps:$4 sm:$0xff]  }
  0x72   : >> { %916 = vmatmul.mubr.bf16.vlgmr.msra.gmra.mxu0 %v2835_v48  ;;  %1060 = vmatmul.mubr.bf16.vlgmr.msra.gmra.mxu1 %v2869_v49  ;;  %v3515_v48 = vld [vmem:[%s4585_s1 + $0x4a4] ss:$8 sps:$4 sm:$0xff]   ;;  %v3510_v49 = vld [vmem:[%s4585_s1 + $0x420] ss:$8 sps:$4 sm:$0xff]  }
  0x73   : >> { %1180 = vmatpush1.bf16.msra.mxu0 %v3430_v50  ;;  %1332 = vmatpush1.bf16.msra.mxu1 %v3433_v51  ;;  %v3513_v50 = vld [vmem:[%s4585_s1 + $0x4a0] ss:$8 sps:$4 sm:$0xff]   ;;  %v3518_v51 = vld [vmem:[%s4585_s1 + $0x414] ss:$8 sps:$4 sm:$0xff]  }
  0x74   : >> { %1181 = vmatprep.subr.bf16.mxu0 %v3438_v52  ;;  %1333 = vmatprep.subr.bf16.mxu1 %v3441_v53  ;;  %v3521_v52 = vld [vmem:[%s4585_s1 + $0x494] ss:$8 sps:$4 sm:$0xff]   ;;  %v3516_v53 = vld [vmem:[%s4585_s1 + $0x410] ss:$8 sps:$4 sm:$0xff]  }
  0x75   : >> { %1211 = vmatprep.mubr.bf16.mxu0 %v3708_v2  ;;  %1363 = vmatprep.mubr.bf16.mxu1 %v3708_v2 }
  0x77   : >> { %1182 = vmatpush1.bf16.msra.mxu0 %v3436_v54  ;;  %1334 = vmatpush1.bf16.msra.mxu1 %v3439_v55  ;;  %v3519_v54 = vld [vmem:[%s4585_s1 + $0x490] ss:$8 sps:$4 sm:$0xff]   ;;  %v3524_v55 = vld [vmem:[%s4585_s1 + $0x404] ss:$8 sps:$4 sm:$0xff]  }
  0x78   : >> { %1183 = vmatprep.subr.bf16.mxu0 %v3444_v56  ;;  %1335 = vmatprep.subr.bf16.mxu1 %v3447_v57  ;;  %v3527_v56 = vld [vmem:[%s4585_s1 + $0x484] ss:$8 sps:$4 sm:$0xff]   ;;  %v3522_v57 = vld [vmem:[%s4585_s1 + $0x400] ss:$8 sps:$4 sm:$0xff]  }
  0x7b   : >> { %1184 = vmatpush1.bf16.msra.mxu0 %v3442_v58  ;;  %1336 = vmatpush1.bf16.msra.mxu1 %v3445_v59  ;;  %v3525_v58 = vld [vmem:[%s4585_s1 + $0x480] ss:$8 sps:$4 sm:$0xff]   ;;  %v3530_v59 = vld [vmem:[%s4585_s1 + $0x574] ss:$8 sps:$4 sm:$0xff]  }
  0x7c   : >> { %1185 = vmatprep.subr.bf16.mxu0 %v3450_v60  ;;  %1337 = vmatprep.subr.bf16.mxu1 %v3453_v61  ;;  %v3533_v60 = vld [vmem:[%s4585_s1 + $0x5f4] ss:$8 sps:$4 sm:$0xff]   ;;  %v2971_v61 = vld [vmem:[%s3853_s14 + $0x4] sm:$0x3] }
  0x7f   : >> { %1186 = vmatpush1.bf16.msra.mxu0 %v3448_v62  ;;  %1338 = vmatpush1.bf16.msra.mxu1 %v3451_v63  ;;  %v3005_v62 = vld [vmem:[%s3853_s14 + $0x18] sm:$0x3] }
  0x80   : >> { %1187 = vmatprep.subr.bf16.mxu0 %v3456_v0  ;;  %1339 = vmatprep.subr.bf16.mxu1 %v3459_v1  ;;  %v3528_v63 = vld [vmem:[%s4585_s1 + $0x570] ss:$8 sps:$4 sm:$0xff]   ;;  %v3536_v1 = vld [vmem:[%s4585_s1 + $0x564] ss:$8 sps:$4 sm:$0xff]  }
  0x81   : >> { %v3531_v0 = vld [vmem:[%s4585_s1 + $0x5f0] ss:$8 sps:$4 sm:$0xff]  }
  0x83   : >> { %1188 = vmatpush1.bf16.msra.mxu0 %v3454_v3  ;;  %1340 = vmatpush1.bf16.msra.mxu1 %v3457_v4  ;;  %v3539_v3 = vld [vmem:[%s4585_s1 + $0x5e4] ss:$8 sps:$4 sm:$0xff]   ;;  %v3534_v4 = vld [vmem:[%s4585_s1 + $0x560] ss:$8 sps:$4 sm:$0xff]  }
  0x84   : >> { %1189 = vmatprep.subr.bf16.mxu0 %v3462_v5  ;;  %1341 = vmatprep.subr.bf16.mxu1 %v3465_v6  ;;  %v3537_v5 = vld [vmem:[%s4585_s1 + $0x5e0] ss:$8 sps:$4 sm:$0xff]   ;;  %v3542_v6 = vld [vmem:[%s4585_s1 + $0x554] ss:$8 sps:$4 sm:$0xff]  }
  0x87   : >> { %1190 = vmatpush1.bf16.msra.mxu0 %v3460_v9  ;;  %1342 = vmatpush1.bf16.msra.mxu1 %v3463_v10  ;;  %v3543_v9 = vld [vmem:[%s4585_s1 + $0x5d0] ss:$8 sps:$4 sm:$0xff]   ;;  %v3548_v10 = vld [vmem:[%s4585_s1 + $0x544] ss:$8 sps:$4 sm:$0xff]  }
  0x88   : >> { %1191 = vmatprep.subr.bf16.mxu0 %v3468_v11  ;;  %1343 = vmatprep.subr.bf16.mxu1 %v3471_v12  ;;  %v3551_v11 = vld [vmem:[%s4585_s1 + $0x5c4] ss:$8 sps:$4 sm:$0xff]   ;;  %v3546_v12 = vld [vmem:[%s4585_s1 + $0x540] ss:$8 sps:$4 sm:$0xff]  }
  0x8b   : >> { %1192 = vmatpush1.bf16.msra.mxu0 %v3466_v15  ;;  %1344 = vmatpush1.bf16.msra.mxu1 %v3469_v16  ;;  %v3557_v15 = vld [vmem:[%s4585_s1 + $0x5b4] ss:$8 sps:$4 sm:$0xff]   ;;  %v3552_v16 = vld [vmem:[%s4585_s1 + $0x530] ss:$8 sps:$4 sm:$0xff]  }
  0x8c   : >> { %1193 = vmatprep.subr.bf16.mxu0 %v3474_v17  ;;  %1345 = vmatprep.subr.bf16.mxu1 %v3477_v18  ;;  %v3555_v17 = vld [vmem:[%s4585_s1 + $0x5b0] ss:$8 sps:$4 sm:$0xff]   ;;  %v3560_v18 = vld [vmem:[%s4585_s1 + $0x524] ss:$8 sps:$4 sm:$0xff]  }
  0x8f   : >> { %1194 = vmatpush1.bf16.msra.mxu0 %v3472_v23  ;;  %1346 = vmatpush1.bf16.msra.mxu1 %v3475_v24  ;;  %v3561_v23 = vld [vmem:[%s4585_s1 + $0x5a0] ss:$8 sps:$4 sm:$0xff]   ;;  %v3566_v24 = vld [vmem:[%s4585_s1 + $0x514] ss:$8 sps:$4 sm:$0xff]  }
  0x90   : >> { %1475 = vmatprep.subr.bf16.mxu0 %v3482_v25  ;;  %1619 = vmatprep.subr.bf16.mxu1 %v3485_v26  ;;  %v3569_v25 = vld [vmem:[%s4585_s1 + $0x594] ss:$8 sps:$4 sm:$0xff]   ;;  %v1686_v26 = vshll.u32 %v3576_v20, 16 }
  0x92   : >> { %1212 = vmatmul.mubr.bf16.vlgmr.msra.gmra.mxu0 %v1097_v27  ;;  %1364 = vmatmul.mubr.bf16.vlgmr.msra.gmra.mxu1 %v1249_v28  ;;  %v1838_v27 = vshll.u32 %v3577_v21, 16  ;;  %v3564_v28 = vld [vmem:[%s4585_s1 + $0x510] ss:$8 sps:$4 sm:$0xff]  }
  0x93   : >> { %1476 = vmatpush1.bf16.msra.mxu0 %v3480_v29  ;;  %1620 = vmatpush1.bf16.msra.mxu1 %v3483_v30  ;;  %v3567_v29 = vld [vmem:[%s4585_s1 + $0x590] ss:$8 sps:$4 sm:$0xff]   ;;  %v3572_v30 = vld [vmem:[%s4585_s1 + $0x504] ss:$8 sps:$4 sm:$0xff]  }
  0x94   : >> { %1477 = vmatprep.subr.bf16.mxu0 %v3488_v31  ;;  %1621 = vmatprep.subr.bf16.mxu1 %v3491_v32  ;;  %v3575_v31 = vld [vmem:[%s4585_s1 + $0x584] ss:$8 sps:$4 sm:$0xff]   ;;  %v1684_v32 = vshrl.u32 %v3576_v20, 16  ;;  %v3632_v20 = vld [vmem:[%s4585_s1 + $0x760] ss:$8 sps:$4 sm:$0xff]  }
  0x95   : >> { %1507 = vmatprep.mubr.bf16.mxu0 %v3708_v2  ;;  %1651 = vmatprep.mubr.bf16.mxu1 %v3708_v2 }
  0x97   : >> { %1478 = vmatpush1.bf16.msra.mxu0 %v3486_v33  ;;  %1622 = vmatpush1.bf16.msra.mxu1 %v3489_v34  ;;  %v1688_v33 = vrot.slane %v1686_v26, 1  ;;  %v1836_v34 = vshrl.u32 %v3577_v21, 16  ;;  %v3635_v21 = vld [vmem:[%s4585_s1 + $0x7e0] ss:$8 sps:$4 sm:$0xff]  }
  0x98   : >> { %1479 = vmatprep.subr.bf16.mxu0 %v3494_v35  ;;  %1623 = vmatprep.subr.bf16.mxu1 %v3497_v36  ;;  %v1840_v35 = vrot.slane %v1838_v27, 1  ;;  %v3570_v36 = vld [vmem:[%s4585_s1 + $0x500] ss:$8 sps:$4 sm:$0xff]  }
  0x9b   : >> { %1480 = vmatpush1.bf16.msra.mxu0 %v3492_v37  ;;  %1624 = vmatpush1.bf16.msra.mxu1 %v3495_v38  ;;  %v3573_v37 = vld [vmem:[%s4585_s1 + $0x580] ss:$8 sps:$4 sm:$0xff]   ;;  %v3580_v38 = vld [vmem:[%s4585_s1 + $0x674] ss:$8 sps:$4 sm:$0xff]  }
  0x9c   : >> { %1481 = vmatprep.subr.bf16.mxu0 %v3500_v39  ;;  %1625 = vmatprep.subr.bf16.mxu1 %v3503_v40  ;;  %v3583_v39 = vld [vmem:[%s4585_s1 + $0x6f4] ss:$8 sps:$4 sm:$0xff]   ;;  %v1689_v40 = vor.u32 %v1688_v33, %v1684_v32  ;;  %v3649_v33 = vld [vmem:[%s4585_s1 + $0x7c4] ss:$8 sps:$4 sm:$0xff]  }
  0x9f   : >> { %1482 = vmatpush1.bf16.msra.mxu0 %v3498_v41  ;;  %1626 = vmatpush1.bf16.msra.mxu1 %v3501_v42  ;;  %v1841_v41 = vor.u32 %v1840_v35, %v1836_v34  ;;  %v3578_v42 = vld [vmem:[%s4585_s1 + $0x670] ss:$8 sps:$4 sm:$0xff]   ;;  %v3644_v34 = vld [vmem:[%s4585_s1 + $0x740] ss:$8 sps:$4 sm:$0xff]  }
  0xa0   : >> { %1483 = vmatprep.subr.bf16.mxu0 %v3506_v43  ;;  %1627 = vmatprep.subr.bf16.mxu1 %v3509_v44  ;;  %v3581_v43 = vld [vmem:[%s4585_s1 + $0x6f0] ss:$8 sps:$4 sm:$0xff]   ;;  %v3586_v44 = vld [vmem:[%s4585_s1 + $0x664] ss:$8 sps:$4 sm:$0xff]   ;;  %v3647_v35 = vld [vmem:[%s4585_s1 + $0x7c0] ss:$8 sps:$4 sm:$0xff]  }
  0xa3   : >> { %1484 = vmatpush1.bf16.msra.mxu0 %v3504_v45  ;;  %1628 = vmatpush1.bf16.msra.mxu1 %v3507_v46  ;;  %v3589_v45 = vld [vmem:[%s4585_s1 + $0x6e4] ss:$8 sps:$4 sm:$0xff]   ;;  %v3584_v46 = vld [vmem:[%s4585_s1 + $0x660] ss:$8 sps:$4 sm:$0xff]  }
  0xa4   : >> { %1485 = vmatprep.subr.bf16.mxu0 %v3512_v47  ;;  %1629 = vmatprep.subr.bf16.mxu1 %v3515_v48  ;;  %v3587_v47 = vld [vmem:[%s4585_s1 + $0x6e0] ss:$8 sps:$4 sm:$0xff]   ;;  %v3592_v48 = vld [vmem:[%s4585_s1 + $0x654] ss:$8 sps:$4 sm:$0xff]  }
  0xa7   : >> { %1486 = vmatpush1.bf16.msra.mxu0 %v3510_v49  ;;  %1630 = vmatpush1.bf16.msra.mxu1 %v3513_v50  ;;  %v3595_v49 = vld [vmem:[%s4585_s1 + $0x6d4] ss:$8 sps:$4 sm:$0xff]   ;;  %v3590_v50 = vld [vmem:[%s4585_s1 + $0x650] ss:$8 sps:$4 sm:$0xff]  }
  0xa8   : >> { %1487 = vmatprep.subr.bf16.mxu0 %v3518_v51  ;;  %1631 = vmatprep.subr.bf16.mxu1 %v3521_v52  ;;  %v3593_v51 = vld [vmem:[%s4585_s1 + $0x6d0] ss:$8 sps:$4 sm:$0xff]   ;;  %v3598_v52 = vld [vmem:[%s4585_s1 + $0x644] ss:$8 sps:$4 sm:$0xff]  }
  0xab   : >> { %1488 = vmatpush1.bf16.msra.mxu0 %v3516_v53  ;;  %1632 = vmatpush1.bf16.msra.mxu1 %v3519_v54  ;;  %v3601_v53 = vld [vmem:[%s4585_s1 + $0x6c4] ss:$8 sps:$4 sm:$0xff]   ;;  %v3596_v54 = vld [vmem:[%s4585_s1 + $0x640] ss:$8 sps:$4 sm:$0xff]  }
  0xac   : >> { %1489 = vmatprep.subr.bf16.mxu0 %v3524_v55  ;;  %1633 = vmatprep.subr.bf16.mxu1 %v3527_v56  ;;  %v3599_v55 = vld [vmem:[%s4585_s1 + $0x6c0] ss:$8 sps:$4 sm:$0xff]   ;;  %v3604_v56 = vld [vmem:[%s4585_s1 + $0x634] ss:$8 sps:$4 sm:$0xff]  }
  0xaf   : >> { %1490 = vmatpush1.bf16.msra.mxu0 %v3522_v57  ;;  %1634 = vmatpush1.bf16.msra.mxu1 %v3525_v58  ;;  %v3607_v57 = vld [vmem:[%s4585_s1 + $0x6b4] ss:$8 sps:$4 sm:$0xff]   ;;  %v3602_v58 = vld [vmem:[%s4585_s1 + $0x630] ss:$8 sps:$4 sm:$0xff]  }
  0xb0   : >> { %1771 = vmatprep.subr.bf16.mxu0 %v3530_v59  ;;  %1923 = vmatprep.subr.bf16.mxu1 %v3533_v60  ;;  %v3605_v59 = vld [vmem:[%s4585_s1 + $0x6b0] ss:$8 sps:$4 sm:$0xff]   ;;  %v3610_v60 = vld [vmem:[%s4585_s1 + $0x624] ss:$8 sps:$4 sm:$0xff]  }
  0xb2   : >> { %1508 = vmatmul.mubr.bf16.vlgmr.msra.gmra.mxu0 %v2971_v61  ;;  %1652 = vmatmul.mubr.bf16.vlgmr.msra.gmra.mxu1 %v3005_v62  ;;  %v3613_v61 = vld [vmem:[%s4585_s1 + $0x6a4] ss:$8 sps:$4 sm:$0xff]   ;;  %v3608_v62 = vld [vmem:[%s4585_s1 + $0x620] ss:$8 sps:$4 sm:$0xff]  }
  0xb3   : >> { %1772 = vmatpush1.bf16.msra.mxu0 %v3528_v63  ;;  %1924 = vmatpush1.bf16.msra.mxu1 %v3531_v0  ;;  %v3611_v63 = vld [vmem:[%s4585_s1 + $0x6a0] ss:$8 sps:$4 sm:$0xff]   ;;  %v3616_v0 = vld [vmem:[%s4585_s1 + $0x614] ss:$8 sps:$4 sm:$0xff]  }
  0xb4   : >> { %1773 = vmatprep.subr.bf16.mxu0 %v3536_v1  ;;  %1925 = vmatprep.subr.bf16.mxu1 %v3539_v3  ;;  %v3619_v1 = vld [vmem:[%s4585_s1 + $0x694] ss:$8 sps:$4 sm:$0xff]   ;;  %v3614_v3 = vld [vmem:[%s4585_s1 + $0x610] ss:$8 sps:$4 sm:$0xff]  }
  0xb5   : >> { %1803 = vmatprep.mubr.bf16.mxu0 %v3708_v2  ;;  %1955 = vmatprep.mubr.bf16.mxu1 %v3708_v2 }
  0xb7   : >> { %1774 = vmatpush1.bf16.msra.mxu0 %v3534_v4  ;;  %1926 = vmatpush1.bf16.msra.mxu1 %v3537_v5  ;;  %v3617_v4 = vld [vmem:[%s4585_s1 + $0x690] ss:$8 sps:$4 sm:$0xff]   ;;  %v3622_v5 = vld [vmem:[%s4585_s1 + $0x604] ss:$8 sps:$4 sm:$0xff]  }
  0xb8   : >> { %1775 = vmatprep.subr.bf16.mxu0 %v3542_v6  ;;  %1927 = vmatprep.subr.bf16.mxu1 %v3545_v7  ;;  %v3625_v6 = vld [vmem:[%s4585_s1 + $0x684] ss:$8 sps:$4 sm:$0xff]   ;;  %v3620_v7 = vld [vmem:[%s4585_s1 + $0x600] ss:$8 sps:$4 sm:$0xff]  }
  0xbb   : >> { %1776 = vmatpush1.bf16.msra.mxu0 %v3540_v8  ;;  %1928 = vmatpush1.bf16.msra.mxu1 %v3543_v9  ;;  %v3623_v8 = vld [vmem:[%s4585_s1 + $0x680] ss:$8 sps:$4 sm:$0xff]   ;;  %v3628_v9 = vld [vmem:[%s4585_s1 + $0x774] ss:$8 sps:$4 sm:$0xff]  }
  0xbc   : >> { %1777 = vmatprep.subr.bf16.mxu0 %v3548_v10  ;;  %1929 = vmatprep.subr.bf16.mxu1 %v3551_v11  ;;  %v3631_v10 = vld [vmem:[%s4585_s1 + $0x7f4] ss:$8 sps:$4 sm:$0xff]   ;;  %v3107_v11 = vld [vmem:[%s3853_s14 + $0x2c] sm:$0x3] }
  0xbf   : >> { %1778 = vmatpush1.bf16.msra.mxu0 %v3546_v12  ;;  %1930 = vmatpush1.bf16.msra.mxu1 %v3549_v13  ;;  %v3141_v12 = vld [vmem:[%s3853_s14 + $0x40] sm:$0x3]  ;;  %v3626_v13 = vld [vmem:[%s4585_s1 + $0x770] ss:$8 sps:$4 sm:$0xff]  }
  0xc0   : >> { %1779 = vmatprep.subr.bf16.mxu0 %v3554_v14  ;;  %1931 = vmatprep.subr.bf16.mxu1 %v3557_v15  ;;  %v3629_v14 = vld [vmem:[%s4585_s1 + $0x7f0] ss:$8 sps:$4 sm:$0xff]   ;;  %v3634_v15 = vld [vmem:[%s4585_s1 + $0x764] ss:$8 sps:$4 sm:$0xff]  }
  0xc3   : >> { %1780 = vmatpush1.bf16.msra.mxu0 %v3552_v16  ;;  %1932 = vmatpush1.bf16.msra.mxu1 %v3555_v17  ;;  %v3637_v16 = vld [vmem:[%s4585_s1 + $0x7e4] ss:$8 sps:$4 sm:$0xff]  }
  0xc4   : >> { %1781 = vmatprep.subr.bf16.mxu0 %v3560_v18  ;;  %1933 = vmatprep.subr.bf16.mxu1 %v3563_v19 }
  0xc7   : >> { %1782 = vmatpush1.bf16.msra.mxu0 %v3558_v22  ;;  %1934 = vmatpush1.bf16.msra.mxu1 %v3561_v23 }
  0xc8   : >> { %1783 = vmatprep.subr.bf16.mxu0 %v3566_v24  ;;  %1935 = vmatprep.subr.bf16.mxu1 %v3569_v25  ;;  %v3640_v24 = vld [vmem:[%s4585_s1 + $0x754] ss:$8 sps:$4 sm:$0xff]  }
  0xc9   : >> { %v3643_v25 = vld [vmem:[%s4585_s1 + $0x7d4] ss:$8 sps:$4 sm:$0xff]  }
  0xcb   : >> { %1784 = vmatpush1.bf16.msra.mxu0 %v3564_v28  ;;  %1936 = vmatpush1.bf16.msra.mxu1 %v3567_v29  ;;  %v3638_v29 = vld [vmem:[%s4585_s1 + $0x750] ss:$8 sps:$4 sm:$0xff]  }
  0xcc   : >> { %1785 = vmatprep.subr.bf16.mxu0 %v3572_v30  ;;  %1937 = vmatprep.subr.bf16.mxu1 %v3575_v31  ;;  %v3641_v30 = vld [vmem:[%s4585_s1 + $0x7d0] ss:$8 sps:$4 sm:$0xff]  }
  0xcf   : >> { %1786 = vmatpush1.bf16.msra.mxu0 %v3570_v36  ;;  %1938 = vmatpush1.bf16.msra.mxu1 %v3573_v37  ;;  %v3652_v36 = vld [vmem:[%s4585_s1 + $0x734] ss:$8 sps:$4 sm:$0xff]  }
  0xd0   : >> { %2067 = vmatprep.subr.bf16.mxu0 %v3580_v38  ;;  %2211 = vmatprep.subr.bf16.mxu1 %v3583_v39  ;;  %v3655_v37 = vld [vmem:[%s4585_s1 + $0x7b4] ss:$8 sps:$4 sm:$0xff]   ;;  %v3650_v38 = vld [vmem:[%s4585_s1 + $0x730] ss:$8 sps:$4 sm:$0xff]  }
  0xd1   : >> { %v3653_v39 = vld [vmem:[%s4585_s1 + $0x7b0] ss:$8 sps:$4 sm:$0xff]  }
  0xd2   : >> { %1804 = vmatmul.mubr.bf16.vlgmr.msra.gmra.mxu0 %v1689_v40  ;;  %1956 = vmatmul.mubr.bf16.vlgmr.msra.gmra.mxu1 %v1841_v41  ;;  %v3658_v40 = vld [vmem:[%s4585_s1 + $0x724] ss:$8 sps:$4 sm:$0xff]  }
  0xd3   : >> { %2068 = vmatpush1.bf16.msra.mxu0 %v3578_v42  ;;  %2212 = vmatpush1.bf16.msra.mxu1 %v3581_v43  ;;  %v3661_v41 = vld [vmem:[%s4585_s1 + $0x7a4] ss:$8 sps:$4 sm:$0xff]   ;;  %v3675_v43 = vld [vmem:[%s3853_s14 + $0x40] ss:$0 sps:$4 sm:$0x77]  }
  0xd4   : >> { %2069 = vmatprep.subr.bf16.mxu0 %v3586_v44  ;;  %2213 = vmatprep.subr.bf16.mxu1 %v3589_v45  ;;  %v3674_v42 = vld [vmem:[%s3853_s14 + $0x2c] ss:$0 sps:$4 sm:$0x77]   ;;  %v3656_v44 = vld [vmem:[%s4585_s1 + $0x720] ss:$8 sps:$4 sm:$0xff]  }
  0xd5   : >> { %2099 = vmatprep.mubr.bf16.mxu0 %v3708_v2  ;;  %2243 = vmatprep.mubr.bf16.mxu1 %v3708_v2  ;;  %v3659_v45 = vld [vmem:[%s4585_s1 + $0x7a0] ss:$8 sps:$4 sm:$0xff]  }
  0xd7   : >> { %2070 = vmatpush1.bf16.msra.mxu0 %v3584_v46  ;;  %2214 = vmatpush1.bf16.msra.mxu1 %v3587_v47  ;;  %v3664_v46 = vld [vmem:[%s4585_s1 + $0x714] ss:$8 sps:$4 sm:$0xff]  }
  0xd8   : >> { %2071 = vmatprep.subr.bf16.mxu0 %v3592_v48  ;;  %2215 = vmatprep.subr.bf16.mxu1 %v3595_v49  ;;  %v3667_v47 = vld [vmem:[%s4585_s1 + $0x794] ss:$8 sps:$4 sm:$0xff]   ;;  %v2278_v48 = vshll.u32 %v3674_v42, 16  ;;  %v2430_v49 = vshll.u32 %v3675_v43, 16 }
  0xdb   : >> { %2072 = vmatpush1.bf16.msra.mxu0 %v3590_v50  ;;  %2216 = vmatpush1.bf16.msra.mxu1 %v3593_v51  ;;  %v3662_v50 = vld [vmem:[%s4585_s1 + $0x710] ss:$8 sps:$4 sm:$0xff]  }
  0xdc   : >> { %2073 = vmatprep.subr.bf16.mxu0 %v3598_v52  ;;  %2217 = vmatprep.subr.bf16.mxu1 %v3601_v53  ;;  %v3665_v51 = vld [vmem:[%s4585_s1 + $0x790] ss:$8 sps:$4 sm:$0xff]   ;;  %v3670_v52 = vld [vmem:[%s4585_s1 + $0x704] ss:$8 sps:$4 sm:$0xff]  }
  0xdd   : >> { %v3673_v53 = vld [vmem:[%s4585_s1 + $0x784] ss:$8 sps:$4 sm:$0xff]  }
  0xdf   : >> { %2074 = vmatpush1.bf16.msra.mxu0 %v3596_v54  ;;  %2218 = vmatpush1.bf16.msra.mxu1 %v3599_v55  ;;  %v2276_v54 = vshrl.u32 %v3674_v42, 16  ;;  %v2280_v55 = vrot.slane %v2278_v48, 1 }
  0xe0   : >> { %2075 = vmatprep.subr.bf16.mxu0 %v3604_v56  ;;  %2219 = vmatprep.subr.bf16.mxu1 %v3607_v57  ;;  %v2428_v56 = vshrl.u32 %v3675_v43, 16  ;;  %v2432_v57 = vrot.slane %v2430_v49, 1 }
  0xe3   : >> { %2076 = vmatpush1.bf16.msra.mxu0 %v3602_v58  ;;  %2220 = vmatpush1.bf16.msra.mxu1 %v3605_v59  ;;  %v3668_v58 = vld [vmem:[%s4585_s1 + $0x700] ss:$8 sps:$4 sm:$0xff]  }
  0xe4   : >> { %2077 = vmatprep.subr.bf16.mxu0 %v3610_v60  ;;  %2221 = vmatprep.subr.bf16.mxu1 %v3613_v61  ;;  %v3671_v59 = vld [vmem:[%s4585_s1 + $0x780] ss:$8 sps:$4 sm:$0xff]   ;;  %v2281_v60 = vor.u32 %v2280_v55, %v2276_v54  ;;  %v2433_v61 = vor.u32 %v2432_v57, %v2428_v56 }
  0xe7   : >> { %2078 = vmatpush1.bf16.msra.mxu0 %v3608_v62  ;;  %2222 = vmatpush1.bf16.msra.mxu1 %v3611_v63 }
  0xe8   : >> { %2079 = vmatprep.subr.bf16.mxu0 %v3616_v0  ;;  %2223 = vmatprep.subr.bf16.mxu1 %v3619_v1 }
  0xeb   : >> { %2080 = vmatpush1.bf16.msra.mxu0 %v3614_v3  ;;  %2224 = vmatpush1.bf16.msra.mxu1 %v3617_v4 }
  0xec   : >> { %2081 = vmatprep.subr.bf16.mxu0 %v3622_v5  ;;  %2225 = vmatprep.subr.bf16.mxu1 %v3625_v6 }
  0xef   : >> { %2082 = vmatpush1.bf16.msra.mxu0 %v3620_v7  ;;  %2226 = vmatpush1.bf16.msra.mxu1 %v3623_v8 }
  0xf0   : >> { %2363 = vmatprep.subr.bf16.mxu0 %v3628_v9  ;;  %2515 = vmatprep.subr.bf16.mxu1 %v3631_v10 }
  0xf2   : >> { %v350_v17 = vpop.f32.mrf.mxu0  ;;  %v471_v18 = vpop.f32.mrf.mxu1  ;;  %2100 = vmatmul.mubr.bf16.vlgmr.msra.gmra.mxu0 %v3107_v11  ;;  %2244 = vmatmul.mubr.bf16.vlgmr.msra.gmra.mxu1 %v3141_v12 }
  0xf3   : >> { %v4481_v19 = vadd.f32 %v471_v18, %v350_v17  ;;  %2364 = vmatpush1.bf16.msra.mxu0 %v3626_v13  ;;  %2516 = vmatpush1.bf16.msra.mxu1 %v3629_v14 }
  0xf4   : >> { %v352_v22 = vpop.f32.mrf.mxu0  ;;  %v473_v23 = vpop.f32.mrf.mxu1  ;;  %2365 = vmatprep.subr.bf16.mxu0 %v3634_v15  ;;  %2517 = vmatprep.subr.bf16.mxu1 %v3637_v16 }
  0xf5   : >> { %v4495_v26 = vadd.f32 %v473_v23, %v352_v22  ;;  %2395 = vmatprep.mubr.bf16.mxu0 %v3708_v2  ;;  %2547 = vmatprep.mubr.bf16.mxu1 %v3708_v2  ;;  %v3646_v2 = vld [vmem:[%s4585_s1 + $0x744] ss:$8 sps:$4 sm:$0xff]  }
  0xf6   : >> { %v354_v27 = vpop.f32.mrf.mxu0  ;;  %v475_v28 = vpop.f32.mrf.mxu1 }
  0xf7   : >> { %2366 = vmatpush1.bf16.msra.mxu0 %v3632_v20  ;;  %2518 = vmatpush1.bf16.msra.mxu1 %v3635_v21 }
  0xf8   : >> { %v355_v31 = vpop.f32.mrf.mxu0  ;;  %v476_v32 = vpop.f32.mrf.mxu1  ;;  %2367 = vmatprep.subr.bf16.mxu0 %v3640_v24  ;;  %2519 = vmatprep.subr.bf16.mxu1 %v3643_v25 }
  0xfb   : >> { %2368 = vmatpush1.bf16.msra.mxu0 %v3638_v29  ;;  %2520 = vmatpush1.bf16.msra.mxu1 %v3641_v30 }
  0xfc   : >> { %2369 = vmatprep.subr.bf16.mxu0 %v3646_v2  ;;  %2521 = vmatprep.subr.bf16.mxu1 %v3649_v33 }
  0xff   : >> { %2370 = vmatpush1.bf16.msra.mxu0 %v3644_v34  ;;  %2522 = vmatpush1.bf16.msra.mxu1 %v3647_v35 }
 0x100   : >> { %2371 = vmatprep.subr.bf16.mxu0 %v3652_v36  ;;  %2523 = vmatprep.subr.bf16.mxu1 %v3655_v37 }
 0x103   : >> { %2372 = vmatpush1.bf16.msra.mxu0 %v3650_v38  ;;  %2524 = vmatpush1.bf16.msra.mxu1 %v3653_v39 }
 0x104   : >> { %2373 = vmatprep.subr.bf16.mxu0 %v3658_v40  ;;  %2525 = vmatprep.subr.bf16.mxu1 %v3661_v41 }
 0x107   : >> { %2374 = vmatpush1.bf16.msra.mxu0 %v3656_v44  ;;  %2526 = vmatpush1.bf16.msra.mxu1 %v3659_v45 }
 0x108   : >> { %2375 = vmatprep.subr.bf16.mxu0 %v3664_v46  ;;  %2527 = vmatprep.subr.bf16.mxu1 %v3667_v47 }
 0x10b   : >> { %2376 = vmatpush1.bf16.msra.mxu0 %v3662_v50  ;;  %2528 = vmatpush1.bf16.msra.mxu1 %v3665_v51 }
 0x10c   : >> { %2377 = vmatprep.subr.bf16.mxu0 %v3670_v52  ;;  %2529 = vmatprep.subr.bf16.mxu1 %v3673_v53 }
 0x10f   : >> { %2378 = vmatpush1.bf16.msra.mxu0 %v3668_v58  ;;  %2530 = vmatpush1.bf16.msra.mxu1 %v3671_v59 }
 0x112   : >> { %v621_v62 = vpop.f32.mrf.mxu0  ;;  %v773_v63 = vpop.f32.mrf.mxu1  ;;  %2396 = vmatmul.mubr.bf16.vlgmr.msra.gmra.mxu0 %v2281_v60  ;;  %2548 = vmatmul.mubr.bf16.vlgmr.msra.gmra.mxu1 %v2433_v61 }
 0x113   : >> { %v628_v0 = vadd.f32 %v621_v62, %v4481_v19 }
 0x114   : >> { %v623_v1 = vpop.f32.mrf.mxu0  ;;  %v775_v3 = vpop.f32.mrf.mxu1 }
 0x115   : >> { %v780_v4 = vadd.f32 %v773_v63, %v628_v0  ;;  %v629_v5 = vadd.f32 %v623_v1, %v4495_v26 }
 0x116   : >> { %v625_v6 = vpop.f32.mrf.mxu0  ;;  %v777_v7 = vpop.f32.mrf.mxu1 }
 0x117   : >> { %v781_v8 = vadd.f32 %v775_v3, %v629_v5 }
 0x118   : >> { %v626_v9 = vpop.f32.mrf.mxu0  ;;  %v778_v10 = vpop.f32.mrf.mxu1 }
 0x132   : >> { %v917_v11 = vpop.f32.mrf.mxu0  ;;  %v1061_v12 = vpop.f32.mrf.mxu1 }
 0x133   : >> { %v924_v13 = vadd.f32 %v917_v11, %v780_v4 }
 0x134   : >> { %v919_v14 = vpop.f32.mrf.mxu0  ;;  %v1063_v15 = vpop.f32.mrf.mxu1 }
 0x135   : >> { %v1068_v16 = vadd.f32 %v1061_v12, %v924_v13  ;;  %v925_v17 = vadd.f32 %v919_v14, %v781_v8 }
 0x136   : >> { %v921_v18 = vpop.f32.mrf.mxu0  ;;  %v1065_v20 = vpop.f32.mrf.mxu1 }
 0x137   : >> { %v1069_v19 = vadd.f32 %v1063_v15, %v925_v17 }
 0x138   : >> { %v922_v21 = vpop.f32.mrf.mxu0  ;;  %v1066_v22 = vpop.f32.mrf.mxu1 }
 0x152   : >> { %v1213_v23 = vpop.f32.mrf.mxu0  ;;  %v1365_v24 = vpop.f32.mrf.mxu1 }
 0x153   : >> { %v1220_v25 = vadd.f32 %v1213_v23, %v1068_v16 }
 0x154   : >> { %v1215_v26 = vpop.f32.mrf.mxu0  ;;  %v1367_v27 = vpop.f32.mrf.mxu1 }
 0x155   : >> { %v1372_v28 = vadd.f32 %v1365_v24, %v1220_v25  ;;  %v1221_v29 = vadd.f32 %v1215_v26, %v1069_v19 }
 0x156   : >> { %v1217_v30 = vpop.f32.mrf.mxu0  ;;  %v1369_v31 = vpop.f32.mrf.mxu1 }
 0x157   : >> { %v1373_v32 = vadd.f32 %v1367_v27, %v1221_v29 }
 0x158   : >> { %v1218_v2 = vpop.f32.mrf.mxu0  ;;  %v1370_v33 = vpop.f32.mrf.mxu1 }
 0x172   : >> { %v1509_v34 = vpop.f32.mrf.mxu0  ;;  %v1653_v35 = vpop.f32.mrf.mxu1 }
 0x173   : >> { %v1516_v36 = vadd.f32 %v1509_v34, %v1372_v28 }
 0x174   : >> { %v1511_v37 = vpop.f32.mrf.mxu0  ;;  %v1655_v38 = vpop.f32.mrf.mxu1 }
 0x175   : >> { %v1660_v39 = vadd.f32 %v1653_v35, %v1516_v36  ;;  %v1517_v40 = vadd.f32 %v1511_v37, %v1373_v32 }
 0x176   : >> { %v1513_v41 = vpop.f32.mrf.mxu0  ;;  %v1657_v42 = vpop.f32.mrf.mxu1 }
 0x177   : >> { %v1661_v43 = vadd.f32 %v1655_v38, %v1517_v40 }
 0x178   : >> { %v1514_v44 = vpop.f32.mrf.mxu0  ;;  %v1658_v45 = vpop.f32.mrf.mxu1 }
 0x192   : >> { %v1805_v46 = vpop.f32.mrf.mxu0  ;;  %v1957_v47 = vpop.f32.mrf.mxu1 }
 0x193   : >> { %v1812_v62 = vadd.f32 %v1805_v46, %v1660_v39 }
 0x194   : >> { %v1807_v48 = vpop.f32.mrf.mxu0  ;;  %v1959_v49 = vpop.f32.mrf.mxu1 }
 0x195   : >> { %v1813_v63 = vadd.f32 %v1807_v48, %v1661_v43  ;;  %v1964_v0 = vadd.f32 %v1957_v47, %v1812_v62 }
 0x196   : >> { %v1809_v50 = vpop.f32.mrf.mxu0  ;;  %v1961_v51 = vpop.f32.mrf.mxu1 }
 0x197   : >> { %v1965_v1 = vadd.f32 %v1959_v49, %v1813_v63 }
 0x198   : >> { %v1810_v52 = vpop.f32.mrf.mxu0  ;;  %v1962_v53 = vpop.f32.mrf.mxu1 }
 0x1b2   : >> { %v2101_v54 = vpop.f32.mrf.mxu0  ;;  %v2245_v55 = vpop.f32.mrf.mxu1 }
 0x1b3   : >> { %v2108_v3 = vadd.f32 %v2101_v54, %v1964_v0 }
 0x1b4   : >> { %v2103_v56 = vpop.f32.mrf.mxu0  ;;  %v2247_v57 = vpop.f32.mrf.mxu1 }
 0x1b5   : >> { %v2109_v4 = vadd.f32 %v2103_v56, %v1965_v1  ;;  %v2252_v5 = vadd.f32 %v2245_v55, %v2108_v3 }
 0x1b6   : >> { %v2105_v58 = vpop.f32.mrf.mxu0  ;;  %v2249_v59 = vpop.f32.mrf.mxu1 }
 0x1b7   : >> { %v2253_v8 = vadd.f32 %v2247_v57, %v2109_v4 }
 0x1b8   : >> { %v2106_v60 = vpop.f32.mrf.mxu0  ;;  %v2250_v61 = vpop.f32.mrf.mxu1 }
 0x1d2   : >> { %v2397_v6 = vpop.f32.mrf.mxu0  ;;  %v2549_v7 = vpop.f32.mrf.mxu1 }
 0x1d3   : >> { %v2404_v9 = vadd.f32 %v2397_v6, %v2252_v5 }
 0x1d4   : >> { %v2399_v10 = vpop.f32.mrf.mxu0  ;;  %v2551_v11 = vpop.f32.mrf.mxu1 }
 0x1d5   : >> { %v2556_v12 = vadd.f32 %v2549_v7, %v2404_v9  ;;  %v2405_v13 = vadd.f32 %v2399_v10, %v2253_v8 }
 0x1d6   : >> { %v2401_v14 = vpop.f32.mrf.mxu0  ;;  %v2553_v15 = vpop.f32.mrf.mxu1 }
 0x1d7   : >> { %v2560_v16 = vmul.f32 0.2, %v2556_v12  ;;  %v2557_v17 = vadd.f32 %v2551_v11, %v2405_v13  ;;  %vm2558_vm0 = vcmp.ge.f32.partialorder %v2556_v12, 0.0 }
 0x1d8   : >> { %v2402_v18 = vpop.f32.mrf.mxu0  ;;  %v2554_v20 = vpop.f32.mrf.mxu1 }
 0x1d9   : >> { %vm2559_vm1 = vcmp.ge.f32.partialorder %v2557_v17, 0.0  ;;  %v2561_v19 = vmul.f32 0.2, %v2557_v17  ;;  %v2562_v21 = vsel %vm2558_vm0, %v2556_v12, %v2560_v16 }
 0x1da   : > { %194 = sbr.rel (!%p192_p5) target bundleno = 16 (0x10), region = 92 }
 0x1db   : >> { %v2563_v22 = vsel %vm2559_vm1, %v2557_v17, %v2561_v19 }
 0x1dc   : >> { %v3242_v23 = vpack.c.bf16 %v2563_v22, %v2562_v21 }
 0x1de   : >> { %3245 = vst.sshfl [vmem:[%s2579_s29] sm:$0x33 pattern:$0x76325410] %v3242_v23 }
 0x1df PF: > { %s12_s11 = sadd.s32 1, %s3702_s11   ;;  %s4587_s9 = smov %s3698_s10 }
 0x1e0   : > { %p9_p6 = scmp.ge.s32.totalorder %s12_s11, 4   ;;  %s4588_s10 = smov %s4590_s12 }
 0x1e2   :  { %11 = sbr.rel (!%p9_p6) target bundleno = 2 (0x2), region = 103 }

// kernel: discriminator_forward.8
= control target key start
LH: loop header
LB: loop body
LE: loop exit
PB: predicated region body
PF: predicated region fallthrough
CT: control target
= control target key end

     0   :  { %s10546_s9 = smov 0   ;;  %s10548_s10 = smov 0   ;;  %s12306_s0 = inlined_call_operand.vmem [shape: bf16[2,1,6,6,256], index: 0, kind: input, shape index: {}]   ;;  %s12307_s1 = inlined_call_operand.vmem [shape: bf16[16,256,512], index: 1, kind: input, shape index: {}]   ;;  %s12308_s2 = inlined_call_operand.vmem [shape: bf16[2,3,3,512], index: 2, kind: output, shape index: {}]  }
   0x1   :  { %s10550_s11 = smov 0   ;;  %s10552_s12 = smov 0  }
   0x2   :  { %s10554_s13 = smov 0   ;;  %s10556_s14 = smov 0  }
   0x3   :  { %s10558_s15 = smov 0   ;;  %s10560_s16 = smov 0  }
   0x4   :  { %s10562_s17 = smov 0  }
   0x5 LB: > { %s8544_s18 = sadd.s32 4294967295, %s10524_s17   ;;  %s21_s19 = sadd.s32 1, %s10516_s15  ;;  %s10524_s17 = sphi %s10562_s17, %s12_s17   ;;  %s10520_s16 = sphi %s10560_s16, %s12317_s16   ;;  %s10516_s15 = sphi %s10558_s15, %s12316_s15   ;;  %s10512_s14 = sphi %s10556_s14, %s12315_s14   ;;  %s10508_s13 = sphi %s10554_s13, %s12314_s13   ;;  %s10504_s12 = sphi %s10552_s12, %s12313_s12   ;;  %s10500_s11 = sphi %s10550_s11, %s12312_s11   ;;  %s10496_s10 = sphi %s10548_s10, %s12311_s10   ;;  %s10492_s9 = sphi %s10546_s9, %s12310_s9  }
   0x6   : > { %p22_p0 = scmp.ge.s32.totalorder %s21_s19, 2  ;;  %s24_s20 = sadd.s32 1, %s10520_s16 }
   0x7   : > { %s57_s21 = sadd.s32 1, %s10504_s12  ;;  %p64_p1 = scmp.ne.s32.totalorder %s10504_s12, %s10500_s11 }
   0x8   : > { %s12319_s19 = smov (%p22_p0, %s21_s19), 0  ;;  %s12321_s20 = smov (!%p22_p0, %s24_s20), %s10520_s16 }
   0x9   : > { %s54_s22 = ssub.s32 %s10516_s15, %s12319_s19  ;;  %p65_p2 = scmp.eq.s32.totalorder %s10524_s17, 0 }
   0xa   : > { %p26_p3 = scmp.ge.s32.totalorder %s12321_s20, 2  ;;  %p55_p4 = scmp.eq.s32.totalorder %s54_s22, 0 }
   0xb   : > { %p66_p5 = por %p65_p2, %p64_p1  ;;  %s85_s23 = sadd.s32 1, %s10496_s10 }
   0xc   : > { %s12323_s20 = smov (%p26_p3, %s12321_s20), 0  ;;  %p95_p6 = scmp.ne.s32.totalorder %s10496_s10, %s10492_s9 }
   0xd   : > { %s10607_s24 = scalar_select %p55_p4, %s10504_s12, %s57_s21  }
   0xe   : > { %s80_s25 = ssub.s32 %s10520_s16, %s12323_s20  ;;  %p96_p7 = scmp.eq.s32.totalorder %s8544_s18, 3 }
   0xf   : > { %s82_s26 = sor.u32 %s80_s25, %s54_s22  ;;  %p8547_p10 = scmp.ge.s32.totalorder %s10524_s17, 4 }
  0x10   : > { %p83_p8 = scmp.eq.s32.totalorder %s82_s26, 0  ;;  %p10613_p9 = por %p96_p7, %p95_p6 }
  0x11   : > { %118 = sbr.rel (%p8547_p10) target bundleno = 282 (0x11a), region = 16 }
  0x12   : > { %s10618_s28 = scalar_select %p83_p8, %s10496_s10, %s85_s23  }
  0x16   : > { %129 = sbr.rel (!%p66_p5) target bundleno = 282 (0x11a), region = 24  ;;  %s131_s29 = sand.u32 (%p66_p5), 1, %s10504_s12  }
  0x17   : > { %s9579_s30 = sshll.u32 (%p66_p5), %s10516_s15, 3  ;;  %s8548_s3 = sshll.u32 (%p66_p5), %s131_s29, 12 }
  0x18   : > { %s10626_s6 = scalar_lea.vmem (%p66_p5), %s12307_s1, %s9579_s30  ;;  %s10631_s7 = scalar_lea.vmem (%p66_p5), [#allocation2], %s8548_s3 }
  0x19   : > { %v1190_v0 = vld [vmem:[%s10626_s6] sm:$0xff] (%p66_p5)  ;;  %v1192_v1 = vld [vmem:[%s10626_s6 + $0x10] sm:$0xff] (%p66_p5) }
  0x1a   : > { %v1194_v2 = vld [vmem:[%s10626_s6 + $0x20] sm:$0xff] (%p66_p5)  ;;  %1191 = vst [vmem:[%s10631_s7] sm:$0xff] (%p66_p5), %v1190_v0  ;;  %1193 = vst [vmem:[%s10631_s7 + $0x8] sm:$0xff] (%p66_p5), %v1192_v1  ;;  %v1196_v3 = vld [vmem:[%s10626_s6 + $0x30] sm:$0xff] (%p66_p5) }
  0x1b   : > { %1195 = vst [vmem:[%s10631_s7 + $0x10] sm:$0xff] %v1194_v2  ;;  %v1198_v4 = vld [vmem:[%s10626_s6 + $0x40] sm:$0xff]  ;;  %v1200_v5 = vld [vmem:[%s10626_s6 + $0x50] sm:$0xff]  ;;  %1197 = vst [vmem:[%s10631_s7 + $0x18] sm:$0xff] %v1196_v3 }
  0x1c   : > { %1199 = vst [vmem:[%s10631_s7 + $0x20] sm:$0xff] %v1198_v4  ;;  %1201 = vst [vmem:[%s10631_s7 + $0x28] sm:$0xff] %v1200_v5  ;;  %v1202_v6 = vld [vmem:[%s10626_s6 + $0x60] sm:$0xff]  ;;  %v1204_v7 = vld [vmem:[%s10626_s6 + $0x70] sm:$0xff] }
  0x1d   : > { %v1206_v8 = vld [vmem:[%s10626_s6 + $0x80] sm:$0xff]  ;;  %1203 = vst [vmem:[%s10631_s7 + $0x30] sm:$0xff] %v1202_v6  ;;  %1205 = vst [vmem:[%s10631_s7 + $0x38] sm:$0xff] %v1204_v7  ;;  %v1208_v9 = vld [vmem:[%s10626_s6 + $0x90] sm:$0xff] }
  0x1e   : > { %1207 = vst [vmem:[%s10631_s7 + $0x40] sm:$0xff] %v1206_v8  ;;  %v1210_v10 = vld [vmem:[%s10626_s6 + $0xa0] sm:$0xff]  ;;  %v1212_v11 = vld [vmem:[%s10626_s6 + $0xb0] sm:$0xff]  ;;  %1209 = vst [vmem:[%s10631_s7 + $0x48] sm:$0xff] %v1208_v9 }
  0x1f   : > { %1211 = vst [vmem:[%s10631_s7 + $0x50] sm:$0xff] %v1210_v10  ;;  %1213 = vst [vmem:[%s10631_s7 + $0x58] sm:$0xff] %v1212_v11  ;;  %v1214_v12 = vld [vmem:[%s10626_s6 + $0xc0] sm:$0xff]  ;;  %v1216_v13 = vld [vmem:[%s10626_s6 + $0xd0] sm:$0xff] }
  0x20   : > { %v1218_v14 = vld [vmem:[%s10626_s6 + $0xe0] sm:$0xff]  ;;  %1215 = vst [vmem:[%s10631_s7 + $0x60] sm:$0xff] %v1214_v12  ;;  %1217 = vst [vmem:[%s10631_s7 + $0x68] sm:$0xff] %v1216_v13  ;;  %v1220_v15 = vld [vmem:[%s10626_s6 + $0xf0] sm:$0xff] }
  0x21   : > { %1219 = vst [vmem:[%s10631_s7 + $0x70] sm:$0xff] %v1218_v14  ;;  %v1222_v16 = vld [vmem:[%s10626_s6 + $0x100] sm:$0xff]  ;;  %v1224_v17 = vld [vmem:[%s10626_s6 + $0x110] sm:$0xff]  ;;  %1221 = vst [vmem:[%s10631_s7 + $0x78] sm:$0xff] %v1220_v15 }
  0x22   : > { %1223 = vst [vmem:[%s10631_s7 + $0x80] sm:$0xff] %v1222_v16  ;;  %1225 = vst [vmem:[%s10631_s7 + $0x88] sm:$0xff] %v1224_v17  ;;  %v1226_v18 = vld [vmem:[%s10626_s6 + $0x120] sm:$0xff]  ;;  %v1228_v19 = vld [vmem:[%s10626_s6 + $0x130] sm:$0xff] }
  0x23   : > { %v1230_v20 = vld [vmem:[%s10626_s6 + $0x140] sm:$0xff]  ;;  %1227 = vst [vmem:[%s10631_s7 + $0x90] sm:$0xff] %v1226_v18  ;;  %1229 = vst [vmem:[%s10631_s7 + $0x98] sm:$0xff] %v1228_v19  ;;  %v1232_v21 = vld [vmem:[%s10626_s6 + $0x150] sm:$0xff] }
  0x24   : > { %1231 = vst [vmem:[%s10631_s7 + $0xa0] sm:$0xff] %v1230_v20  ;;  %v1234_v22 = vld [vmem:[%s10626_s6 + $0x160] sm:$0xff]  ;;  %v1236_v23 = vld [vmem:[%s10626_s6 + $0x170] sm:$0xff]  ;;  %1233 = vst [vmem:[%s10631_s7 + $0xa8] sm:$0xff] %v1232_v21 }
  0x25   : > { %1235 = vst [vmem:[%s10631_s7 + $0xb0] sm:$0xff] %v1234_v22  ;;  %1237 = vst [vmem:[%s10631_s7 + $0xb8] sm:$0xff] %v1236_v23  ;;  %v1238_v24 = vld [vmem:[%s10626_s6 + $0x180] sm:$0xff]  ;;  %v1240_v25 = vld [vmem:[%s10626_s6 + $0x190] sm:$0xff] }
  0x26   : > { %v1242_v26 = vld [vmem:[%s10626_s6 + $0x1a0] sm:$0xff]  ;;  %1239 = vst [vmem:[%s10631_s7 + $0xc0] sm:$0xff] %v1238_v24  ;;  %1241 = vst [vmem:[%s10631_s7 + $0xc8] sm:$0xff] %v1240_v25  ;;  %v1244_v27 = vld [vmem:[%s10626_s6 + $0x1b0] sm:$0xff] }
  0x27   : > { %1243 = vst [vmem:[%s10631_s7 + $0xd0] sm:$0xff] %v1242_v26  ;;  %v1246_v28 = vld [vmem:[%s10626_s6 + $0x1c0] sm:$0xff]  ;;  %v1248_v29 = vld [vmem:[%s10626_s6 + $0x1d0] sm:$0xff]  ;;  %1245 = vst [vmem:[%s10631_s7 + $0xd8] sm:$0xff] %v1244_v27 }
  0x28   : > { %1247 = vst [vmem:[%s10631_s7 + $0xe0] sm:$0xff] %v1246_v28  ;;  %1249 = vst [vmem:[%s10631_s7 + $0xe8] sm:$0xff] %v1248_v29  ;;  %v1250_v30 = vld [vmem:[%s10626_s6 + $0x1e0] sm:$0xff]  ;;  %v1252_v31 = vld [vmem:[%s10626_s6 + $0x1f0] sm:$0xff] }
  0x29   : > { %v1254_v32 = vld [vmem:[%s10626_s6 + $0x200] sm:$0xff]  ;;  %1251 = vst [vmem:[%s10631_s7 + $0xf0] sm:$0xff] %v1250_v30  ;;  %1253 = vst [vmem:[%s10631_s7 + $0xf8] sm:$0xff] %v1252_v31  ;;  %v1256_v33 = vld [vmem:[%s10626_s6 + $0x210] sm:$0xff] }
  0x2a   : > { %1255 = vst [vmem:[%s10631_s7 + $0x100] sm:$0xff] %v1254_v32  ;;  %v1258_v34 = vld [vmem:[%s10626_s6 + $0x220] sm:$0xff]  ;;  %v1260_v35 = vld [vmem:[%s10626_s6 + $0x230] sm:$0xff]  ;;  %1257 = vst [vmem:[%s10631_s7 + $0x108] sm:$0xff] %v1256_v33 }
  0x2b   : > { %1259 = vst [vmem:[%s10631_s7 + $0x110] sm:$0xff] %v1258_v34  ;;  %1261 = vst [vmem:[%s10631_s7 + $0x118] sm:$0xff] %v1260_v35  ;;  %v1262_v36 = vld [vmem:[%s10626_s6 + $0x240] sm:$0xff]  ;;  %v1264_v37 = vld [vmem:[%s10626_s6 + $0x250] sm:$0xff] }
  0x2c   : > { %v1266_v38 = vld [vmem:[%s10626_s6 + $0x260] sm:$0xff]  ;;  %1263 = vst [vmem:[%s10631_s7 + $0x120] sm:$0xff] %v1262_v36  ;;  %1265 = vst [vmem:[%s10631_s7 + $0x128] sm:$0xff] %v1264_v37  ;;  %v1268_v39 = vld [vmem:[%s10626_s6 + $0x270] sm:$0xff] }
  0x2d   : > { %1267 = vst [vmem:[%s10631_s7 + $0x130] sm:$0xff] %v1266_v38  ;;  %v1270_v40 = vld [vmem:[%s10626_s6 + $0x280] sm:$0xff]  ;;  %v1272_v41 = vld [vmem:[%s10626_s6 + $0x290] sm:$0xff]  ;;  %1269 = vst [vmem:[%s10631_s7 + $0x138] sm:$0xff] %v1268_v39 }
  0x2e   : > { %1271 = vst [vmem:[%s10631_s7 + $0x140] sm:$0xff] %v1270_v40  ;;  %1273 = vst [vmem:[%s10631_s7 + $0x148] sm:$0xff] %v1272_v41  ;;  %v1274_v42 = vld [vmem:[%s10626_s6 + $0x2a0] sm:$0xff]  ;;  %v1276_v43 = vld [vmem:[%s10626_s6 + $0x2b0] sm:$0xff] }
  0x2f   : > { %v1278_v44 = vld [vmem:[%s10626_s6 + $0x2c0] sm:$0xff]  ;;  %1275 = vst [vmem:[%s10631_s7 + $0x150] sm:$0xff] %v1274_v42  ;;  %1277 = vst [vmem:[%s10631_s7 + $0x158] sm:$0xff] %v1276_v43  ;;  %v1280_v45 = vld [vmem:[%s10626_s6 + $0x2d0] sm:$0xff] }
  0x30   : > { %1279 = vst [vmem:[%s10631_s7 + $0x160] sm:$0xff] %v1278_v44  ;;  %v1282_v46 = vld [vmem:[%s10626_s6 + $0x2e0] sm:$0xff]  ;;  %v1284_v47 = vld [vmem:[%s10626_s6 + $0x2f0] sm:$0xff]  ;;  %1281 = vst [vmem:[%s10631_s7 + $0x168] sm:$0xff] %v1280_v45 }
  0x31   : > { %1283 = vst [vmem:[%s10631_s7 + $0x170] sm:$0xff] %v1282_v46  ;;  %1285 = vst [vmem:[%s10631_s7 + $0x178] sm:$0xff] %v1284_v47  ;;  %v1286_v48 = vld [vmem:[%s10626_s6 + $0x300] sm:$0xff]  ;;  %v1288_v49 = vld [vmem:[%s10626_s6 + $0x310] sm:$0xff] }
  0x32   : > { %v1290_v50 = vld [vmem:[%s10626_s6 + $0x320] sm:$0xff]  ;;  %1287 = vst [vmem:[%s10631_s7 + $0x180] sm:$0xff] %v1286_v48  ;;  %1289 = vst [vmem:[%s10631_s7 + $0x188] sm:$0xff] %v1288_v49  ;;  %v1292_v51 = vld [vmem:[%s10626_s6 + $0x330] sm:$0xff] }
  0x33   : > { %1291 = vst [vmem:[%s10631_s7 + $0x190] sm:$0xff] %v1290_v50  ;;  %v1294_v52 = vld [vmem:[%s10626_s6 + $0x340] sm:$0xff]  ;;  %v1296_v53 = vld [vmem:[%s10626_s6 + $0x350] sm:$0xff]  ;;  %1293 = vst [vmem:[%s10631_s7 + $0x198] sm:$0xff] %v1292_v51 }
  0x34   : > { %1295 = vst [vmem:[%s10631_s7 + $0x1a0] sm:$0xff] %v1294_v52  ;;  %1297 = vst [vmem:[%s10631_s7 + $0x1a8] sm:$0xff] %v1296_v53  ;;  %v1298_v54 = vld [vmem:[%s10626_s6 + $0x360] sm:$0xff]  ;;  %v1300_v55 = vld [vmem:[%s10626_s6 + $0x370] sm:$0xff] }
  0x35   : > { %v1302_v56 = vld [vmem:[%s10626_s6 + $0x380] sm:$0xff]  ;;  %1299 = vst [vmem:[%s10631_s7 + $0x1b0] sm:$0xff] %v1298_v54  ;;  %1301 = vst [vmem:[%s10631_s7 + $0x1b8] sm:$0xff] %v1300_v55  ;;  %v1304_v57 = vld [vmem:[%s10626_s6 + $0x390] sm:$0xff] }
  0x36   : > { %1303 = vst [vmem:[%s10631_s7 + $0x1c0] sm:$0xff] %v1302_v56  ;;  %v1306_v58 = vld [vmem:[%s10626_s6 + $0x3a0] sm:$0xff]  ;;  %v1308_v59 = vld [vmem:[%s10626_s6 + $0x3b0] sm:$0xff]  ;;  %1305 = vst [vmem:[%s10631_s7 + $0x1c8] sm:$0xff] %v1304_v57 }
  0x37   : > { %1307 = vst [vmem:[%s10631_s7 + $0x1d0] sm:$0xff] %v1306_v58  ;;  %1309 = vst [vmem:[%s10631_s7 + $0x1d8] sm:$0xff] %v1308_v59  ;;  %v1310_v60 = vld [vmem:[%s10626_s6 + $0x3c0] sm:$0xff]  ;;  %v1312_v61 = vld [vmem:[%s10626_s6 + $0x3d0] sm:$0xff] }
  0x38   : > { %v1314_v62 = vld [vmem:[%s10626_s6 + $0x3e0] sm:$0xff]  ;;  %1311 = vst [vmem:[%s10631_s7 + $0x1e0] sm:$0xff] %v1310_v60  ;;  %1313 = vst [vmem:[%s10631_s7 + $0x1e8] sm:$0xff] %v1312_v61  ;;  %v1316_v63 = vld [vmem:[%s10626_s6 + $0x3f0] sm:$0xff] }
  0x39   : > { %1315 = vst [vmem:[%s10631_s7 + $0x1f0] sm:$0xff] %v1314_v62  ;;  %v1318_v0 = vld [vmem:[%s10626_s6 + $0x400] sm:$0xff]  ;;  %v1320_v1 = vld [vmem:[%s10626_s6 + $0x410] sm:$0xff]  ;;  %1317 = vst [vmem:[%s10631_s7 + $0x1f8] sm:$0xff] %v1316_v63 }
  0x3a   : > { %1319 = vst [vmem:[%s10631_s7 + $0x200] sm:$0xff] %v1318_v0  ;;  %1321 = vst [vmem:[%s10631_s7 + $0x208] sm:$0xff] %v1320_v1  ;;  %v1322_v2 = vld [vmem:[%s10626_s6 + $0x420] sm:$0xff]  ;;  %v1324_v3 = vld [vmem:[%s10626_s6 + $0x430] sm:$0xff] }
  0x3b   : > { %v1326_v4 = vld [vmem:[%s10626_s6 + $0x440] sm:$0xff]  ;;  %1323 = vst [vmem:[%s10631_s7 + $0x210] sm:$0xff] %v1322_v2  ;;  %1325 = vst [vmem:[%s10631_s7 + $0x218] sm:$0xff] %v1324_v3  ;;  %v1328_v5 = vld [vmem:[%s10626_s6 + $0x450] sm:$0xff] }
  0x3c   : > { %1327 = vst [vmem:[%s10631_s7 + $0x220] sm:$0xff] %v1326_v4  ;;  %v1330_v6 = vld [vmem:[%s10626_s6 + $0x460] sm:$0xff]  ;;  %v1332_v7 = vld [vmem:[%s10626_s6 + $0x470] sm:$0xff]  ;;  %1329 = vst [vmem:[%s10631_s7 + $0x228] sm:$0xff] %v1328_v5 }
  0x3d   : > { %1331 = vst [vmem:[%s10631_s7 + $0x230] sm:$0xff] %v1330_v6  ;;  %1333 = vst [vmem:[%s10631_s7 + $0x238] sm:$0xff] %v1332_v7  ;;  %v1334_v8 = vld [vmem:[%s10626_s6 + $0x480] sm:$0xff]  ;;  %v1336_v9 = vld [vmem:[%s10626_s6 + $0x490] sm:$0xff] }
  0x3e   : > { %v1338_v10 = vld [vmem:[%s10626_s6 + $0x4a0] sm:$0xff]  ;;  %1335 = vst [vmem:[%s10631_s7 + $0x240] sm:$0xff] %v1334_v8  ;;  %1337 = vst [vmem:[%s10631_s7 + $0x248] sm:$0xff] %v1336_v9  ;;  %v1340_v11 = vld [vmem:[%s10626_s6 + $0x4b0] sm:$0xff] }
  0x3f   : > { %1339 = vst [vmem:[%s10631_s7 + $0x250] sm:$0xff] %v1338_v10  ;;  %v1342_v12 = vld [vmem:[%s10626_s6 + $0x4c0] sm:$0xff]  ;;  %v1344_v13 = vld [vmem:[%s10626_s6 + $0x4d0] sm:$0xff]  ;;  %1341 = vst [vmem:[%s10631_s7 + $0x258] sm:$0xff] %v1340_v11 }
  0x40   : > { %1343 = vst [vmem:[%s10631_s7 + $0x260] sm:$0xff] %v1342_v12  ;;  %1345 = vst [vmem:[%s10631_s7 + $0x268] sm:$0xff] %v1344_v13  ;;  %v1346_v14 = vld [vmem:[%s10626_s6 + $0x4e0] sm:$0xff]  ;;  %v1348_v15 = vld [vmem:[%s10626_s6 + $0x4f0] sm:$0xff] }
  0x41   : > { %v1350_v16 = vld [vmem:[%s10626_s6 + $0x500] sm:$0xff]  ;;  %1347 = vst [vmem:[%s10631_s7 + $0x270] sm:$0xff] %v1346_v14  ;;  %1349 = vst [vmem:[%s10631_s7 + $0x278] sm:$0xff] %v1348_v15  ;;  %v1352_v17 = vld [vmem:[%s10626_s6 + $0x510] sm:$0xff] }
  0x42   : > { %1351 = vst [vmem:[%s10631_s7 + $0x280] sm:$0xff] %v1350_v16  ;;  %v1354_v18 = vld [vmem:[%s10626_s6 + $0x520] sm:$0xff]  ;;  %v1356_v19 = vld [vmem:[%s10626_s6 + $0x530] sm:$0xff]  ;;  %1353 = vst [vmem:[%s10631_s7 + $0x288] sm:$0xff] %v1352_v17 }
  0x43   : > { %1355 = vst [vmem:[%s10631_s7 + $0x290] sm:$0xff] %v1354_v18  ;;  %1357 = vst [vmem:[%s10631_s7 + $0x298] sm:$0xff] %v1356_v19  ;;  %v1358_v20 = vld [vmem:[%s10626_s6 + $0x540] sm:$0xff]  ;;  %v1360_v21 = vld [vmem:[%s10626_s6 + $0x550] sm:$0xff] }
  0x44   : > { %v1362_v22 = vld [vmem:[%s10626_s6 + $0x560] sm:$0xff]  ;;  %1359 = vst [vmem:[%s10631_s7 + $0x2a0] sm:$0xff] %v1358_v20  ;;  %1361 = vst [vmem:[%s10631_s7 + $0x2a8] sm:$0xff] %v1360_v21  ;;  %v1364_v23 = vld [vmem:[%s10626_s6 + $0x570] sm:$0xff] }
  0x45   : > { %1363 = vst [vmem:[%s10631_s7 + $0x2b0] sm:$0xff] %v1362_v22  ;;  %v1366_v24 = vld [vmem:[%s10626_s6 + $0x580] sm:$0xff]  ;;  %v1368_v25 = vld [vmem:[%s10626_s6 + $0x590] sm:$0xff]  ;;  %1365 = vst [vmem:[%s10631_s7 + $0x2b8] sm:$0xff] %v1364_v23 }
  0x46   : > { %1367 = vst [vmem:[%s10631_s7 + $0x2c0] sm:$0xff] %v1366_v24  ;;  %1369 = vst [vmem:[%s10631_s7 + $0x2c8] sm:$0xff] %v1368_v25  ;;  %v1370_v26 = vld [vmem:[%s10626_s6 + $0x5a0] sm:$0xff]  ;;  %v1372_v27 = vld [vmem:[%s10626_s6 + $0x5b0] sm:$0xff] }
  0x47   : > { %v1374_v28 = vld [vmem:[%s10626_s6 + $0x5c0] sm:$0xff]  ;;  %1371 = vst [vmem:[%s10631_s7 + $0x2d0] sm:$0xff] %v1370_v26  ;;  %1373 = vst [vmem:[%s10631_s7 + $0x2d8] sm:$0xff] %v1372_v27  ;;  %v1376_v29 = vld [vmem:[%s10626_s6 + $0x5d0] sm:$0xff] }
  0x48   : > { %1375 = vst [vmem:[%s10631_s7 + $0x2e0] sm:$0xff] %v1374_v28  ;;  %v1378_v30 = vld [vmem:[%s10626_s6 + $0x5e0] sm:$0xff]  ;;  %v1380_v31 = vld [vmem:[%s10626_s6 + $0x5f0] sm:$0xff]  ;;  %1377 = vst [vmem:[%s10631_s7 + $0x2e8] sm:$0xff] %v1376_v29 }
  0x49   : > { %1379 = vst [vmem:[%s10631_s7 + $0x2f0] sm:$0xff] %v1378_v30  ;;  %1381 = vst [vmem:[%s10631_s7 + $0x2f8] sm:$0xff] %v1380_v31  ;;  %v1382_v32 = vld [vmem:[%s10626_s6 + $0x600] sm:$0xff]  ;;  %v1384_v33 = vld [vmem:[%s10626_s6 + $0x610] sm:$0xff] }
  0x4a   : > { %v1386_v34 = vld [vmem:[%s10626_s6 + $0x620] sm:$0xff]  ;;  %1383 = vst [vmem:[%s10631_s7 + $0x300] sm:$0xff] %v1382_v32  ;;  %1385 = vst [vmem:[%s10631_s7 + $0x308] sm:$0xff] %v1384_v33  ;;  %v1388_v35 = vld [vmem:[%s10626_s6 + $0x630] sm:$0xff] }
  0x4b   : > { %1387 = vst [vmem:[%s10631_s7 + $0x310] sm:$0xff] %v1386_v34  ;;  %v1390_v36 = vld [vmem:[%s10626_s6 + $0x640] sm:$0xff]  ;;  %v1392_v37 = vld [vmem:[%s10626_s6 + $0x650] sm:$0xff]  ;;  %1389 = vst [vmem:[%s10631_s7 + $0x318] sm:$0xff] %v1388_v35 }
  0x4c   : > { %1391 = vst [vmem:[%s10631_s7 + $0x320] sm:$0xff] %v1390_v36  ;;  %1393 = vst [vmem:[%s10631_s7 + $0x328] sm:$0xff] %v1392_v37  ;;  %v1394_v38 = vld [vmem:[%s10626_s6 + $0x660] sm:$0xff]  ;;  %v1396_v39 = vld [vmem:[%s10626_s6 + $0x670] sm:$0xff] }
  0x4d   : > { %v1398_v40 = vld [vmem:[%s10626_s6 + $0x680] sm:$0xff]  ;;  %1395 = vst [vmem:[%s10631_s7 + $0x330] sm:$0xff] %v1394_v38  ;;  %1397 = vst [vmem:[%s10631_s7 + $0x338] sm:$0xff] %v1396_v39  ;;  %v1400_v41 = vld [vmem:[%s10626_s6 + $0x690] sm:$0xff] }
  0x4e   : > { %1399 = vst [vmem:[%s10631_s7 + $0x340] sm:$0xff] %v1398_v40  ;;  %v1402_v42 = vld [vmem:[%s10626_s6 + $0x6a0] sm:$0xff]  ;;  %v1404_v43 = vld [vmem:[%s10626_s6 + $0x6b0] sm:$0xff]  ;;  %1401 = vst [vmem:[%s10631_s7 + $0x348] sm:$0xff] %v1400_v41 }
  0x4f   : > { %1403 = vst [vmem:[%s10631_s7 + $0x350] sm:$0xff] %v1402_v42  ;;  %1405 = vst [vmem:[%s10631_s7 + $0x358] sm:$0xff] %v1404_v43  ;;  %v1406_v44 = vld [vmem:[%s10626_s6 + $0x6c0] sm:$0xff]  ;;  %v1408_v45 = vld [vmem:[%s10626_s6 + $0x6d0] sm:$0xff] }
  0x50   : > { %v1410_v46 = vld [vmem:[%s10626_s6 + $0x6e0] sm:$0xff]  ;;  %1407 = vst [vmem:[%s10631_s7 + $0x360] sm:$0xff] %v1406_v44  ;;  %1409 = vst [vmem:[%s10631_s7 + $0x368] sm:$0xff] %v1408_v45  ;;  %v1412_v47 = vld [vmem:[%s10626_s6 + $0x6f0] sm:$0xff] }
  0x51   : > { %1411 = vst [vmem:[%s10631_s7 + $0x370] sm:$0xff] %v1410_v46  ;;  %v1414_v48 = vld [vmem:[%s10626_s6 + $0x700] sm:$0xff]  ;;  %v1416_v49 = vld [vmem:[%s10626_s6 + $0x710] sm:$0xff]  ;;  %1413 = vst [vmem:[%s10631_s7 + $0x378] sm:$0xff] %v1412_v47 }
  0x52   : > { %1415 = vst [vmem:[%s10631_s7 + $0x380] sm:$0xff] %v1414_v48  ;;  %1417 = vst [vmem:[%s10631_s7 + $0x388] sm:$0xff] %v1416_v49  ;;  %v1418_v50 = vld [vmem:[%s10626_s6 + $0x720] sm:$0xff]  ;;  %v1420_v51 = vld [vmem:[%s10626_s6 + $0x730] sm:$0xff] }
  0x53   : > { %v1422_v52 = vld [vmem:[%s10626_s6 + $0x740] sm:$0xff]  ;;  %1419 = vst [vmem:[%s10631_s7 + $0x390] sm:$0xff] %v1418_v50  ;;  %1421 = vst [vmem:[%s10631_s7 + $0x398] sm:$0xff] %v1420_v51  ;;  %v1424_v53 = vld [vmem:[%s10626_s6 + $0x750] sm:$0xff] }
  0x54   : > { %1423 = vst [vmem:[%s10631_s7 + $0x3a0] sm:$0xff] %v1422_v52  ;;  %v1426_v54 = vld [vmem:[%s10626_s6 + $0x760] sm:$0xff]  ;;  %v1428_v55 = vld [vmem:[%s10626_s6 + $0x770] sm:$0xff]  ;;  %1425 = vst [vmem:[%s10631_s7 + $0x3a8] sm:$0xff] %v1424_v53 }
  0x55   : > { %1427 = vst [vmem:[%s10631_s7 + $0x3b0] sm:$0xff] %v1426_v54  ;;  %1429 = vst [vmem:[%s10631_s7 + $0x3b8] sm:$0xff] %v1428_v55  ;;  %v1430_v56 = vld [vmem:[%s10626_s6 + $0x780] sm:$0xff]  ;;  %v1432_v57 = vld [vmem:[%s10626_s6 + $0x790] sm:$0xff] }
  0x56   : > { %v1434_v58 = vld [vmem:[%s10626_s6 + $0x7a0] sm:$0xff]  ;;  %1431 = vst [vmem:[%s10631_s7 + $0x3c0] sm:$0xff] %v1430_v56  ;;  %1433 = vst [vmem:[%s10631_s7 + $0x3c8] sm:$0xff] %v1432_v57  ;;  %v1436_v59 = vld [vmem:[%s10626_s6 + $0x7b0] sm:$0xff] }
  0x57   : > { %1435 = vst [vmem:[%s10631_s7 + $0x3d0] sm:$0xff] %v1434_v58  ;;  %v1438_v60 = vld [vmem:[%s10626_s6 + $0x7c0] sm:$0xff]  ;;  %v1440_v61 = vld [vmem:[%s10626_s6 + $0x7d0] sm:$0xff]  ;;  %1437 = vst [vmem:[%s10631_s7 + $0x3d8] sm:$0xff] %v1436_v59 }
  0x58   : > { %1439 = vst [vmem:[%s10631_s7 + $0x3e0] sm:$0xff] %v1438_v60  ;;  %1441 = vst [vmem:[%s10631_s7 + $0x3e8] sm:$0xff] %v1440_v61  ;;  %v1442_v62 = vld [vmem:[%s10626_s6 + $0x7e0] sm:$0xff]  ;;  %v1444_v63 = vld [vmem:[%s10626_s6 + $0x7f0] sm:$0xff] }
  0x59   : > { %v1446_v0 = vld [vmem:[%s10626_s6 + $0x800] sm:$0xff]  ;;  %1443 = vst [vmem:[%s10631_s7 + $0x3f0] sm:$0xff] %v1442_v62  ;;  %1445 = vst [vmem:[%s10631_s7 + $0x3f8] sm:$0xff] %v1444_v63  ;;  %v1448_v1 = vld [vmem:[%s10626_s6 + $0x810] sm:$0xff] }
  0x5a   : > { %1447 = vst [vmem:[%s10631_s7 + $0x400] sm:$0xff] %v1446_v0  ;;  %v1450_v2 = vld [vmem:[%s10626_s6 + $0x820] sm:$0xff]  ;;  %v1452_v3 = vld [vmem:[%s10626_s6 + $0x830] sm:$0xff]  ;;  %1449 = vst [vmem:[%s10631_s7 + $0x408] sm:$0xff] %v1448_v1 }
  0x5b   : > { %1451 = vst [vmem:[%s10631_s7 + $0x410] sm:$0xff] %v1450_v2  ;;  %1453 = vst [vmem:[%s10631_s7 + $0x418] sm:$0xff] %v1452_v3  ;;  %v1454_v4 = vld [vmem:[%s10626_s6 + $0x840] sm:$0xff]  ;;  %v1456_v5 = vld [vmem:[%s10626_s6 + $0x850] sm:$0xff] }
  0x5c   : > { %v1458_v6 = vld [vmem:[%s10626_s6 + $0x860] sm:$0xff]  ;;  %1455 = vst [vmem:[%s10631_s7 + $0x420] sm:$0xff] %v1454_v4  ;;  %1457 = vst [vmem:[%s10631_s7 + $0x428] sm:$0xff] %v1456_v5  ;;  %v1460_v7 = vld [vmem:[%s10626_s6 + $0x870] sm:$0xff] }
  0x5d   : > { %1459 = vst [vmem:[%s10631_s7 + $0x430] sm:$0xff] %v1458_v6  ;;  %v1462_v8 = vld [vmem:[%s10626_s6 + $0x880] sm:$0xff]  ;;  %v1464_v9 = vld [vmem:[%s10626_s6 + $0x890] sm:$0xff]  ;;  %1461 = vst [vmem:[%s10631_s7 + $0x438] sm:$0xff] %v1460_v7 }
  0x5e   : > { %1463 = vst [vmem:[%s10631_s7 + $0x440] sm:$0xff] %v1462_v8  ;;  %1465 = vst [vmem:[%s10631_s7 + $0x448] sm:$0xff] %v1464_v9  ;;  %v1466_v10 = vld [vmem:[%s10626_s6 + $0x8a0] sm:$0xff]  ;;  %v1468_v11 = vld [vmem:[%s10626_s6 + $0x8b0] sm:$0xff] }
  0x5f   : > { %v1470_v12 = vld [vmem:[%s10626_s6 + $0x8c0] sm:$0xff]  ;;  %1467 = vst [vmem:[%s10631_s7 + $0x450] sm:$0xff] %v1466_v10  ;;  %1469 = vst [vmem:[%s10631_s7 + $0x458] sm:$0xff] %v1468_v11  ;;  %v1472_v13 = vld [vmem:[%s10626_s6 + $0x8d0] sm:$0xff] }
  0x60   : > { %1471 = vst [vmem:[%s10631_s7 + $0x460] sm:$0xff] %v1470_v12  ;;  %v1474_v14 = vld [vmem:[%s10626_s6 + $0x8e0] sm:$0xff]  ;;  %v1476_v15 = vld [vmem:[%s10626_s6 + $0x8f0] sm:$0xff]  ;;  %1473 = vst [vmem:[%s10631_s7 + $0x468] sm:$0xff] %v1472_v13 }
  0x61   : > { %1475 = vst [vmem:[%s10631_s7 + $0x470] sm:$0xff] %v1474_v14  ;;  %1477 = vst [vmem:[%s10631_s7 + $0x478] sm:$0xff] %v1476_v15  ;;  %v1478_v16 = vld [vmem:[%s10626_s6 + $0x900] sm:$0xff]  ;;  %v1480_v17 = vld [vmem:[%s10626_s6 + $0x910] sm:$0xff] }
  0x62   : > { %v1482_v18 = vld [vmem:[%s10626_s6 + $0x920] sm:$0xff]  ;;  %1479 = vst [vmem:[%s10631_s7 + $0x480] sm:$0xff] %v1478_v16  ;;  %1481 = vst [vmem:[%s10631_s7 + $0x488] sm:$0xff] %v1480_v17  ;;  %v1484_v19 = vld [vmem:[%s10626_s6 + $0x930] sm:$0xff] }
  0x63   : > { %1483 = vst [vmem:[%s10631_s7 + $0x490] sm:$0xff] %v1482_v18  ;;  %v1486_v20 = vld [vmem:[%s10626_s6 + $0x940] sm:$0xff]  ;;  %v1488_v21 = vld [vmem:[%s10626_s6 + $0x950] sm:$0xff]  ;;  %1485 = vst [vmem:[%s10631_s7 + $0x498] sm:$0xff] %v1484_v19 }
  0x64   : > { %1487 = vst [vmem:[%s10631_s7 + $0x4a0] sm:$0xff] %v1486_v20  ;;  %1489 = vst [vmem:[%s10631_s7 + $0x4a8] sm:$0xff] %v1488_v21  ;;  %v1490_v22 = vld [vmem:[%s10626_s6 + $0x960] sm:$0xff]  ;;  %v1492_v23 = vld [vmem:[%s10626_s6 + $0x970] sm:$0xff] }
  0x65   : > { %v1494_v24 = vld [vmem:[%s10626_s6 + $0x980] sm:$0xff]  ;;  %1491 = vst [vmem:[%s10631_s7 + $0x4b0] sm:$0xff] %v1490_v22  ;;  %1493 = vst [vmem:[%s10631_s7 + $0x4b8] sm:$0xff] %v1492_v23  ;;  %v1496_v25 = vld [vmem:[%s10626_s6 + $0x990] sm:$0xff] }
  0x66   : > { %1495 = vst [vmem:[%s10631_s7 + $0x4c0] sm:$0xff] %v1494_v24  ;;  %v1498_v26 = vld [vmem:[%s10626_s6 + $0x9a0] sm:$0xff]  ;;  %v1500_v27 = vld [vmem:[%s10626_s6 + $0x9b0] sm:$0xff]  ;;  %1497 = vst [vmem:[%s10631_s7 + $0x4c8] sm:$0xff] %v1496_v25 }
  0x67   : > { %1499 = vst [vmem:[%s10631_s7 + $0x4d0] sm:$0xff] %v1498_v26  ;;  %1501 = vst [vmem:[%s10631_s7 + $0x4d8] sm:$0xff] %v1500_v27  ;;  %v1502_v28 = vld [vmem:[%s10626_s6 + $0x9c0] sm:$0xff]  ;;  %v1504_v29 = vld [vmem:[%s10626_s6 + $0x9d0] sm:$0xff] }
  0x68   : > { %v1506_v30 = vld [vmem:[%s10626_s6 + $0x9e0] sm:$0xff]  ;;  %1503 = vst [vmem:[%s10631_s7 + $0x4e0] sm:$0xff] %v1502_v28  ;;  %1505 = vst [vmem:[%s10631_s7 + $0x4e8] sm:$0xff] %v1504_v29  ;;  %v1508_v31 = vld [vmem:[%s10626_s6 + $0x9f0] sm:$0xff] }
  0x69   : > { %1507 = vst [vmem:[%s10631_s7 + $0x4f0] sm:$0xff] %v1506_v30  ;;  %v1510_v32 = vld [vmem:[%s10626_s6 + $0xa00] sm:$0xff]  ;;  %v1512_v33 = vld [vmem:[%s10626_s6 + $0xa10] sm:$0xff]  ;;  %1509 = vst [vmem:[%s10631_s7 + $0x4f8] sm:$0xff] %v1508_v31 }
  0x6a   : > { %1511 = vst [vmem:[%s10631_s7 + $0x500] sm:$0xff] %v1510_v32  ;;  %1513 = vst [vmem:[%s10631_s7 + $0x508] sm:$0xff] %v1512_v33  ;;  %v1514_v34 = vld [vmem:[%s10626_s6 + $0xa20] sm:$0xff]  ;;  %v1516_v35 = vld [vmem:[%s10626_s6 + $0xa30] sm:$0xff] }
  0x6b   : > { %v1518_v36 = vld [vmem:[%s10626_s6 + $0xa40] sm:$0xff]  ;;  %1515 = vst [vmem:[%s10631_s7 + $0x510] sm:$0xff] %v1514_v34  ;;  %1517 = vst [vmem:[%s10631_s7 + $0x518] sm:$0xff] %v1516_v35  ;;  %v1520_v37 = vld [vmem:[%s10626_s6 + $0xa50] sm:$0xff] }
  0x6c   : > { %1519 = vst [vmem:[%s10631_s7 + $0x520] sm:$0xff] %v1518_v36  ;;  %v1522_v38 = vld [vmem:[%s10626_s6 + $0xa60] sm:$0xff]  ;;  %v1524_v39 = vld [vmem:[%s10626_s6 + $0xa70] sm:$0xff]  ;;  %1521 = vst [vmem:[%s10631_s7 + $0x528] sm:$0xff] %v1520_v37 }
  0x6d   : > { %1523 = vst [vmem:[%s10631_s7 + $0x530] sm:$0xff] %v1522_v38  ;;  %1525 = vst [vmem:[%s10631_s7 + $0x538] sm:$0xff] %v1524_v39  ;;  %v1526_v40 = vld [vmem:[%s10626_s6 + $0xa80] sm:$0xff]  ;;  %v1528_v41 = vld [vmem:[%s10626_s6 + $0xa90] sm:$0xff] }
  0x6e   : > { %v1530_v42 = vld [vmem:[%s10626_s6 + $0xaa0] sm:$0xff]  ;;  %1527 = vst [vmem:[%s10631_s7 + $0x540] sm:$0xff] %v1526_v40  ;;  %1529 = vst [vmem:[%s10631_s7 + $0x548] sm:$0xff] %v1528_v41  ;;  %v1532_v43 = vld [vmem:[%s10626_s6 + $0xab0] sm:$0xff] }
  0x6f   : > { %1531 = vst [vmem:[%s10631_s7 + $0x550] sm:$0xff] %v1530_v42  ;;  %v1534_v44 = vld [vmem:[%s10626_s6 + $0xac0] sm:$0xff]  ;;  %v1536_v45 = vld [vmem:[%s10626_s6 + $0xad0] sm:$0xff]  ;;  %1533 = vst [vmem:[%s10631_s7 + $0x558] sm:$0xff] %v1532_v43 }
  0x70   : > { %1535 = vst [vmem:[%s10631_s7 + $0x560] sm:$0xff] %v1534_v44  ;;  %1537 = vst [vmem:[%s10631_s7 + $0x568] sm:$0xff] %v1536_v45  ;;  %v1538_v46 = vld [vmem:[%s10626_s6 + $0xae0] sm:$0xff]  ;;  %v1540_v47 = vld [vmem:[%s10626_s6 + $0xaf0] sm:$0xff] }
  0x71   : > { %v1542_v48 = vld [vmem:[%s10626_s6 + $0xb00] sm:$0xff]  ;;  %1539 = vst [vmem:[%s10631_s7 + $0x570] sm:$0xff] %v1538_v46  ;;  %1541 = vst [vmem:[%s10631_s7 + $0x578] sm:$0xff] %v1540_v47  ;;  %v1544_v49 = vld [vmem:[%s10626_s6 + $0xb10] sm:$0xff] }
  0x72   : > { %1543 = vst [vmem:[%s10631_s7 + $0x580] sm:$0xff] %v1542_v48  ;;  %v1546_v50 = vld [vmem:[%s10626_s6 + $0xb20] sm:$0xff]  ;;  %v1548_v51 = vld [vmem:[%s10626_s6 + $0xb30] sm:$0xff]  ;;  %1545 = vst [vmem:[%s10631_s7 + $0x588] sm:$0xff] %v1544_v49 }
  0x73   : > { %1547 = vst [vmem:[%s10631_s7 + $0x590] sm:$0xff] %v1546_v50  ;;  %1549 = vst [vmem:[%s10631_s7 + $0x598] sm:$0xff] %v1548_v51  ;;  %v1550_v52 = vld [vmem:[%s10626_s6 + $0xb40] sm:$0xff]  ;;  %v1552_v53 = vld [vmem:[%s10626_s6 + $0xb50] sm:$0xff] }
  0x74   : > { %v1554_v54 = vld [vmem:[%s10626_s6 + $0xb60] sm:$0xff]  ;;  %1551 = vst [vmem:[%s10631_s7 + $0x5a0] sm:$0xff] %v1550_v52  ;;  %1553 = vst [vmem:[%s10631_s7 + $0x5a8] sm:$0xff] %v1552_v53  ;;  %v1556_v55 = vld [vmem:[%s10626_s6 + $0xb70] sm:$0xff] }
  0x75   : > { %1555 = vst [vmem:[%s10631_s7 + $0x5b0] sm:$0xff] %v1554_v54  ;;  %v1558_v56 = vld [vmem:[%s10626_s6 + $0xb80] sm:$0xff]  ;;  %v1560_v57 = vld [vmem:[%s10626_s6 + $0xb90] sm:$0xff]  ;;  %1557 = vst [vmem:[%s10631_s7 + $0x5b8] sm:$0xff] %v1556_v55 }
  0x76   : > { %1559 = vst [vmem:[%s10631_s7 + $0x5c0] sm:$0xff] %v1558_v56  ;;  %1561 = vst [vmem:[%s10631_s7 + $0x5c8] sm:$0xff] %v1560_v57  ;;  %v1562_v58 = vld [vmem:[%s10626_s6 + $0xba0] sm:$0xff]  ;;  %v1564_v59 = vld [vmem:[%s10626_s6 + $0xbb0] sm:$0xff] }
  0x77   : > { %v1566_v60 = vld [vmem:[%s10626_s6 + $0xbc0] sm:$0xff]  ;;  %1563 = vst [vmem:[%s10631_s7 + $0x5d0] sm:$0xff] %v1562_v58  ;;  %1565 = vst [vmem:[%s10631_s7 + $0x5d8] sm:$0xff] %v1564_v59  ;;  %v1568_v61 = vld [vmem:[%s10626_s6 + $0xbd0] sm:$0xff] }
  0x78   : > { %1567 = vst [vmem:[%s10631_s7 + $0x5e0] sm:$0xff] %v1566_v60  ;;  %v1570_v62 = vld [vmem:[%s10626_s6 + $0xbe0] sm:$0xff]  ;;  %v1572_v63 = vld [vmem:[%s10626_s6 + $0xbf0] sm:$0xff]  ;;  %1569 = vst [vmem:[%s10631_s7 + $0x5e8] sm:$0xff] %v1568_v61 }
  0x79   : > { %1571 = vst [vmem:[%s10631_s7 + $0x5f0] sm:$0xff] %v1570_v62  ;;  %1573 = vst [vmem:[%s10631_s7 + $0x5f8] sm:$0xff] %v1572_v63  ;;  %v1574_v0 = vld [vmem:[%s10626_s6 + $0xc00] sm:$0xff]  ;;  %v1576_v1 = vld [vmem:[%s10626_s6 + $0xc10] sm:$0xff] }
  0x7a   : > { %v1578_v2 = vld [vmem:[%s10626_s6 + $0xc20] sm:$0xff]  ;;  %1575 = vst [vmem:[%s10631_s7 + $0x600] sm:$0xff] %v1574_v0  ;;  %1577 = vst [vmem:[%s10631_s7 + $0x608] sm:$0xff] %v1576_v1  ;;  %v1580_v3 = vld [vmem:[%s10626_s6 + $0xc30] sm:$0xff] }
  0x7b   : > { %1579 = vst [vmem:[%s10631_s7 + $0x610] sm:$0xff] %v1578_v2  ;;  %v1582_v4 = vld [vmem:[%s10626_s6 + $0xc40] sm:$0xff]  ;;  %v1584_v5 = vld [vmem:[%s10626_s6 + $0xc50] sm:$0xff]  ;;  %1581 = vst [vmem:[%s10631_s7 + $0x618] sm:$0xff] %v1580_v3 }
  0x7c   : > { %1583 = vst [vmem:[%s10631_s7 + $0x620] sm:$0xff] %v1582_v4  ;;  %1585 = vst [vmem:[%s10631_s7 + $0x628] sm:$0xff] %v1584_v5  ;;  %v1586_v6 = vld [vmem:[%s10626_s6 + $0xc60] sm:$0xff]  ;;  %v1588_v7 = vld [vmem:[%s10626_s6 + $0xc70] sm:$0xff] }
  0x7d   : > { %v1590_v8 = vld [vmem:[%s10626_s6 + $0xc80] sm:$0xff]  ;;  %1587 = vst [vmem:[%s10631_s7 + $0x630] sm:$0xff] %v1586_v6  ;;  %1589 = vst [vmem:[%s10631_s7 + $0x638] sm:$0xff] %v1588_v7  ;;  %v1592_v9 = vld [vmem:[%s10626_s6 + $0xc90] sm:$0xff] }
  0x7e   : > { %1591 = vst [vmem:[%s10631_s7 + $0x640] sm:$0xff] %v1590_v8  ;;  %v1594_v10 = vld [vmem:[%s10626_s6 + $0xca0] sm:$0xff]  ;;  %v1596_v11 = vld [vmem:[%s10626_s6 + $0xcb0] sm:$0xff]  ;;  %1593 = vst [vmem:[%s10631_s7 + $0x648] sm:$0xff] %v1592_v9 }
  0x7f   : > { %1595 = vst [vmem:[%s10631_s7 + $0x650] sm:$0xff] %v1594_v10  ;;  %1597 = vst [vmem:[%s10631_s7 + $0x658] sm:$0xff] %v1596_v11  ;;  %v1598_v12 = vld [vmem:[%s10626_s6 + $0xcc0] sm:$0xff]  ;;  %v1600_v13 = vld [vmem:[%s10626_s6 + $0xcd0] sm:$0xff] }
  0x80   : > { %v1602_v14 = vld [vmem:[%s10626_s6 + $0xce0] sm:$0xff]  ;;  %1599 = vst [vmem:[%s10631_s7 + $0x660] sm:$0xff] %v1598_v12  ;;  %1601 = vst [vmem:[%s10631_s7 + $0x668] sm:$0xff] %v1600_v13  ;;  %v1604_v15 = vld [vmem:[%s10626_s6 + $0xcf0] sm:$0xff] }
  0x81   : > { %1603 = vst [vmem:[%s10631_s7 + $0x670] sm:$0xff] %v1602_v14  ;;  %v1606_v16 = vld [vmem:[%s10626_s6 + $0xd00] sm:$0xff]  ;;  %v1608_v17 = vld [vmem:[%s10626_s6 + $0xd10] sm:$0xff]  ;;  %1605 = vst [vmem:[%s10631_s7 + $0x678] sm:$0xff] %v1604_v15 }
  0x82   : > { %1607 = vst [vmem:[%s10631_s7 + $0x680] sm:$0xff] %v1606_v16  ;;  %1609 = vst [vmem:[%s10631_s7 + $0x688] sm:$0xff] %v1608_v17  ;;  %v1610_v18 = vld [vmem:[%s10626_s6 + $0xd20] sm:$0xff]  ;;  %v1612_v19 = vld [vmem:[%s10626_s6 + $0xd30] sm:$0xff] }
  0x83   : > { %v1614_v20 = vld [vmem:[%s10626_s6 + $0xd40] sm:$0xff]  ;;  %1611 = vst [vmem:[%s10631_s7 + $0x690] sm:$0xff] %v1610_v18  ;;  %1613 = vst [vmem:[%s10631_s7 + $0x698] sm:$0xff] %v1612_v19  ;;  %v1616_v21 = vld [vmem:[%s10626_s6 + $0xd50] sm:$0xff] }
  0x84   : > { %1615 = vst [vmem:[%s10631_s7 + $0x6a0] sm:$0xff] %v1614_v20  ;;  %v1618_v22 = vld [vmem:[%s10626_s6 + $0xd60] sm:$0xff]  ;;  %v1620_v23 = vld [vmem:[%s10626_s6 + $0xd70] sm:$0xff]  ;;  %1617 = vst [vmem:[%s10631_s7 + $0x6a8] sm:$0xff] %v1616_v21 }
  0x85   : > { %1619 = vst [vmem:[%s10631_s7 + $0x6b0] sm:$0xff] %v1618_v22  ;;  %1621 = vst [vmem:[%s10631_s7 + $0x6b8] sm:$0xff] %v1620_v23  ;;  %v1622_v24 = vld [vmem:[%s10626_s6 + $0xd80] sm:$0xff]  ;;  %v1624_v25 = vld [vmem:[%s10626_s6 + $0xd90] sm:$0xff] }
  0x86   : > { %v1626_v26 = vld [vmem:[%s10626_s6 + $0xda0] sm:$0xff]  ;;  %1623 = vst [vmem:[%s10631_s7 + $0x6c0] sm:$0xff] %v1622_v24  ;;  %1625 = vst [vmem:[%s10631_s7 + $0x6c8] sm:$0xff] %v1624_v25  ;;  %v1628_v27 = vld [vmem:[%s10626_s6 + $0xdb0] sm:$0xff] }
  0x87   : > { %1627 = vst [vmem:[%s10631_s7 + $0x6d0] sm:$0xff] %v1626_v26  ;;  %v1630_v28 = vld [vmem:[%s10626_s6 + $0xdc0] sm:$0xff]  ;;  %v1632_v29 = vld [vmem:[%s10626_s6 + $0xdd0] sm:$0xff]  ;;  %1629 = vst [vmem:[%s10631_s7 + $0x6d8] sm:$0xff] %v1628_v27 }
  0x88   : > { %1631 = vst [vmem:[%s10631_s7 + $0x6e0] sm:$0xff] %v1630_v28  ;;  %1633 = vst [vmem:[%s10631_s7 + $0x6e8] sm:$0xff] %v1632_v29  ;;  %v1634_v30 = vld [vmem:[%s10626_s6 + $0xde0] sm:$0xff]  ;;  %v1636_v31 = vld [vmem:[%s10626_s6 + $0xdf0] sm:$0xff] }
  0x89   : > { %v1638_v32 = vld [vmem:[%s10626_s6 + $0xe00] sm:$0xff]  ;;  %1635 = vst [vmem:[%s10631_s7 + $0x6f0] sm:$0xff] %v1634_v30  ;;  %1637 = vst [vmem:[%s10631_s7 + $0x6f8] sm:$0xff] %v1636_v31  ;;  %v1640_v33 = vld [vmem:[%s10626_s6 + $0xe10] sm:$0xff] }
  0x8a   : > { %1639 = vst [vmem:[%s10631_s7 + $0x700] sm:$0xff] %v1638_v32  ;;  %v1642_v34 = vld [vmem:[%s10626_s6 + $0xe20] sm:$0xff]  ;;  %v1644_v35 = vld [vmem:[%s10626_s6 + $0xe30] sm:$0xff]  ;;  %1641 = vst [vmem:[%s10631_s7 + $0x708] sm:$0xff] %v1640_v33 }
  0x8b   : > { %1643 = vst [vmem:[%s10631_s7 + $0x710] sm:$0xff] %v1642_v34  ;;  %1645 = vst [vmem:[%s10631_s7 + $0x718] sm:$0xff] %v1644_v35  ;;  %v1646_v36 = vld [vmem:[%s10626_s6 + $0xe40] sm:$0xff]  ;;  %v1648_v37 = vld [vmem:[%s10626_s6 + $0xe50] sm:$0xff] }
  0x8c   : > { %v1650_v38 = vld [vmem:[%s10626_s6 + $0xe60] sm:$0xff]  ;;  %1647 = vst [vmem:[%s10631_s7 + $0x720] sm:$0xff] %v1646_v36  ;;  %1649 = vst [vmem:[%s10631_s7 + $0x728] sm:$0xff] %v1648_v37  ;;  %v1652_v39 = vld [vmem:[%s10626_s6 + $0xe70] sm:$0xff] }
  0x8d   : > { %1651 = vst [vmem:[%s10631_s7 + $0x730] sm:$0xff] %v1650_v38  ;;  %v1654_v40 = vld [vmem:[%s10626_s6 + $0xe80] sm:$0xff]  ;;  %v1656_v41 = vld [vmem:[%s10626_s6 + $0xe90] sm:$0xff]  ;;  %1653 = vst [vmem:[%s10631_s7 + $0x738] sm:$0xff] %v1652_v39 }
  0x8e   : > { %1655 = vst [vmem:[%s10631_s7 + $0x740] sm:$0xff] %v1654_v40  ;;  %1657 = vst [vmem:[%s10631_s7 + $0x748] sm:$0xff] %v1656_v41  ;;  %v1658_v42 = vld [vmem:[%s10626_s6 + $0xea0] sm:$0xff]  ;;  %v1660_v43 = vld [vmem:[%s10626_s6 + $0xeb0] sm:$0xff] }
  0x8f   : > { %v1662_v44 = vld [vmem:[%s10626_s6 + $0xec0] sm:$0xff]  ;;  %1659 = vst [vmem:[%s10631_s7 + $0x750] sm:$0xff] %v1658_v42  ;;  %1661 = vst [vmem:[%s10631_s7 + $0x758] sm:$0xff] %v1660_v43  ;;  %v1664_v45 = vld [vmem:[%s10626_s6 + $0xed0] sm:$0xff] }
  0x90   : > { %1663 = vst [vmem:[%s10631_s7 + $0x760] sm:$0xff] %v1662_v44  ;;  %v1666_v46 = vld [vmem:[%s10626_s6 + $0xee0] sm:$0xff]  ;;  %v1668_v47 = vld [vmem:[%s10626_s6 + $0xef0] sm:$0xff]  ;;  %1665 = vst [vmem:[%s10631_s7 + $0x768] sm:$0xff] %v1664_v45 }
  0x91   : > { %1667 = vst [vmem:[%s10631_s7 + $0x770] sm:$0xff] %v1666_v46  ;;  %1669 = vst [vmem:[%s10631_s7 + $0x778] sm:$0xff] %v1668_v47  ;;  %v1670_v48 = vld [vmem:[%s10626_s6 + $0xf00] sm:$0xff]  ;;  %v1672_v49 = vld [vmem:[%s10626_s6 + $0xf10] sm:$0xff] }
  0x92   : > { %v1674_v50 = vld [vmem:[%s10626_s6 + $0xf20] sm:$0xff]  ;;  %1671 = vst [vmem:[%s10631_s7 + $0x780] sm:$0xff] %v1670_v48  ;;  %1673 = vst [vmem:[%s10631_s7 + $0x788] sm:$0xff] %v1672_v49  ;;  %v1676_v51 = vld [vmem:[%s10626_s6 + $0xf30] sm:$0xff] }
  0x93   : > { %1675 = vst [vmem:[%s10631_s7 + $0x790] sm:$0xff] %v1674_v50  ;;  %v1678_v52 = vld [vmem:[%s10626_s6 + $0xf40] sm:$0xff]  ;;  %v1680_v53 = vld [vmem:[%s10626_s6 + $0xf50] sm:$0xff]  ;;  %1677 = vst [vmem:[%s10631_s7 + $0x798] sm:$0xff] %v1676_v51 }
  0x94   : > { %1679 = vst [vmem:[%s10631_s7 + $0x7a0] sm:$0xff] %v1678_v52  ;;  %1681 = vst [vmem:[%s10631_s7 + $0x7a8] sm:$0xff] %v1680_v53  ;;  %v1682_v54 = vld [vmem:[%s10626_s6 + $0xf60] sm:$0xff]  ;;  %v1684_v55 = vld [vmem:[%s10626_s6 + $0xf70] sm:$0xff] }
  0x95   : > { %v1686_v56 = vld [vmem:[%s10626_s6 + $0xf80] sm:$0xff]  ;;  %1683 = vst [vmem:[%s10631_s7 + $0x7b0] sm:$0xff] %v1682_v54  ;;  %1685 = vst [vmem:[%s10631_s7 + $0x7b8] sm:$0xff] %v1684_v55  ;;  %v1688_v57 = vld [vmem:[%s10626_s6 + $0xf90] sm:$0xff] }
  0x96   : > { %1687 = vst [vmem:[%s10631_s7 + $0x7c0] sm:$0xff] %v1686_v56  ;;  %v1690_v58 = vld [vmem:[%s10626_s6 + $0xfa0] sm:$0xff]  ;;  %v1692_v59 = vld [vmem:[%s10626_s6 + $0xfb0] sm:$0xff]  ;;  %1689 = vst [vmem:[%s10631_s7 + $0x7c8] sm:$0xff] %v1688_v57 }
  0x97   : > { %1691 = vst [vmem:[%s10631_s7 + $0x7d0] sm:$0xff] %v1690_v58  ;;  %1693 = vst [vmem:[%s10631_s7 + $0x7d8] sm:$0xff] %v1692_v59  ;;  %v1694_v60 = vld [vmem:[%s10626_s6 + $0xfc0] sm:$0xff]  ;;  %v1696_v61 = vld [vmem:[%s10626_s6 + $0xfd0] sm:$0xff] }
  0x98   : > { %v1698_v62 = vld [vmem:[%s10626_s6 + $0xfe0] sm:$0xff]  ;;  %1695 = vst [vmem:[%s10631_s7 + $0x7e0] sm:$0xff] %v1694_v60  ;;  %1697 = vst [vmem:[%s10631_s7 + $0x7e8] sm:$0xff] %v1696_v61  ;;  %v1700_v63 = vld [vmem:[%s10626_s6 + $0xff0] sm:$0xff] }
  0x99   : > { %1699 = vst [vmem:[%s10631_s7 + $0x7f0] sm:$0xff] %v1698_v62  ;;  %v1702_v0 = vld [vmem:[%s10626_s6 + $0x1000] sm:$0xff]  ;;  %v1704_v1 = vld [vmem:[%s10626_s6 + $0x1010] sm:$0xff]  ;;  %1701 = vst [vmem:[%s10631_s7 + $0x7f8] sm:$0xff] %v1700_v63 }
  0x9a   : > { %1703 = vst [vmem:[%s10631_s7 + $0x800] sm:$0xff] %v1702_v0  ;;  %1705 = vst [vmem:[%s10631_s7 + $0x808] sm:$0xff] %v1704_v1  ;;  %v1706_v2 = vld [vmem:[%s10626_s6 + $0x1020] sm:$0xff]  ;;  %v1708_v3 = vld [vmem:[%s10626_s6 + $0x1030] sm:$0xff] }
  0x9b   : > { %v1710_v4 = vld [vmem:[%s10626_s6 + $0x1040] sm:$0xff]  ;;  %1707 = vst [vmem:[%s10631_s7 + $0x810] sm:$0xff] %v1706_v2  ;;  %1709 = vst [vmem:[%s10631_s7 + $0x818] sm:$0xff] %v1708_v3  ;;  %v1712_v5 = vld [vmem:[%s10626_s6 + $0x1050] sm:$0xff] }
  0x9c   : > { %1711 = vst [vmem:[%s10631_s7 + $0x820] sm:$0xff] %v1710_v4  ;;  %v1714_v6 = vld [vmem:[%s10626_s6 + $0x1060] sm:$0xff]  ;;  %v1716_v7 = vld [vmem:[%s10626_s6 + $0x1070] sm:$0xff]  ;;  %1713 = vst [vmem:[%s10631_s7 + $0x828] sm:$0xff] %v1712_v5 }
  0x9d   : > { %1715 = vst [vmem:[%s10631_s7 + $0x830] sm:$0xff] %v1714_v6  ;;  %1717 = vst [vmem:[%s10631_s7 + $0x838] sm:$0xff] %v1716_v7  ;;  %v1718_v8 = vld [vmem:[%s10626_s6 + $0x1080] sm:$0xff]  ;;  %v1720_v9 = vld [vmem:[%s10626_s6 + $0x1090] sm:$0xff] }
  0x9e   : > { %v1722_v10 = vld [vmem:[%s10626_s6 + $0x10a0] sm:$0xff]  ;;  %1719 = vst [vmem:[%s10631_s7 + $0x840] sm:$0xff] %v1718_v8  ;;  %1721 = vst [vmem:[%s10631_s7 + $0x848] sm:$0xff] %v1720_v9  ;;  %v1724_v11 = vld [vmem:[%s10626_s6 + $0x10b0] sm:$0xff] }
  0x9f   : > { %1723 = vst [vmem:[%s10631_s7 + $0x850] sm:$0xff] %v1722_v10  ;;  %v1726_v12 = vld [vmem:[%s10626_s6 + $0x10c0] sm:$0xff]  ;;  %v1728_v13 = vld [vmem:[%s10626_s6 + $0x10d0] sm:$0xff]  ;;  %1725 = vst [vmem:[%s10631_s7 + $0x858] sm:$0xff] %v1724_v11 }
  0xa0   : > { %1727 = vst [vmem:[%s10631_s7 + $0x860] sm:$0xff] %v1726_v12  ;;  %1729 = vst [vmem:[%s10631_s7 + $0x868] sm:$0xff] %v1728_v13  ;;  %v1730_v14 = vld [vmem:[%s10626_s6 + $0x10e0] sm:$0xff]  ;;  %v1732_v15 = vld [vmem:[%s10626_s6 + $0x10f0] sm:$0xff] }
  0xa1   : > { %v1734_v16 = vld [vmem:[%s10626_s6 + $0x1100] sm:$0xff]  ;;  %1731 = vst [vmem:[%s10631_s7 + $0x870] sm:$0xff] %v1730_v14  ;;  %1733 = vst [vmem:[%s10631_s7 + $0x878] sm:$0xff] %v1732_v15  ;;  %v1736_v17 = vld [vmem:[%s10626_s6 + $0x1110] sm:$0xff] }
  0xa2   : > { %1735 = vst [vmem:[%s10631_s7 + $0x880] sm:$0xff] %v1734_v16  ;;  %v1738_v18 = vld [vmem:[%s10626_s6 + $0x1120] sm:$0xff]  ;;  %v1740_v19 = vld [vmem:[%s10626_s6 + $0x1130] sm:$0xff]  ;;  %1737 = vst [vmem:[%s10631_s7 + $0x888] sm:$0xff] %v1736_v17 }
  0xa3   : > { %1739 = vst [vmem:[%s10631_s7 + $0x890] sm:$0xff] %v1738_v18  ;;  %1741 = vst [vmem:[%s10631_s7 + $0x898] sm:$0xff] %v1740_v19  ;;  %v1742_v20 = vld [vmem:[%s10626_s6 + $0x1140] sm:$0xff]  ;;  %v1744_v21 = vld [vmem:[%s10626_s6 + $0x1150] sm:$0xff] }
  0xa4   : > { %v1746_v22 = vld [vmem:[%s10626_s6 + $0x1160] sm:$0xff]  ;;  %1743 = vst [vmem:[%s10631_s7 + $0x8a0] sm:$0xff] %v1742_v20  ;;  %1745 = vst [vmem:[%s10631_s7 + $0x8a8] sm:$0xff] %v1744_v21  ;;  %v1748_v23 = vld [vmem:[%s10626_s6 + $0x1170] sm:$0xff] }
  0xa5   : > { %1747 = vst [vmem:[%s10631_s7 + $0x8b0] sm:$0xff] %v1746_v22  ;;  %v1750_v24 = vld [vmem:[%s10626_s6 + $0x1180] sm:$0xff]  ;;  %v1752_v25 = vld [vmem:[%s10626_s6 + $0x1190] sm:$0xff]  ;;  %1749 = vst [vmem:[%s10631_s7 + $0x8b8] sm:$0xff] %v1748_v23 }
  0xa6   : > { %1751 = vst [vmem:[%s10631_s7 + $0x8c0] sm:$0xff] %v1750_v24  ;;  %1753 = vst [vmem:[%s10631_s7 + $0x8c8] sm:$0xff] %v1752_v25  ;;  %v1754_v26 = vld [vmem:[%s10626_s6 + $0x11a0] sm:$0xff]  ;;  %v1756_v27 = vld [vmem:[%s10626_s6 + $0x11b0] sm:$0xff] }
  0xa7   : > { %v1758_v28 = vld [vmem:[%s10626_s6 + $0x11c0] sm:$0xff]  ;;  %1755 = vst [vmem:[%s10631_s7 + $0x8d0] sm:$0xff] %v1754_v26  ;;  %1757 = vst [vmem:[%s10631_s7 + $0x8d8] sm:$0xff] %v1756_v27  ;;  %v1760_v29 = vld [vmem:[%s10626_s6 + $0x11d0] sm:$0xff] }
  0xa8   : > { %1759 = vst [vmem:[%s10631_s7 + $0x8e0] sm:$0xff] %v1758_v28  ;;  %v1762_v30 = vld [vmem:[%s10626_s6 + $0x11e0] sm:$0xff]  ;;  %v1764_v31 = vld [vmem:[%s10626_s6 + $0x11f0] sm:$0xff]  ;;  %1761 = vst [vmem:[%s10631_s7 + $0x8e8] sm:$0xff] %v1760_v29 }
  0xa9   : > { %1763 = vst [vmem:[%s10631_s7 + $0x8f0] sm:$0xff] %v1762_v30  ;;  %1765 = vst [vmem:[%s10631_s7 + $0x8f8] sm:$0xff] %v1764_v31  ;;  %v1766_v32 = vld [vmem:[%s10626_s6 + $0x1200] sm:$0xff]  ;;  %v1768_v33 = vld [vmem:[%s10626_s6 + $0x1210] sm:$0xff] }
  0xaa   : > { %v1770_v34 = vld [vmem:[%s10626_s6 + $0x1220] sm:$0xff]  ;;  %1767 = vst [vmem:[%s10631_s7 + $0x900] sm:$0xff] %v1766_v32  ;;  %1769 = vst [vmem:[%s10631_s7 + $0x908] sm:$0xff] %v1768_v33  ;;  %v1772_v35 = vld [vmem:[%s10626_s6 + $0x1230] sm:$0xff] }
  0xab   : > { %1771 = vst [vmem:[%s10631_s7 + $0x910] sm:$0xff] %v1770_v34  ;;  %v1774_v36 = vld [vmem:[%s10626_s6 + $0x1240] sm:$0xff]  ;;  %v1776_v37 = vld [vmem:[%s10626_s6 + $0x1250] sm:$0xff]  ;;  %1773 = vst [vmem:[%s10631_s7 + $0x918] sm:$0xff] %v1772_v35 }
  0xac   : > { %1775 = vst [vmem:[%s10631_s7 + $0x920] sm:$0xff] %v1774_v36  ;;  %1777 = vst [vmem:[%s10631_s7 + $0x928] sm:$0xff] %v1776_v37  ;;  %v1778_v38 = vld [vmem:[%s10626_s6 + $0x1260] sm:$0xff]  ;;  %v1780_v39 = vld [vmem:[%s10626_s6 + $0x1270] sm:$0xff] }
  0xad   : > { %v1782_v40 = vld [vmem:[%s10626_s6 + $0x1280] sm:$0xff]  ;;  %1779 = vst [vmem:[%s10631_s7 + $0x930] sm:$0xff] %v1778_v38  ;;  %1781 = vst [vmem:[%s10631_s7 + $0x938] sm:$0xff] %v1780_v39  ;;  %v1784_v41 = vld [vmem:[%s10626_s6 + $0x1290] sm:$0xff] }
  0xae   : > { %1783 = vst [vmem:[%s10631_s7 + $0x940] sm:$0xff] %v1782_v40  ;;  %v1786_v42 = vld [vmem:[%s10626_s6 + $0x12a0] sm:$0xff]  ;;  %v1788_v43 = vld [vmem:[%s10626_s6 + $0x12b0] sm:$0xff]  ;;  %1785 = vst [vmem:[%s10631_s7 + $0x948] sm:$0xff] %v1784_v41 }
  0xaf   : > { %1787 = vst [vmem:[%s10631_s7 + $0x950] sm:$0xff] %v1786_v42  ;;  %1789 = vst [vmem:[%s10631_s7 + $0x958] sm:$0xff] %v1788_v43  ;;  %v1790_v44 = vld [vmem:[%s10626_s6 + $0x12c0] sm:$0xff]  ;;  %v1792_v45 = vld [vmem:[%s10626_s6 + $0x12d0] sm:$0xff] }
  0xb0   : > { %v1794_v46 = vld [vmem:[%s10626_s6 + $0x12e0] sm:$0xff]  ;;  %1791 = vst [vmem:[%s10631_s7 + $0x960] sm:$0xff] %v1790_v44  ;;  %1793 = vst [vmem:[%s10631_s7 + $0x968] sm:$0xff] %v1792_v45  ;;  %v1796_v47 = vld [vmem:[%s10626_s6 + $0x12f0] sm:$0xff] }
  0xb1   : > { %1795 = vst [vmem:[%s10631_s7 + $0x970] sm:$0xff] %v1794_v46  ;;  %v1798_v48 = vld [vmem:[%s10626_s6 + $0x1300] sm:$0xff]  ;;  %v1800_v49 = vld [vmem:[%s10626_s6 + $0x1310] sm:$0xff]  ;;  %1797 = vst [vmem:[%s10631_s7 + $0x978] sm:$0xff] %v1796_v47 }
  0xb2   : > { %1799 = vst [vmem:[%s10631_s7 + $0x980] sm:$0xff] %v1798_v48  ;;  %1801 = vst [vmem:[%s10631_s7 + $0x988] sm:$0xff] %v1800_v49  ;;  %v1802_v50 = vld [vmem:[%s10626_s6 + $0x1320] sm:$0xff]  ;;  %v1804_v51 = vld [vmem:[%s10626_s6 + $0x1330] sm:$0xff] }
  0xb3   : > { %v1806_v52 = vld [vmem:[%s10626_s6 + $0x1340] sm:$0xff]  ;;  %1803 = vst [vmem:[%s10631_s7 + $0x990] sm:$0xff] %v1802_v50  ;;  %1805 = vst [vmem:[%s10631_s7 + $0x998] sm:$0xff] %v1804_v51  ;;  %v1808_v53 = vld [vmem:[%s10626_s6 + $0x1350] sm:$0xff] }
  0xb4   : > { %1807 = vst [vmem:[%s10631_s7 + $0x9a0] sm:$0xff] %v1806_v52  ;;  %v1810_v54 = vld [vmem:[%s10626_s6 + $0x1360] sm:$0xff]  ;;  %v1812_v55 = vld [vmem:[%s10626_s6 + $0x1370] sm:$0xff]  ;;  %1809 = vst [vmem:[%s10631_s7 + $0x9a8] sm:$0xff] %v1808_v53 }
  0xb5   : > { %1811 = vst [vmem:[%s10631_s7 + $0x9b0] sm:$0xff] %v1810_v54  ;;  %1813 = vst [vmem:[%s10631_s7 + $0x9b8] sm:$0xff] %v1812_v55  ;;  %v1814_v56 = vld [vmem:[%s10626_s6 + $0x1380] sm:$0xff]  ;;  %v1816_v57 = vld [vmem:[%s10626_s6 + $0x1390] sm:$0xff] }
  0xb6   : > { %v1818_v58 = vld [vmem:[%s10626_s6 + $0x13a0] sm:$0xff]  ;;  %1815 = vst [vmem:[%s10631_s7 + $0x9c0] sm:$0xff] %v1814_v56  ;;  %1817 = vst [vmem:[%s10631_s7 + $0x9c8] sm:$0xff] %v1816_v57  ;;  %v1820_v59 = vld [vmem:[%s10626_s6 + $0x13b0] sm:$0xff] }
  0xb7   : > { %1819 = vst [vmem:[%s10631_s7 + $0x9d0] sm:$0xff] %v1818_v58  ;;  %v1822_v60 = vld [vmem:[%s10626_s6 + $0x13c0] sm:$0xff]  ;;  %v1824_v61 = vld [vmem:[%s10626_s6 + $0x13d0] sm:$0xff]  ;;  %1821 = vst [vmem:[%s10631_s7 + $0x9d8] sm:$0xff] %v1820_v59 }
  0xb8   : > { %1823 = vst [vmem:[%s10631_s7 + $0x9e0] sm:$0xff] %v1822_v60  ;;  %1825 = vst [vmem:[%s10631_s7 + $0x9e8] sm:$0xff] %v1824_v61  ;;  %v1826_v62 = vld [vmem:[%s10626_s6 + $0x13e0] sm:$0xff]  ;;  %v1828_v63 = vld [vmem:[%s10626_s6 + $0x13f0] sm:$0xff] }
  0xb9   : > { %v1830_v0 = vld [vmem:[%s10626_s6 + $0x1400] sm:$0xff]  ;;  %1827 = vst [vmem:[%s10631_s7 + $0x9f0] sm:$0xff] %v1826_v62  ;;  %1829 = vst [vmem:[%s10631_s7 + $0x9f8] sm:$0xff] %v1828_v63  ;;  %v1832_v1 = vld [vmem:[%s10626_s6 + $0x1410] sm:$0xff] }
  0xba   : > { %1831 = vst [vmem:[%s10631_s7 + $0xa00] sm:$0xff] %v1830_v0  ;;  %v1834_v2 = vld [vmem:[%s10626_s6 + $0x1420] sm:$0xff]  ;;  %v1836_v3 = vld [vmem:[%s10626_s6 + $0x1430] sm:$0xff]  ;;  %1833 = vst [vmem:[%s10631_s7 + $0xa08] sm:$0xff] %v1832_v1 }
  0xbb   : > { %1835 = vst [vmem:[%s10631_s7 + $0xa10] sm:$0xff] %v1834_v2  ;;  %1837 = vst [vmem:[%s10631_s7 + $0xa18] sm:$0xff] %v1836_v3  ;;  %v1838_v4 = vld [vmem:[%s10626_s6 + $0x1440] sm:$0xff]  ;;  %v1840_v5 = vld [vmem:[%s10626_s6 + $0x1450] sm:$0xff] }
  0xbc   : > { %v1842_v6 = vld [vmem:[%s10626_s6 + $0x1460] sm:$0xff]  ;;  %1839 = vst [vmem:[%s10631_s7 + $0xa20] sm:$0xff] %v1838_v4  ;;  %1841 = vst [vmem:[%s10631_s7 + $0xa28] sm:$0xff] %v1840_v5  ;;  %v1844_v7 = vld [vmem:[%s10626_s6 + $0x1470] sm:$0xff] }
  0xbd   : > { %1843 = vst [vmem:[%s10631_s7 + $0xa30] sm:$0xff] %v1842_v6  ;;  %v1846_v8 = vld [vmem:[%s10626_s6 + $0x1480] sm:$0xff]  ;;  %v1848_v9 = vld [vmem:[%s10626_s6 + $0x1490] sm:$0xff]  ;;  %1845 = vst [vmem:[%s10631_s7 + $0xa38] sm:$0xff] %v1844_v7 }
  0xbe   : > { %1847 = vst [vmem:[%s10631_s7 + $0xa40] sm:$0xff] %v1846_v8  ;;  %1849 = vst [vmem:[%s10631_s7 + $0xa48] sm:$0xff] %v1848_v9  ;;  %v1850_v10 = vld [vmem:[%s10626_s6 + $0x14a0] sm:$0xff]  ;;  %v1852_v11 = vld [vmem:[%s10626_s6 + $0x14b0] sm:$0xff] }
  0xbf   : > { %v1854_v12 = vld [vmem:[%s10626_s6 + $0x14c0] sm:$0xff]  ;;  %1851 = vst [vmem:[%s10631_s7 + $0xa50] sm:$0xff] %v1850_v10  ;;  %1853 = vst [vmem:[%s10631_s7 + $0xa58] sm:$0xff] %v1852_v11  ;;  %v1856_v13 = vld [vmem:[%s10626_s6 + $0x14d0] sm:$0xff] }
  0xc0   : > { %1855 = vst [vmem:[%s10631_s7 + $0xa60] sm:$0xff] %v1854_v12  ;;  %v1858_v14 = vld [vmem:[%s10626_s6 + $0x14e0] sm:$0xff]  ;;  %v1860_v15 = vld [vmem:[%s10626_s6 + $0x14f0] sm:$0xff]  ;;  %1857 = vst [vmem:[%s10631_s7 + $0xa68] sm:$0xff] %v1856_v13 }
  0xc1   : > { %1859 = vst [vmem:[%s10631_s7 + $0xa70] sm:$0xff] %v1858_v14  ;;  %1861 = vst [vmem:[%s10631_s7 + $0xa78] sm:$0xff] %v1860_v15  ;;  %v1862_v16 = vld [vmem:[%s10626_s6 + $0x1500] sm:$0xff]  ;;  %v1864_v17 = vld [vmem:[%s10626_s6 + $0x1510] sm:$0xff] }
  0xc2   : > { %v1866_v18 = vld [vmem:[%s10626_s6 + $0x1520] sm:$0xff]  ;;  %1863 = vst [vmem:[%s10631_s7 + $0xa80] sm:$0xff] %v1862_v16  ;;  %1865 = vst [vmem:[%s10631_s7 + $0xa88] sm:$0xff] %v1864_v17  ;;  %v1868_v19 = vld [vmem:[%s10626_s6 + $0x1530] sm:$0xff] }
  0xc3   : > { %1867 = vst [vmem:[%s10631_s7 + $0xa90] sm:$0xff] %v1866_v18  ;;  %v1870_v20 = vld [vmem:[%s10626_s6 + $0x1540] sm:$0xff]  ;;  %v1872_v21 = vld [vmem:[%s10626_s6 + $0x1550] sm:$0xff]  ;;  %1869 = vst [vmem:[%s10631_s7 + $0xa98] sm:$0xff] %v1868_v19 }
  0xc4   : > { %1871 = vst [vmem:[%s10631_s7 + $0xaa0] sm:$0xff] %v1870_v20  ;;  %1873 = vst [vmem:[%s10631_s7 + $0xaa8] sm:$0xff] %v1872_v21  ;;  %v1874_v22 = vld [vmem:[%s10626_s6 + $0x1560] sm:$0xff]  ;;  %v1876_v23 = vld [vmem:[%s10626_s6 + $0x1570] sm:$0xff] }
  0xc5   : > { %v1878_v24 = vld [vmem:[%s10626_s6 + $0x1580] sm:$0xff]  ;;  %1875 = vst [vmem:[%s10631_s7 + $0xab0] sm:$0xff] %v1874_v22  ;;  %1877 = vst [vmem:[%s10631_s7 + $0xab8] sm:$0xff] %v1876_v23  ;;  %v1880_v25 = vld [vmem:[%s10626_s6 + $0x1590] sm:$0xff] }
  0xc6   : > { %1879 = vst [vmem:[%s10631_s7 + $0xac0] sm:$0xff] %v1878_v24  ;;  %v1882_v26 = vld [vmem:[%s10626_s6 + $0x15a0] sm:$0xff]  ;;  %v1884_v27 = vld [vmem:[%s10626_s6 + $0x15b0] sm:$0xff]  ;;  %1881 = vst [vmem:[%s10631_s7 + $0xac8] sm:$0xff] %v1880_v25 }
  0xc7   : > { %1883 = vst [vmem:[%s10631_s7 + $0xad0] sm:$0xff] %v1882_v26  ;;  %1885 = vst [vmem:[%s10631_s7 + $0xad8] sm:$0xff] %v1884_v27  ;;  %v1886_v28 = vld [vmem:[%s10626_s6 + $0x15c0] sm:$0xff]  ;;  %v1888_v29 = vld [vmem:[%s10626_s6 + $0x15d0] sm:$0xff] }
  0xc8   : > { %v1890_v30 = vld [vmem:[%s10626_s6 + $0x15e0] sm:$0xff]  ;;  %1887 = vst [vmem:[%s10631_s7 + $0xae0] sm:$0xff] %v1886_v28  ;;  %1889 = vst [vmem:[%s10631_s7 + $0xae8] sm:$0xff] %v1888_v29  ;;  %v1892_v31 = vld [vmem:[%s10626_s6 + $0x15f0] sm:$0xff] }
  0xc9   : > { %1891 = vst [vmem:[%s10631_s7 + $0xaf0] sm:$0xff] %v1890_v30  ;;  %v1894_v32 = vld [vmem:[%s10626_s6 + $0x1600] sm:$0xff]  ;;  %v1896_v33 = vld [vmem:[%s10626_s6 + $0x1610] sm:$0xff]  ;;  %1893 = vst [vmem:[%s10631_s7 + $0xaf8] sm:$0xff] %v1892_v31 }
  0xca   : > { %1895 = vst [vmem:[%s10631_s7 + $0xb00] sm:$0xff] %v1894_v32  ;;  %1897 = vst [vmem:[%s10631_s7 + $0xb08] sm:$0xff] %v1896_v33  ;;  %v1898_v34 = vld [vmem:[%s10626_s6 + $0x1620] sm:$0xff]  ;;  %v1900_v35 = vld [vmem:[%s10626_s6 + $0x1630] sm:$0xff] }
  0xcb   : > { %v1902_v36 = vld [vmem:[%s10626_s6 + $0x1640] sm:$0xff]  ;;  %1899 = vst [vmem:[%s10631_s7 + $0xb10] sm:$0xff] %v1898_v34  ;;  %1901 = vst [vmem:[%s10631_s7 + $0xb18] sm:$0xff] %v1900_v35  ;;  %v1904_v37 = vld [vmem:[%s10626_s6 + $0x1650] sm:$0xff] }
  0xcc   : > { %1903 = vst [vmem:[%s10631_s7 + $0xb20] sm:$0xff] %v1902_v36  ;;  %v1906_v38 = vld [vmem:[%s10626_s6 + $0x1660] sm:$0xff]  ;;  %v1908_v39 = vld [vmem:[%s10626_s6 + $0x1670] sm:$0xff]  ;;  %1905 = vst [vmem:[%s10631_s7 + $0xb28] sm:$0xff] %v1904_v37 }
  0xcd   : > { %1907 = vst [vmem:[%s10631_s7 + $0xb30] sm:$0xff] %v1906_v38  ;;  %1909 = vst [vmem:[%s10631_s7 + $0xb38] sm:$0xff] %v1908_v39  ;;  %v1910_v40 = vld [vmem:[%s10626_s6 + $0x1680] sm:$0xff]  ;;  %v1912_v41 = vld [vmem:[%s10626_s6 + $0x1690] sm:$0xff] }
  0xce   : > { %v1914_v42 = vld [vmem:[%s10626_s6 + $0x16a0] sm:$0xff]  ;;  %1911 = vst [vmem:[%s10631_s7 + $0xb40] sm:$0xff] %v1910_v40  ;;  %1913 = vst [vmem:[%s10631_s7 + $0xb48] sm:$0xff] %v1912_v41  ;;  %v1916_v43 = vld [vmem:[%s10626_s6 + $0x16b0] sm:$0xff] }
  0xcf   : > { %1915 = vst [vmem:[%s10631_s7 + $0xb50] sm:$0xff] %v1914_v42  ;;  %v1918_v44 = vld [vmem:[%s10626_s6 + $0x16c0] sm:$0xff]  ;;  %v1920_v45 = vld [vmem:[%s10626_s6 + $0x16d0] sm:$0xff]  ;;  %1917 = vst [vmem:[%s10631_s7 + $0xb58] sm:$0xff] %v1916_v43 }
  0xd0   : > { %1919 = vst [vmem:[%s10631_s7 + $0xb60] sm:$0xff] %v1918_v44  ;;  %1921 = vst [vmem:[%s10631_s7 + $0xb68] sm:$0xff] %v1920_v45  ;;  %v1922_v46 = vld [vmem:[%s10626_s6 + $0x16e0] sm:$0xff]  ;;  %v1924_v47 = vld [vmem:[%s10626_s6 + $0x16f0] sm:$0xff] }
  0xd1   : > { %v1926_v48 = vld [vmem:[%s10626_s6 + $0x1700] sm:$0xff]  ;;  %1923 = vst [vmem:[%s10631_s7 + $0xb70] sm:$0xff] %v1922_v46  ;;  %1925 = vst [vmem:[%s10631_s7 + $0xb78] sm:$0xff] %v1924_v47  ;;  %v1928_v49 = vld [vmem:[%s10626_s6 + $0x1710] sm:$0xff] }
  0xd2   : > { %1927 = vst [vmem:[%s10631_s7 + $0xb80] sm:$0xff] %v1926_v48  ;;  %v1930_v50 = vld [vmem:[%s10626_s6 + $0x1720] sm:$0xff]  ;;  %v1932_v51 = vld [vmem:[%s10626_s6 + $0x1730] sm:$0xff]  ;;  %1929 = vst [vmem:[%s10631_s7 + $0xb88] sm:$0xff] %v1928_v49 }
  0xd3   : > { %1931 = vst [vmem:[%s10631_s7 + $0xb90] sm:$0xff] %v1930_v50  ;;  %1933 = vst [vmem:[%s10631_s7 + $0xb98] sm:$0xff] %v1932_v51  ;;  %v1934_v52 = vld [vmem:[%s10626_s6 + $0x1740] sm:$0xff]  ;;  %v1936_v53 = vld [vmem:[%s10626_s6 + $0x1750] sm:$0xff] }
  0xd4   : > { %v1938_v54 = vld [vmem:[%s10626_s6 + $0x1760] sm:$0xff]  ;;  %1935 = vst [vmem:[%s10631_s7 + $0xba0] sm:$0xff] %v1934_v52  ;;  %1937 = vst [vmem:[%s10631_s7 + $0xba8] sm:$0xff] %v1936_v53  ;;  %v1940_v55 = vld [vmem:[%s10626_s6 + $0x1770] sm:$0xff] }
  0xd5   : > { %1939 = vst [vmem:[%s10631_s7 + $0xbb0] sm:$0xff] %v1938_v54  ;;  %v1942_v56 = vld [vmem:[%s10626_s6 + $0x1780] sm:$0xff]  ;;  %v1944_v57 = vld [vmem:[%s10626_s6 + $0x1790] sm:$0xff]  ;;  %1941 = vst [vmem:[%s10631_s7 + $0xbb8] sm:$0xff] %v1940_v55 }
  0xd6   : > { %1943 = vst [vmem:[%s10631_s7 + $0xbc0] sm:$0xff] %v1942_v56  ;;  %1945 = vst [vmem:[%s10631_s7 + $0xbc8] sm:$0xff] %v1944_v57  ;;  %v1946_v58 = vld [vmem:[%s10626_s6 + $0x17a0] sm:$0xff]  ;;  %v1948_v59 = vld [vmem:[%s10626_s6 + $0x17b0] sm:$0xff] }
  0xd7   : > { %v1950_v60 = vld [vmem:[%s10626_s6 + $0x17c0] sm:$0xff]  ;;  %1947 = vst [vmem:[%s10631_s7 + $0xbd0] sm:$0xff] %v1946_v58  ;;  %1949 = vst [vmem:[%s10631_s7 + $0xbd8] sm:$0xff] %v1948_v59  ;;  %v1952_v61 = vld [vmem:[%s10626_s6 + $0x17d0] sm:$0xff] }
  0xd8   : > { %1951 = vst [vmem:[%s10631_s7 + $0xbe0] sm:$0xff] %v1950_v60  ;;  %v1954_v62 = vld [vmem:[%s10626_s6 + $0x17e0] sm:$0xff]  ;;  %v1956_v63 = vld [vmem:[%s10626_s6 + $0x17f0] sm:$0xff]  ;;  %1953 = vst [vmem:[%s10631_s7 + $0xbe8] sm:$0xff] %v1952_v61 }
  0xd9   : > { %1955 = vst [vmem:[%s10631_s7 + $0xbf0] sm:$0xff] %v1954_v62  ;;  %1957 = vst [vmem:[%s10631_s7 + $0xbf8] sm:$0xff] %v1956_v63  ;;  %v1958_v0 = vld [vmem:[%s10626_s6 + $0x1800] sm:$0xff]  ;;  %v1960_v1 = vld [vmem:[%s10626_s6 + $0x1810] sm:$0xff] }
  0xda   : > { %v1962_v2 = vld [vmem:[%s10626_s6 + $0x1820] sm:$0xff]  ;;  %1959 = vst [vmem:[%s10631_s7 + $0xc00] sm:$0xff] %v1958_v0  ;;  %1961 = vst [vmem:[%s10631_s7 + $0xc08] sm:$0xff] %v1960_v1  ;;  %v1964_v3 = vld [vmem:[%s10626_s6 + $0x1830] sm:$0xff] }
  0xdb   : > { %1963 = vst [vmem:[%s10631_s7 + $0xc10] sm:$0xff] %v1962_v2  ;;  %v1966_v4 = vld [vmem:[%s10626_s6 + $0x1840] sm:$0xff]  ;;  %v1968_v5 = vld [vmem:[%s10626_s6 + $0x1850] sm:$0xff]  ;;  %1965 = vst [vmem:[%s10631_s7 + $0xc18] sm:$0xff] %v1964_v3 }
  0xdc   : > { %1967 = vst [vmem:[%s10631_s7 + $0xc20] sm:$0xff] %v1966_v4  ;;  %1969 = vst [vmem:[%s10631_s7 + $0xc28] sm:$0xff] %v1968_v5  ;;  %v1970_v6 = vld [vmem:[%s10626_s6 + $0x1860] sm:$0xff]  ;;  %v1972_v7 = vld [vmem:[%s10626_s6 + $0x1870] sm:$0xff] }
  0xdd   : > { %v1974_v8 = vld [vmem:[%s10626_s6 + $0x1880] sm:$0xff]  ;;  %1971 = vst [vmem:[%s10631_s7 + $0xc30] sm:$0xff] %v1970_v6  ;;  %1973 = vst [vmem:[%s10631_s7 + $0xc38] sm:$0xff] %v1972_v7  ;;  %v1976_v9 = vld [vmem:[%s10626_s6 + $0x1890] sm:$0xff] }
  0xde   : > { %1975 = vst [vmem:[%s10631_s7 + $0xc40] sm:$0xff] %v1974_v8  ;;  %v1978_v10 = vld [vmem:[%s10626_s6 + $0x18a0] sm:$0xff]  ;;  %v1980_v11 = vld [vmem:[%s10626_s6 + $0x18b0] sm:$0xff]  ;;  %1977 = vst [vmem:[%s10631_s7 + $0xc48] sm:$0xff] %v1976_v9 }
  0xdf   : > { %1979 = vst [vmem:[%s10631_s7 + $0xc50] sm:$0xff] %v1978_v10  ;;  %1981 = vst [vmem:[%s10631_s7 + $0xc58] sm:$0xff] %v1980_v11  ;;  %v1982_v12 = vld [vmem:[%s10626_s6 + $0x18c0] sm:$0xff]  ;;  %v1984_v13 = vld [vmem:[%s10626_s6 + $0x18d0] sm:$0xff] }
  0xe0   : > { %v1986_v14 = vld [vmem:[%s10626_s6 + $0x18e0] sm:$0xff]  ;;  %1983 = vst [vmem:[%s10631_s7 + $0xc60] sm:$0xff] %v1982_v12  ;;  %1985 = vst [vmem:[%s10631_s7 + $0xc68] sm:$0xff] %v1984_v13  ;;  %v1988_v15 = vld [vmem:[%s10626_s6 + $0x18f0] sm:$0xff] }
  0xe1   : > { %1987 = vst [vmem:[%s10631_s7 + $0xc70] sm:$0xff] %v1986_v14  ;;  %v1990_v16 = vld [vmem:[%s10626_s6 + $0x1900] sm:$0xff]  ;;  %v1992_v17 = vld [vmem:[%s10626_s6 + $0x1910] sm:$0xff]  ;;  %1989 = vst [vmem:[%s10631_s7 + $0xc78] sm:$0xff] %v1988_v15 }
  0xe2   : > { %1991 = vst [vmem:[%s10631_s7 + $0xc80] sm:$0xff] %v1990_v16  ;;  %1993 = vst [vmem:[%s10631_s7 + $0xc88] sm:$0xff] %v1992_v17  ;;  %v1994_v18 = vld [vmem:[%s10626_s6 + $0x1920] sm:$0xff]  ;;  %v1996_v19 = vld [vmem:[%s10626_s6 + $0x1930] sm:$0xff] }
  0xe3   : > { %v1998_v20 = vld [vmem:[%s10626_s6 + $0x1940] sm:$0xff]  ;;  %1995 = vst [vmem:[%s10631_s7 + $0xc90] sm:$0xff] %v1994_v18  ;;  %1997 = vst [vmem:[%s10631_s7 + $0xc98] sm:$0xff] %v1996_v19  ;;  %v2000_v21 = vld [vmem:[%s10626_s6 + $0x1950] sm:$0xff] }
  0xe4   : > { %1999 = vst [vmem:[%s10631_s7 + $0xca0] sm:$0xff] %v1998_v20  ;;  %v2002_v22 = vld [vmem:[%s10626_s6 + $0x1960] sm:$0xff]  ;;  %v2004_v23 = vld [vmem:[%s10626_s6 + $0x1970] sm:$0xff]  ;;  %2001 = vst [vmem:[%s10631_s7 + $0xca8] sm:$0xff] %v2000_v21 }
  0xe5   : > { %2003 = vst [vmem:[%s10631_s7 + $0xcb0] sm:$0xff] %v2002_v22  ;;  %2005 = vst [vmem:[%s10631_s7 + $0xcb8] sm:$0xff] %v2004_v23  ;;  %v2006_v24 = vld [vmem:[%s10626_s6 + $0x1980] sm:$0xff]  ;;  %v2008_v25 = vld [vmem:[%s10626_s6 + $0x1990] sm:$0xff] }
  0xe6   : > { %v2010_v26 = vld [vmem:[%s10626_s6 + $0x19a0] sm:$0xff]  ;;  %2007 = vst [vmem:[%s10631_s7 + $0xcc0] sm:$0xff] %v2006_v24  ;;  %2009 = vst [vmem:[%s10631_s7 + $0xcc8] sm:$0xff] %v2008_v25  ;;  %v2012_v27 = vld [vmem:[%s10626_s6 + $0x19b0] sm:$0xff] }
  0xe7   : > { %2011 = vst [vmem:[%s10631_s7 + $0xcd0] sm:$0xff] %v2010_v26  ;;  %v2014_v28 = vld [vmem:[%s10626_s6 + $0x19c0] sm:$0xff]  ;;  %v2016_v29 = vld [vmem:[%s10626_s6 + $0x19d0] sm:$0xff]  ;;  %2013 = vst [vmem:[%s10631_s7 + $0xcd8] sm:$0xff] %v2012_v27 }
  0xe8   : > { %2015 = vst [vmem:[%s10631_s7 + $0xce0] sm:$0xff] %v2014_v28  ;;  %2017 = vst [vmem:[%s10631_s7 + $0xce8] sm:$0xff] %v2016_v29  ;;  %v2018_v30 = vld [vmem:[%s10626_s6 + $0x19e0] sm:$0xff]  ;;  %v2020_v31 = vld [vmem:[%s10626_s6 + $0x19f0] sm:$0xff] }
  0xe9   : > { %v2022_v32 = vld [vmem:[%s10626_s6 + $0x1a00] sm:$0xff]  ;;  %2019 = vst [vmem:[%s10631_s7 + $0xcf0] sm:$0xff] %v2018_v30  ;;  %2021 = vst [vmem:[%s10631_s7 + $0xcf8] sm:$0xff] %v2020_v31  ;;  %v2024_v33 = vld [vmem:[%s10626_s6 + $0x1a10] sm:$0xff] }
  0xea   : > { %2023 = vst [vmem:[%s10631_s7 + $0xd00] sm:$0xff] %v2022_v32  ;;  %v2026_v34 = vld [vmem:[%s10626_s6 + $0x1a20] sm:$0xff]  ;;  %v2028_v35 = vld [vmem:[%s10626_s6 + $0x1a30] sm:$0xff]  ;;  %2025 = vst [vmem:[%s10631_s7 + $0xd08] sm:$0xff] %v2024_v33 }
  0xeb   : > { %2027 = vst [vmem:[%s10631_s7 + $0xd10] sm:$0xff] %v2026_v34  ;;  %2029 = vst [vmem:[%s10631_s7 + $0xd18] sm:$0xff] %v2028_v35  ;;  %v2030_v36 = vld [vmem:[%s10626_s6 + $0x1a40] sm:$0xff]  ;;  %v2032_v37 = vld [vmem:[%s10626_s6 + $0x1a50] sm:$0xff] }
  0xec   : > { %v2034_v38 = vld [vmem:[%s10626_s6 + $0x1a60] sm:$0xff]  ;;  %2031 = vst [vmem:[%s10631_s7 + $0xd20] sm:$0xff] %v2030_v36  ;;  %2033 = vst [vmem:[%s10631_s7 + $0xd28] sm:$0xff] %v2032_v37  ;;  %v2036_v39 = vld [vmem:[%s10626_s6 + $0x1a70] sm:$0xff] }
  0xed   : > { %2035 = vst [vmem:[%s10631_s7 + $0xd30] sm:$0xff] %v2034_v38  ;;  %v2038_v40 = vld [vmem:[%s10626_s6 + $0x1a80] sm:$0xff]  ;;  %v2040_v41 = vld [vmem:[%s10626_s6 + $0x1a90] sm:$0xff]  ;;  %2037 = vst [vmem:[%s10631_s7 + $0xd38] sm:$0xff] %v2036_v39 }
  0xee   : > { %2039 = vst [vmem:[%s10631_s7 + $0xd40] sm:$0xff] %v2038_v40  ;;  %2041 = vst [vmem:[%s10631_s7 + $0xd48] sm:$0xff] %v2040_v41  ;;  %v2042_v42 = vld [vmem:[%s10626_s6 + $0x1aa0] sm:$0xff]  ;;  %v2044_v43 = vld [vmem:[%s10626_s6 + $0x1ab0] sm:$0xff] }
  0xef   : > { %v2046_v44 = vld [vmem:[%s10626_s6 + $0x1ac0] sm:$0xff]  ;;  %2043 = vst [vmem:[%s10631_s7 + $0xd50] sm:$0xff] %v2042_v42  ;;  %2045 = vst [vmem:[%s10631_s7 + $0xd58] sm:$0xff] %v2044_v43  ;;  %v2048_v45 = vld [vmem:[%s10626_s6 + $0x1ad0] sm:$0xff] }
  0xf0   : > { %2047 = vst [vmem:[%s10631_s7 + $0xd60] sm:$0xff] %v2046_v44  ;;  %v2050_v46 = vld [vmem:[%s10626_s6 + $0x1ae0] sm:$0xff]  ;;  %v2052_v47 = vld [vmem:[%s10626_s6 + $0x1af0] sm:$0xff]  ;;  %2049 = vst [vmem:[%s10631_s7 + $0xd68] sm:$0xff] %v2048_v45 }
  0xf1   : > { %2051 = vst [vmem:[%s10631_s7 + $0xd70] sm:$0xff] %v2050_v46  ;;  %2053 = vst [vmem:[%s10631_s7 + $0xd78] sm:$0xff] %v2052_v47  ;;  %v2054_v48 = vld [vmem:[%s10626_s6 + $0x1b00] sm:$0xff]  ;;  %v2056_v49 = vld [vmem:[%s10626_s6 + $0x1b10] sm:$0xff] }
  0xf2   : > { %v2058_v50 = vld [vmem:[%s10626_s6 + $0x1b20] sm:$0xff]  ;;  %2055 = vst [vmem:[%s10631_s7 + $0xd80] sm:$0xff] %v2054_v48  ;;  %2057 = vst [vmem:[%s10631_s7 + $0xd88] sm:$0xff] %v2056_v49  ;;  %v2060_v51 = vld [vmem:[%s10626_s6 + $0x1b30] sm:$0xff] }
  0xf3   : > { %2059 = vst [vmem:[%s10631_s7 + $0xd90] sm:$0xff] %v2058_v50  ;;  %v2062_v52 = vld [vmem:[%s10626_s6 + $0x1b40] sm:$0xff]  ;;  %v2064_v53 = vld [vmem:[%s10626_s6 + $0x1b50] sm:$0xff]  ;;  %2061 = vst [vmem:[%s10631_s7 + $0xd98] sm:$0xff] %v2060_v51 }
  0xf4   : > { %2063 = vst [vmem:[%s10631_s7 + $0xda0] sm:$0xff] %v2062_v52  ;;  %2065 = vst [vmem:[%s10631_s7 + $0xda8] sm:$0xff] %v2064_v53  ;;  %v2066_v54 = vld [vmem:[%s10626_s6 + $0x1b60] sm:$0xff]  ;;  %v2068_v55 = vld [vmem:[%s10626_s6 + $0x1b70] sm:$0xff] }
  0xf5   : > { %v2070_v56 = vld [vmem:[%s10626_s6 + $0x1b80] sm:$0xff]  ;;  %2067 = vst [vmem:[%s10631_s7 + $0xdb0] sm:$0xff] %v2066_v54  ;;  %2069 = vst [vmem:[%s10631_s7 + $0xdb8] sm:$0xff] %v2068_v55  ;;  %v2072_v57 = vld [vmem:[%s10626_s6 + $0x1b90] sm:$0xff] }
  0xf6   : > { %2071 = vst [vmem:[%s10631_s7 + $0xdc0] sm:$0xff] %v2070_v56  ;;  %v2074_v58 = vld [vmem:[%s10626_s6 + $0x1ba0] sm:$0xff]  ;;  %v2076_v59 = vld [vmem:[%s10626_s6 + $0x1bb0] sm:$0xff]  ;;  %2073 = vst [vmem:[%s10631_s7 + $0xdc8] sm:$0xff] %v2072_v57 }
  0xf7   : > { %2075 = vst [vmem:[%s10631_s7 + $0xdd0] sm:$0xff] %v2074_v58  ;;  %2077 = vst [vmem:[%s10631_s7 + $0xdd8] sm:$0xff] %v2076_v59  ;;  %v2078_v60 = vld [vmem:[%s10626_s6 + $0x1bc0] sm:$0xff]  ;;  %v2080_v61 = vld [vmem:[%s10626_s6 + $0x1bd0] sm:$0xff] }
  0xf8   : > { %v2082_v62 = vld [vmem:[%s10626_s6 + $0x1be0] sm:$0xff]  ;;  %2079 = vst [vmem:[%s10631_s7 + $0xde0] sm:$0xff] %v2078_v60  ;;  %2081 = vst [vmem:[%s10631_s7 + $0xde8] sm:$0xff] %v2080_v61  ;;  %v2084_v63 = vld [vmem:[%s10626_s6 + $0x1bf0] sm:$0xff] }
  0xf9   : > { %2083 = vst [vmem:[%s10631_s7 + $0xdf0] sm:$0xff] %v2082_v62  ;;  %v2086_v0 = vld [vmem:[%s10626_s6 + $0x1c00] sm:$0xff]  ;;  %v2088_v1 = vld [vmem:[%s10626_s6 + $0x1c10] sm:$0xff]  ;;  %2085 = vst [vmem:[%s10631_s7 + $0xdf8] sm:$0xff] %v2084_v63 }
  0xfa   : > { %2087 = vst [vmem:[%s10631_s7 + $0xe00] sm:$0xff] %v2086_v0  ;;  %2089 = vst [vmem:[%s10631_s7 + $0xe08] sm:$0xff] %v2088_v1  ;;  %v2090_v2 = vld [vmem:[%s10626_s6 + $0x1c20] sm:$0xff]  ;;  %v2092_v3 = vld [vmem:[%s10626_s6 + $0x1c30] sm:$0xff] }
  0xfb   : > { %v2094_v4 = vld [vmem:[%s10626_s6 + $0x1c40] sm:$0xff]  ;;  %2091 = vst [vmem:[%s10631_s7 + $0xe10] sm:$0xff] %v2090_v2  ;;  %2093 = vst [vmem:[%s10631_s7 + $0xe18] sm:$0xff] %v2092_v3  ;;  %v2096_v5 = vld [vmem:[%s10626_s6 + $0x1c50] sm:$0xff] }
  0xfc   : > { %2095 = vst [vmem:[%s10631_s7 + $0xe20] sm:$0xff] %v2094_v4  ;;  %v2098_v6 = vld [vmem:[%s10626_s6 + $0x1c60] sm:$0xff]  ;;  %v2100_v7 = vld [vmem:[%s10626_s6 + $0x1c70] sm:$0xff]  ;;  %2097 = vst [vmem:[%s10631_s7 + $0xe28] sm:$0xff] %v2096_v5 }
  0xfd   : > { %2099 = vst [vmem:[%s10631_s7 + $0xe30] sm:$0xff] %v2098_v6  ;;  %2101 = vst [vmem:[%s10631_s7 + $0xe38] sm:$0xff] %v2100_v7  ;;  %v2102_v8 = vld [vmem:[%s10626_s6 + $0x1c80] sm:$0xff]  ;;  %v2104_v9 = vld [vmem:[%s10626_s6 + $0x1c90] sm:$0xff] }
  0xfe   : > { %v2106_v10 = vld [vmem:[%s10626_s6 + $0x1ca0] sm:$0xff]  ;;  %2103 = vst [vmem:[%s10631_s7 + $0xe40] sm:$0xff] %v2102_v8  ;;  %2105 = vst [vmem:[%s10631_s7 + $0xe48] sm:$0xff] %v2104_v9  ;;  %v2108_v11 = vld [vmem:[%s10626_s6 + $0x1cb0] sm:$0xff] }
  0xff   : > { %2107 = vst [vmem:[%s10631_s7 + $0xe50] sm:$0xff] %v2106_v10  ;;  %v2110_v12 = vld [vmem:[%s10626_s6 + $0x1cc0] sm:$0xff]  ;;  %v2112_v13 = vld [vmem:[%s10626_s6 + $0x1cd0] sm:$0xff]  ;;  %2109 = vst [vmem:[%s10631_s7 + $0xe58] sm:$0xff] %v2108_v11 }
 0x100   : > { %2111 = vst [vmem:[%s10631_s7 + $0xe60] sm:$0xff] %v2110_v12  ;;  %2113 = vst [vmem:[%s10631_s7 + $0xe68] sm:$0xff] %v2112_v13  ;;  %v2114_v14 = vld [vmem:[%s10626_s6 + $0x1ce0] sm:$0xff]  ;;  %v2116_v15 = vld [vmem:[%s10626_s6 + $0x1cf0] sm:$0xff] }
 0x101   : > { %v2118_v16 = vld [vmem:[%s10626_s6 + $0x1d00] sm:$0xff]  ;;  %2115 = vst [vmem:[%s10631_s7 + $0xe70] sm:$0xff] %v2114_v14  ;;  %2117 = vst [vmem:[%s10631_s7 + $0xe78] sm:$0xff] %v2116_v15  ;;  %v2120_v17 = vld [vmem:[%s10626_s6 + $0x1d10] sm:$0xff] }
 0x102   : > { %2119 = vst [vmem:[%s10631_s7 + $0xe80] sm:$0xff] %v2118_v16  ;;  %v2122_v18 = vld [vmem:[%s10626_s6 + $0x1d20] sm:$0xff]  ;;  %v2124_v19 = vld [vmem:[%s10626_s6 + $0x1d30] sm:$0xff]  ;;  %2121 = vst [vmem:[%s10631_s7 + $0xe88] sm:$0xff] %v2120_v17 }
 0x103   : > { %2123 = vst [vmem:[%s10631_s7 + $0xe90] sm:$0xff] %v2122_v18  ;;  %2125 = vst [vmem:[%s10631_s7 + $0xe98] sm:$0xff] %v2124_v19  ;;  %v2126_v20 = vld [vmem:[%s10626_s6 + $0x1d40] sm:$0xff]  ;;  %v2128_v21 = vld [vmem:[%s10626_s6 + $0x1d50] sm:$0xff] }
 0x104   : > { %v2130_v22 = vld [vmem:[%s10626_s6 + $0x1d60] sm:$0xff]  ;;  %2127 = vst [vmem:[%s10631_s7 + $0xea0] sm:$0xff] %v2126_v20  ;;  %2129 = vst [vmem:[%s10631_s7 + $0xea8] sm:$0xff] %v2128_v21  ;;  %v2132_v23 = vld [vmem:[%s10626_s6 + $0x1d70] sm:$0xff] }
 0x105   : > { %2131 = vst [vmem:[%s10631_s7 + $0xeb0] sm:$0xff] %v2130_v22  ;;  %v2134_v24 = vld [vmem:[%s10626_s6 + $0x1d80] sm:$0xff]  ;;  %v2136_v25 = vld [vmem:[%s10626_s6 + $0x1d90] sm:$0xff]  ;;  %2133 = vst [vmem:[%s10631_s7 + $0xeb8] sm:$0xff] %v2132_v23 }
 0x106   : > { %2135 = vst [vmem:[%s10631_s7 + $0xec0] sm:$0xff] %v2134_v24  ;;  %2137 = vst [vmem:[%s10631_s7 + $0xec8] sm:$0xff] %v2136_v25  ;;  %v2138_v26 = vld [vmem:[%s10626_s6 + $0x1da0] sm:$0xff]  ;;  %v2140_v27 = vld [vmem:[%s10626_s6 + $0x1db0] sm:$0xff] }
 0x107   : > { %v2142_v28 = vld [vmem:[%s10626_s6 + $0x1dc0] sm:$0xff]  ;;  %2139 = vst [vmem:[%s10631_s7 + $0xed0] sm:$0xff] %v2138_v26  ;;  %2141 = vst [vmem:[%s10631_s7 + $0xed8] sm:$0xff] %v2140_v27  ;;  %v2144_v29 = vld [vmem:[%s10626_s6 + $0x1dd0] sm:$0xff] }
 0x108   : > { %2143 = vst [vmem:[%s10631_s7 + $0xee0] sm:$0xff] %v2142_v28  ;;  %v2146_v30 = vld [vmem:[%s10626_s6 + $0x1de0] sm:$0xff]  ;;  %v2148_v31 = vld [vmem:[%s10626_s6 + $0x1df0] sm:$0xff]  ;;  %2145 = vst [vmem:[%s10631_s7 + $0xee8] sm:$0xff] %v2144_v29 }
 0x109   : > { %2147 = vst [vmem:[%s10631_s7 + $0xef0] sm:$0xff] %v2146_v30  ;;  %2149 = vst [vmem:[%s10631_s7 + $0xef8] sm:$0xff] %v2148_v31  ;;  %v2150_v32 = vld [vmem:[%s10626_s6 + $0x1e00] sm:$0xff]  ;;  %v2152_v33 = vld [vmem:[%s10626_s6 + $0x1e10] sm:$0xff] }
 0x10a   : > { %v2154_v34 = vld [vmem:[%s10626_s6 + $0x1e20] sm:$0xff]  ;;  %2151 = vst [vmem:[%s10631_s7 + $0xf00] sm:$0xff] %v2150_v32  ;;  %2153 = vst [vmem:[%s10631_s7 + $0xf08] sm:$0xff] %v2152_v33  ;;  %v2156_v35 = vld [vmem:[%s10626_s6 + $0x1e30] sm:$0xff] }
 0x10b   : > { %2155 = vst [vmem:[%s10631_s7 + $0xf10] sm:$0xff] %v2154_v34  ;;  %v2158_v36 = vld [vmem:[%s10626_s6 + $0x1e40] sm:$0xff]  ;;  %v2160_v37 = vld [vmem:[%s10626_s6 + $0x1e50] sm:$0xff]  ;;  %2157 = vst [vmem:[%s10631_s7 + $0xf18] sm:$0xff] %v2156_v35 }
 0x10c   : > { %2159 = vst [vmem:[%s10631_s7 + $0xf20] sm:$0xff] %v2158_v36  ;;  %2161 = vst [vmem:[%s10631_s7 + $0xf28] sm:$0xff] %v2160_v37  ;;  %v2162_v38 = vld [vmem:[%s10626_s6 + $0x1e60] sm:$0xff]  ;;  %v2164_v39 = vld [vmem:[%s10626_s6 + $0x1e70] sm:$0xff] }
 0x10d   : > { %v2166_v40 = vld [vmem:[%s10626_s6 + $0x1e80] sm:$0xff]  ;;  %2163 = vst [vmem:[%s10631_s7 + $0xf30] sm:$0xff] %v2162_v38  ;;  %2165 = vst [vmem:[%s10631_s7 + $0xf38] sm:$0xff] %v2164_v39  ;;  %v2168_v41 = vld [vmem:[%s10626_s6 + $0x1e90] sm:$0xff] }
 0x10e   : > { %2167 = vst [vmem:[%s10631_s7 + $0xf40] sm:$0xff] %v2166_v40  ;;  %v2170_v42 = vld [vmem:[%s10626_s6 + $0x1ea0] sm:$0xff]  ;;  %v2172_v43 = vld [vmem:[%s10626_s6 + $0x1eb0] sm:$0xff]  ;;  %2169 = vst [vmem:[%s10631_s7 + $0xf48] sm:$0xff] %v2168_v41 }
 0x10f   : > { %2171 = vst [vmem:[%s10631_s7 + $0xf50] sm:$0xff] %v2170_v42  ;;  %2173 = vst [vmem:[%s10631_s7 + $0xf58] sm:$0xff] %v2172_v43  ;;  %v2174_v44 = vld [vmem:[%s10626_s6 + $0x1ec0] sm:$0xff]  ;;  %v2176_v45 = vld [vmem:[%s10626_s6 + $0x1ed0] sm:$0xff] }
 0x110   : > { %v2178_v46 = vld [vmem:[%s10626_s6 + $0x1ee0] sm:$0xff]  ;;  %2175 = vst [vmem:[%s10631_s7 + $0xf60] sm:$0xff] %v2174_v44  ;;  %2177 = vst [vmem:[%s10631_s7 + $0xf68] sm:$0xff] %v2176_v45  ;;  %v2180_v47 = vld [vmem:[%s10626_s6 + $0x1ef0] sm:$0xff] }
 0x111   : > { %2179 = vst [vmem:[%s10631_s7 + $0xf70] sm:$0xff] %v2178_v46  ;;  %v2182_v48 = vld [vmem:[%s10626_s6 + $0x1f00] sm:$0xff]  ;;  %v2184_v49 = vld [vmem:[%s10626_s6 + $0x1f10] sm:$0xff]  ;;  %2181 = vst [vmem:[%s10631_s7 + $0xf78] sm:$0xff] %v2180_v47 }
 0x112   : > { %2183 = vst [vmem:[%s10631_s7 + $0xf80] sm:$0xff] %v2182_v48  ;;  %2185 = vst [vmem:[%s10631_s7 + $0xf88] sm:$0xff] %v2184_v49  ;;  %v2186_v50 = vld [vmem:[%s10626_s6 + $0x1f20] sm:$0xff]  ;;  %v2188_v51 = vld [vmem:[%s10626_s6 + $0x1f30] sm:$0xff] }
 0x113   : > { %v2190_v52 = vld [vmem:[%s10626_s6 + $0x1f40] sm:$0xff]  ;;  %2187 = vst [vmem:[%s10631_s7 + $0xf90] sm:$0xff] %v2186_v50  ;;  %2189 = vst [vmem:[%s10631_s7 + $0xf98] sm:$0xff] %v2188_v51  ;;  %v2192_v53 = vld [vmem:[%s10626_s6 + $0x1f50] sm:$0xff] }
 0x114   : > { %2191 = vst [vmem:[%s10631_s7 + $0xfa0] sm:$0xff] %v2190_v52  ;;  %v2194_v54 = vld [vmem:[%s10626_s6 + $0x1f60] sm:$0xff]  ;;  %v2196_v55 = vld [vmem:[%s10626_s6 + $0x1f70] sm:$0xff]  ;;  %2193 = vst [vmem:[%s10631_s7 + $0xfa8] sm:$0xff] %v2192_v53 }
 0x115   : > { %2195 = vst [vmem:[%s10631_s7 + $0xfb0] sm:$0xff] %v2194_v54  ;;  %2197 = vst [vmem:[%s10631_s7 + $0xfb8] sm:$0xff] %v2196_v55  ;;  %v2198_v56 = vld [vmem:[%s10626_s6 + $0x1f80] sm:$0xff]  ;;  %v2200_v57 = vld [vmem:[%s10626_s6 + $0x1f90] sm:$0xff] }
 0x116   : > { %v2202_v58 = vld [vmem:[%s10626_s6 + $0x1fa0] sm:$0xff]  ;;  %2199 = vst [vmem:[%s10631_s7 + $0xfc0] sm:$0xff] %v2198_v56  ;;  %2201 = vst [vmem:[%s10631_s7 + $0xfc8] sm:$0xff] %v2200_v57  ;;  %v2204_v59 = vld [vmem:[%s10626_s6 + $0x1fb0] sm:$0xff] }
 0x117   : > { %2203 = vst [vmem:[%s10631_s7 + $0xfd0] sm:$0xff] %v2202_v58  ;;  %v2206_v60 = vld [vmem:[%s10626_s6 + $0x1fc0] sm:$0xff]  ;;  %v2208_v61 = vld [vmem:[%s10626_s6 + $0x1fd0] sm:$0xff]  ;;  %2205 = vst [vmem:[%s10631_s7 + $0xfd8] sm:$0xff] %v2204_v59 }
 0x118   : > { %2207 = vst [vmem:[%s10631_s7 + $0xfe0] sm:$0xff] %v2206_v60  ;;  %2209 = vst [vmem:[%s10631_s7 + $0xfe8] sm:$0xff] %v2208_v61  ;;  %v2210_v62 = vld [vmem:[%s10626_s6 + $0x1fe0] sm:$0xff]  ;;  %v2212_v63 = vld [vmem:[%s10626_s6 + $0x1ff0] sm:$0xff] }
 0x119   : > { %2211 = vst [vmem:[%s10631_s7 + $0xff0] sm:$0xff] %v2210_v62  ;;  %2213 = vst [vmem:[%s10631_s7 + $0xff8] sm:$0xff] %v2212_v63 }
 0x11a PF: > { %p8551_p11 = scmp.ge.s32.totalorder %s10524_s17, 1  ;;  %p4303_p12 = scmp.lt.s32.totalorder %s10524_s17, 5 }
 0x11c   : > { %p4304_p13 = pnand %p8551_p11, %p4303_p12 }
 0x11d   : > { %s4310_s8 = sand.u32 (!%p4304_p13), 1, %s10500_s11   ;;  %s4332_s18 = sand.u32 (!%p4304_p13), 1, %s10492_s9  }
 0x11e   : > { %4307 = sbr.rel (%p4304_p13) target bundleno = 1026 (0x402), region = 76  ;;  %s8552_s21 = sshll.u32 (!%p4304_p13), %s4310_s8, 12 }
 0x11f   : > { %s9582_s22 = smul.u32 (!%p4304_p13), 12, %s4332_s18  ;;  %p4335_p0 = scmp.lt.s32.totalorder (!%p4304_p13), %s10512_s14, 1 }
 0x120   : > { %s11665_s3 = scalar_lea.vmem (!%p4304_p13), [#allocation2], %s8552_s21  ;;  %s11669_s5 = smov (!%p4304_p13), 0  }
 0x121   : > { %s11667_s4 = scalar_lea.vmem (!%p4304_p13), [#allocation3], %s9582_s22 }
 0x123   : > { %s4336_s23 = scalar_select %p4335_p0, %s10512_s14, 1 }
 0x125   : > { %s9583_s25 = smul.u32 48, %s4336_s23 }
 0x127   : > { %s11663_s30 = scalar_lea.vmem %s12306_s0, %s9583_s25 }
 0x128 LB: >> { %v9666_v0 = vld [vmem:[%s11665_s3 + $0x174] ss:$8 sps:$4 sm:$0xff]   ;;  %v9670_v2 = vld [vmem:[%s11665_s3 + $0x170] ss:$8 sps:$4 sm:$0xff]   ;;  %v9672_v4 = vld [vmem:[%s11665_s3 + $0x164] ss:$8 sps:$4 sm:$0xff]   ;;  %s10528_s5 = sphi %s11669_s5, %s4347_s5  }
 0x129   : >> { %v9668_v1 = vld [vmem:[%s11665_s3 + $0x74] ss:$8 sps:$4 sm:$0xff]   ;;  %4598 = vmatprep.subr.bf16.mxu0 %v9666_v0  ;;  %v9671_v3 = vld [vmem:[%s11665_s3 + $0x70] ss:$8 sps:$4 sm:$0xff]   ;;  %v9674_v5 = vld [vmem:[%s11665_s3 + $0x64] ss:$8 sps:$4 sm:$0xff]  }
 0x12a   : >> { %4801 = vmatprep.subr.bf16.mxu1 %v9668_v1  ;;  %4599 = vmatpush1.bf16.msra.mxu0 %v9670_v2  ;;  %v9676_v6 = vld [vmem:[%s11665_s3 + $0x160] ss:$8 sps:$4 sm:$0xff]   ;;  %v9678_v8 = vld [vmem:[%s11665_s3 + $0x154] ss:$8 sps:$4 sm:$0xff]   ;;  %v9682_v10 = vld [vmem:[%s11665_s3 + $0x150] ss:$8 sps:$4 sm:$0xff]  }
 0x12b   : >> { %4802 = vmatpush1.bf16.msra.mxu1 %v9671_v3  ;;  %4600 = vmatprep.subr.bf16.mxu0 %v9672_v4  ;;  %v9677_v7 = vld [vmem:[%s11665_s3 + $0x60] ss:$8 sps:$4 sm:$0xff]   ;;  %v9680_v9 = vld [vmem:[%s11665_s3 + $0x54] ss:$8 sps:$4 sm:$0xff]   ;;  %v9683_v11 = vld [vmem:[%s11665_s3 + $0x50] ss:$8 sps:$4 sm:$0xff]  }
 0x12c   : >> { %4803 = vmatprep.subr.bf16.mxu1 %v9674_v5  ;;  %v9684_v12 = vld [vmem:[%s11665_s3 + $0x144] ss:$8 sps:$4 sm:$0xff]   ;;  %v9688_v14 = vld [vmem:[%s11665_s3 + $0x140] ss:$8 sps:$4 sm:$0xff]   ;;  %v9690_v16 = vld [vmem:[%s11665_s3 + $0x134] ss:$8 sps:$4 sm:$0xff]  }
 0x12d   : >> { %v9686_v13 = vld [vmem:[%s11665_s3 + $0x44] ss:$8 sps:$4 sm:$0xff]   ;;  %v9689_v15 = vld [vmem:[%s11665_s3 + $0x40] ss:$8 sps:$4 sm:$0xff]   ;;  %v9692_v17 = vld [vmem:[%s11665_s3 + $0x34] ss:$8 sps:$4 sm:$0xff]  }
 0x12e   : >> { %4601 = vmatpush1.bf16.msra.mxu0 %v9676_v6  ;;  %v9694_v18 = vld [vmem:[%s11665_s3 + $0x130] ss:$8 sps:$4 sm:$0xff]   ;;  %v9696_v20 = vld [vmem:[%s11665_s3 + $0x124] ss:$8 sps:$4 sm:$0xff]   ;;  %v9700_v22 = vld [vmem:[%s11665_s3 + $0x120] ss:$8 sps:$4 sm:$0xff]  }
 0x12f   : >> { %4804 = vmatpush1.bf16.msra.mxu1 %v9677_v7  ;;  %4602 = vmatprep.subr.bf16.mxu0 %v9678_v8  ;;  %v9695_v19 = vld [vmem:[%s11665_s3 + $0x30] ss:$8 sps:$4 sm:$0xff]   ;;  %v9698_v21 = vld [vmem:[%s11665_s3 + $0x24] ss:$8 sps:$4 sm:$0xff]   ;;  %v9701_v23 = vld [vmem:[%s11665_s3 + $0x20] ss:$8 sps:$4 sm:$0xff]  }
 0x130   : >> { %4805 = vmatprep.subr.bf16.mxu1 %v9680_v9  ;;  %v9702_v24 = vld [vmem:[%s11665_s3 + $0x114] ss:$8 sps:$4 sm:$0xff]   ;;  %v9706_v26 = vld [vmem:[%s11665_s3 + $0x110] ss:$8 sps:$4 sm:$0xff]   ;;  %v9708_v28 = vld [vmem:[%s11665_s3 + $0x104] ss:$8 sps:$4 sm:$0xff]  }
 0x131   : >> { %v9704_v25 = vld [vmem:[%s11665_s3 + $0x14] ss:$8 sps:$4 sm:$0xff]   ;;  %v9707_v27 = vld [vmem:[%s11665_s3 + $0x10] ss:$8 sps:$4 sm:$0xff]   ;;  %v9710_v29 = vld [vmem:[%s11665_s3 + $0x4] ss:$8 sps:$4 sm:$0xff]  }
 0x132   : >> { %4603 = vmatpush1.bf16.msra.mxu0 %v9682_v10  ;;  %v9712_v30 = vld [vmem:[%s11665_s3 + $0x100] ss:$8 sps:$4 sm:$0xff]   ;;  %v9714_v32 = vld [vmem:[%s11665_s3 + $0x1f4] ss:$8 sps:$4 sm:$0xff]   ;;  %v9718_v34 = vld [vmem:[%s11665_s3 + $0x1f0] ss:$8 sps:$4 sm:$0xff]  }
 0x133   : >> { %4806 = vmatpush1.bf16.msra.mxu1 %v9683_v11  ;;  %4604 = vmatprep.subr.bf16.mxu0 %v9684_v12  ;;  %v9713_v31 = vld [vmem:[%s11665_s3] ss:$8 sps:$4 sm:$0xff]   ;;  %v9716_v33 = vld [vmem:[%s11665_s3 + $0xf4] ss:$8 sps:$4 sm:$0xff]   ;;  %v9719_v35 = vld [vmem:[%s11665_s3 + $0xf0] ss:$8 sps:$4 sm:$0xff]  }
 0x134   : >> { %4807 = vmatprep.subr.bf16.mxu1 %v9686_v13  ;;  %v9720_v36 = vld [vmem:[%s11665_s3 + $0x1e4] ss:$8 sps:$4 sm:$0xff]   ;;  %v9724_v38 = vld [vmem:[%s11665_s3 + $0x1e0] ss:$8 sps:$4 sm:$0xff]   ;;  %v9726_v40 = vld [vmem:[%s11665_s3 + $0x1d4] ss:$8 sps:$4 sm:$0xff]  }
 0x135   : >> { %v9722_v37 = vld [vmem:[%s11665_s3 + $0xe4] ss:$8 sps:$4 sm:$0xff]   ;;  %v9725_v39 = vld [vmem:[%s11665_s3 + $0xe0] ss:$8 sps:$4 sm:$0xff]   ;;  %s9580_s9 = sshll.u32 %s10528_s5, 3  ;;  %vm8363_vm0 = vcmask 1041408  }
 0x136   : >> { %4605 = vmatpush1.bf16.msra.mxu0 %v9688_v14  ;;  %v9728_v41 = vld [vmem:[%s11665_s3 + $0xd4] ss:$8 sps:$4 sm:$0xff]   ;;  %v9730_v42 = vld [vmem:[%s11665_s3 + $0x1d0] ss:$8 sps:$4 sm:$0xff]   ;;  %s11720_s11 = scalar_lea.vmem %s11663_s30, %s9580_s9  ;;  %v9732_v44 = vld [vmem:[%s11665_s3 + $0x1c4] ss:$8 sps:$4 sm:$0xff]  }
 0x137   : >> { %4808 = vmatpush1.bf16.msra.mxu1 %v9689_v15  ;;  %4606 = vmatprep.subr.bf16.mxu0 %v9690_v16  ;;  %v9731_v43 = vld [vmem:[%s11665_s3 + $0xd0] ss:$8 sps:$4 sm:$0xff]   ;;  %v9734_v45 = vld [vmem:[%s11665_s3 + $0xc4] ss:$8 sps:$4 sm:$0xff]   ;;  %v9736_v47 = vld [vmem:[%s11665_s3 + $0x1c0] ss:$8 sps:$4 sm:$0xff]  }
 0x138   : >> { %4809 = vmatprep.subr.bf16.mxu1 %v9692_v17  ;;  %v4351_v46 = vld [vmem:[%s11720_s11] sm:$0x33]  ;;  %v9738_v50 = vld [vmem:[%s11665_s3 + $0x1b4] ss:$8 sps:$4 sm:$0xff]   ;;  %v9742_v54 = vld [vmem:[%s11665_s3 + $0x1b0] ss:$8 sps:$4 sm:$0xff]  }
 0x139   : >> { %v8589_v48 = vcombine.high %v4351_v46, %v4351_v46  ;;  %v9737_v49 = vld [vmem:[%s11665_s3 + $0xc0] ss:$8 sps:$4 sm:$0xff]   ;;  %v9740_v51 = vld [vmem:[%s11665_s3 + $0xb4] ss:$8 sps:$4 sm:$0xff]   ;;  %v9743_v55 = vld [vmem:[%s11665_s3 + $0xb0] ss:$8 sps:$4 sm:$0xff]   ;;  %v8588_v62 = vcombine.low %v4351_v46, %v4351_v46 }
 0x13a   : >> { %4607 = vmatpush1.bf16.msra.mxu0 %v9694_v18  ;;  %v9744_v57 = vld [vmem:[%s11665_s3 + $0x1a4] ss:$8 sps:$4 sm:$0xff]   ;;  %v9748_v60 = vld [vmem:[%s11665_s3 + $0x1a0] ss:$8 sps:$4 sm:$0xff]   ;;  %v9750_v63 = vld [vmem:[%s11665_s3 + $0x194] ss:$8 sps:$4 sm:$0xff]  }
 0x13b   : >> { %4810 = vmatpush1.bf16.msra.mxu1 %v9695_v19  ;;  %4608 = vmatprep.subr.bf16.mxu0 %v9696_v20  ;;  %v4430_v52 = vshrl.u32 %v8589_v48, 16  ;;  %v4432_v53 = vshll.u32 %v8589_v48, 16  ;;  %v9746_v58 = vld [vmem:[%s11665_s3 + $0xa4] ss:$8 sps:$4 sm:$0xff]   ;;  %v9749_v61 = vld [vmem:[%s11665_s3 + $0xa0] ss:$8 sps:$4 sm:$0xff]  }
 0x13c   : >> { %4811 = vmatprep.subr.bf16.mxu1 %v9698_v21  ;;  %4833 = vmatprep.mubr.bf16.mxu1 %v8589_v48  ;;  %v9752_v0 = vld [vmem:[%s11665_s3 + $0x94] ss:$8 sps:$4 sm:$0xff]   ;;  %v9754_v1 = vld [vmem:[%s11665_s3 + $0x190] ss:$8 sps:$4 sm:$0xff]   ;;  %v4425_v3 = vshll.u32 %v8588_v62, 16  ;;  %v4423_v8 = vshrl.u32 %v8588_v62, 16 }
 0x13d   : >> { %v4434_v56 = vrot.slane %v4432_v53, 1  ;;  %v9755_v2 = vld [vmem:[%s11665_s3 + $0x90] ss:$8 sps:$4 sm:$0xff]   ;;  %v9756_v4 = vld [vmem:[%s11665_s3 + $0x184] ss:$8 sps:$4 sm:$0xff]   ;;  %s9581_s6 = sshll.u32 %s10528_s5, 2 }
 0x13e   : >> { %4609 = vmatpush1.bf16.msra.mxu0 %v9700_v22  ;;  %v9758_v5 = vld [vmem:[%s11665_s3 + $0x84] ss:$8 sps:$4 sm:$0xff]   ;;  %v9760_v6 = vld [vmem:[%s11665_s3 + $0x180] ss:$8 sps:$4 sm:$0xff]   ;;  %v4427_v9 = vrot.slane %v4425_v3, 1  ;;  %vm8366_vm2 = vcmask 1043458   ;;  %s8362_s7 = scalar_lea.vmem %s11667_s4, %s9581_s6 [#allocation3] }
 0x13f   : >> { %4812 = vmatpush1.bf16.msra.mxu1 %v9701_v23  ;;  %4610 = vmatprep.subr.bf16.mxu0 %v9702_v24  ;;  %v4435_v59 = vor.u32 %v4434_v56, %v4430_v52  ;;  %v9761_v7 = vld [vmem:[%s11665_s3 + $0x80] ss:$8 sps:$4 sm:$0xff]   ;;  %v9766_v10 = vld [vmem:[%s11665_s3 + $0x274] ss:$8 sps:$4 sm:$0xff]   ;;  %v9764_v13 = vld [vmem:[%s11665_s3 + $0x270] ss:$8 sps:$4 sm:$0xff]  }
 0x140   : >> { %4813 = vmatprep.subr.bf16.mxu1 %v9704_v25  ;;  %v9769_v11 = vld [vmem:[%s11665_s3 + $0x374] ss:$8 sps:$4 sm:$0xff]   ;;  %v4428_v12 = vor.u32 %v4427_v9, %v4423_v8  ;;  %v9767_v14 = vld [vmem:[%s11665_s3 + $0x370] ss:$8 sps:$4 sm:$0xff]   ;;  %v9772_v15 = vld [vmem:[%s11665_s3 + $0x264] ss:$8 sps:$4 sm:$0xff]  }
 0x141   : >> { %4630 = vmatprep.mubr.bf16.mxu0 %v4435_v59  ;;  %v9775_v16 = vld [vmem:[%s11665_s3 + $0x364] ss:$8 sps:$4 sm:$0xff]   ;;  %v9770_v17 = vld [vmem:[%s11665_s3 + $0x260] ss:$8 sps:$4 sm:$0xff]   ;;  %v9778_v19 = vld [vmem:[%s11665_s3 + $0x254] ss:$8 sps:$4 sm:$0xff]  }
 0x142   : >> { %4611 = vmatpush1.bf16.msra.mxu0 %v9706_v26  ;;  %v9773_v18 = vld [vmem:[%s11665_s3 + $0x360] ss:$8 sps:$4 sm:$0xff]   ;;  %v9781_v20 = vld [vmem:[%s11665_s3 + $0x354] ss:$8 sps:$4 sm:$0xff]   ;;  %v9776_v21 = vld [vmem:[%s11665_s3 + $0x250] ss:$8 sps:$4 sm:$0xff]  }
 0x143   : >> { %4814 = vmatpush1.bf16.msra.mxu1 %v9707_v27  ;;  %4612 = vmatprep.subr.bf16.mxu0 %v9708_v28  ;;  %v9779_v22 = vld [vmem:[%s11665_s3 + $0x350] ss:$8 sps:$4 sm:$0xff]   ;;  %v9784_v23 = vld [vmem:[%s11665_s3 + $0x244] ss:$8 sps:$4 sm:$0xff]   ;;  %v9782_v25 = vld [vmem:[%s11665_s3 + $0x240] ss:$8 sps:$4 sm:$0xff]  }
 0x144   : >> { %4815 = vmatprep.subr.bf16.mxu1 %v9710_v29  ;;  %v9787_v24 = vld [vmem:[%s11665_s3 + $0x344] ss:$8 sps:$4 sm:$0xff]   ;;  %v9785_v26 = vld [vmem:[%s11665_s3 + $0x340] ss:$8 sps:$4 sm:$0xff]   ;;  %v9790_v27 = vld [vmem:[%s11665_s3 + $0x234] ss:$8 sps:$4 sm:$0xff]  }
 0x145   : >> { %v9793_v28 = vld [vmem:[%s11665_s3 + $0x334] ss:$8 sps:$4 sm:$0xff]   ;;  %v9788_v29 = vld [vmem:[%s11665_s3 + $0x230] ss:$8 sps:$4 sm:$0xff]   ;;  %v9806_v46 = vld [vmem:[%s11665_s3 + $0x200] ss:$8 sps:$4 sm:$0xff]  }
 0x146   : >> { %4613 = vmatpush1.bf16.msra.mxu0 %v9712_v30  ;;  %v9791_v30 = vld [vmem:[%s11665_s3 + $0x330] ss:$8 sps:$4 sm:$0xff]   ;;  %v9823_v56 = vld [vmem:[%s11665_s3 + $0x3e4] ss:$8 sps:$4 sm:$0xff]   ;;  %v9826_v59 = vld [vmem:[%s11665_s3 + $0x2d4] ss:$8 sps:$4 sm:$0xff]  }
 0x147   : >> { %4816 = vmatpush1.bf16.msra.mxu1 %v9713_v31  ;;  %4614 = vmatprep.subr.bf16.mxu0 %v9714_v32  ;;  %v9796_v31 = vld [vmem:[%s11665_s3 + $0x224] ss:$8 sps:$4 sm:$0xff]   ;;  %v9812_v53 = vld [vmem:[%s11665_s3 + $0x2f0] ss:$8 sps:$4 sm:$0xff]   ;;  %v9838_v3 = vld [vmem:[%s11665_s3 + $0x2b4] ss:$8 sps:$4 sm:$0xff]  }
 0x148   : >> { %4817 = vmatprep.subr.bf16.mxu1 %v9716_v33  ;;  %v9799_v32 = vld [vmem:[%s11665_s3 + $0x324] ss:$8 sps:$4 sm:$0xff]   ;;  %v9794_v33 = vld [vmem:[%s11665_s3 + $0x220] ss:$8 sps:$4 sm:$0xff]   ;;  %vm8364_vm1 = vsmask.f32 1280 }
 0x149   : >> { %v9847_v8 = vld [vmem:[%s11665_s3 + $0x3a4] ss:$8 sps:$4 sm:$0xff]   ;;  %v9842_v9 = vld [vmem:[%s11665_s3 + $0x2a0] ss:$8 sps:$4 sm:$0xff]   ;;  %vm8367_vm3 = vsmask.f32 3328  ;;  %vm8365_vm6 = vmand %vm8363_vm0, %vm8364_vm1 }
 0x14a   : >> { %4615 = vmatpush2.bf16.msra.mxu0 %v9718_v34  ;;  %v9797_v34 = vld [vmem:[%s11665_s3 + $0x320] ss:$8 sps:$4 sm:$0xff]   ;;  %vm8368_vm7 = vmand %vm8366_vm2, %vm8367_vm3  ;;  %s4347_s5 = sadd.s32 1, %s10528_s5  }
 0x14b   : >> { %4818 = vmatpush2.bf16.msra.mxu1 %v9719_v35  ;;  %4616 = vmatprep.subr.bf16.mxu0 %v9720_v36  ;;  %v9802_v35 = vld [vmem:[%s11665_s3 + $0x214] ss:$8 sps:$4 sm:$0xff]   ;;  %vm8369_vm8 = vmor %vm8368_vm7, %vm8365_vm6  ;;  %p4344_p1 = scmp.ge.s32.totalorder %s4347_s5, 3  }
 0x14c   : >> { %4819 = vmatprep.subr.bf16.mxu1 %v9722_v37  ;;  %v9805_v36 = vld [vmem:[%s11665_s3 + $0x314] ss:$8 sps:$4 sm:$0xff]   ;;  %v9800_v37 = vld [vmem:[%s11665_s3 + $0x210] ss:$8 sps:$4 sm:$0xff]  }
 0x14e   : >> { %4617 = vmatpush2.bf16.msra.mxu0 %v9724_v38  ;;  %v11771_v38 = vld [vmem:[%s11720_s11] sm:$0x66] }
 0x14f   : >> { %4820 = vmatpush2.bf16.msra.mxu1 %v9725_v39  ;;  %4618 = vmatprep.subr.bf16.mxu0 %v9726_v40  ;;  %v9803_v39 = vld [vmem:[%s11665_s3 + $0x310] ss:$8 sps:$4 sm:$0xff]   ;;  %v8687_v40 = vcombine.high %v11771_v38, %v11771_v38 }
 0x150   : >> { %4821 = vmatprep.subr.bf16.mxu1 %v9728_v41  ;;  %v9808_v41 = vld [vmem:[%s11665_s3 + $0x204] ss:$8 sps:$4 sm:$0xff]  }
 0x152   : >> { %4619 = vmatpush2.bf16.msra.mxu0 %v9730_v42  ;;  %v9811_v42 = vld [vmem:[%s11665_s3 + $0x304] ss:$8 sps:$4 sm:$0xff]  }
 0x153   : >> { %4822 = vmatpush2.bf16.msra.mxu1 %v9731_v43  ;;  %4620 = vmatprep.subr.bf16.mxu0 %v9732_v44  ;;  %v4882_v43 = vrot.slane %v8687_v40, 1  ;;  %v5130_v44 = vshrl.u32 %v8687_v40, 16 }
 0x154   : >> { %4823 = vmatprep.subr.bf16.mxu1 %v9734_v45  ;;  %v5133_v45 = vshll.u32 %v8687_v40, 16  ;;  %v9874_v40 = vld [vmem:[%s11665_s3 + $0x450] ss:$8 sps:$4 sm:$0xff]  }
 0x155   : >> { %v5132_v48 = vrot.slane %v5130_v44, 1  ;;  %v9885_v44 = vld [vmem:[%s11665_s3 + $0x544] ss:$8 sps:$4 sm:$0xff]  }
 0x156   : >> { %4621 = vmatpush2.bf16.msra.mxu0 %v9736_v47  ;;  %v9809_v47 = vld [vmem:[%s11665_s3 + $0x300] ss:$8 sps:$4 sm:$0xff]  }
 0x157   : >> { %4824 = vmatpush2.bf16.msra.mxu1 %v9737_v49  ;;  %4622 = vmatprep.subr.bf16.mxu0 %v9738_v50  ;;  %v5135_v49 = vrot.slane %v5133_v45, 2  ;;  %v9814_v50 = vld [vmem:[%s11665_s3 + $0x2f4] ss:$8 sps:$4 sm:$0xff]  }
 0x158   : >> { %4825 = vmatprep.subr.bf16.mxu1 %v9740_v51  ;;  %v9817_v51 = vld [vmem:[%s11665_s3 + $0x3f4] ss:$8 sps:$4 sm:$0xff]  }
 0x159   : >> { %v5136_v52 = vor.u32 %v5135_v49, %v5132_v48  ;;  %v9888_v48 = vld [vmem:[%s11665_s3 + $0x434] ss:$8 sps:$4 sm:$0xff]  }
 0x15a   : >> { %4623 = vmatpush2.bf16.msra.mxu0 %v9742_v54  ;;  %v9815_v54 = vld [vmem:[%s11665_s3 + $0x3f0] ss:$8 sps:$4 sm:$0xff]   ;;  %v9891_v49 = vld [vmem:[%s11665_s3 + $0x534] ss:$8 sps:$4 sm:$0xff]  }
 0x15b   : >> { %4826 = vmatpush2.bf16.msra.mxu1 %v9743_v55  ;;  %4624 = vmatprep.subr.bf16.mxu0 %v9744_v57  ;;  %v9820_v55 = vld [vmem:[%s11665_s3 + $0x2e4] ss:$8 sps:$4 sm:$0xff]   ;;  %v9818_v57 = vld [vmem:[%s11665_s3 + $0x2e0] ss:$8 sps:$4 sm:$0xff]  }
 0x15c   : >> { %4827 = vmatprep.subr.bf16.mxu1 %v9746_v58  ;;  %v9821_v58 = vld [vmem:[%s11665_s3 + $0x3e0] ss:$8 sps:$4 sm:$0xff]  }
 0x15e   : >> { %4625 = vmatpush2.bf16.msra.mxu0 %v9748_v60  ;;  %v9829_v60 = vld [vmem:[%s11665_s3 + $0x3d4] ss:$8 sps:$4 sm:$0xff]  }
 0x15f   : >> { %4828 = vmatpush2.bf16.msra.mxu1 %v9749_v61  ;;  %4626 = vmatprep.subr.bf16.mxu0 %v9750_v63  ;;  %v9824_v61 = vld [vmem:[%s11665_s3 + $0x2d0] ss:$8 sps:$4 sm:$0xff]   ;;  %v9832_v63 = vld [vmem:[%s11665_s3 + $0x2c4] ss:$8 sps:$4 sm:$0xff]  }
 0x160   : >> { %4829 = vmatprep.subr.bf16.mxu1 %v9752_v0  ;;  %v9835_v0 = vld [vmem:[%s11665_s3 + $0x3c4] ss:$8 sps:$4 sm:$0xff]  }
 0x162   : >> { %4627 = vmatpush2.bf16.msra.mxu0 %v9754_v1  ;;  %v9830_v1 = vld [vmem:[%s11665_s3 + $0x2c0] ss:$8 sps:$4 sm:$0xff]  }
 0x163   : >> { %4830 = vmatpush2.bf16.msra.mxu1 %v9755_v2  ;;  %4628 = vmatprep.subr.bf16.mxu0 %v9756_v4  ;;  %v9833_v2 = vld [vmem:[%s11665_s3 + $0x3c0] ss:$8 sps:$4 sm:$0xff]   ;;  %v9841_v4 = vld [vmem:[%s11665_s3 + $0x3b4] ss:$8 sps:$4 sm:$0xff]  }
 0x164   : >> { %4831 = vmatprep.subr.bf16.mxu1 %v9758_v5  ;;  %v9836_v5 = vld [vmem:[%s11665_s3 + $0x2b0] ss:$8 sps:$4 sm:$0xff]  }
 0x166   : >> { %4629 = vmatpush2.bf16.msra.mxu0 %v9760_v6  ;;  %v9839_v6 = vld [vmem:[%s11665_s3 + $0x3b0] ss:$8 sps:$4 sm:$0xff]  }
 0x167   : >> { %4832 = vmatpush2.bf16.msra.mxu1 %v9761_v7  ;;  %5045 = vmatprep.subr.bf16.mxu0 %v9766_v10  ;;  %v9844_v7 = vld [vmem:[%s11665_s3 + $0x2a4] ss:$8 sps:$4 sm:$0xff]   ;;  %v9845_v10 = vld [vmem:[%s11665_s3 + $0x3a0] ss:$8 sps:$4 sm:$0xff]  }
 0x168   : >> { %5299 = vmatprep.subr.bf16.mxu1 %v9769_v11  ;;  %v8686_v11 = vcombine.low %v11771_v38, %v11771_v38 }
 0x169   : >> { %4631 = vmatmul.mubr.bf16.vlgmr.msra.gmra.mxu0 %v4428_v12  ;;  %v9850_v12 = vld [vmem:[%s11665_s3 + $0x294] ss:$8 sps:$4 sm:$0xff]  }
 0x16a   : >> { %4834 = vmatmul.mubr.bf16.vlgmr.msra.gmra.mxu1 %v8588_v62  ;;  %5046 = vmatpush1.bf16.msra.mxu0 %v9764_v13  ;;  %v9827_v62 = vld [vmem:[%s11665_s3 + $0x3d0] ss:$8 sps:$4 sm:$0xff]   ;;  %v9853_v13 = vld [vmem:[%s11665_s3 + $0x394] ss:$8 sps:$4 sm:$0xff]  }
 0x16b   : >> { %5300 = vmatpush1.bf16.msra.mxu1 %v9767_v14  ;;  %5047 = vmatprep.subr.bf16.mxu0 %v9772_v15  ;;  %v9848_v14 = vld [vmem:[%s11665_s3 + $0x290] ss:$8 sps:$4 sm:$0xff]  }
 0x16c   : >> { %5301 = vmatprep.subr.bf16.mxu1 %v9775_v16  ;;  %5077 = vmatprep.mubr.bf16.mxu0 %v4882_v43  ;;  %v9851_v15 = vld [vmem:[%s11665_s3 + $0x390] ss:$8 sps:$4 sm:$0xff]   ;;  %v5122_v16 = vshrl.u32 %v8686_v11, 16  ;;  %v9882_v43 = vld [vmem:[%s11665_s3 + $0x444] ss:$8 sps:$4 sm:$0xff]  }
 0x16d   : >> { %5331 = vmatprep.mubr.bf16.mxu1 %v5136_v52  ;;  %v9894_v52 = vld [vmem:[%s11665_s3 + $0x424] ss:$8 sps:$4 sm:$0xff]  }
 0x16e   : >> { %5048 = vmatpush1.bf16.msra.mxu0 %v9770_v17  ;;  %v5125_v17 = vshll.u32 %v8686_v11, 16 }
 0x16f   : >> { %5302 = vmatpush1.bf16.msra.mxu1 %v9773_v18  ;;  %5049 = vmatprep.subr.bf16.mxu0 %v9778_v19  ;;  %v9856_v18 = vld [vmem:[%s11665_s3 + $0x284] ss:$8 sps:$4 sm:$0xff]  }
 0x170   : >> { %5303 = vmatprep.subr.bf16.mxu1 %v9781_v20  ;;  %v9859_v19 = vld [vmem:[%s11665_s3 + $0x384] ss:$8 sps:$4 sm:$0xff]   ;;  %v9854_v20 = vld [vmem:[%s11665_s3 + $0x280] ss:$8 sps:$4 sm:$0xff]  }
 0x172   : >> { %5050 = vmatpush1.bf16.msra.mxu0 %v9776_v21  ;;  %v9857_v21 = vld [vmem:[%s11665_s3 + $0x380] ss:$8 sps:$4 sm:$0xff]  }
 0x173   : >> { %5304 = vmatpush1.bf16.msra.mxu1 %v9779_v22  ;;  %5051 = vmatprep.subr.bf16.mxu0 %v9784_v23  ;;  %v5124_v22 = vrot.slane %v5122_v16, 1  ;;  %v5127_v23 = vrot.slane %v5125_v17, 2  ;;  %v9936_v16 = vld [vmem:[%s11665_s3 + $0x4b4] ss:$8 sps:$4 sm:$0xff]  }
 0x174   : >> { %5305 = vmatprep.subr.bf16.mxu1 %v9787_v24  ;;  %v9864_v24 = vld [vmem:[%s11665_s3 + $0x474] ss:$8 sps:$4 sm:$0xff]  }
 0x175   : >> { %v9939_v17 = vld [vmem:[%s11665_s3 + $0x5b4] ss:$8 sps:$4 sm:$0xff]  }
 0x176   : >> { %5052 = vmatpush1.bf16.msra.mxu0 %v9782_v25  ;;  %v9867_v25 = vld [vmem:[%s11665_s3 + $0x574] ss:$8 sps:$4 sm:$0xff]  }
 0x177   : >> { %5306 = vmatpush1.bf16.msra.mxu1 %v9785_v26  ;;  %5053 = vmatprep.subr.bf16.mxu0 %v9790_v27  ;;  %v4881_v26 = vrot.slane %v8686_v11, 1  ;;  %v5128_v27 = vor.u32 %v5127_v23, %v5124_v22  ;;  %v9925_v11 = vld [vmem:[%s11665_s3 + $0x5d0] ss:$8 sps:$4 sm:$0xff]   ;;  %v9940_v22 = vld [vmem:[%s11665_s3 + $0x4a0] ss:$8 sps:$4 sm:$0xff]  }
 0x178   : >> { %5307 = vmatprep.subr.bf16.mxu1 %v9793_v28  ;;  %v9862_v28 = vld [vmem:[%s11665_s3 + $0x470] ss:$8 sps:$4 sm:$0xff]   ;;  %v9943_v23 = vld [vmem:[%s11665_s3 + $0x5a0] ss:$8 sps:$4 sm:$0xff]  }
 0x17a   : >> { %5054 = vmatpush1.bf16.msra.mxu0 %v9788_v29  ;;  %v9865_v29 = vld [vmem:[%s11665_s3 + $0x570] ss:$8 sps:$4 sm:$0xff]  }
 0x17b   : >> { %5308 = vmatpush1.bf16.msra.mxu1 %v9791_v30  ;;  %5055 = vmatprep.subr.bf16.mxu0 %v9796_v31  ;;  %v9870_v30 = vld [vmem:[%s11665_s3 + $0x464] ss:$8 sps:$4 sm:$0xff]  }
 0x17c   : >> { %5309 = vmatprep.subr.bf16.mxu1 %v9799_v32  ;;  %v9873_v31 = vld [vmem:[%s11665_s3 + $0x564] ss:$8 sps:$4 sm:$0xff]  }
 0x17d   : >> { %v11821_v32 = vld [vmem:[%s11720_s11 + $0x8] sm:$0x33] }
 0x17e   : >> { %5056 = vmatpush1.bf16.msra.mxu0 %v9794_v33  ;;  %v9868_v33 = vld [vmem:[%s11665_s3 + $0x460] ss:$8 sps:$4 sm:$0xff]  }
 0x17f   : >> { %5310 = vmatpush1.bf16.msra.mxu1 %v9797_v34  ;;  %5057 = vmatprep.subr.bf16.mxu0 %v9802_v35  ;;  %v8819_v34 = vcombine.high %v11821_v32, %v11821_v32  ;;  %v9871_v35 = vld [vmem:[%s11665_s3 + $0x560] ss:$8 sps:$4 sm:$0xff]  }
 0x180   : >> { %5311 = vmatprep.subr.bf16.mxu1 %v9805_v36  ;;  %v9876_v36 = vld [vmem:[%s11665_s3 + $0x454] ss:$8 sps:$4 sm:$0xff]  }
 0x181   : >> { %v5631_v38 = vshrl.u32 %v8819_v34, 16 }
 0x182   : >> { %5058 = vmatpush1.bf16.msra.mxu0 %v9800_v37  ;;  %v9879_v37 = vld [vmem:[%s11665_s3 + $0x554] ss:$8 sps:$4 sm:$0xff]  }
 0x183   : >> { %5312 = vmatpush1.bf16.msra.mxu1 %v9803_v39  ;;  %5059 = vmatprep.subr.bf16.mxu0 %v9808_v41  ;;  %v5633_v39 = vshll.u32 %v8819_v34, 16  ;;  %v9877_v41 = vld [vmem:[%s11665_s3 + $0x550] ss:$8 sps:$4 sm:$0xff]  }
 0x184   : >> { %5313 = vmatprep.subr.bf16.mxu1 %v9811_v42 }
 0x185   : >> { %v5635_v42 = vrot.slane %v5633_v39, 1 }
 0x186   : >> { %5060 = vmatpush1.bf16.msra.mxu0 %v9806_v46  ;;  %v9880_v46 = vld [vmem:[%s11665_s3 + $0x440] ss:$8 sps:$4 sm:$0xff]  }
 0x187   : >> { %5314 = vmatpush1.bf16.msra.mxu1 %v9809_v47  ;;  %5061 = vmatprep.subr.bf16.mxu0 %v9814_v50  ;;  %v5636_v45 = vor.u32 %v5635_v42, %v5631_v38  ;;  %v9883_v47 = vld [vmem:[%s11665_s3 + $0x540] ss:$8 sps:$4 sm:$0xff]   ;;  %v9886_v50 = vld [vmem:[%s11665_s3 + $0x430] ss:$8 sps:$4 sm:$0xff]  }
 0x188   : >> { %5315 = vmatprep.subr.bf16.mxu1 %v9817_v51  ;;  %v9889_v51 = vld [vmem:[%s11665_s3 + $0x530] ss:$8 sps:$4 sm:$0xff]  }
 0x18a   : >> { %5062 = vmatpush2.bf16.msra.mxu0 %v9812_v53  ;;  %v9897_v53 = vld [vmem:[%s11665_s3 + $0x524] ss:$8 sps:$4 sm:$0xff]  }
 0x18b   : >> { %5316 = vmatpush2.bf16.msra.mxu1 %v9815_v54  ;;  %5063 = vmatprep.subr.bf16.mxu0 %v9820_v55  ;;  %v9892_v54 = vld [vmem:[%s11665_s3 + $0x420] ss:$8 sps:$4 sm:$0xff]  }
 0x18c   : >> { %5317 = vmatprep.subr.bf16.mxu1 %v9823_v56  ;;  %v9895_v55 = vld [vmem:[%s11665_s3 + $0x520] ss:$8 sps:$4 sm:$0xff]   ;;  %v9900_v56 = vld [vmem:[%s11665_s3 + $0x414] ss:$8 sps:$4 sm:$0xff]  }
 0x18e   : >> { %5064 = vmatpush2.bf16.msra.mxu0 %v9818_v57  ;;  %v9903_v57 = vld [vmem:[%s11665_s3 + $0x514] ss:$8 sps:$4 sm:$0xff]  }
 0x18f   : >> { %5318 = vmatpush2.bf16.msra.mxu1 %v9821_v58  ;;  %5065 = vmatprep.subr.bf16.mxu0 %v9826_v59  ;;  %v9898_v58 = vld [vmem:[%s11665_s3 + $0x410] ss:$8 sps:$4 sm:$0xff]  }
 0x190   : >> { %5319 = vmatprep.subr.bf16.mxu1 %v9829_v60  ;;  %v9901_v59 = vld [vmem:[%s11665_s3 + $0x510] ss:$8 sps:$4 sm:$0xff]   ;;  %v9906_v60 = vld [vmem:[%s11665_s3 + $0x404] ss:$8 sps:$4 sm:$0xff]  }
 0x192   : >> { %5066 = vmatpush2.bf16.msra.mxu0 %v9824_v61  ;;  %v9909_v61 = vld [vmem:[%s11665_s3 + $0x504] ss:$8 sps:$4 sm:$0xff]  }
 0x193   : >> { %5320 = vmatpush2.bf16.msra.mxu1 %v9827_v62  ;;  %5067 = vmatprep.subr.bf16.mxu0 %v9832_v63  ;;  %v9904_v62 = vld [vmem:[%s11665_s3 + $0x400] ss:$8 sps:$4 sm:$0xff]  }
 0x194   : >> { %5321 = vmatprep.subr.bf16.mxu1 %v9835_v0  ;;  %v9907_v63 = vld [vmem:[%s11665_s3 + $0x500] ss:$8 sps:$4 sm:$0xff]   ;;  %v9912_v0 = vld [vmem:[%s11665_s3 + $0x4f4] ss:$8 sps:$4 sm:$0xff]  }
 0x196   : >> { %5068 = vmatpush2.bf16.msra.mxu0 %v9830_v1  ;;  %v9915_v1 = vld [vmem:[%s11665_s3 + $0x5f4] ss:$8 sps:$4 sm:$0xff]  }
 0x197   : >> { %5322 = vmatpush2.bf16.msra.mxu1 %v9833_v2  ;;  %5069 = vmatprep.subr.bf16.mxu0 %v9838_v3  ;;  %v9910_v2 = vld [vmem:[%s11665_s3 + $0x4f0] ss:$8 sps:$4 sm:$0xff]  }
 0x198   : >> { %5323 = vmatprep.subr.bf16.mxu1 %v9841_v4  ;;  %v9913_v3 = vld [vmem:[%s11665_s3 + $0x5f0] ss:$8 sps:$4 sm:$0xff]   ;;  %v9918_v4 = vld [vmem:[%s11665_s3 + $0x4e4] ss:$8 sps:$4 sm:$0xff]  }
 0x19a   : >> { %5070 = vmatpush2.bf16.msra.mxu0 %v9836_v5  ;;  %v9921_v5 = vld [vmem:[%s11665_s3 + $0x5e4] ss:$8 sps:$4 sm:$0xff]  }
 0x19b   : >> { %5324 = vmatpush2.bf16.msra.mxu1 %v9839_v6  ;;  %5071 = vmatprep.subr.bf16.mxu0 %v9844_v7  ;;  %v9916_v6 = vld [vmem:[%s11665_s3 + $0x4e0] ss:$8 sps:$4 sm:$0xff]  }
 0x19c   : >> { %5325 = vmatprep.subr.bf16.mxu1 %v9847_v8  ;;  %v9919_v7 = vld [vmem:[%s11665_s3 + $0x5e0] ss:$8 sps:$4 sm:$0xff]   ;;  %v9924_v8 = vld [vmem:[%s11665_s3 + $0x4d4] ss:$8 sps:$4 sm:$0xff]  }
 0x19e   : >> { %5072 = vmatpush2.bf16.msra.mxu0 %v9842_v9  ;;  %v9927_v9 = vld [vmem:[%s11665_s3 + $0x5d4] ss:$8 sps:$4 sm:$0xff]  }
 0x19f   : >> { %5326 = vmatpush2.bf16.msra.mxu1 %v9845_v10  ;;  %5073 = vmatprep.subr.bf16.mxu0 %v9850_v12  ;;  %v9922_v10 = vld [vmem:[%s11665_s3 + $0x4d0] ss:$8 sps:$4 sm:$0xff]   ;;  %v9930_v12 = vld [vmem:[%s11665_s3 + $0x4c4] ss:$8 sps:$4 sm:$0xff]  }
 0x1a0   : >> { %5327 = vmatprep.subr.bf16.mxu1 %v9853_v13  ;;  %v9933_v13 = vld [vmem:[%s11665_s3 + $0x5c4] ss:$8 sps:$4 sm:$0xff]  }
 0x1a2   : >> { %5074 = vmatpush2.bf16.msra.mxu0 %v9848_v14  ;;  %v9928_v14 = vld [vmem:[%s11665_s3 + $0x4c0] ss:$8 sps:$4 sm:$0xff]  }
 0x1a3   : >> { %5328 = vmatpush2.bf16.msra.mxu1 %v9851_v15  ;;  %5075 = vmatprep.subr.bf16.mxu0 %v9856_v18  ;;  %v9931_v15 = vld [vmem:[%s11665_s3 + $0x5c0] ss:$8 sps:$4 sm:$0xff]   ;;  %v9934_v18 = vld [vmem:[%s11665_s3 + $0x4b0] ss:$8 sps:$4 sm:$0xff]  }
 0x1a4   : >> { %5329 = vmatprep.subr.bf16.mxu1 %v9859_v19  ;;  %v9937_v19 = vld [vmem:[%s11665_s3 + $0x5b0] ss:$8 sps:$4 sm:$0xff]  }
 0x1a6   : >> { %5076 = vmatpush2.bf16.msra.mxu0 %v9854_v20  ;;  %v9942_v20 = vld [vmem:[%s11665_s3 + $0x4a4] ss:$8 sps:$4 sm:$0xff]  }
 0x1a7   : >> { %5330 = vmatpush2.bf16.msra.mxu1 %v9857_v21  ;;  %5547 = vmatprep.subr.bf16.mxu0 %v9864_v24  ;;  %v9945_v21 = vld [vmem:[%s11665_s3 + $0x5a4] ss:$8 sps:$4 sm:$0xff]   ;;  %v8818_v24 = vcombine.low %v11821_v32, %v11821_v32 }
 0x1a8   : >> { %5799 = vmatprep.subr.bf16.mxu1 %v9867_v25  ;;  %v11878_v25 = vld [vmem:[%s11720_s11 + $0x8] sm:$0x66] }
 0x1a9   : >> { %5078 = vmatmul.mubr.bf16.vlgmr.msra.gmra.mxu0 %v4881_v26  ;;  %v9948_v26 = vld [vmem:[%s11665_s3 + $0x494] ss:$8 sps:$4 sm:$0xff]   ;;  %v9954_v32 = vld [vmem:[%s11665_s3 + $0x484] ss:$8 sps:$4 sm:$0xff]   ;;  %v5624_v38 = vshrl.u32 %v8818_v24, 16 }
 0x1aa   : >> { %5332 = vmatmul.mubr.bf16.vlgmr.msra.gmra.mxu1 %v5128_v27  ;;  %5548 = vmatpush1.bf16.msra.mxu0 %v9862_v28  ;;  %v9951_v27 = vld [vmem:[%s11665_s3 + $0x594] ss:$8 sps:$4 sm:$0xff]   ;;  %v8950_v28 = vcombine.high %v11878_v25, %v11878_v25 }
 0x1ab   : >> { %5800 = vmatpush1.bf16.msra.mxu1 %v9865_v29  ;;  %5549 = vmatprep.subr.bf16.mxu0 %v9870_v30  ;;  %v9946_v29 = vld [vmem:[%s11665_s3 + $0x490] ss:$8 sps:$4 sm:$0xff]  }
 0x1ac   : >> { %5801 = vmatprep.subr.bf16.mxu1 %v9873_v31  ;;  %5579 = vmatprep.mubr.bf16.mxu0 %v8819_v34  ;;  %v9949_v30 = vld [vmem:[%s11665_s3 + $0x590] ss:$8 sps:$4 sm:$0xff]   ;;  %v5626_v31 = vshll.u32 %v8818_v24, 16  ;;  %v9952_v34 = vld [vmem:[%s11665_s3 + $0x480] ss:$8 sps:$4 sm:$0xff]  }
 0x1ad   : >> { %5831 = vmatprep.mubr.bf16.mxu1 %v5636_v45  ;;  %v9960_v45 = vld [vmem:[%s11665_s3 + $0x670] ss:$8 sps:$4 sm:$0xff]  }
 0x1ae   : >> { %5550 = vmatpush1.bf16.msra.mxu0 %v9868_v33  ;;  %v9957_v33 = vld [vmem:[%s11665_s3 + $0x584] ss:$8 sps:$4 sm:$0xff]   ;;  %v5628_v39 = vrot.slane %v5626_v31, 1  ;;  %v10037_v31 = vld [vmem:[%s11665_s3 + $0x7b4] ss:$8 sps:$4 sm:$0xff]  }
 0x1af   : >> { %5802 = vmatpush1.bf16.msra.mxu1 %v9871_v35  ;;  %5551 = vmatprep.subr.bf16.mxu0 %v9876_v36  ;;  %v6130_v35 = vshrl.u32 %v8950_v28, 16  ;;  %v6133_v36 = vshll.u32 %v8950_v28, 16 }
 0x1b0   : >> { %5803 = vmatprep.subr.bf16.mxu1 %v9879_v37  ;;  %v9955_v37 = vld [vmem:[%s11665_s3 + $0x580] ss:$8 sps:$4 sm:$0xff]  }
 0x1b1   : >> { %v6132_v42 = vrot.slane %v6130_v35, 1  ;;  %v10043_v35 = vld [vmem:[%s11665_s3 + $0x7a4] ss:$8 sps:$4 sm:$0xff]  }
 0x1b2   : >> { %5552 = vmatpush1.bf16.msra.mxu0 %v9874_v40  ;;  %v9962_v40 = vld [vmem:[%s11665_s3 + $0x674] ss:$8 sps:$4 sm:$0xff]  }
 0x1b3   : >> { %5804 = vmatpush1.bf16.msra.mxu1 %v9877_v41  ;;  %5553 = vmatprep.subr.bf16.mxu0 %v9882_v43  ;;  %v9965_v41 = vld [vmem:[%s11665_s3 + $0x774] ss:$8 sps:$4 sm:$0xff]   ;;  %v6135_v43 = vrot.slane %v6133_v36, 2  ;;  %v10038_v36 = vld [vmem:[%s11665_s3 + $0x6a0] ss:$8 sps:$4 sm:$0xff]  }
 0x1b4   : >> { %5805 = vmatprep.subr.bf16.mxu1 %v9885_v44  ;;  %v5629_v44 = vor.u32 %v5628_v39, %v5624_v38  ;;  %v8949_v38 = vcombine.low %v11878_v25, %v11878_v25  ;;  %v11949_v39 = vld [vmem:[%s11720_s11 + $0x10] sm:$0x33]  ;;  %v10052_v25 = vld [vmem:[%s11665_s3 + $0x684] ss:$8 sps:$4 sm:$0xff]  }
 0x1b6   : >> { %5554 = vmatpush1.bf16.msra.mxu0 %v9880_v46  ;;  %v9963_v46 = vld [vmem:[%s11665_s3 + $0x770] ss:$8 sps:$4 sm:$0xff]  }
 0x1b7   : >> { %5806 = vmatpush1.bf16.msra.mxu1 %v9883_v47  ;;  %5555 = vmatprep.subr.bf16.mxu0 %v9888_v48  ;;  %v9968_v47 = vld [vmem:[%s11665_s3 + $0x664] ss:$8 sps:$4 sm:$0xff]  }
 0x1b8   : >> { %5807 = vmatprep.subr.bf16.mxu1 %v9891_v49  ;;  %v9971_v48 = vld [vmem:[%s11665_s3 + $0x764] ss:$8 sps:$4 sm:$0xff]   ;;  %v5882_v49 = vrot.slane %v8950_v28, 1  ;;  %v10026_v28 = vld [vmem:[%s11665_s3 + $0x6c0] ss:$8 sps:$4 sm:$0xff]  }
 0x1ba   : >> { %5556 = vmatpush1.bf16.msra.mxu0 %v9886_v50  ;;  %v6136_v50 = vor.u32 %v6135_v43, %v6132_v42  ;;  %v10044_v42 = vld [vmem:[%s11665_s3 + $0x690] ss:$8 sps:$4 sm:$0xff]   ;;  %v9082_v43 = vcombine.high %v11949_v39, %v11949_v39 }
 0x1bb   : >> { %5808 = vmatpush1.bf16.msra.mxu1 %v9889_v51  ;;  %5557 = vmatprep.subr.bf16.mxu0 %v9894_v52  ;;  %v9966_v51 = vld [vmem:[%s11665_s3 + $0x660] ss:$8 sps:$4 sm:$0xff]  }
 0x1bc   : >> { %5809 = vmatprep.subr.bf16.mxu1 %v9897_v53  ;;  %v9969_v52 = vld [vmem:[%s11665_s3 + $0x760] ss:$8 sps:$4 sm:$0xff]   ;;  %v9974_v53 = vld [vmem:[%s11665_s3 + $0x654] ss:$8 sps:$4 sm:$0xff]  }
 0x1be   : >> { %5558 = vmatpush1.bf16.msra.mxu0 %v9892_v54  ;;  %v9977_v54 = vld [vmem:[%s11665_s3 + $0x754] ss:$8 sps:$4 sm:$0xff]  }
 0x1bf   : >> { %5810 = vmatpush1.bf16.msra.mxu1 %v9895_v55  ;;  %5559 = vmatprep.subr.bf16.mxu0 %v9900_v56  ;;  %v9972_v55 = vld [vmem:[%s11665_s3 + $0x650] ss:$8 sps:$4 sm:$0xff]  }
 0x1c0   : >> { %5811 = vmatprep.subr.bf16.mxu1 %v9903_v57  ;;  %v9975_v56 = vld [vmem:[%s11665_s3 + $0x750] ss:$8 sps:$4 sm:$0xff]   ;;  %v9980_v57 = vld [vmem:[%s11665_s3 + $0x644] ss:$8 sps:$4 sm:$0xff]  }
 0x1c2   : >> { %5560 = vmatpush1.bf16.msra.mxu0 %v9898_v58  ;;  %v9983_v58 = vld [vmem:[%s11665_s3 + $0x744] ss:$8 sps:$4 sm:$0xff]  }
 0x1c3   : >> { %5812 = vmatpush1.bf16.msra.mxu1 %v9901_v59  ;;  %5561 = vmatprep.subr.bf16.mxu0 %v9906_v60  ;;  %v9978_v59 = vld [vmem:[%s11665_s3 + $0x640] ss:$8 sps:$4 sm:$0xff]  }
 0x1c4   : >> { %5813 = vmatprep.subr.bf16.mxu1 %v9909_v61  ;;  %v9981_v60 = vld [vmem:[%s11665_s3 + $0x740] ss:$8 sps:$4 sm:$0xff]   ;;  %v9986_v61 = vld [vmem:[%s11665_s3 + $0x634] ss:$8 sps:$4 sm:$0xff]  }
 0x1c6   : >> { %5562 = vmatpush1.bf16.msra.mxu0 %v9904_v62  ;;  %v9989_v62 = vld [vmem:[%s11665_s3 + $0x734] ss:$8 sps:$4 sm:$0xff]  }
 0x1c7   : >> { %5814 = vmatpush1.bf16.msra.mxu1 %v9907_v63  ;;  %5563 = vmatprep.subr.bf16.mxu0 %v9912_v0  ;;  %v9984_v63 = vld [vmem:[%s11665_s3 + $0x630] ss:$8 sps:$4 sm:$0xff]  }
 0x1c8   : >> { %5815 = vmatprep.subr.bf16.mxu1 %v9915_v1  ;;  %v9987_v0 = vld [vmem:[%s11665_s3 + $0x730] ss:$8 sps:$4 sm:$0xff]   ;;  %v9992_v1 = vld [vmem:[%s11665_s3 + $0x624] ss:$8 sps:$4 sm:$0xff]  }
 0x1ca   : >> { %5564 = vmatpush2.bf16.msra.mxu0 %v9910_v2  ;;  %v9995_v2 = vld [vmem:[%s11665_s3 + $0x724] ss:$8 sps:$4 sm:$0xff]  }
 0x1cb   : >> { %5816 = vmatpush2.bf16.msra.mxu1 %v9913_v3  ;;  %5565 = vmatprep.subr.bf16.mxu0 %v9918_v4  ;;  %v9990_v3 = vld [vmem:[%s11665_s3 + $0x620] ss:$8 sps:$4 sm:$0xff]  }
 0x1cc   : >> { %5817 = vmatprep.subr.bf16.mxu1 %v9921_v5  ;;  %v9993_v4 = vld [vmem:[%s11665_s3 + $0x720] ss:$8 sps:$4 sm:$0xff]   ;;  %v9998_v5 = vld [vmem:[%s11665_s3 + $0x614] ss:$8 sps:$4 sm:$0xff]  }
 0x1ce   : >> { %5566 = vmatpush2.bf16.msra.mxu0 %v9916_v6  ;;  %v10001_v6 = vld [vmem:[%s11665_s3 + $0x714] ss:$8 sps:$4 sm:$0xff]  }
 0x1cf   : >> { %5818 = vmatpush2.bf16.msra.mxu1 %v9919_v7  ;;  %5567 = vmatprep.subr.bf16.mxu0 %v9924_v8  ;;  %v9996_v7 = vld [vmem:[%s11665_s3 + $0x610] ss:$8 sps:$4 sm:$0xff]  }
 0x1d0   : >> { %5819 = vmatprep.subr.bf16.mxu1 %v9927_v9  ;;  %v9999_v8 = vld [vmem:[%s11665_s3 + $0x710] ss:$8 sps:$4 sm:$0xff]   ;;  %v10004_v9 = vld [vmem:[%s11665_s3 + $0x604] ss:$8 sps:$4 sm:$0xff]  }
 0x1d2   : >> { %5568 = vmatpush2.bf16.msra.mxu0 %v9922_v10  ;;  %v10007_v10 = vld [vmem:[%s11665_s3 + $0x704] ss:$8 sps:$4 sm:$0xff]  }
 0x1d3   : >> { %5820 = vmatpush2.bf16.msra.mxu1 %v9925_v11  ;;  %5569 = vmatprep.subr.bf16.mxu0 %v9930_v12  ;;  %v10002_v11 = vld [vmem:[%s11665_s3 + $0x600] ss:$8 sps:$4 sm:$0xff]  }
 0x1d4   : >> { %5821 = vmatprep.subr.bf16.mxu1 %v9933_v13  ;;  %v10005_v12 = vld [vmem:[%s11665_s3 + $0x700] ss:$8 sps:$4 sm:$0xff]   ;;  %v10010_v13 = vld [vmem:[%s11665_s3 + $0x6f4] ss:$8 sps:$4 sm:$0xff]  }
 0x1d6   : >> { %5570 = vmatpush2.bf16.msra.mxu0 %v9928_v14  ;;  %v10013_v14 = vld [vmem:[%s11665_s3 + $0x7f4] ss:$8 sps:$4 sm:$0xff]  }
 0x1d7   : >> { %5822 = vmatpush2.bf16.msra.mxu1 %v9931_v15  ;;  %5571 = vmatprep.subr.bf16.mxu0 %v9936_v16  ;;  %v10008_v15 = vld [vmem:[%s11665_s3 + $0x6f0] ss:$8 sps:$4 sm:$0xff]  }
 0x1d8   : >> { %5823 = vmatprep.subr.bf16.mxu1 %v9939_v17  ;;  %v10011_v16 = vld [vmem:[%s11665_s3 + $0x7f0] ss:$8 sps:$4 sm:$0xff]   ;;  %v10016_v17 = vld [vmem:[%s11665_s3 + $0x6e4] ss:$8 sps:$4 sm:$0xff]  }
 0x1da   : >> { %5572 = vmatpush2.bf16.msra.mxu0 %v9934_v18  ;;  %v10019_v18 = vld [vmem:[%s11665_s3 + $0x7e4] ss:$8 sps:$4 sm:$0xff]  }
 0x1db   : >> { %5824 = vmatpush2.bf16.msra.mxu1 %v9937_v19  ;;  %5573 = vmatprep.subr.bf16.mxu0 %v9942_v20  ;;  %v10014_v19 = vld [vmem:[%s11665_s3 + $0x6e0] ss:$8 sps:$4 sm:$0xff]  }
 0x1dc   : >> { %5825 = vmatprep.subr.bf16.mxu1 %v9945_v21  ;;  %v10017_v20 = vld [vmem:[%s11665_s3 + $0x7e0] ss:$8 sps:$4 sm:$0xff]   ;;  %v10022_v21 = vld [vmem:[%s11665_s3 + $0x6d4] ss:$8 sps:$4 sm:$0xff]  }
 0x1de   : >> { %5574 = vmatpush2.bf16.msra.mxu0 %v9940_v22  ;;  %v10025_v22 = vld [vmem:[%s11665_s3 + $0x7d4] ss:$8 sps:$4 sm:$0xff]  }
 0x1df   : >> { %5826 = vmatpush2.bf16.msra.mxu1 %v9943_v23  ;;  %5575 = vmatprep.subr.bf16.mxu0 %v9948_v26  ;;  %v10020_v23 = vld [vmem:[%s11665_s3 + $0x6d0] ss:$8 sps:$4 sm:$0xff]   ;;  %v10028_v26 = vld [vmem:[%s11665_s3 + $0x6c4] ss:$8 sps:$4 sm:$0xff]  }
 0x1e0   : >> { %5827 = vmatprep.subr.bf16.mxu1 %v9951_v27  ;;  %v10031_v27 = vld [vmem:[%s11665_s3 + $0x7c4] ss:$8 sps:$4 sm:$0xff]  }
 0x1e2   : >> { %5576 = vmatpush2.bf16.msra.mxu0 %v9946_v29  ;;  %v10029_v29 = vld [vmem:[%s11665_s3 + $0x7c0] ss:$8 sps:$4 sm:$0xff]  }
 0x1e3   : >> { %5828 = vmatpush2.bf16.msra.mxu1 %v9949_v30  ;;  %5577 = vmatprep.subr.bf16.mxu0 %v9954_v32  ;;  %v10034_v30 = vld [vmem:[%s11665_s3 + $0x6b4] ss:$8 sps:$4 sm:$0xff]   ;;  %v10032_v32 = vld [vmem:[%s11665_s3 + $0x6b0] ss:$8 sps:$4 sm:$0xff]  }
 0x1e4   : >> { %5829 = vmatprep.subr.bf16.mxu1 %v9957_v33  ;;  %v10035_v33 = vld [vmem:[%s11665_s3 + $0x7b0] ss:$8 sps:$4 sm:$0xff]  }
 0x1e6   : >> { %5578 = vmatpush2.bf16.msra.mxu0 %v9952_v34  ;;  %v10040_v34 = vld [vmem:[%s11665_s3 + $0x6a4] ss:$8 sps:$4 sm:$0xff]  }
 0x1e7   : >> { %5830 = vmatpush2.bf16.msra.mxu1 %v9955_v37  ;;  %6045 = vmatprep.subr.bf16.mxu0 %v9962_v40  ;;  %v10041_v37 = vld [vmem:[%s11665_s3 + $0x7a0] ss:$8 sps:$4 sm:$0xff]   ;;  %v10046_v40 = vld [vmem:[%s11665_s3 + $0x694] ss:$8 sps:$4 sm:$0xff]  }
 0x1e8   : >> { %6299 = vmatprep.subr.bf16.mxu1 %v9965_v41  ;;  %v10049_v41 = vld [vmem:[%s11665_s3 + $0x794] ss:$8 sps:$4 sm:$0xff]  }
 0x1e9   : >> { %5580 = vmatmul.mubr.bf16.vlgmr.msra.gmra.mxu0 %v8818_v24  ;;  %v10023_v24 = vld [vmem:[%s11665_s3 + $0x7d0] ss:$8 sps:$4 sm:$0xff]  }
 0x1ea   : >> { %5832 = vmatmul.mubr.bf16.vlgmr.msra.gmra.mxu1 %v5629_v44  ;;  %6046 = vmatpush1.bf16.msra.mxu0 %v9960_v45  ;;  %v10047_v44 = vld [vmem:[%s11665_s3 + $0x790] ss:$8 sps:$4 sm:$0xff]   ;;  %v6122_v45 = vshrl.u32 %v8949_v38, 16 }
 0x1eb   : >> { %6300 = vmatpush1.bf16.msra.mxu1 %v9963_v46  ;;  %6047 = vmatprep.subr.bf16.mxu0 %v9968_v47  ;;  %v6125_v46 = vshll.u32 %v8949_v38, 16  ;;  %v10055_v47 = vld [vmem:[%s11665_s3 + $0x784] ss:$8 sps:$4 sm:$0xff]  }
 0x1ec   : >> { %6301 = vmatprep.subr.bf16.mxu1 %v9971_v48  ;;  %6077 = vmatprep.mubr.bf16.mxu0 %v5882_v49  ;;  %v10050_v48 = vld [vmem:[%s11665_s3 + $0x680] ss:$8 sps:$4 sm:$0xff]   ;;  %v6633_v49 = vshll.u32 %v9082_v43, 16 }
 0x1ed   : >> { %6331 = vmatprep.mubr.bf16.mxu1 %v6136_v50  ;;  %v10053_v50 = vld [vmem:[%s11665_s3 + $0x780] ss:$8 sps:$4 sm:$0xff]  }
 0x1ee   : >> { %6048 = vmatpush1.bf16.msra.mxu0 %v9966_v51  ;;  %v6124_v51 = vrot.slane %v6122_v45, 1  ;;  %v10115_v45 = vld [vmem:[%s11665_s3 + $0x9e0] ss:$8 sps:$4 sm:$0xff]  }
 0x1ef   : >> { %6302 = vmatpush1.bf16.msra.mxu1 %v9969_v52  ;;  %6049 = vmatprep.subr.bf16.mxu0 %v9974_v53  ;;  %v6127_v52 = vrot.slane %v6125_v46, 2  ;;  %v10060_v53 = vld [vmem:[%s11665_s3 + $0x874] ss:$8 sps:$4 sm:$0xff]  }
 0x1f0   : >> { %6303 = vmatprep.subr.bf16.mxu1 %v9977_v54  ;;  %v10063_v54 = vld [vmem:[%s11665_s3 + $0x974] ss:$8 sps:$4 sm:$0xff]  }
 0x1f1   : >> { %v10120_v46 = vld [vmem:[%s11665_s3 + $0x8d4] ss:$8 sps:$4 sm:$0xff]  }
 0x1f2   : >> { %6050 = vmatpush1.bf16.msra.mxu0 %v9972_v55  ;;  %v6631_v55 = vshrl.u32 %v9082_v43, 16 }
 0x1f3   : >> { %6304 = vmatpush1.bf16.msra.mxu1 %v9975_v56  ;;  %6051 = vmatprep.subr.bf16.mxu0 %v9980_v57  ;;  %v6635_v56 = vrot.slane %v6633_v49, 1  ;;  %v5881_v57 = vrot.slane %v8949_v38, 1  ;;  %v10111_v38 = vld [vmem:[%s11665_s3 + $0x9f4] ss:$8 sps:$4 sm:$0xff]   ;;  %v10126_v49 = vld [vmem:[%s11665_s3 + $0x8c4] ss:$8 sps:$4 sm:$0xff]  }
 0x1f4   : >> { %6305 = vmatprep.subr.bf16.mxu1 %v9983_v58  ;;  %v6128_v58 = vor.u32 %v6127_v52, %v6124_v51  ;;  %v10124_v51 = vld [vmem:[%s11665_s3 + $0x8c0] ss:$8 sps:$4 sm:$0xff]  }
 0x1f5   : >> { %v10127_v52 = vld [vmem:[%s11665_s3 + $0x9c0] ss:$8 sps:$4 sm:$0xff]  }
 0x1f6   : >> { %6052 = vmatpush1.bf16.msra.mxu0 %v9978_v59  ;;  %v10058_v59 = vld [vmem:[%s11665_s3 + $0x870] ss:$8 sps:$4 sm:$0xff]  }
 0x1f7   : >> { %6306 = vmatpush1.bf16.msra.mxu1 %v9981_v60  ;;  %6053 = vmatprep.subr.bf16.mxu0 %v9986_v61  ;;  %v10061_v60 = vld [vmem:[%s11665_s3 + $0x970] ss:$8 sps:$4 sm:$0xff]   ;;  %v10066_v61 = vld [vmem:[%s11665_s3 + $0x864] ss:$8 sps:$4 sm:$0xff]  }
 0x1f8   : >> { %6307 = vmatprep.subr.bf16.mxu1 %v9989_v62  ;;  %v10069_v62 = vld [vmem:[%s11665_s3 + $0x964] ss:$8 sps:$4 sm:$0xff]  }
 0x1fa   : >> { %6054 = vmatpush1.bf16.msra.mxu0 %v9984_v63  ;;  %v6636_v63 = vor.u32 %v6635_v56, %v6631_v55  ;;  %v10130_v55 = vld [vmem:[%s11665_s3 + $0x8b0] ss:$8 sps:$4 sm:$0xff]  }
 0x1fb   : >> { %6308 = vmatpush1.bf16.msra.mxu1 %v9987_v0  ;;  %6055 = vmatprep.subr.bf16.mxu0 %v9992_v1  ;;  %v10133_v56 = vld [vmem:[%s11665_s3 + $0x9b0] ss:$8 sps:$4 sm:$0xff]  }
 0x1fc   : >> { %6309 = vmatprep.subr.bf16.mxu1 %v9995_v2  ;;  %v10064_v2 = vld [vmem:[%s11665_s3 + $0x860] ss:$8 sps:$4 sm:$0xff]  }
 0x1fe   : >> { %6056 = vmatpush1.bf16.msra.mxu0 %v9990_v3  ;;  %v10067_v3 = vld [vmem:[%s11665_s3 + $0x960] ss:$8 sps:$4 sm:$0xff]  }
 0x1ff   : >> { %6310 = vmatpush1.bf16.msra.mxu1 %v9993_v4  ;;  %6057 = vmatprep.subr.bf16.mxu0 %v9998_v5  ;;  %v10072_v5 = vld [vmem:[%s11665_s3 + $0x854] ss:$8 sps:$4 sm:$0xff]  }
 0x200   : >> { %6311 = vmatprep.subr.bf16.mxu1 %v10001_v6 }
 0x202   : >> { %6058 = vmatpush1.bf16.msra.mxu0 %v9996_v7 }
 0x203   : >> { %6312 = vmatpush1.bf16.msra.mxu1 %v9999_v8  ;;  %6059 = vmatprep.subr.bf16.mxu0 %v10004_v9  ;;  %v10075_v8 = vld [vmem:[%s11665_s3 + $0x954] ss:$8 sps:$4 sm:$0xff]  }
 0x204   : >> { %6313 = vmatprep.subr.bf16.mxu1 %v10007_v10 }
 0x206   : >> { %6060 = vmatpush1.bf16.msra.mxu0 %v10002_v11 }
 0x207   : >> { %6314 = vmatpush1.bf16.msra.mxu1 %v10005_v12  ;;  %6061 = vmatprep.subr.bf16.mxu0 %v10010_v13  ;;  %v10070_v12 = vld [vmem:[%s11665_s3 + $0x850] ss:$8 sps:$4 sm:$0xff]  }
 0x208   : >> { %6315 = vmatprep.subr.bf16.mxu1 %v10013_v14  ;;  %v10073_v13 = vld [vmem:[%s11665_s3 + $0x950] ss:$8 sps:$4 sm:$0xff]  }
 0x20a   : >> { %6062 = vmatpush2.bf16.msra.mxu0 %v10008_v15 }
 0x20b   : >> { %6316 = vmatpush2.bf16.msra.mxu1 %v10011_v16  ;;  %6063 = vmatprep.subr.bf16.mxu0 %v10016_v17  ;;  %v10078_v16 = vld [vmem:[%s11665_s3 + $0x844] ss:$8 sps:$4 sm:$0xff]  }
 0x20c   : >> { %6317 = vmatprep.subr.bf16.mxu1 %v10019_v18  ;;  %v10081_v17 = vld [vmem:[%s11665_s3 + $0x944] ss:$8 sps:$4 sm:$0xff]   ;;  %v10076_v18 = vld [vmem:[%s11665_s3 + $0x840] ss:$8 sps:$4 sm:$0xff]  }
 0x20e   : >> { %6064 = vmatpush2.bf16.msra.mxu0 %v10014_v19  ;;  %v10079_v19 = vld [vmem:[%s11665_s3 + $0x940] ss:$8 sps:$4 sm:$0xff]  }
 0x20f   : >> { %6318 = vmatpush2.bf16.msra.mxu1 %v10017_v20  ;;  %6065 = vmatprep.subr.bf16.mxu0 %v10022_v21  ;;  %v10084_v20 = vld [vmem:[%s11665_s3 + $0x834] ss:$8 sps:$4 sm:$0xff]  }
 0x210   : >> { %6319 = vmatprep.subr.bf16.mxu1 %v10025_v22  ;;  %v10087_v21 = vld [vmem:[%s11665_s3 + $0x934] ss:$8 sps:$4 sm:$0xff]   ;;  %v10082_v22 = vld [vmem:[%s11665_s3 + $0x830] ss:$8 sps:$4 sm:$0xff]  }
 0x212   : >> { %6066 = vmatpush2.bf16.msra.mxu0 %v10020_v23  ;;  %v10085_v23 = vld [vmem:[%s11665_s3 + $0x930] ss:$8 sps:$4 sm:$0xff]  }
 0x213   : >> { %6320 = vmatpush2.bf16.msra.mxu1 %v10023_v24  ;;  %6067 = vmatprep.subr.bf16.mxu0 %v10028_v26  ;;  %v10090_v24 = vld [vmem:[%s11665_s3 + $0x824] ss:$8 sps:$4 sm:$0xff]  }
 0x214   : >> { %6321 = vmatprep.subr.bf16.mxu1 %v10031_v27  ;;  %v10093_v26 = vld [vmem:[%s11665_s3 + $0x924] ss:$8 sps:$4 sm:$0xff]   ;;  %v10088_v27 = vld [vmem:[%s11665_s3 + $0x820] ss:$8 sps:$4 sm:$0xff]  }
 0x216   : >> { %6068 = vmatpush2.bf16.msra.mxu0 %v10026_v28  ;;  %v10091_v28 = vld [vmem:[%s11665_s3 + $0x920] ss:$8 sps:$4 sm:$0xff]  }
 0x217   : >> { %6322 = vmatpush2.bf16.msra.mxu1 %v10029_v29  ;;  %6069 = vmatprep.subr.bf16.mxu0 %v10034_v30  ;;  %v10096_v29 = vld [vmem:[%s11665_s3 + $0x814] ss:$8 sps:$4 sm:$0xff]  }
 0x218   : >> { %6323 = vmatprep.subr.bf16.mxu1 %v10037_v31  ;;  %v10099_v30 = vld [vmem:[%s11665_s3 + $0x914] ss:$8 sps:$4 sm:$0xff]   ;;  %v10094_v31 = vld [vmem:[%s11665_s3 + $0x810] ss:$8 sps:$4 sm:$0xff]  }
 0x21a   : >> { %6070 = vmatpush2.bf16.msra.mxu0 %v10032_v32  ;;  %v10097_v32 = vld [vmem:[%s11665_s3 + $0x910] ss:$8 sps:$4 sm:$0xff]  }
 0x21b   : >> { %6324 = vmatpush2.bf16.msra.mxu1 %v10035_v33  ;;  %6071 = vmatprep.subr.bf16.mxu0 %v10040_v34  ;;  %v10102_v33 = vld [vmem:[%s11665_s3 + $0x804] ss:$8 sps:$4 sm:$0xff]  }
 0x21c   : >> { %6325 = vmatprep.subr.bf16.mxu1 %v10043_v35  ;;  %v10105_v34 = vld [vmem:[%s11665_s3 + $0x904] ss:$8 sps:$4 sm:$0xff]   ;;  %v10100_v35 = vld [vmem:[%s11665_s3 + $0x800] ss:$8 sps:$4 sm:$0xff]  }
 0x21e   : >> { %6072 = vmatpush2.bf16.msra.mxu0 %v10038_v36  ;;  %v10103_v36 = vld [vmem:[%s11665_s3 + $0x900] ss:$8 sps:$4 sm:$0xff]  }
 0x21f   : >> { %6326 = vmatpush2.bf16.msra.mxu1 %v10041_v37  ;;  %6073 = vmatprep.subr.bf16.mxu0 %v10046_v40  ;;  %v10108_v37 = vld [vmem:[%s11665_s3 + $0x8f4] ss:$8 sps:$4 sm:$0xff]   ;;  %v10106_v40 = vld [vmem:[%s11665_s3 + $0x8f0] ss:$8 sps:$4 sm:$0xff]  }
 0x220   : >> { %6327 = vmatprep.subr.bf16.mxu1 %v10049_v41  ;;  %v10109_v41 = vld [vmem:[%s11665_s3 + $0x9f0] ss:$8 sps:$4 sm:$0xff]  }
 0x222   : >> { %6074 = vmatpush2.bf16.msra.mxu0 %v10044_v42  ;;  %v10114_v42 = vld [vmem:[%s11665_s3 + $0x8e4] ss:$8 sps:$4 sm:$0xff]  }
 0x223   : >> { %6328 = vmatpush2.bf16.msra.mxu1 %v10047_v44  ;;  %6075 = vmatprep.subr.bf16.mxu0 %v10052_v25  ;;  %v10112_v44 = vld [vmem:[%s11665_s3 + $0x8e0] ss:$8 sps:$4 sm:$0xff]   ;;  %v10123_v25 = vld [vmem:[%s11665_s3 + $0x9d4] ss:$8 sps:$4 sm:$0xff]  }
 0x224   : >> { %6329 = vmatprep.subr.bf16.mxu1 %v10055_v47  ;;  %v10118_v47 = vld [vmem:[%s11665_s3 + $0x8d0] ss:$8 sps:$4 sm:$0xff]  }
 0x226   : >> { %6076 = vmatpush2.bf16.msra.mxu0 %v10050_v48  ;;  %v10121_v48 = vld [vmem:[%s11665_s3 + $0x9d0] ss:$8 sps:$4 sm:$0xff]  }
 0x227   : >> { %6330 = vmatpush2.bf16.msra.mxu1 %v10053_v50  ;;  %6547 = vmatprep.subr.bf16.mxu0 %v10060_v53  ;;  %v10129_v50 = vld [vmem:[%s11665_s3 + $0x9c4] ss:$8 sps:$4 sm:$0xff]   ;;  %v10132_v53 = vld [vmem:[%s11665_s3 + $0x8b4] ss:$8 sps:$4 sm:$0xff]  }
 0x228   : >> { %6799 = vmatprep.subr.bf16.mxu1 %v10063_v54  ;;  %v10135_v54 = vld [vmem:[%s11665_s3 + $0x9b4] ss:$8 sps:$4 sm:$0xff]  }
 0x229   : >> { %v4632_v0 = vpop.f32.mrf.mxu0  ;;  %6078 = vmatmul.mubr.bf16.vlgmr.msra.gmra.mxu0 %v5881_v57  ;;  %v10138_v57 = vld [vmem:[%s11665_s3 + $0x8a4] ss:$8 sps:$4 sm:$0xff]  }
 0x22a   : >> { %v4835_v1 = vpop.f32.mrf.mxu1  ;;  %6332 = vmatmul.mubr.bf16.vlgmr.msra.gmra.mxu1 %v6128_v58  ;;  %6548 = vmatpush1.bf16.msra.mxu0 %v10058_v59  ;;  %v10141_v58 = vld [vmem:[%s11665_s3 + $0x9a4] ss:$8 sps:$4 sm:$0xff]   ;;  %v12020_v59 = vld [vmem:[%s11720_s11 + $0x10] sm:$0x66] }
 0x22b   : >> { %v11969_v4 = vadd.f32 %v4835_v1, %v4632_v0  ;;  %6800 = vmatpush1.bf16.msra.mxu1 %v10061_v60  ;;  %v4634_v6 = vpop.f32.mrf.mxu0  ;;  %6549 = vmatprep.subr.bf16.mxu0 %v10066_v61  ;;  %v9081_v60 = vcombine.low %v11949_v39, %v11949_v39  ;;  %v10136_v61 = vld [vmem:[%s11665_s3 + $0x8a0] ss:$8 sps:$4 sm:$0xff]   ;;  %v10147_v0 = vld [vmem:[%s11665_s3 + $0x994] ss:$8 sps:$4 sm:$0xff]   ;;  %v9213_v1 = vcombine.high %v12020_v59, %v12020_v59  ;;  %v10145_v39 = vld [vmem:[%s11665_s3 + $0x990] ss:$8 sps:$4 sm:$0xff]  }
 0x22c   : >> { %v4837_v7 = vpop.f32.mrf.mxu1  ;;  %6801 = vmatprep.subr.bf16.mxu1 %v10069_v62  ;;  %6579 = vmatprep.mubr.bf16.mxu0 %v9082_v43  ;;  %v10117_v43 = vld [vmem:[%s11665_s3 + $0x9e4] ss:$8 sps:$4 sm:$0xff]   ;;  %v10139_v62 = vld [vmem:[%s11665_s3 + $0x9a0] ss:$8 sps:$4 sm:$0xff]  }
 0x22d   : >> { %v11973_v9 = vadd.f32 %v4837_v7, %v4634_v6  ;;  %6831 = vmatprep.mubr.bf16.mxu1 %v6636_v63  ;;  %v4636_v10 = vpop.f32.mrf.mxu0  ;;  %v10144_v63 = vld [vmem:[%s11665_s3 + $0x894] ss:$8 sps:$4 sm:$0xff]   ;;  %v10153_v6 = vld [vmem:[%s11665_s3 + $0x984] ss:$8 sps:$4 sm:$0xff]   ;;  %v7130_v7 = vshrl.u32 %v9213_v1, 16 }
 0x22e   : >> { %v4839_v11 = vpop.f32.mrf.mxu1  ;;  %6550 = vmatpush1.bf16.msra.mxu0 %v10064_v2  ;;  %v6626_v2 = vshll.u32 %v9081_v60, 16  ;;  %v6624_v10 = vshrl.u32 %v9081_v60, 16 }
 0x22f   : >> { %6802 = vmatpush1.bf16.msra.mxu1 %v10067_v3  ;;  %v4637_v14 = vpop.f32.mrf.mxu0  ;;  %6551 = vmatprep.subr.bf16.mxu0 %v10072_v5  ;;  %v10142_v3 = vld [vmem:[%s11665_s3 + $0x890] ss:$8 sps:$4 sm:$0xff]   ;;  %v10150_v5 = vld [vmem:[%s11665_s3 + $0x884] ss:$8 sps:$4 sm:$0xff]  }
 0x230   : >> { %v4840_v15 = vpop.f32.mrf.mxu1  ;;  %6803 = vmatprep.subr.bf16.mxu1 %v10075_v8  ;;  %v7133_v8 = vshll.u32 %v9213_v1, 16  ;;  %v6628_v11 = vrot.slane %v6626_v2, 1  ;;  %v10158_v14 = vld [vmem:[%s11665_s3 + $0xa74] ss:$8 sps:$4 sm:$0xff]   ;;  %v10207_v2 = vld [vmem:[%s11665_s3 + $0xbf0] ss:$8 sps:$4 sm:$0xff]  }
 0x231   : >> { %v10161_v15 = vld [vmem:[%s11665_s3 + $0xb74] ss:$8 sps:$4 sm:$0xff]  }
 0x232   : >> { %6552 = vmatpush1.bf16.msra.mxu0 %v10070_v12  ;;  %v10148_v12 = vld [vmem:[%s11665_s3 + $0x880] ss:$8 sps:$4 sm:$0xff]  }
 0x233   : >> { %6804 = vmatpush1.bf16.msra.mxu1 %v10073_v13  ;;  %6553 = vmatprep.subr.bf16.mxu0 %v10078_v16  ;;  %v10151_v13 = vld [vmem:[%s11665_s3 + $0x980] ss:$8 sps:$4 sm:$0xff]   ;;  %v10156_v16 = vld [vmem:[%s11665_s3 + $0xa70] ss:$8 sps:$4 sm:$0xff]  }
 0x234   : >> { %6805 = vmatprep.subr.bf16.mxu1 %v10081_v17  ;;  %v10159_v17 = vld [vmem:[%s11665_s3 + $0xb70] ss:$8 sps:$4 sm:$0xff]  }
 0x236   : >> { %6554 = vmatpush1.bf16.msra.mxu0 %v10076_v18  ;;  %v7132_v18 = vrot.slane %v7130_v7, 1  ;;  %v10218_v7 = vld [vmem:[%s11665_s3 + $0xad4] ss:$8 sps:$4 sm:$0xff]  }
 0x237   : >> { %6806 = vmatpush1.bf16.msra.mxu1 %v10079_v19  ;;  %6555 = vmatprep.subr.bf16.mxu0 %v10084_v20  ;;  %v7135_v19 = vrot.slane %v7133_v8, 2  ;;  %v6629_v20 = vor.u32 %v6628_v11, %v6624_v10  ;;  %v10221_v8 = vld [vmem:[%s11665_s3 + $0xbd4] ss:$8 sps:$4 sm:$0xff]   ;;  %v10216_v10 = vld [vmem:[%s11665_s3 + $0xad0] ss:$8 sps:$4 sm:$0xff]  }
 0x238   : >> { %6807 = vmatprep.subr.bf16.mxu1 %v10087_v21  ;;  %v10164_v21 = vld [vmem:[%s11665_s3 + $0xa64] ss:$8 sps:$4 sm:$0xff]   ;;  %v10219_v11 = vld [vmem:[%s11665_s3 + $0xbd0] ss:$8 sps:$4 sm:$0xff]  }
 0x23a   : >> { %6556 = vmatpush1.bf16.msra.mxu0 %v10082_v22  ;;  %v10167_v22 = vld [vmem:[%s11665_s3 + $0xb64] ss:$8 sps:$4 sm:$0xff]  }
 0x23b   : >> { %6808 = vmatpush1.bf16.msra.mxu1 %v10085_v23  ;;  %6557 = vmatprep.subr.bf16.mxu0 %v10090_v24  ;;  %v10162_v23 = vld [vmem:[%s11665_s3 + $0xa60] ss:$8 sps:$4 sm:$0xff]  }
 0x23c   : >> { %6809 = vmatprep.subr.bf16.mxu1 %v10093_v26  ;;  %v10165_v24 = vld [vmem:[%s11665_s3 + $0xb60] ss:$8 sps:$4 sm:$0xff]   ;;  %v6882_v26 = vrot.slane %v9213_v1, 1  ;;  %v10204_v1 = vld [vmem:[%s11665_s3 + $0xaf0] ss:$8 sps:$4 sm:$0xff]  }
 0x23e   : >> { %6558 = vmatpush1.bf16.msra.mxu0 %v10088_v27  ;;  %v7136_v27 = vor.u32 %v7135_v19, %v7132_v18  ;;  %v10228_v18 = vld [vmem:[%s11665_s3 + $0xab0] ss:$8 sps:$4 sm:$0xff]  }
 0x23f   : >> { %6810 = vmatpush1.bf16.msra.mxu1 %v10091_v28  ;;  %6559 = vmatprep.subr.bf16.mxu0 %v10096_v29  ;;  %v10231_v19 = vld [vmem:[%s11665_s3 + $0xbb0] ss:$8 sps:$4 sm:$0xff]  }
 0x240   : >> { %6811 = vmatprep.subr.bf16.mxu1 %v10099_v30 }
 0x242   : >> { %6560 = vmatpush1.bf16.msra.mxu0 %v10094_v31 }
 0x243   : >> { %6812 = vmatpush1.bf16.msra.mxu1 %v10097_v32  ;;  %6561 = vmatprep.subr.bf16.mxu0 %v10102_v33  ;;  %v10170_v33 = vld [vmem:[%s11665_s3 + $0xa54] ss:$8 sps:$4 sm:$0xff]  }
 0x244   : >> { %6813 = vmatprep.subr.bf16.mxu1 %v10105_v34  ;;  %v10173_v34 = vld [vmem:[%s11665_s3 + $0xb54] ss:$8 sps:$4 sm:$0xff]  }
 0x246   : >> { %6562 = vmatpush1.bf16.msra.mxu0 %v10100_v35 }
 0x247   : >> { %6814 = vmatpush1.bf16.msra.mxu1 %v10103_v36  ;;  %6563 = vmatprep.subr.bf16.mxu0 %v10108_v37  ;;  %v10168_v37 = vld [vmem:[%s11665_s3 + $0xa50] ss:$8 sps:$4 sm:$0xff]  }
 0x248   : >> { %6815 = vmatprep.subr.bf16.mxu1 %v10111_v38  ;;  %v10171_v38 = vld [vmem:[%s11665_s3 + $0xb50] ss:$8 sps:$4 sm:$0xff]  }
 0x24a   : >> { %6564 = vmatpush2.bf16.msra.mxu0 %v10106_v40 }
 0x24b   : >> { %6816 = vmatpush2.bf16.msra.mxu1 %v10109_v41  ;;  %6565 = vmatprep.subr.bf16.mxu0 %v10114_v42 }
 0x24c   : >> { %6817 = vmatprep.subr.bf16.mxu1 %v10117_v43 }
 0x24e   : >> { %6566 = vmatpush2.bf16.msra.mxu0 %v10112_v44  ;;  %v10179_v44 = vld [vmem:[%s11665_s3 + $0xb44] ss:$8 sps:$4 sm:$0xff]  }
 0x24f   : >> { %6818 = vmatpush2.bf16.msra.mxu1 %v10115_v45  ;;  %6567 = vmatprep.subr.bf16.mxu0 %v10120_v46  ;;  %v10174_v45 = vld [vmem:[%s11665_s3 + $0xa40] ss:$8 sps:$4 sm:$0xff]  }
 0x250   : >> { %6819 = vmatprep.subr.bf16.mxu1 %v10123_v25  ;;  %v10177_v46 = vld [vmem:[%s11665_s3 + $0xb40] ss:$8 sps:$4 sm:$0xff]   ;;  %v10182_v25 = vld [vmem:[%s11665_s3 + $0xa34] ss:$8 sps:$4 sm:$0xff]  }
 0x252   : >> { %6568 = vmatpush2.bf16.msra.mxu0 %v10118_v47  ;;  %v10185_v47 = vld [vmem:[%s11665_s3 + $0xb34] ss:$8 sps:$4 sm:$0xff]  }
 0x253   : >> { %6820 = vmatpush2.bf16.msra.mxu1 %v10121_v48  ;;  %6569 = vmatprep.subr.bf16.mxu0 %v10126_v49  ;;  %v10180_v48 = vld [vmem:[%s11665_s3 + $0xa30] ss:$8 sps:$4 sm:$0xff]  }
 0x254   : >> { %6821 = vmatprep.subr.bf16.mxu1 %v10129_v50  ;;  %v10183_v49 = vld [vmem:[%s11665_s3 + $0xb30] ss:$8 sps:$4 sm:$0xff]   ;;  %v10188_v50 = vld [vmem:[%s11665_s3 + $0xa24] ss:$8 sps:$4 sm:$0xff]  }
 0x256   : >> { %6570 = vmatpush2.bf16.msra.mxu0 %v10124_v51  ;;  %v10191_v51 = vld [vmem:[%s11665_s3 + $0xb24] ss:$8 sps:$4 sm:$0xff]  }
 0x257   : >> { %6822 = vmatpush2.bf16.msra.mxu1 %v10127_v52  ;;  %6571 = vmatprep.subr.bf16.mxu0 %v10132_v53  ;;  %v10186_v52 = vld [vmem:[%s11665_s3 + $0xa20] ss:$8 sps:$4 sm:$0xff]  }
 0x258   : >> { %6823 = vmatprep.subr.bf16.mxu1 %v10135_v54  ;;  %v10189_v53 = vld [vmem:[%s11665_s3 + $0xb20] ss:$8 sps:$4 sm:$0xff]   ;;  %v10194_v54 = vld [vmem:[%s11665_s3 + $0xa14] ss:$8 sps:$4 sm:$0xff]  }
 0x25a   : >> { %6572 = vmatpush2.bf16.msra.mxu0 %v10130_v55  ;;  %v10197_v55 = vld [vmem:[%s11665_s3 + $0xb14] ss:$8 sps:$4 sm:$0xff]  }
 0x25b   : >> { %6824 = vmatpush2.bf16.msra.mxu1 %v10133_v56  ;;  %6573 = vmatprep.subr.bf16.mxu0 %v10138_v57  ;;  %v10192_v56 = vld [vmem:[%s11665_s3 + $0xa10] ss:$8 sps:$4 sm:$0xff]  }
 0x25c   : >> { %6825 = vmatprep.subr.bf16.mxu1 %v10141_v58  ;;  %v10195_v57 = vld [vmem:[%s11665_s3 + $0xb10] ss:$8 sps:$4 sm:$0xff]   ;;  %v10200_v58 = vld [vmem:[%s11665_s3 + $0xa04] ss:$8 sps:$4 sm:$0xff]  }
 0x25e   : >> { %6574 = vmatpush2.bf16.msra.mxu0 %v10136_v61  ;;  %v10198_v61 = vld [vmem:[%s11665_s3 + $0xa00] ss:$8 sps:$4 sm:$0xff]  }
 0x25f   : >> { %6826 = vmatpush2.bf16.msra.mxu1 %v10139_v62  ;;  %6575 = vmatprep.subr.bf16.mxu0 %v10144_v63  ;;  %v10201_v62 = vld [vmem:[%s11665_s3 + $0xb00] ss:$8 sps:$4 sm:$0xff]   ;;  %v10206_v63 = vld [vmem:[%s11665_s3 + $0xaf4] ss:$8 sps:$4 sm:$0xff]  }
 0x260   : >> { %6827 = vmatprep.subr.bf16.mxu1 %v10147_v0  ;;  %v10209_v0 = vld [vmem:[%s11665_s3 + $0xbf4] ss:$8 sps:$4 sm:$0xff]  }
 0x262   : >> { %6576 = vmatpush2.bf16.msra.mxu0 %v10142_v3  ;;  %v10212_v3 = vld [vmem:[%s11665_s3 + $0xae4] ss:$8 sps:$4 sm:$0xff]  }
 0x263   : >> { %6828 = vmatpush2.bf16.msra.mxu1 %v10145_v39  ;;  %6577 = vmatprep.subr.bf16.mxu0 %v10150_v5  ;;  %v10215_v39 = vld [vmem:[%s11665_s3 + $0xbe4] ss:$8 sps:$4 sm:$0xff]   ;;  %v10210_v5 = vld [vmem:[%s11665_s3 + $0xae0] ss:$8 sps:$4 sm:$0xff]  }
 0x264   : >> { %6829 = vmatprep.subr.bf16.mxu1 %v10153_v6  ;;  %v10213_v6 = vld [vmem:[%s11665_s3 + $0xbe0] ss:$8 sps:$4 sm:$0xff]  }
 0x266   : >> { %6578 = vmatpush2.bf16.msra.mxu0 %v10148_v12  ;;  %v10224_v12 = vld [vmem:[%s11665_s3 + $0xac4] ss:$8 sps:$4 sm:$0xff]  }
 0x267   : >> { %6830 = vmatpush2.bf16.msra.mxu1 %v10151_v13  ;;  %7045 = vmatprep.subr.bf16.mxu0 %v10158_v14  ;;  %v10227_v13 = vld [vmem:[%s11665_s3 + $0xbc4] ss:$8 sps:$4 sm:$0xff]   ;;  %v10222_v14 = vld [vmem:[%s11665_s3 + $0xac0] ss:$8 sps:$4 sm:$0xff]  }
 0x268   : >> { %7299 = vmatprep.subr.bf16.mxu1 %v10161_v15  ;;  %v10225_v15 = vld [vmem:[%s11665_s3 + $0xbc0] ss:$8 sps:$4 sm:$0xff]  }
 0x269   : >> { %v5079_v28 = vpop.f32.mrf.mxu0  ;;  %6580 = vmatmul.mubr.bf16.vlgmr.msra.gmra.mxu0 %v9081_v60  ;;  %v10203_v60 = vld [vmem:[%s11665_s3 + $0xb04] ss:$8 sps:$4 sm:$0xff]  }
 0x26a   : >> { %v5333_v29 = vpop.f32.mrf.mxu1  ;;  %6832 = vmatmul.mubr.bf16.vlgmr.msra.gmra.mxu1 %v6629_v20  ;;  %v5086_v30 = vadd.f32 %v5079_v28, %v11969_v4  ;;  %7046 = vmatpush1.bf16.msra.mxu0 %v10156_v16  ;;  %v10230_v16 = vld [vmem:[%s11665_s3 + $0xab4] ss:$8 sps:$4 sm:$0xff]   ;;  %v10236_v20 = vld [vmem:[%s11665_s3 + $0xaa4] ss:$8 sps:$4 sm:$0xff]  }
 0x26b   : >> { %7300 = vmatpush1.bf16.msra.mxu1 %v10159_v17  ;;  %v5081_v31 = vpop.f32.mrf.mxu0  ;;  %7047 = vmatprep.subr.bf16.mxu0 %v10164_v21  ;;  %v10233_v17 = vld [vmem:[%s11665_s3 + $0xbb4] ss:$8 sps:$4 sm:$0xff]   ;;  %v10239_v21 = vld [vmem:[%s11665_s3 + $0xba4] ss:$8 sps:$4 sm:$0xff]  }
 0x26c   : >> { %v5335_v32 = vpop.f32.mrf.mxu1  ;;  %7301 = vmatprep.subr.bf16.mxu1 %v10167_v22  ;;  %v12047_v35 = vadd.f32 %v5333_v29, %v5086_v30  ;;  %v5087_v36 = vadd.f32 %v5081_v31, %v11973_v9  ;;  %7077 = vmatprep.mubr.bf16.mxu0 %v6882_v26  ;;  %v10176_v9 = vld [vmem:[%s11665_s3 + $0xa44] ss:$8 sps:$4 sm:$0xff]   ;;  %v9212_v22 = vcombine.low %v12020_v59, %v12020_v59  ;;  %v10237_v26 = vld [vmem:[%s11665_s3 + $0xba0] ss:$8 sps:$4 sm:$0xff]   ;;  %v10245_v28 = vld [vmem:[%s11665_s3 + $0xb94] ss:$8 sps:$4 sm:$0xff]  }
 0x26d   : >> { %7331 = vmatprep.mubr.bf16.mxu1 %v7136_v27  ;;  %v5083_v4 = vpop.f32.mrf.mxu0  ;;  %v10242_v27 = vld [vmem:[%s11665_s3 + $0xa94] ss:$8 sps:$4 sm:$0xff]   ;;  %v10240_v31 = vld [vmem:[%s11665_s3 + $0xa90] ss:$8 sps:$4 sm:$0xff]  }
 0x26e   : >> { %v5337_v40 = vpop.f32.mrf.mxu1  ;;  %v12052_v41 = vadd.f32 %v5335_v32, %v5087_v36  ;;  %7048 = vmatpush1.bf16.msra.mxu0 %v10162_v23  ;;  %v12099_v23 = vld [vmem:[%s11720_s11 + $0x18] sm:$0x33]  ;;  %v7122_v30 = vshrl.u32 %v9212_v22, 16  ;;  %v7125_v59 = vshll.u32 %v9212_v22, 16  ;;  %v10246_v4 = vld [vmem:[%s11665_s3 + $0xa80] ss:$8 sps:$4 sm:$0xff]  }
 0x26f   : >> { %7302 = vmatpush1.bf16.msra.mxu1 %v10165_v24  ;;  %v5084_v42 = vpop.f32.mrf.mxu0  ;;  %7049 = vmatprep.subr.bf16.mxu0 %v10170_v33  ;;  %v10234_v24 = vld [vmem:[%s11665_s3 + $0xaa0] ss:$8 sps:$4 sm:$0xff]   ;;  %v9345_v29 = vcombine.high %v12099_v23, %v12099_v23  ;;  %v10243_v32 = vld [vmem:[%s11665_s3 + $0xb90] ss:$8 sps:$4 sm:$0xff]   ;;  %v10248_v33 = vld [vmem:[%s11665_s3 + $0xa84] ss:$8 sps:$4 sm:$0xff]  }
 0x270   : >> { %v5338_v43 = vpop.f32.mrf.mxu1  ;;  %7303 = vmatprep.subr.bf16.mxu1 %v10173_v34  ;;  %v10251_v34 = vld [vmem:[%s11665_s3 + $0xb84] ss:$8 sps:$4 sm:$0xff]   ;;  %v10249_v40 = vld [vmem:[%s11665_s3 + $0xb80] ss:$8 sps:$4 sm:$0xff]   ;;  %v10256_v42 = vld [vmem:[%s11665_s3 + $0xc74] ss:$8 sps:$4 sm:$0xff]  }
 0x271   : >> { %v7633_v36 = vshll.u32 %v9345_v29, 16  ;;  %v10259_v43 = vld [vmem:[%s11665_s3 + $0xd74] ss:$8 sps:$4 sm:$0xff]  }
 0x272   : >> { %7050 = vmatpush1.bf16.msra.mxu0 %v10168_v37  ;;  %v7124_v37 = vrot.slane %v7122_v30, 1  ;;  %v10305_v30 = vld [vmem:[%s11665_s3 + $0xdf0] ss:$8 sps:$4 sm:$0xff]  }
 0x273   : >> { %7304 = vmatpush1.bf16.msra.mxu1 %v10171_v38  ;;  %7051 = vmatprep.subr.bf16.mxu0 %v10176_v9  ;;  %v7127_v38 = vrot.slane %v7125_v59, 2  ;;  %v7631_v9 = vshrl.u32 %v9345_v29, 16  ;;  %v10310_v59 = vld [vmem:[%s11665_s3 + $0xce4] ss:$8 sps:$4 sm:$0xff]  }
 0x274   : >> { %7305 = vmatprep.subr.bf16.mxu1 %v10179_v44  ;;  %v7635_v44 = vrot.slane %v7633_v36, 1  ;;  %v10319_v36 = vld [vmem:[%s11665_s3 + $0xdd4] ss:$8 sps:$4 sm:$0xff]  }
 0x276   : >> { %7052 = vmatpush1.bf16.msra.mxu0 %v10174_v45  ;;  %v6881_v45 = vrot.slane %v9212_v22, 1  ;;  %v10301_v22 = vld [vmem:[%s11665_s3 + $0xd04] ss:$8 sps:$4 sm:$0xff]  }
 0x277   : >> { %7306 = vmatpush1.bf16.msra.mxu1 %v10177_v46  ;;  %7053 = vmatprep.subr.bf16.mxu0 %v10182_v25  ;;  %v7128_v46 = vor.u32 %v7127_v38, %v7124_v37  ;;  %v10254_v25 = vld [vmem:[%s11665_s3 + $0xc70] ss:$8 sps:$4 sm:$0xff]  }
 0x278   : >> { %7307 = vmatprep.subr.bf16.mxu1 %v10185_v47  ;;  %v10257_v47 = vld [vmem:[%s11665_s3 + $0xd70] ss:$8 sps:$4 sm:$0xff]  }
 0x279   : >> { %v10314_v37 = vld [vmem:[%s11665_s3 + $0xcd0] ss:$8 sps:$4 sm:$0xff]  }
 0x27a   : >> { %7054 = vmatpush1.bf16.msra.mxu0 %v10180_v48  ;;  %v10262_v48 = vld [vmem:[%s11665_s3 + $0xc64] ss:$8 sps:$4 sm:$0xff]   ;;  %v10317_v38 = vld [vmem:[%s11665_s3 + $0xdd0] ss:$8 sps:$4 sm:$0xff]  }
 0x27b   : >> { %7308 = vmatpush1.bf16.msra.mxu1 %v10183_v49  ;;  %7055 = vmatprep.subr.bf16.mxu0 %v10188_v50  ;;  %v10265_v49 = vld [vmem:[%s11665_s3 + $0xd64] ss:$8 sps:$4 sm:$0xff]   ;;  %v7636_v50 = vor.u32 %v7635_v44, %v7631_v9  ;;  %v10328_v9 = vld [vmem:[%s11665_s3 + $0xcb4] ss:$8 sps:$4 sm:$0xff]  }
 0x27c   : >> { %7309 = vmatprep.subr.bf16.mxu1 %v10191_v51  ;;  %v10331_v44 = vld [vmem:[%s11665_s3 + $0xdb4] ss:$8 sps:$4 sm:$0xff]  }
 0x27e   : >> { %7056 = vmatpush1.bf16.msra.mxu0 %v10186_v52 }
 0x27f   : >> { %7310 = vmatpush1.bf16.msra.mxu1 %v10189_v53  ;;  %7057 = vmatprep.subr.bf16.mxu0 %v10194_v54  ;;  %v10260_v54 = vld [vmem:[%s11665_s3 + $0xc60] ss:$8 sps:$4 sm:$0xff]  }
 0x280   : >> { %7311 = vmatprep.subr.bf16.mxu1 %v10197_v55  ;;  %v10263_v55 = vld [vmem:[%s11665_s3 + $0xd60] ss:$8 sps:$4 sm:$0xff]  }
 0x282   : >> { %7058 = vmatpush1.bf16.msra.mxu0 %v10192_v56 }
 0x283   : >> { %7312 = vmatpush1.bf16.msra.mxu1 %v10195_v57  ;;  %7059 = vmatprep.subr.bf16.mxu0 %v10200_v58  ;;  %v10268_v58 = vld [vmem:[%s11665_s3 + $0xc54] ss:$8 sps:$4 sm:$0xff]  }
 0x284   : >> { %7313 = vmatprep.subr.bf16.mxu1 %v10203_v60  ;;  %v10271_v60 = vld [vmem:[%s11665_s3 + $0xd54] ss:$8 sps:$4 sm:$0xff]  }
 0x286   : >> { %7060 = vmatpush1.bf16.msra.mxu0 %v10198_v61 }
 0x287   : >> { %7314 = vmatpush1.bf16.msra.mxu1 %v10201_v62  ;;  %7061 = vmatprep.subr.bf16.mxu0 %v10206_v63 }
 0x288   : >> { %7315 = vmatprep.subr.bf16.mxu1 %v10209_v0 }
 0x28a   : >> { %7062 = vmatpush2.bf16.msra.mxu0 %v10204_v1  ;;  %v10266_v1 = vld [vmem:[%s11665_s3 + $0xc50] ss:$8 sps:$4 sm:$0xff]  }
 0x28b   : >> { %7316 = vmatpush2.bf16.msra.mxu1 %v10207_v2  ;;  %7063 = vmatprep.subr.bf16.mxu0 %v10212_v3  ;;  %v10269_v2 = vld [vmem:[%s11665_s3 + $0xd50] ss:$8 sps:$4 sm:$0xff]  }
 0x28c   : >> { %7317 = vmatprep.subr.bf16.mxu1 %v10215_v39 }
 0x28e   : >> { %7064 = vmatpush2.bf16.msra.mxu0 %v10210_v5  ;;  %v10277_v5 = vld [vmem:[%s11665_s3 + $0xd44] ss:$8 sps:$4 sm:$0xff]  }
 0x28f   : >> { %7318 = vmatpush2.bf16.msra.mxu1 %v10213_v6  ;;  %7065 = vmatprep.subr.bf16.mxu0 %v10218_v7  ;;  %v10272_v6 = vld [vmem:[%s11665_s3 + $0xc40] ss:$8 sps:$4 sm:$0xff]  }
 0x290   : >> { %7319 = vmatprep.subr.bf16.mxu1 %v10221_v8  ;;  %v10275_v7 = vld [vmem:[%s11665_s3 + $0xd40] ss:$8 sps:$4 sm:$0xff]   ;;  %v10280_v8 = vld [vmem:[%s11665_s3 + $0xc34] ss:$8 sps:$4 sm:$0xff]  }
 0x292   : >> { %7066 = vmatpush2.bf16.msra.mxu0 %v10216_v10  ;;  %v10283_v10 = vld [vmem:[%s11665_s3 + $0xd34] ss:$8 sps:$4 sm:$0xff]  }
 0x293   : >> { %7320 = vmatpush2.bf16.msra.mxu1 %v10219_v11  ;;  %7067 = vmatprep.subr.bf16.mxu0 %v10224_v12  ;;  %v10278_v11 = vld [vmem:[%s11665_s3 + $0xc30] ss:$8 sps:$4 sm:$0xff]  }
 0x294   : >> { %7321 = vmatprep.subr.bf16.mxu1 %v10227_v13  ;;  %v10281_v12 = vld [vmem:[%s11665_s3 + $0xd30] ss:$8 sps:$4 sm:$0xff]   ;;  %v10286_v13 = vld [vmem:[%s11665_s3 + $0xc24] ss:$8 sps:$4 sm:$0xff]  }
 0x296   : >> { %7068 = vmatpush2.bf16.msra.mxu0 %v10222_v14  ;;  %v10289_v14 = vld [vmem:[%s11665_s3 + $0xd24] ss:$8 sps:$4 sm:$0xff]  }
 0x297   : >> { %7322 = vmatpush2.bf16.msra.mxu1 %v10225_v15  ;;  %7069 = vmatprep.subr.bf16.mxu0 %v10230_v16  ;;  %v10284_v15 = vld [vmem:[%s11665_s3 + $0xc20] ss:$8 sps:$4 sm:$0xff]  }
 0x298   : >> { %7323 = vmatprep.subr.bf16.mxu1 %v10233_v17  ;;  %v10287_v16 = vld [vmem:[%s11665_s3 + $0xd20] ss:$8 sps:$4 sm:$0xff]   ;;  %v10292_v17 = vld [vmem:[%s11665_s3 + $0xc14] ss:$8 sps:$4 sm:$0xff]  }
 0x29a   : >> { %7070 = vmatpush2.bf16.msra.mxu0 %v10228_v18  ;;  %v10295_v18 = vld [vmem:[%s11665_s3 + $0xd14] ss:$8 sps:$4 sm:$0xff]  }
 0x29b   : >> { %7324 = vmatpush2.bf16.msra.mxu1 %v10231_v19  ;;  %7071 = vmatprep.subr.bf16.mxu0 %v10236_v20  ;;  %v10290_v19 = vld [vmem:[%s11665_s3 + $0xc10] ss:$8 sps:$4 sm:$0xff]  }
 0x29c   : >> { %7325 = vmatprep.subr.bf16.mxu1 %v10239_v21  ;;  %v10293_v20 = vld [vmem:[%s11665_s3 + $0xd10] ss:$8 sps:$4 sm:$0xff]   ;;  %v10298_v21 = vld [vmem:[%s11665_s3 + $0xc04] ss:$8 sps:$4 sm:$0xff]  }
 0x29e   : >> { %7072 = vmatpush2.bf16.msra.mxu0 %v10234_v24  ;;  %v10296_v24 = vld [vmem:[%s11665_s3 + $0xc00] ss:$8 sps:$4 sm:$0xff]  }
 0x29f   : >> { %7326 = vmatpush2.bf16.msra.mxu1 %v10237_v26  ;;  %7073 = vmatprep.subr.bf16.mxu0 %v10242_v27  ;;  %v10299_v26 = vld [vmem:[%s11665_s3 + $0xd00] ss:$8 sps:$4 sm:$0xff]   ;;  %v10304_v27 = vld [vmem:[%s11665_s3 + $0xcf4] ss:$8 sps:$4 sm:$0xff]  }
 0x2a0   : >> { %7327 = vmatprep.subr.bf16.mxu1 %v10245_v28  ;;  %v10307_v28 = vld [vmem:[%s11665_s3 + $0xdf4] ss:$8 sps:$4 sm:$0xff]  }
 0x2a2   : >> { %7074 = vmatpush2.bf16.msra.mxu0 %v10240_v31  ;;  %v10313_v31 = vld [vmem:[%s11665_s3 + $0xde4] ss:$8 sps:$4 sm:$0xff]  }
 0x2a3   : >> { %7328 = vmatpush2.bf16.msra.mxu1 %v10243_v32  ;;  %7075 = vmatprep.subr.bf16.mxu0 %v10248_v33  ;;  %v10308_v32 = vld [vmem:[%s11665_s3 + $0xce0] ss:$8 sps:$4 sm:$0xff]  }
 0x2a4   : >> { %7329 = vmatprep.subr.bf16.mxu1 %v10251_v34  ;;  %v10311_v33 = vld [vmem:[%s11665_s3 + $0xde0] ss:$8 sps:$4 sm:$0xff]   ;;  %v10316_v34 = vld [vmem:[%s11665_s3 + $0xcd4] ss:$8 sps:$4 sm:$0xff]  }
 0x2a6   : >> { %7076 = vmatpush2.bf16.msra.mxu0 %v10246_v4  ;;  %v10322_v4 = vld [vmem:[%s11665_s3 + $0xcc4] ss:$8 sps:$4 sm:$0xff]  }
 0x2a7   : >> { %7330 = vmatpush2.bf16.msra.mxu1 %v10249_v40  ;;  %7547 = vmatprep.subr.bf16.mxu0 %v10256_v42  ;;  %v10325_v40 = vld [vmem:[%s11665_s3 + $0xdc4] ss:$8 sps:$4 sm:$0xff]   ;;  %v10320_v42 = vld [vmem:[%s11665_s3 + $0xcc0] ss:$8 sps:$4 sm:$0xff]  }
 0x2a8   : >> { %7799 = vmatprep.subr.bf16.mxu1 %v10259_v43  ;;  %v10323_v43 = vld [vmem:[%s11665_s3 + $0xdc0] ss:$8 sps:$4 sm:$0xff]  }
 0x2a9   : >> { %v5581_v51 = vpop.f32.mrf.mxu0  ;;  %7078 = vmatmul.mubr.bf16.vlgmr.msra.gmra.mxu0 %v6881_v45  ;;  %v10326_v45 = vld [vmem:[%s11665_s3 + $0xcb0] ss:$8 sps:$4 sm:$0xff]  }
 0x2aa   : >> { %v5833_v52 = vpop.f32.mrf.mxu1  ;;  %7332 = vmatmul.mubr.bf16.vlgmr.msra.gmra.mxu1 %v7128_v46  ;;  %v5588_v53 = vadd.f32 %v5581_v51, %v12047_v35  ;;  %7548 = vmatpush1.bf16.msra.mxu0 %v10254_v25  ;;  %v10329_v46 = vld [vmem:[%s11665_s3 + $0xdb0] ss:$8 sps:$4 sm:$0xff]   ;;  %v10334_v25 = vld [vmem:[%s11665_s3 + $0xca4] ss:$8 sps:$4 sm:$0xff]   ;;  %v10335_v51 = vld [vmem:[%s11665_s3 + $0xda0] ss:$8 sps:$4 sm:$0xff]  }
 0x2ab   : >> { %7800 = vmatpush1.bf16.msra.mxu1 %v10257_v47  ;;  %v5583_v56 = vpop.f32.mrf.mxu0  ;;  %7549 = vmatprep.subr.bf16.mxu0 %v10262_v48  ;;  %v10337_v47 = vld [vmem:[%s11665_s3 + $0xda4] ss:$8 sps:$4 sm:$0xff]   ;;  %v9344_v48 = vcombine.low %v12099_v23, %v12099_v23  ;;  %v10338_v23 = vld [vmem:[%s11665_s3 + $0xc90] ss:$8 sps:$4 sm:$0xff]  }
 0x2ac   : >> { %v5835_v57 = vpop.f32.mrf.mxu1  ;;  %7801 = vmatprep.subr.bf16.mxu1 %v10265_v49  ;;  %v12124_v61 = vadd.f32 %v5833_v52, %v5588_v53  ;;  %v5589_v62 = vadd.f32 %v5583_v56, %v12052_v41  ;;  %7579 = vmatprep.mubr.bf16.mxu0 %v9345_v29  ;;  %v10274_v41 = vld [vmem:[%s11665_s3 + $0xc44] ss:$8 sps:$4 sm:$0xff]   ;;  %v10302_v29 = vld [vmem:[%s11665_s3 + $0xcf0] ss:$8 sps:$4 sm:$0xff]   ;;  %v10340_v52 = vld [vmem:[%s11665_s3 + $0xc94] ss:$8 sps:$4 sm:$0xff]  }
 0x2ad   : >> { %7831 = vmatprep.mubr.bf16.mxu1 %v7636_v50  ;;  %v5585_v35 = vpop.f32.mrf.mxu0  ;;  %v12176_v49 = vld [vmem:[%s11720_s11 + $0x18] sm:$0x66]  ;;  %v10332_v50 = vld [vmem:[%s11665_s3 + $0xca0] ss:$8 sps:$4 sm:$0xff]  }
 0x2ae   : >> { %v5837_v63 = vpop.f32.mrf.mxu1  ;;  %v12127_v0 = vadd.f32 %v5835_v57, %v5589_v62  ;;  %7550 = vmatpush1.bf16.msra.mxu0 %v10260_v54  ;;  %v10343_v53 = vld [vmem:[%s11665_s3 + $0xd94] ss:$8 sps:$4 sm:$0xff]   ;;  %v9476_v54 = vcombine.high %v12176_v49, %v12176_v49  ;;  %v10341_v56 = vld [vmem:[%s11665_s3 + $0xd90] ss:$8 sps:$4 sm:$0xff]   ;;  %v10346_v57 = vld [vmem:[%s11665_s3 + $0xc84] ss:$8 sps:$4 sm:$0xff]  }
 0x2af   : >> { %7802 = vmatpush1.bf16.msra.mxu1 %v10263_v55  ;;  %v5586_v3 = vpop.f32.mrf.mxu0  ;;  %7551 = vmatprep.subr.bf16.mxu0 %v10268_v58  ;;  %v7626_v55 = vshll.u32 %v9344_v48, 16  ;;  %v10349_v58 = vld [vmem:[%s11665_s3 + $0xd84] ss:$8 sps:$4 sm:$0xff]   ;;  %v7624_v35 = vshrl.u32 %v9344_v48, 16 }
 0x2b0   : >> { %v5838_v39 = vpop.f32.mrf.mxu1  ;;  %7803 = vmatprep.subr.bf16.mxu1 %v10271_v60  ;;  %v8130_v60 = vshrl.u32 %v9476_v54, 16  ;;  %v8133_v62 = vshll.u32 %v9476_v54, 16  ;;  %v10354_v3 = vld [vmem:[%s11665_s3 + $0xe74] ss:$8 sps:$4 sm:$0xff]  }
 0x2b1   : >> { %v7628_v63 = vrot.slane %v7626_v55, 1  ;;  %v10357_v39 = vld [vmem:[%s11665_s3 + $0xf74] ss:$8 sps:$4 sm:$0xff]   ;;  %v10403_v55 = vld [vmem:[%s11665_s3 + $0xff0] ss:$8 sps:$4 sm:$0xff]  }
 0x2b2   : >> { %7552 = vmatpush1.bf16.msra.mxu0 %v10266_v1  ;;  %v10344_v1 = vld [vmem:[%s11665_s3 + $0xc80] ss:$8 sps:$4 sm:$0xff]  }
 0x2b3   : >> { %7804 = vmatpush1.bf16.msra.mxu1 %v10269_v2  ;;  %7553 = vmatprep.subr.bf16.mxu0 %v10274_v41  ;;  %v10347_v2 = vld [vmem:[%s11665_s3 + $0xd80] ss:$8 sps:$4 sm:$0xff]   ;;  %v8132_v41 = vrot.slane %v8130_v60, 1  ;;  %v10414_v60 = vld [vmem:[%s11665_s3 + $0xed4] ss:$8 sps:$4 sm:$0xff]  }
 0x2b4   : >> { %7805 = vmatprep.subr.bf16.mxu1 %v10277_v5  ;;  %v8135_v5 = vrot.slane %v8133_v62, 2  ;;  %v10417_v62 = vld [vmem:[%s11665_s3 + $0xfd4] ss:$8 sps:$4 sm:$0xff]  }
 0x2b6   : >> { %7554 = vmatpush1.bf16.msra.mxu0 %v10272_v6  ;;  %v7629_v6 = vor.u32 %v7628_v63, %v7624_v35  ;;  %v10412_v35 = vld [vmem:[%s11665_s3 + $0xed0] ss:$8 sps:$4 sm:$0xff]  }
 0x2b7   : >> { %7806 = vmatpush1.bf16.msra.mxu1 %v10275_v7  ;;  %7555 = vmatprep.subr.bf16.mxu0 %v10280_v8  ;;  %v10352_v7 = vld [vmem:[%s11665_s3 + $0xe70] ss:$8 sps:$4 sm:$0xff]  }
 0x2b8   : >> { %7807 = vmatprep.subr.bf16.mxu1 %v10283_v10  ;;  %v10355_v8 = vld [vmem:[%s11665_s3 + $0xf70] ss:$8 sps:$4 sm:$0xff]   ;;  %v10360_v10 = vld [vmem:[%s11665_s3 + $0xe64] ss:$8 sps:$4 sm:$0xff]  }
 0x2b9   : >> { %v10415_v63 = vld [vmem:[%s11665_s3 + $0xfd0] ss:$8 sps:$4 sm:$0xff]  }
 0x2ba   : >> { %7556 = vmatpush1.bf16.msra.mxu0 %v10278_v11  ;;  %v10363_v11 = vld [vmem:[%s11665_s3 + $0xf64] ss:$8 sps:$4 sm:$0xff]  }
 0x2bb   : >> { %7808 = vmatpush1.bf16.msra.mxu1 %v10281_v12  ;;  %7557 = vmatprep.subr.bf16.mxu0 %v10286_v13  ;;  %v7882_v12 = vrot.slane %v9476_v54, 1  ;;  %v8136_v13 = vor.u32 %v8135_v5, %v8132_v41  ;;  %v10400_v54 = vld [vmem:[%s11665_s3 + $0xef0] ss:$8 sps:$4 sm:$0xff]   ;;  %v10426_v41 = vld [vmem:[%s11665_s3 + $0xeb4] ss:$8 sps:$4 sm:$0xff]  }
 0x2bc   : >> { %7809 = vmatprep.subr.bf16.mxu1 %v10289_v14  ;;  %v10429_v5 = vld [vmem:[%s11665_s3 + $0xfb4] ss:$8 sps:$4 sm:$0xff]  }
 0x2be   : >> { %7558 = vmatpush1.bf16.msra.mxu0 %v10284_v15 }
 0x2bf   : >> { %7810 = vmatpush1.bf16.msra.mxu1 %v10287_v16  ;;  %7559 = vmatprep.subr.bf16.mxu0 %v10292_v17  ;;  %v10358_v17 = vld [vmem:[%s11665_s3 + $0xe60] ss:$8 sps:$4 sm:$0xff]  }
 0x2c0   : >> { %7811 = vmatprep.subr.bf16.mxu1 %v10295_v18  ;;  %v10361_v18 = vld [vmem:[%s11665_s3 + $0xf60] ss:$8 sps:$4 sm:$0xff]  }
 0x2c2   : >> { %7560 = vmatpush1.bf16.msra.mxu0 %v10290_v19 }
 0x2c3   : >> { %7812 = vmatpush1.bf16.msra.mxu1 %v10293_v20  ;;  %7561 = vmatprep.subr.bf16.mxu0 %v10298_v21  ;;  %v10366_v21 = vld [vmem:[%s11665_s3 + $0xe54] ss:$8 sps:$4 sm:$0xff]  }
 0x2c4   : >> { %7813 = vmatprep.subr.bf16.mxu1 %v10301_v22  ;;  %v10369_v22 = vld [vmem:[%s11665_s3 + $0xf54] ss:$8 sps:$4 sm:$0xff]  }
 0x2c6   : >> { %7562 = vmatpush1.bf16.msra.mxu0 %v10296_v24 }
 0x2c7   : >> { %7814 = vmatpush1.bf16.msra.mxu1 %v10299_v26  ;;  %7563 = vmatprep.subr.bf16.mxu0 %v10304_v27 }
 0x2c8   : >> { %7815 = vmatprep.subr.bf16.mxu1 %v10307_v28 }
 0x2ca   : >> { %7564 = vmatpush2.bf16.msra.mxu0 %v10302_v29  ;;  %v10364_v29 = vld [vmem:[%s11665_s3 + $0xe50] ss:$8 sps:$4 sm:$0xff]  }
 0x2cb   : >> { %7816 = vmatpush2.bf16.msra.mxu1 %v10305_v30  ;;  %7565 = vmatprep.subr.bf16.mxu0 %v10310_v59  ;;  %v10367_v30 = vld [vmem:[%s11665_s3 + $0xf50] ss:$8 sps:$4 sm:$0xff]  }
 0x2cc   : >> { %7817 = vmatprep.subr.bf16.mxu1 %v10313_v31 }
 0x2ce   : >> { %7566 = vmatpush2.bf16.msra.mxu0 %v10308_v32  ;;  %v10375_v32 = vld [vmem:[%s11665_s3 + $0xf44] ss:$8 sps:$4 sm:$0xff]  }
 0x2cf   : >> { %7818 = vmatpush2.bf16.msra.mxu1 %v10311_v33  ;;  %7567 = vmatprep.subr.bf16.mxu0 %v10316_v34  ;;  %v10370_v33 = vld [vmem:[%s11665_s3 + $0xe40] ss:$8 sps:$4 sm:$0xff]  }
 0x2d0   : >> { %7819 = vmatprep.subr.bf16.mxu1 %v10319_v36  ;;  %v10373_v34 = vld [vmem:[%s11665_s3 + $0xf40] ss:$8 sps:$4 sm:$0xff]   ;;  %v10378_v36 = vld [vmem:[%s11665_s3 + $0xe34] ss:$8 sps:$4 sm:$0xff]  }
 0x2d2   : >> { %7568 = vmatpush2.bf16.msra.mxu0 %v10314_v37  ;;  %v10381_v37 = vld [vmem:[%s11665_s3 + $0xf34] ss:$8 sps:$4 sm:$0xff]  }
 0x2d3   : >> { %7820 = vmatpush2.bf16.msra.mxu1 %v10317_v38  ;;  %7569 = vmatprep.subr.bf16.mxu0 %v10322_v4  ;;  %v10376_v38 = vld [vmem:[%s11665_s3 + $0xe30] ss:$8 sps:$4 sm:$0xff]  }
 0x2d4   : >> { %7821 = vmatprep.subr.bf16.mxu1 %v10325_v40  ;;  %v10379_v4 = vld [vmem:[%s11665_s3 + $0xf30] ss:$8 sps:$4 sm:$0xff]   ;;  %v10384_v40 = vld [vmem:[%s11665_s3 + $0xe24] ss:$8 sps:$4 sm:$0xff]  }
 0x2d6   : >> { %7570 = vmatpush2.bf16.msra.mxu0 %v10320_v42  ;;  %v10387_v42 = vld [vmem:[%s11665_s3 + $0xf24] ss:$8 sps:$4 sm:$0xff]  }
 0x2d7   : >> { %7822 = vmatpush2.bf16.msra.mxu1 %v10323_v43  ;;  %7571 = vmatprep.subr.bf16.mxu0 %v10328_v9  ;;  %v10382_v43 = vld [vmem:[%s11665_s3 + $0xe20] ss:$8 sps:$4 sm:$0xff]  }
 0x2d8   : >> { %7823 = vmatprep.subr.bf16.mxu1 %v10331_v44  ;;  %v10385_v9 = vld [vmem:[%s11665_s3 + $0xf20] ss:$8 sps:$4 sm:$0xff]   ;;  %v10390_v44 = vld [vmem:[%s11665_s3 + $0xe14] ss:$8 sps:$4 sm:$0xff]  }
 0x2da   : >> { %7572 = vmatpush2.bf16.msra.mxu0 %v10326_v45  ;;  %v10393_v45 = vld [vmem:[%s11665_s3 + $0xf14] ss:$8 sps:$4 sm:$0xff]  }
 0x2db   : >> { %7824 = vmatpush2.bf16.msra.mxu1 %v10329_v46  ;;  %7573 = vmatprep.subr.bf16.mxu0 %v10334_v25  ;;  %v10388_v46 = vld [vmem:[%s11665_s3 + $0xe10] ss:$8 sps:$4 sm:$0xff]  }
 0x2dc   : >> { %7825 = vmatprep.subr.bf16.mxu1 %v10337_v47  ;;  %v10391_v25 = vld [vmem:[%s11665_s3 + $0xf10] ss:$8 sps:$4 sm:$0xff]   ;;  %v10396_v47 = vld [vmem:[%s11665_s3 + $0xe04] ss:$8 sps:$4 sm:$0xff]  }
 0x2de   : >> { %7574 = vmatpush2.bf16.msra.mxu0 %v10332_v50  ;;  %v10394_v50 = vld [vmem:[%s11665_s3 + $0xe00] ss:$8 sps:$4 sm:$0xff]  }
 0x2df   : >> { %7826 = vmatpush2.bf16.msra.mxu1 %v10335_v51  ;;  %7575 = vmatprep.subr.bf16.mxu0 %v10340_v52  ;;  %v10397_v51 = vld [vmem:[%s11665_s3 + $0xf00] ss:$8 sps:$4 sm:$0xff]   ;;  %v10402_v52 = vld [vmem:[%s11665_s3 + $0xef4] ss:$8 sps:$4 sm:$0xff]  }
 0x2e0   : >> { %7827 = vmatprep.subr.bf16.mxu1 %v10343_v53  ;;  %v10405_v53 = vld [vmem:[%s11665_s3 + $0xff4] ss:$8 sps:$4 sm:$0xff]  }
 0x2e2   : >> { %7576 = vmatpush2.bf16.msra.mxu0 %v10338_v23  ;;  %v10408_v23 = vld [vmem:[%s11665_s3 + $0xee4] ss:$8 sps:$4 sm:$0xff]  }
 0x2e3   : >> { %7828 = vmatpush2.bf16.msra.mxu1 %v10341_v56  ;;  %7577 = vmatprep.subr.bf16.mxu0 %v10346_v57  ;;  %v10411_v56 = vld [vmem:[%s11665_s3 + $0xfe4] ss:$8 sps:$4 sm:$0xff]   ;;  %v10406_v57 = vld [vmem:[%s11665_s3 + $0xee0] ss:$8 sps:$4 sm:$0xff]  }
 0x2e4   : >> { %7829 = vmatprep.subr.bf16.mxu1 %v10349_v58  ;;  %v10409_v58 = vld [vmem:[%s11665_s3 + $0xfe0] ss:$8 sps:$4 sm:$0xff]  }
 0x2e6   : >> { %7578 = vmatpush2.bf16.msra.mxu0 %v10344_v1  ;;  %v10420_v1 = vld [vmem:[%s11665_s3 + $0xec4] ss:$8 sps:$4 sm:$0xff]  }
 0x2e7   : >> { %7830 = vmatpush2.bf16.msra.mxu1 %v10347_v2  ;;  %8045 = vmatprep.subr.bf16.mxu0 %v10354_v3  ;;  %v10423_v2 = vld [vmem:[%s11665_s3 + $0xfc4] ss:$8 sps:$4 sm:$0xff]   ;;  %v10418_v3 = vld [vmem:[%s11665_s3 + $0xec0] ss:$8 sps:$4 sm:$0xff]  }
 0x2e8   : >> { %8299 = vmatprep.subr.bf16.mxu1 %v10357_v39  ;;  %v10421_v39 = vld [vmem:[%s11665_s3 + $0xfc0] ss:$8 sps:$4 sm:$0xff]  }
 0x2e9   : >> { %v6079_v14 = vpop.f32.mrf.mxu0  ;;  %7580 = vmatmul.mubr.bf16.vlgmr.msra.gmra.mxu0 %v9344_v48  ;;  %v10399_v48 = vld [vmem:[%s11665_s3 + $0xf04] ss:$8 sps:$4 sm:$0xff]  }
 0x2ea   : >> { %v6333_v15 = vpop.f32.mrf.mxu1  ;;  %7832 = vmatmul.mubr.bf16.vlgmr.msra.gmra.mxu1 %v7629_v6  ;;  %v6086_v16 = vadd.f32 %v6079_v14, %v12124_v61  ;;  %8046 = vmatpush1.bf16.msra.mxu0 %v10352_v7  ;;  %v10424_v6 = vld [vmem:[%s11665_s3 + $0xeb0] ss:$8 sps:$4 sm:$0xff]   ;;  %v10438_v14 = vld [vmem:[%s11665_s3 + $0xe94] ss:$8 sps:$4 sm:$0xff]  }
 0x2eb   : >> { %8300 = vmatpush1.bf16.msra.mxu1 %v10355_v8  ;;  %v6081_v19 = vpop.f32.mrf.mxu0  ;;  %8047 = vmatprep.subr.bf16.mxu0 %v10360_v10  ;;  %v10427_v7 = vld [vmem:[%s11665_s3 + $0xfb0] ss:$8 sps:$4 sm:$0xff]   ;;  %v10432_v8 = vld [vmem:[%s11665_s3 + $0xea4] ss:$8 sps:$4 sm:$0xff]  }
 0x2ec   : >> { %v6335_v20 = vpop.f32.mrf.mxu1  ;;  %8301 = vmatprep.subr.bf16.mxu1 %v10363_v11  ;;  %v12201_v24 = vadd.f32 %v6333_v15, %v6086_v16  ;;  %v6087_v26 = vadd.f32 %v6081_v19, %v12127_v0  ;;  %8077 = vmatprep.mubr.bf16.mxu0 %v7882_v12  ;;  %v10372_v0 = vld [vmem:[%s11665_s3 + $0xe44] ss:$8 sps:$4 sm:$0xff]   ;;  %v9475_v11 = vcombine.low %v12176_v49, %v12176_v49  ;;  %v10430_v12 = vld [vmem:[%s11665_s3 + $0xea0] ss:$8 sps:$4 sm:$0xff]   ;;  %v10441_v15 = vld [vmem:[%s11665_s3 + $0xf94] ss:$8 sps:$4 sm:$0xff]  }
 0x2ed   : >> { %8331 = vmatprep.mubr.bf16.mxu1 %v8136_v13  ;;  %v6083_v61 = vpop.f32.mrf.mxu0  ;;  %v10435_v10 = vld [vmem:[%s11665_s3 + $0xfa4] ss:$8 sps:$4 sm:$0xff]   ;;  %v10433_v13 = vld [vmem:[%s11665_s3 + $0xfa0] ss:$8 sps:$4 sm:$0xff]   ;;  %v10439_v19 = vld [vmem:[%s11665_s3 + $0xf90] ss:$8 sps:$4 sm:$0xff]  }
 0x2ee   : >> { %v6337_v27 = vpop.f32.mrf.mxu1  ;;  %v12204_v28 = vadd.f32 %v6335_v20, %v6087_v26  ;;  %8048 = vmatpush1.bf16.msra.mxu0 %v10358_v17  ;;  %v8122_v16 = vshrl.u32 %v9475_v11, 16  ;;  %v8125_v17 = vshll.u32 %v9475_v11, 16  ;;  %v10444_v49 = vld [vmem:[%s11665_s3 + $0xe84] ss:$8 sps:$4 sm:$0xff]   ;;  %v10442_v26 = vld [vmem:[%s11665_s3 + $0xe80] ss:$8 sps:$4 sm:$0xff]  }
 0x2ef   : >> { %8302 = vmatpush1.bf16.msra.mxu1 %v10361_v18  ;;  %v6084_v59 = vpop.f32.mrf.mxu0  ;;  %8049 = vmatprep.subr.bf16.mxu0 %v10366_v21  ;;  %v10436_v18 = vld [vmem:[%s11665_s3 + $0xe90] ss:$8 sps:$4 sm:$0xff]   ;;  %v10447_v20 = vld [vmem:[%s11665_s3 + $0xf84] ss:$8 sps:$4 sm:$0xff]   ;;  %v10445_v61 = vld [vmem:[%s11665_s3 + $0xf80] ss:$8 sps:$4 sm:$0xff]  }
 0x2f0   : >> { %v6338_v31 = vpop.f32.mrf.mxu1  ;;  %8303 = vmatprep.subr.bf16.mxu1 %v10369_v22  ;;  %v8124_v21 = vrot.slane %v8122_v16, 1  ;;  %v8127_v22 = vrot.slane %v8125_v17, 2  ;;  %v7881_v27 = vrot.slane %v9475_v11, 1 }
 0x2f2   : >> { %8050 = vmatpush1.bf16.msra.mxu0 %v10364_v29  ;;  %v8128_v29 = vor.u32 %v8127_v22, %v8124_v21  ;;  %v8370_v22 = vld [vmem:[%s8362_s7] sm:$0xf] }
 0x2f3   : >> { %8304 = vmatpush1.bf16.msra.mxu1 %v10367_v30  ;;  %8051 = vmatprep.subr.bf16.mxu0 %v10372_v0 }
 0x2f4   : >> { %8305 = vmatprep.subr.bf16.mxu1 %v10375_v32 }
 0x2f6   : >> { %8052 = vmatpush1.bf16.msra.mxu0 %v10370_v33 }
 0x2f7   : >> { %8306 = vmatpush1.bf16.msra.mxu1 %v10373_v34  ;;  %8053 = vmatprep.subr.bf16.mxu0 %v10378_v36 }
 0x2f8   : >> { %8307 = vmatprep.subr.bf16.mxu1 %v10381_v37 }
 0x2fa   : >> { %8054 = vmatpush1.bf16.msra.mxu0 %v10376_v38 }
 0x2fb   : >> { %8308 = vmatpush1.bf16.msra.mxu1 %v10379_v4  ;;  %8055 = vmatprep.subr.bf16.mxu0 %v10384_v40 }
 0x2fc   : >> { %8309 = vmatprep.subr.bf16.mxu1 %v10387_v42 }
 0x2fe   : >> { %8056 = vmatpush1.bf16.msra.mxu0 %v10382_v43 }
 0x2ff   : >> { %8310 = vmatpush1.bf16.msra.mxu1 %v10385_v9  ;;  %8057 = vmatprep.subr.bf16.mxu0 %v10390_v44 }
 0x300   : >> { %8311 = vmatprep.subr.bf16.mxu1 %v10393_v45 }
 0x302   : >> { %8058 = vmatpush1.bf16.msra.mxu0 %v10388_v46 }
 0x303   : >> { %8312 = vmatpush1.bf16.msra.mxu1 %v10391_v25  ;;  %8059 = vmatprep.subr.bf16.mxu0 %v10396_v47 }
 0x304   : >> { %8313 = vmatprep.subr.bf16.mxu1 %v10399_v48 }
 0x306   : >> { %8060 = vmatpush1.bf16.msra.mxu0 %v10394_v50 }
 0x307   : >> { %8314 = vmatpush1.bf16.msra.mxu1 %v10397_v51  ;;  %8061 = vmatprep.subr.bf16.mxu0 %v10402_v52 }
 0x308   : >> { %8315 = vmatprep.subr.bf16.mxu1 %v10405_v53 }
 0x30a   : >> { %8062 = vmatpush2.bf16.msra.mxu0 %v10400_v54 }
 0x30b   : >> { %8316 = vmatpush2.bf16.msra.mxu1 %v10403_v55  ;;  %8063 = vmatprep.subr.bf16.mxu0 %v10408_v23 }
 0x30c   : >> { %8317 = vmatprep.subr.bf16.mxu1 %v10411_v56 }
 0x30e   : >> { %8064 = vmatpush2.bf16.msra.mxu0 %v10406_v57 }
 0x30f   : >> { %8318 = vmatpush2.bf16.msra.mxu1 %v10409_v58  ;;  %8065 = vmatprep.subr.bf16.mxu0 %v10414_v60 }
 0x310   : >> { %8319 = vmatprep.subr.bf16.mxu1 %v10417_v62 }
 0x312   : >> { %8066 = vmatpush2.bf16.msra.mxu0 %v10412_v35 }
 0x313   : >> { %8320 = vmatpush2.bf16.msra.mxu1 %v10415_v63  ;;  %8067 = vmatprep.subr.bf16.mxu0 %v10420_v1  ;;  %v10530_v1 = vmov 1983009808  }
 0x314   : >> { %8321 = vmatprep.subr.bf16.mxu1 %v10423_v2  ;;  %v8354_v2 = vunpack.c.l.s4 %v10530_v1 }
 0x316   : >> { %8068 = vmatpush2.bf16.msra.mxu0 %v10418_v3  ;;  %v8356_v3 = vlaneseq }
 0x317   : >> { %8322 = vmatpush2.bf16.msra.mxu1 %v10421_v39  ;;  %8069 = vmatprep.subr.bf16.mxu0 %v10426_v41 }
 0x318   : >> { %8323 = vmatprep.subr.bf16.mxu1 %v10429_v5  ;;  %v8357_v11 = vshrl.u32 %v8356_v3, 7 }
 0x31a   : >> { %8070 = vmatpush2.bf16.msra.mxu0 %v10424_v6 }
 0x31b   : >> { %8324 = vmatpush2.bf16.msra.mxu1 %v10427_v7  ;;  %8071 = vmatprep.subr.bf16.mxu0 %v10432_v8 }
 0x31c   : >> { %8325 = vmatprep.subr.bf16.mxu1 %v10435_v10  ;;  %v8355_v10 = vunpack.c.0.s8 %v8354_v2 }
 0x31e   : >> { %8072 = vmatpush2.bf16.msra.mxu0 %v10430_v12 }
 0x31f   : >> { %8326 = vmatpush2.bf16.msra.mxu1 %v10433_v13  ;;  %8073 = vmatprep.subr.bf16.mxu0 %v10438_v14 }
 0x320   : >> { %8327 = vmatprep.subr.bf16.mxu1 %v10441_v15 }
 0x322   : >> { %8074 = vmatpush2.bf16.msra.mxu0 %v10436_v18 }
 0x323   : >> { %8328 = vmatpush2.bf16.msra.mxu1 %v10439_v19  ;;  %8075 = vmatprep.subr.bf16.mxu0 %v10444_v49  ;;  %v8358_v19 = vsub.s32 %v8355_v10, %v8357_v11 }
 0x324   : >> { %8329 = vmatprep.subr.bf16.mxu1 %v10447_v20 }
 0x326   : >> { %8076 = vmatpush2.bf16.msra.mxu0 %v10442_v26 }
 0x327   : >> { %8330 = vmatpush2.bf16.msra.mxu1 %v10445_v61 }
 0x329   : >> { %v6581_v30 = vpop.f32.mrf.mxu0  ;;  %8078 = vmatmul.mubr.bf16.vlgmr.msra.gmra.mxu0 %v7881_v27 }
 0x32a   : >> { %v6833_v59 = vpop.f32.mrf.mxu1  ;;  %8332 = vmatmul.mubr.bf16.vlgmr.msra.gmra.mxu1 %v8128_v29  ;;  %v6588_v31 = vadd.f32 %v6581_v30, %v12201_v24 }
 0x32b   : >> { %v6583_v0 = vpop.f32.mrf.mxu0 }
 0x32c   : >> { %v6835_v32 = vpop.f32.mrf.mxu1  ;;  %v6840_v33 = vadd.f32 %v6833_v59, %v6588_v31  ;;  %v6589_v34 = vadd.f32 %v6583_v0, %v12204_v28 }
 0x32d   : >> { %v6585_v36 = vpop.f32.mrf.mxu0 }
 0x32e   : >> { %v6837_v37 = vpop.f32.mrf.mxu1  ;;  %v6841_v38 = vadd.f32 %v6835_v32, %v6589_v34 }
 0x32f   : >> { %v6586_v4 = vpop.f32.mrf.mxu0 }
 0x330   : >> { %v6838_v40 = vpop.f32.mrf.mxu1 }
 0x369   : >> { %v7079_v42 = vpop.f32.mrf.mxu0 }
 0x36a   : >> { %v7333_v43 = vpop.f32.mrf.mxu1  ;;  %v7086_v9 = vadd.f32 %v7079_v42, %v6840_v33 }
 0x36b   : >> { %v7081_v44 = vpop.f32.mrf.mxu0 }
 0x36c   : >> { %v7335_v45 = vpop.f32.mrf.mxu1  ;;  %v7340_v46 = vadd.f32 %v7333_v43, %v7086_v9  ;;  %v7087_v25 = vadd.f32 %v7081_v44, %v6841_v38 }
 0x36d   : >> { %v7083_v47 = vpop.f32.mrf.mxu0 }
 0x36e   : >> { %v7337_v48 = vpop.f32.mrf.mxu1  ;;  %v7341_v24 = vadd.f32 %v7335_v45, %v7087_v25 }
 0x36f   : >> { %v7084_v50 = vpop.f32.mrf.mxu0 }
 0x370   : >> { %v7338_v51 = vpop.f32.mrf.mxu1 }
 0x3a9   : >> { %v7581_v52 = vpop.f32.mrf.mxu0 }
 0x3aa   : >> { %v7833_v53 = vpop.f32.mrf.mxu1  ;;  %v7588_v28 = vadd.f32 %v7581_v52, %v7340_v46 }
 0x3ab   : >> { %v7583_v54 = vpop.f32.mrf.mxu0 }
 0x3ac   : >> { %v7835_v55 = vpop.f32.mrf.mxu1  ;;  %v7840_v23 = vadd.f32 %v7833_v53, %v7588_v28  ;;  %v7589_v62 = vadd.f32 %v7583_v54, %v7341_v24 }
 0x3ad   : >> { %v7585_v56 = vpop.f32.mrf.mxu0 }
 0x3ae   : >> { %v7837_v57 = vpop.f32.mrf.mxu1  ;;  %v7841_v39 = vadd.f32 %v7835_v55, %v7589_v62 }
 0x3af   : >> { %v7586_v58 = vpop.f32.mrf.mxu0 }
 0x3b0   : >> { %v7838_v60 = vpop.f32.mrf.mxu1 }
 0x3e9   : >> { %v8079_v35 = vpop.f32.mrf.mxu0 }
 0x3ea   : >> { %v8333_v63 = vpop.f32.mrf.mxu1  ;;  %v8086_v41 = vadd.f32 %v8079_v35, %v7840_v23 }
 0x3eb   : >> { %v8081_v5 = vpop.f32.mrf.mxu0 }
 0x3ec   : >> { %v8335_v6 = vpop.f32.mrf.mxu1  ;;  %v8340_v7 = vadd.f32 %v8333_v63, %v8086_v41  ;;  %v8087_v8 = vadd.f32 %v8081_v5, %v7841_v39 }
 0x3ed   : >> { %v8083_v12 = vpop.f32.mrf.mxu0 }
 0x3ee   : >> { %v8337_v13 = vpop.f32.mrf.mxu1  ;;  %v8344_v14 = vmul.f32 0.2, %v8340_v7  ;;  %v8341_v15 = vadd.f32 %v8335_v6, %v8087_v8  ;;  %vm8342_vm4 = vcmp.ge.f32.partialorder %v8340_v7, 0.0 }
 0x3ef   : >> { %v8084_v16 = vpop.f32.mrf.mxu0 }
 0x3f0   : >> { %v8338_v17 = vpop.f32.mrf.mxu1  ;;  %vm8343_vm5 = vcmp.ge.f32.partialorder %v8341_v15, 0.0  ;;  %v8345_v18 = vmul.f32 0.2, %v8341_v15  ;;  %v8346_v49 = vsel %vm8342_vm4, %v8340_v7, %v8344_v14 }
 0x3f2   : >> { %v8347_v20 = vsel %vm8343_vm5, %v8341_v15, %v8345_v18 }
 0x3f3   : >> { %v9573_v21 = vpack.c.bf16 %v8347_v20, %v8346_v49 }
 0x3f4   : > { %4346 = sbr.rel (!%p4344_p1) target bundleno = 296 (0x128), region = 192 }
 0x3f5   : >> { %v8359_v26 = vrot.slane %v9573_v21, %v8358_v19 }
 0x3f7   : >> { %v8371_v61 = vsel %vm8369_vm8, %v8359_v26, %v8370_v22 }
 0x3f8   : >> { %8372 = vst [vmem:[%s8362_s7] sm:$0xf] %v8371_v61 }
 0x3f9   : > { %8379 = sbr.rel (!%p10613_p9) target bundleno = 1026 (0x402), region = 91  ;;  %s9575_s8 = sshll.u32 (%p10613_p9), %s10508_s13, 1 }
 0x3fa   : > { %s9584_s18 = smul.u32 (%p10613_p9), 12, %s10512_s14 }
 0x3fc   : > { %s8382_s21 = sadd.s32 (%p10613_p9), %s9584_s18, %s9575_s8 }
 0x3fd   : > { %s9576_s22 = sshll.u32 (%p10613_p9), %s8382_s21, 1 }
 0x3fe   : > { %s8384_s26 = scalar_lea.vmem %s12308_s2, %s9576_s22 }
 0x3ff   : > { %v8401_v27 = vld [vmem:[%s11667_s4] sm:$0xf]  ;;  %v8403_v29 = vld [vmem:[%s11667_s4 + $0x4] sm:$0xf]  ;;  %v8405_v30 = vld [vmem:[%s11667_s4 + $0x8] sm:$0xf] }
 0x400   : > { %8402 = vst [vmem:[%s8384_s26] sm:$0xf] %v8401_v27  ;;  %8404 = vst [vmem:[%s8384_s26 + $0x8] sm:$0xf] %v8403_v29 }
 0x401   : > { %8406 = vst [vmem:[%s8384_s26 + $0x10] sm:$0xf] %v8405_v30 }
 0x402 PF: > { %s12_s17 = sadd.s32 1, %s10524_s17   ;;  %s12310_s9 = smov %s10496_s10 }
 0x403   : > { %p9_p2 = scmp.ge.s32.totalorder %s12_s17, 6   ;;  %s12311_s10 = smov %s10618_s28 }
 0x404   : > { %s12312_s11 = smov %s10504_s12  ;;  %s12313_s12 = smov %s10607_s24 }
 0x405   : > { %s12314_s13 = smov %s10516_s15  ;;  %s12315_s14 = smov %s10520_s16 }
 0x406   : > { %s12316_s15 = smov %s12319_s19  ;;  %s12317_s16 = smov %s12323_s20 }
 0x407   :  { %11 = sbr.rel (!%p9_p2) target bundleno = 5 (0x5), region = 203 }

// kernel: discriminator_forward.9
= control target key start
LH: loop header
LB: loop body
LE: loop exit
PB: predicated region body
PF: predicated region fallthrough
CT: control target
= control target key end

     0   :  { %s9173_s9 = smov 0   ;;  %s9175_s10 = smov 0   ;;  %s10819_s0 = inlined_call_operand.vmem [shape: bf16[2,1,5,5,512], index: 0, kind: input, shape index: {}]   ;;  %s10820_s1 = inlined_call_operand.vmem [shape: bf16[16,512,128], index: 1, kind: input, shape index: {}]   ;;  %s10821_s2 = inlined_call_operand.vmem [shape: f32[2,2,2,128], index: 2, kind: output, shape index: {}]  }
   0x1   :  { %s9177_s11 = smov 0  }
   0x2 LB: > { %s24_s12 = sadd.s32 1, %s9148_s10  ;;  %p6239_p0 = scmp.ge.s32.totalorder %s9152_s11, 1  ;;  %s9152_s11 = sphi %s9177_s11, %s12_s11   ;;  %s9148_s10 = sphi %s9175_s10, %s10823_s10   ;;  %s9144_s9 = sphi %s9173_s9, %s10822_s9  }
   0x3   : > { %p26_p1 = scmp.ge.s32.totalorder %s24_s12, 2  ;;  %p135_p2 = scmp.lt.s32.totalorder %s9152_s11, 3 }
   0x5   : > { %s10825_s12 = smov (%p26_p1, %s24_s12), 0  ;;  %p136_p3 = pnand %p6239_p0, %p135_p2 }
   0x6   : > { %p164_p4 = scmp.lt.s32.totalorder (!%p136_p3), %s9144_s9, 1  ;;  %s9201_s21 = smov (!%p136_p3), 0  }
   0x7   : > { %139 = sbr.rel (%p136_p3) target bundleno = 733 (0x2dd), region = 28 }
   0xc   : > { %s10827_s9 = smov (!%p164_p4, %s9144_s9), 1 }
   0xd   : > { %s8517_s13 = smul.u32 80, %s10827_s9  ;;  %s7811_s14 = sshll.u32 %s10827_s9, 2 }
   0xe   : > { %s9194_s17 = scalar_lea.vmem %s10821_s2, %s7811_s14 }
   0xf   : > { %s9199_s20 = scalar_lea.vmem %s10819_s0, %s8517_s13 }
  0x10 LB: >> { %v8550_v0 = vld [vmem:[%s10820_s1 + $0x178] sm:$0xff]   ;;  %v8554_v4 = vld [vmem:[%s10820_s1 + $0x170] sm:$0xff]   ;;  %v8558_v8 = vld [vmem:[%s10820_s1 + $0x168] sm:$0xff]   ;;  %s7812_s4 = sshll.u32 %s9156_s21, 4  ;;  %s9156_s21 = sphi %s9201_s21, %s187_s21  }
  0x11   : >> { %v8551_v1 = vld [vmem:[%s10820_s1 + $0x1f8] sm:$0xff]   ;;  %7813 = vmatprep.subr.bf16.mxu0 %v8550_v0  ;;  %v8555_v5 = vld [vmem:[%s10820_s1 + $0x1f0] sm:$0xff]   ;;  %v8559_v9 = vld [vmem:[%s10820_s1 + $0x1e8] sm:$0xff]   ;;  %s9298_s14 = scalar_lea.vmem %s9199_s20, %s7812_s4 }
  0x12   : >> { %v8552_v2 = vld [vmem:[%s10820_s1 + $0x138] sm:$0xff]   ;;  %7835 = vmatprep.subr.bf16.mxu1 %v8551_v1  ;;  %v8556_v6 = vld [vmem:[%s10820_s1 + $0x130] sm:$0xff]   ;;  %v8560_v10 = vld [vmem:[%s10820_s1 + $0x128] sm:$0xff]  }
  0x13   : >> { %v8553_v3 = vld [vmem:[%s10820_s1 + $0x1b8] sm:$0xff]   ;;  %7814 = vmatpush3.bf16.msra.mxu0 %v8552_v2  ;;  %v8557_v7 = vld [vmem:[%s10820_s1 + $0x1b0] sm:$0xff]   ;;  %v8561_v11 = vld [vmem:[%s10820_s1 + $0x1a8] sm:$0xff]  }
  0x14   : >> { %7836 = vmatpush3.bf16.msra.mxu1 %v8553_v3  ;;  %7815 = vmatprep.subr.bf16.mxu0 %v8554_v4  ;;  %v8562_v12 = vld [vmem:[%s10820_s1 + $0x160] sm:$0xff]   ;;  %v8566_v16 = vld [vmem:[%s10820_s1 + $0x158] sm:$0xff]   ;;  %v8570_v20 = vld [vmem:[%s10820_s1 + $0x150] sm:$0xff]  }
  0x15   : >> { %7837 = vmatprep.subr.bf16.mxu1 %v8555_v5  ;;  %v8563_v13 = vld [vmem:[%s10820_s1 + $0x1e0] sm:$0xff]   ;;  %v8567_v17 = vld [vmem:[%s10820_s1 + $0x1d8] sm:$0xff]   ;;  %v8571_v21 = vld [vmem:[%s10820_s1 + $0x1d0] sm:$0xff]  }
  0x16   : >> { %v8564_v14 = vld [vmem:[%s10820_s1 + $0x120] sm:$0xff]   ;;  %v8568_v18 = vld [vmem:[%s10820_s1 + $0x118] sm:$0xff]   ;;  %v8572_v22 = vld [vmem:[%s10820_s1 + $0x110] sm:$0xff]  }
  0x17   : >> { %7816 = vmatpush3.bf16.msra.mxu0 %v8556_v6  ;;  %v8565_v15 = vld [vmem:[%s10820_s1 + $0x1a0] sm:$0xff]   ;;  %v8569_v19 = vld [vmem:[%s10820_s1 + $0x198] sm:$0xff]   ;;  %v8573_v23 = vld [vmem:[%s10820_s1 + $0x190] sm:$0xff]  }
  0x18   : >> { %7838 = vmatpush3.bf16.msra.mxu1 %v8557_v7  ;;  %7817 = vmatprep.subr.bf16.mxu0 %v8558_v8  ;;  %v8574_v24 = vld [vmem:[%s10820_s1 + $0x148] sm:$0xff]   ;;  %v8578_v28 = vld [vmem:[%s10820_s1 + $0x140] sm:$0xff]   ;;  %v8586_v38 = vld [vmem:[%s10820_s1 + $0x78] sm:$0xff]  }
  0x19   : >> { %7839 = vmatprep.subr.bf16.mxu1 %v8559_v9  ;;  %v8575_v25 = vld [vmem:[%s10820_s1 + $0x1c8] sm:$0xff]   ;;  %v8579_v29 = vld [vmem:[%s10820_s1 + $0x1c0] sm:$0xff]   ;;  %v8587_v39 = vld [vmem:[%s10820_s1 + $0xf8] sm:$0xff]  }
  0x1a   : >> { %v8576_v26 = vld [vmem:[%s10820_s1 + $0x108] sm:$0xff]   ;;  %v8580_v30 = vld [vmem:[%s10820_s1 + $0x100] sm:$0xff]   ;;  %v8588_v50 = vld [vmem:[%s10820_s1 + $0x38] sm:$0xff]  }
  0x1b   : >> { %7818 = vmatpush3.bf16.msra.mxu0 %v8560_v10  ;;  %v8577_v27 = vld [vmem:[%s10820_s1 + $0x188] sm:$0xff]   ;;  %v8581_v31 = vld [vmem:[%s10820_s1 + $0x180] sm:$0xff]   ;;  %v8589_v51 = vld [vmem:[%s10820_s1 + $0xb8] sm:$0xff]  }
  0x1c   : >> { %7840 = vmatpush3.bf16.msra.mxu1 %v8561_v11  ;;  %7819 = vmatprep.subr.bf16.mxu0 %v8562_v12  ;;  %v257_v32 = vld [vmem:[%s9298_s14] sm:$0x33]  ;;  %v258_v33 = vld [vmem:[%s9298_s14 + $0x8] sm:$0x33]  ;;  %v8590_v56 = vld [vmem:[%s10820_s1 + $0x70] sm:$0xff]  }
  0x1d   : >> { %7841 = vmatprep.subr.bf16.mxu1 %v8563_v13  ;;  %v6309_v34 = vcombine.low %v257_v32, %v257_v32  ;;  %v6310_v35 = vcombine.high %v257_v32, %v257_v32  ;;  %v6311_v36 = vcombine.low %v258_v33, %v258_v33  ;;  %v6312_v37 = vcombine.high %v258_v33, %v258_v33  ;;  %v8591_v59 = vld [vmem:[%s10820_s1 + $0xf0] sm:$0xff]   ;;  %v8594_v62 = vld [vmem:[%s10820_s1 + $0x68] sm:$0xff]   ;;  %v8598_v2 = vld [vmem:[%s10820_s1 + $0x60] sm:$0xff]  }
  0x1e   : >> { %v8592_v60 = vld [vmem:[%s10820_s1 + $0x30] sm:$0xff]   ;;  %v8595_v63 = vld [vmem:[%s10820_s1 + $0xe8] sm:$0xff]   ;;  %v8599_v3 = vld [vmem:[%s10820_s1 + $0xe0] sm:$0xff]  }
  0x1f   : >> { %7820 = vmatpush3.bf16.msra.mxu0 %v8564_v14  ;;  %v342_v40 = vshrl.u32 %v6310_v35, 16  ;;  %v344_v41 = vshll.u32 %v6310_v35, 16  ;;  %v356_v42 = vshrl.u32 %v6312_v37, 16  ;;  %v358_v43 = vshll.u32 %v6312_v37, 16  ;;  %v8593_v61 = vld [vmem:[%s10820_s1 + $0xb0] sm:$0xff]   ;;  %v8596_v0 = vld [vmem:[%s10820_s1 + $0x28] sm:$0xff]  }
  0x20   : >> { %7842 = vmatpush3.bf16.msra.mxu1 %v8565_v15  ;;  %7821 = vmatprep.subr.bf16.mxu0 %v8566_v16  ;;  %v335_v44 = vshrl.u32 %v6309_v34, 16  ;;  %v337_v45 = vshll.u32 %v6309_v34, 16  ;;  %v349_v46 = vshrl.u32 %v6311_v36, 16  ;;  %v351_v47 = vshll.u32 %v6311_v36, 16  ;;  %v8597_v1 = vld [vmem:[%s10820_s1 + $0xa8] sm:$0xff]   ;;  %v8600_v4 = vld [vmem:[%s10820_s1 + $0x20] sm:$0xff]  }
  0x21   : >> { %7843 = vmatprep.subr.bf16.mxu1 %v8567_v17  ;;  %v346_v48 = vrot.slane %v344_v41, 1  ;;  %v360_v49 = vrot.slane %v358_v43, 1  ;;  %v8601_v5 = vld [vmem:[%s10820_s1 + $0xa0] sm:$0xff]   ;;  %v8602_v6 = vld [vmem:[%s10820_s1 + $0x58] sm:$0xff]   ;;  %v8606_v10 = vld [vmem:[%s10820_s1 + $0x50] sm:$0xff]  }
  0x22   : >> { %v339_v52 = vrot.slane %v337_v45, 1  ;;  %v353_v53 = vrot.slane %v351_v47, 1  ;;  %v8603_v7 = vld [vmem:[%s10820_s1 + $0xd8] sm:$0xff]   ;;  %v8607_v11 = vld [vmem:[%s10820_s1 + $0xd0] sm:$0xff]   ;;  %v8610_v14 = vld [vmem:[%s10820_s1 + $0x48] sm:$0xff]  }
  0x23   : >> { %7822 = vmatpush3.bf16.msra.mxu0 %v8568_v18  ;;  %v347_v54 = vor.u32 %v346_v48, %v342_v40  ;;  %v361_v55 = vor.u32 %v360_v49, %v356_v42  ;;  %v8604_v8 = vld [vmem:[%s10820_s1 + $0x18] sm:$0xff]   ;;  %v8608_v12 = vld [vmem:[%s10820_s1 + $0x10] sm:$0xff]   ;;  %v8611_v15 = vld [vmem:[%s10820_s1 + $0xc8] sm:$0xff]  }
  0x24   : >> { %7844 = vmatpush3.bf16.msra.mxu1 %v8569_v19  ;;  %7823 = vmatprep.subr.bf16.mxu0 %v8570_v20  ;;  %v340_v57 = vor.u32 %v339_v52, %v335_v44  ;;  %v354_v58 = vor.u32 %v353_v53, %v349_v46  ;;  %v8605_v9 = vld [vmem:[%s10820_s1 + $0x98] sm:$0xff]   ;;  %v8609_v13 = vld [vmem:[%s10820_s1 + $0x90] sm:$0xff]   ;;  %v8612_v16 = vld [vmem:[%s10820_s1 + $0x8] sm:$0xff]  }
  0x25   : >> { %7845 = vmatprep.subr.bf16.mxu1 %v8571_v21  ;;  %590 = vmatprep.mubr.bf16.mxu0 %v347_v54  ;;  %v8613_v17 = vld [vmem:[%s10820_s1 + $0x88] sm:$0xff]   ;;  %v8614_v18 = vld [vmem:[%s10820_s1 + $0x40] sm:$0xff]   ;;  %v8626_v32 = vld [vmem:[%s10820_s1 + $0x270] sm:$0xff]  }
  0x26   : >> { %630 = vmatprep.mubr.bf16.mxu1 %v361_v55  ;;  %v8615_v19 = vld [vmem:[%s10820_s1 + $0xc0] sm:$0xff]   ;;  %v8627_v33 = vld [vmem:[%s10820_s1 + $0x2f0] sm:$0xff]   ;;  %v8630_v36 = vld [vmem:[%s10820_s1 + $0x268] sm:$0xff]  }
  0x27   : >> { %7824 = vmatpush3.bf16.msra.mxu0 %v8572_v22  ;;  %v8616_v20 = vld [vmem:[%s10820_s1] sm:$0xff]   ;;  %v8628_v34 = vld [vmem:[%s10820_s1 + $0x230] sm:$0xff]   ;;  %v8631_v37 = vld [vmem:[%s10820_s1 + $0x2e8] sm:$0xff]  }
  0x28   : >> { %7846 = vmatpush3.bf16.msra.mxu1 %v8573_v23  ;;  %7825 = vmatprep.subr.bf16.mxu0 %v8574_v24  ;;  %v8617_v21 = vld [vmem:[%s10820_s1 + $0x80] sm:$0xff]   ;;  %v192_v23 = vld [vmem:[%s9298_s14 + $0x8] sm:$0x11]  ;;  %v8629_v35 = vld [vmem:[%s10820_s1 + $0x2b0] sm:$0xff]  }
  0x29   : >> { %7847 = vmatprep.subr.bf16.mxu1 %v8575_v25  ;;  %v191_v22 = vld [vmem:[%s9298_s14] sm:$0x11]  ;;  %v8622_v25 = vld [vmem:[%s10820_s1 + $0x278] sm:$0xff]   ;;  %v8642_v48 = vld [vmem:[%s10820_s1 + $0x250] sm:$0xff]  }
  0x2a   : >> { %v6346_v24 = vcombine.high %v191_v22, %v191_v22  ;;  %v8634_v40 = vld [vmem:[%s10820_s1 + $0x260] sm:$0xff]   ;;  %v8638_v44 = vld [vmem:[%s10820_s1 + $0x258] sm:$0xff]   ;;  %v8643_v49 = vld [vmem:[%s10820_s1 + $0x2d0] sm:$0xff]  }
  0x2b   : >> { %7826 = vmatpush3.bf16.msra.mxu0 %v8576_v26  ;;  %v6348_v26 = vcombine.high %v192_v23, %v192_v23  ;;  %v8635_v41 = vld [vmem:[%s10820_s1 + $0x2e0] sm:$0xff]   ;;  %v8639_v45 = vld [vmem:[%s10820_s1 + $0x2d8] sm:$0xff]   ;;  %v8646_v52 = vld [vmem:[%s10820_s1 + $0x248] sm:$0xff]  }
  0x2c   : >> { %7848 = vmatpush3.bf16.msra.mxu1 %v8577_v27  ;;  %7827 = vmatprep.subr.bf16.mxu0 %v8578_v28  ;;  %v8623_v27 = vld [vmem:[%s10820_s1 + $0x2f8] sm:$0xff]   ;;  %v8636_v42 = vld [vmem:[%s10820_s1 + $0x220] sm:$0xff]   ;;  %v8647_v53 = vld [vmem:[%s10820_s1 + $0x2c8] sm:$0xff]  }
  0x2d   : >> { %7849 = vmatprep.subr.bf16.mxu1 %v8579_v29  ;;  %v8624_v28 = vld [vmem:[%s10820_s1 + $0x238] sm:$0xff]   ;;  %v6345_v29 = vcombine.low %v191_v22, %v191_v22  ;;  %v8637_v43 = vld [vmem:[%s10820_s1 + $0x2a0] sm:$0xff]   ;;  %v8648_v54 = vld [vmem:[%s10820_s1 + $0x208] sm:$0xff]  }
  0x2e   : >> { %v8640_v46 = vld [vmem:[%s10820_s1 + $0x218] sm:$0xff]   ;;  %v8649_v55 = vld [vmem:[%s10820_s1 + $0x288] sm:$0xff]  }
  0x2f   : >> { %7828 = vmatpush3.bf16.msra.mxu0 %v8580_v30  ;;  %v6347_v30 = vcombine.low %v192_v23, %v192_v23  ;;  %v8641_v47 = vld [vmem:[%s10820_s1 + $0x298] sm:$0xff]  }
  0x30   : >> { %7850 = vmatpush3.bf16.msra.mxu1 %v8581_v31  ;;  %7857 = vmatprep.subr.bf16.mxu0 %v8586_v38  ;;  %v8625_v31 = vld [vmem:[%s10820_s1 + $0x2b8] sm:$0xff]   ;;  %v8632_v38 = vld [vmem:[%s10820_s1 + $0x228] sm:$0xff]  }
  0x31   : >> { %7879 = vmatprep.subr.bf16.mxu1 %v8587_v39  ;;  %v8633_v39 = vld [vmem:[%s10820_s1 + $0x2a8] sm:$0xff]   ;;  %v8674_v22 = vld [vmem:[%s10820_s1 + $0x358] sm:$0xff]  }
  0x32   : >> { %591 = vmatmul.mubr.bf16.vlgmr.msra.gmra.mxu0 %v340_v57  ;;  %v8651_v57 = vld [vmem:[%s10820_s1 + $0x2c0] sm:$0xff]   ;;  %v8675_v23 = vld [vmem:[%s10820_s1 + $0x3d8] sm:$0xff]  }
  0x33   : >> { %631 = vmatmul.mubr.bf16.vlgmr.msra.gmra.mxu1 %v354_v58  ;;  %7858 = vmatpush3.bf16.msra.mxu0 %v8588_v50  ;;  %v8644_v50 = vld [vmem:[%s10820_s1 + $0x210] sm:$0xff]   ;;  %v8652_v58 = vld [vmem:[%s10820_s1 + $0x200] sm:$0xff]  }
  0x34   : >> { %7880 = vmatpush3.bf16.msra.mxu1 %v8589_v51  ;;  %7859 = vmatprep.subr.bf16.mxu0 %v8590_v56  ;;  %v8645_v51 = vld [vmem:[%s10820_s1 + $0x290] sm:$0xff]   ;;  %v8650_v56 = vld [vmem:[%s10820_s1 + $0x240] sm:$0xff]  }
  0x35   : >> { %7881 = vmatprep.subr.bf16.mxu1 %v8591_v59  ;;  %876 = vmatprep.mubr.bf16.mxu0 %v6346_v24  ;;  %v8653_v59 = vld [vmem:[%s10820_s1 + $0x280] sm:$0xff]   ;;  %v8676_v24 = vld [vmem:[%s10820_s1 + $0x318] sm:$0xff]  }
  0x36   : >> { %916 = vmatprep.mubr.bf16.mxu1 %v6348_v26  ;;  %v8678_v26 = vld [vmem:[%s10820_s1 + $0x350] sm:$0xff]  }
  0x37   : >> { %7860 = vmatpush3.bf16.msra.mxu0 %v8592_v60  ;;  %v924_v60 = vld [vmem:[%s9298_s14] sm:$0x22] }
  0x38   : >> { %7882 = vmatpush3.bf16.msra.mxu1 %v8593_v61  ;;  %7861 = vmatprep.subr.bf16.mxu0 %v8594_v62  ;;  %v925_v61 = vld [vmem:[%s9298_s14 + $0x8] sm:$0x22]  ;;  %v6445_v62 = vcombine.low %v924_v60, %v924_v60 }
  0x39   : >> { %7883 = vmatprep.subr.bf16.mxu1 %v8595_v63  ;;  %v6446_v63 = vcombine.high %v924_v60, %v924_v60 }
  0x3b   : >> { %7862 = vmatpush3.bf16.msra.mxu0 %v8596_v0  ;;  %v6447_v0 = vcombine.low %v925_v61, %v925_v61 }
  0x3c   : >> { %7884 = vmatpush3.bf16.msra.mxu1 %v8597_v1  ;;  %7863 = vmatprep.subr.bf16.mxu0 %v8598_v2  ;;  %v8658_v1 = vld [vmem:[%s10820_s1 + $0x378] sm:$0xff]   ;;  %v6448_v2 = vcombine.high %v925_v61, %v925_v61 }
  0x3d   : >> { %7885 = vmatprep.subr.bf16.mxu1 %v8599_v3  ;;  %v8659_v3 = vld [vmem:[%s10820_s1 + $0x3f8] sm:$0xff]  }
  0x3f   : >> { %7864 = vmatpush3.bf16.msra.mxu0 %v8600_v4  ;;  %v1001_v4 = vrot.slane %v6445_v62, 1 }
  0x40   : >> { %7886 = vmatpush3.bf16.msra.mxu1 %v8601_v5  ;;  %7865 = vmatprep.subr.bf16.mxu0 %v8602_v6  ;;  %v1002_v5 = vrot.slane %v6446_v63, 1  ;;  %v1003_v6 = vrot.slane %v6447_v0, 1 }
  0x41   : >> { %7887 = vmatprep.subr.bf16.mxu1 %v8603_v7  ;;  %v8660_v7 = vld [vmem:[%s10820_s1 + $0x338] sm:$0xff]  }
  0x43   : >> { %7866 = vmatpush3.bf16.msra.mxu0 %v8604_v8  ;;  %v1004_v8 = vrot.slane %v6448_v2, 1  ;;  %v8698_v2 = vld [vmem:[%s10820_s1 + $0x470] sm:$0xff]  }
  0x44   : >> { %7888 = vmatpush3.bf16.msra.mxu1 %v8605_v9  ;;  %7867 = vmatprep.subr.bf16.mxu0 %v8606_v10  ;;  %v8661_v9 = vld [vmem:[%s10820_s1 + $0x3b8] sm:$0xff]   ;;  %v8662_v10 = vld [vmem:[%s10820_s1 + $0x370] sm:$0xff]  }
  0x45   : >> { %7889 = vmatprep.subr.bf16.mxu1 %v8607_v11  ;;  %v8663_v11 = vld [vmem:[%s10820_s1 + $0x3f0] sm:$0xff]  }
  0x47   : >> { %7868 = vmatpush3.bf16.msra.mxu0 %v8608_v12  ;;  %v8664_v12 = vld [vmem:[%s10820_s1 + $0x330] sm:$0xff]  }
  0x48   : >> { %7890 = vmatpush3.bf16.msra.mxu1 %v8609_v13  ;;  %7869 = vmatprep.subr.bf16.mxu0 %v8610_v14  ;;  %v8665_v13 = vld [vmem:[%s10820_s1 + $0x3b0] sm:$0xff]   ;;  %v8666_v14 = vld [vmem:[%s10820_s1 + $0x368] sm:$0xff]  }
  0x49   : >> { %7891 = vmatprep.subr.bf16.mxu1 %v8611_v15  ;;  %v8667_v15 = vld [vmem:[%s10820_s1 + $0x3e8] sm:$0xff]  }
  0x4b   : >> { %7870 = vmatpush3.bf16.msra.mxu0 %v8612_v16  ;;  %v8668_v16 = vld [vmem:[%s10820_s1 + $0x328] sm:$0xff]  }
  0x4c   : >> { %7892 = vmatpush3.bf16.msra.mxu1 %v8613_v17  ;;  %7871 = vmatprep.subr.bf16.mxu0 %v8614_v18  ;;  %v8669_v17 = vld [vmem:[%s10820_s1 + $0x3a8] sm:$0xff]   ;;  %v8670_v18 = vld [vmem:[%s10820_s1 + $0x360] sm:$0xff]  }
  0x4d   : >> { %7893 = vmatprep.subr.bf16.mxu1 %v8615_v19  ;;  %v8671_v19 = vld [vmem:[%s10820_s1 + $0x3e0] sm:$0xff]  }
  0x4f   : >> { %7872 = vmatpush3.bf16.msra.mxu0 %v8616_v20  ;;  %v8672_v20 = vld [vmem:[%s10820_s1 + $0x320] sm:$0xff]  }
  0x50   : >> { %7894 = vmatpush3.bf16.msra.mxu1 %v8617_v21  ;;  %7901 = vmatprep.subr.bf16.mxu0 %v8622_v25  ;;  %v8673_v21 = vld [vmem:[%s10820_s1 + $0x3a0] sm:$0xff]   ;;  %v8677_v25 = vld [vmem:[%s10820_s1 + $0x398] sm:$0xff]  }
  0x51   : >> { %7923 = vmatprep.subr.bf16.mxu1 %v8623_v27  ;;  %v8679_v27 = vld [vmem:[%s10820_s1 + $0x3d0] sm:$0xff]  }
  0x52   : >> { %877 = vmatmul.mubr.bf16.vlgmr.msra.gmra.mxu0 %v6345_v29  ;;  %v8681_v29 = vld [vmem:[%s10820_s1 + $0x390] sm:$0xff]  }
  0x53   : >> { %917 = vmatmul.mubr.bf16.vlgmr.msra.gmra.mxu1 %v6347_v30  ;;  %7902 = vmatpush3.bf16.msra.mxu0 %v8624_v28  ;;  %v8680_v28 = vld [vmem:[%s10820_s1 + $0x310] sm:$0xff]   ;;  %v8682_v30 = vld [vmem:[%s10820_s1 + $0x348] sm:$0xff]  }
  0x54   : >> { %7924 = vmatpush3.bf16.msra.mxu1 %v8625_v31  ;;  %7903 = vmatprep.subr.bf16.mxu0 %v8626_v32  ;;  %v8683_v31 = vld [vmem:[%s10820_s1 + $0x3c8] sm:$0xff]  }
  0x55   : >> { %7925 = vmatprep.subr.bf16.mxu1 %v8627_v33  ;;  %1233 = vmatprep.mubr.bf16.mxu0 %v1002_v5  ;;  %v8684_v32 = vld [vmem:[%s10820_s1 + $0x308] sm:$0xff]   ;;  %v8699_v5 = vld [vmem:[%s10820_s1 + $0x4f0] sm:$0xff]  }
  0x56   : >> { %1273 = vmatprep.mubr.bf16.mxu1 %v1004_v8  ;;  %v8685_v33 = vld [vmem:[%s10820_s1 + $0x388] sm:$0xff]  }
  0x57   : >> { %7904 = vmatpush3.bf16.msra.mxu0 %v8628_v34  ;;  %v8686_v34 = vld [vmem:[%s10820_s1 + $0x340] sm:$0xff]   ;;  %v8702_v8 = vld [vmem:[%s10820_s1 + $0x468] sm:$0xff]  }
  0x58   : >> { %7926 = vmatpush3.bf16.msra.mxu1 %v8629_v35  ;;  %7905 = vmatprep.subr.bf16.mxu0 %v8630_v36  ;;  %v8687_v35 = vld [vmem:[%s10820_s1 + $0x3c0] sm:$0xff]  }
  0x59   : >> { %7927 = vmatprep.subr.bf16.mxu1 %v8631_v37  ;;  %v8688_v36 = vld [vmem:[%s10820_s1 + $0x300] sm:$0xff]  }
  0x5a   : >> { %v8689_v37 = vld [vmem:[%s10820_s1 + $0x380] sm:$0xff]  }
  0x5b   : >> { %7906 = vmatpush3.bf16.msra.mxu0 %v8632_v38  ;;  %v1282_v38 = vld [vmem:[%s9298_s14] sm:$0x66] }
  0x5c   : >> { %7928 = vmatpush3.bf16.msra.mxu1 %v8633_v39  ;;  %7907 = vmatprep.subr.bf16.mxu0 %v8634_v40  ;;  %v1283_v39 = vld [vmem:[%s9298_s14 + $0x8] sm:$0x66]  ;;  %v6545_v40 = vcombine.low %v1282_v38, %v1282_v38 }
  0x5d   : >> { %7929 = vmatprep.subr.bf16.mxu1 %v8635_v41  ;;  %v6546_v41 = vcombine.high %v1282_v38, %v1282_v38 }
  0x5f   : >> { %7908 = vmatpush3.bf16.msra.mxu0 %v8636_v42  ;;  %v6547_v42 = vcombine.low %v1283_v39, %v1283_v39 }
  0x60   : >> { %7930 = vmatpush3.bf16.msra.mxu1 %v8637_v43  ;;  %7909 = vmatprep.subr.bf16.mxu0 %v8638_v44  ;;  %v6548_v43 = vcombine.high %v1283_v39, %v1283_v39  ;;  %v8694_v44 = vld [vmem:[%s10820_s1 + $0x478] sm:$0xff]  }
  0x61   : >> { %7931 = vmatprep.subr.bf16.mxu1 %v8639_v45  ;;  %v8695_v45 = vld [vmem:[%s10820_s1 + $0x4f8] sm:$0xff]  }
  0x63   : >> { %7910 = vmatpush3.bf16.msra.mxu0 %v8640_v46  ;;  %v1368_v46 = vshrl.u32 %v6546_v41, 16 }
  0x64   : >> { %7932 = vmatpush3.bf16.msra.mxu1 %v8641_v47  ;;  %7911 = vmatprep.subr.bf16.mxu0 %v8642_v48  ;;  %v1371_v47 = vshll.u32 %v6546_v41, 16  ;;  %v1384_v48 = vshrl.u32 %v6548_v43, 16  ;;  %v8733_v41 = vld [vmem:[%s10820_s1 + $0x5b8] sm:$0xff]  }
  0x65   : >> { %7933 = vmatprep.subr.bf16.mxu1 %v8643_v49  ;;  %v1387_v49 = vshll.u32 %v6548_v43, 16  ;;  %v8735_v43 = vld [vmem:[%s10820_s1 + $0x5f0] sm:$0xff]  }
  0x67   : >> { %7912 = vmatpush3.bf16.msra.mxu0 %v8644_v50  ;;  %v1360_v50 = vshrl.u32 %v6545_v40, 16 }
  0x68   : >> { %7934 = vmatpush3.bf16.msra.mxu1 %v8645_v51  ;;  %7913 = vmatprep.subr.bf16.mxu0 %v8646_v52  ;;  %v1363_v51 = vshll.u32 %v6545_v40, 16  ;;  %v1376_v52 = vshrl.u32 %v6547_v42, 16  ;;  %v8732_v40 = vld [vmem:[%s10820_s1 + $0x538] sm:$0xff]  }
  0x69   : >> { %7935 = vmatprep.subr.bf16.mxu1 %v8647_v53  ;;  %v1379_v53 = vshll.u32 %v6547_v42, 16  ;;  %v1362_v60 = vrot.slane %v1360_v50, 1  ;;  %v8734_v42 = vld [vmem:[%s10820_s1 + $0x570] sm:$0xff]   ;;  %v8742_v50 = vld [vmem:[%s10820_s1 + $0x560] sm:$0xff]  }
  0x6a   : >> { %v1365_v61 = vrot.slane %v1363_v51, 2  ;;  %v1378_v62 = vrot.slane %v1376_v52, 1  ;;  %v8743_v51 = vld [vmem:[%s10820_s1 + $0x5e0] sm:$0xff]  }
  0x6b   : >> { %7914 = vmatpush3.bf16.msra.mxu0 %v8648_v54  ;;  %v1370_v54 = vrot.slane %v1368_v46, 1  ;;  %v1381_v63 = vrot.slane %v1379_v53, 2  ;;  %v8738_v46 = vld [vmem:[%s10820_s1 + $0x568] sm:$0xff]   ;;  %v8744_v52 = vld [vmem:[%s10820_s1 + $0x520] sm:$0xff]  }
  0x6c   : >> { %7936 = vmatpush3.bf16.msra.mxu1 %v8649_v55  ;;  %7915 = vmatprep.subr.bf16.mxu0 %v8650_v56  ;;  %v1373_v55 = vrot.slane %v1371_v47, 2  ;;  %v1386_v56 = vrot.slane %v1384_v48, 1  ;;  %v8739_v47 = vld [vmem:[%s10820_s1 + $0x5e8] sm:$0xff]   ;;  %v8745_v53 = vld [vmem:[%s10820_s1 + $0x5a0] sm:$0xff]  }
  0x6d   : >> { %7937 = vmatprep.subr.bf16.mxu1 %v8651_v57  ;;  %v1389_v57 = vrot.slane %v1387_v49, 2  ;;  %v8740_v48 = vld [vmem:[%s10820_s1 + $0x528] sm:$0xff]  }
  0x6e   : >> { %v1374_v0 = vor.u32 %v1373_v55, %v1370_v54  ;;  %v8741_v49 = vld [vmem:[%s10820_s1 + $0x5a8] sm:$0xff]   ;;  %v8746_v54 = vld [vmem:[%s10820_s1 + $0x558] sm:$0xff]  }
  0x6f   : >> { %7916 = vmatpush3.bf16.msra.mxu0 %v8652_v58  ;;  %v8696_v58 = vld [vmem:[%s10820_s1 + $0x438] sm:$0xff]  }
  0x70   : >> { %7938 = vmatpush3.bf16.msra.mxu1 %v8653_v59  ;;  %7945 = vmatprep.subr.bf16.mxu0 %v8658_v1  ;;  %v8697_v59 = vld [vmem:[%s10820_s1 + $0x4b8] sm:$0xff]   ;;  %v1390_v1 = vor.u32 %v1389_v57, %v1386_v56 }
  0x71   : >> { %7967 = vmatprep.subr.bf16.mxu1 %v8659_v3  ;;  %v1366_v3 = vor.u32 %v1365_v61, %v1362_v60  ;;  %v8747_v55 = vld [vmem:[%s10820_s1 + $0x5d8] sm:$0xff]   ;;  %v8752_v60 = vld [vmem:[%s10820_s1 + $0x510] sm:$0xff]  }
  0x72   : >> { %1234 = vmatmul.mubr.bf16.vlgmr.msra.gmra.mxu0 %v1001_v4  ;;  %v1382_v4 = vor.u32 %v1381_v63, %v1378_v62  ;;  %v8748_v56 = vld [vmem:[%s10820_s1 + $0x518] sm:$0xff]   ;;  %v8753_v61 = vld [vmem:[%s10820_s1 + $0x590] sm:$0xff]   ;;  %v8754_v62 = vld [vmem:[%s10820_s1 + $0x548] sm:$0xff]  }
  0x73   : >> { %1274 = vmatmul.mubr.bf16.vlgmr.msra.gmra.mxu1 %v1003_v6  ;;  %7946 = vmatpush3.bf16.msra.mxu0 %v8660_v7  ;;  %v8700_v6 = vld [vmem:[%s10820_s1 + $0x430] sm:$0xff]   ;;  %v8749_v57 = vld [vmem:[%s10820_s1 + $0x598] sm:$0xff]   ;;  %v8755_v63 = vld [vmem:[%s10820_s1 + $0x5c8] sm:$0xff]  }
  0x74   : >> { %7968 = vmatpush3.bf16.msra.mxu1 %v8661_v9  ;;  %7947 = vmatprep.subr.bf16.mxu0 %v8662_v10  ;;  %v8701_v7 = vld [vmem:[%s10820_s1 + $0x4b0] sm:$0xff]   ;;  %v8703_v9 = vld [vmem:[%s10820_s1 + $0x4e8] sm:$0xff]  }
  0x75   : >> { %7969 = vmatprep.subr.bf16.mxu1 %v8663_v11  ;;  %1619 = vmatprep.mubr.bf16.mxu0 %v1374_v0  ;;  %v8704_v10 = vld [vmem:[%s10820_s1 + $0x428] sm:$0xff]  }
  0x76   : >> { %1659 = vmatprep.mubr.bf16.mxu1 %v1390_v1  ;;  %v8705_v11 = vld [vmem:[%s10820_s1 + $0x4a8] sm:$0xff]  }
  0x77   : >> { %7948 = vmatpush3.bf16.msra.mxu0 %v8664_v12  ;;  %v8706_v12 = vld [vmem:[%s10820_s1 + $0x460] sm:$0xff]   ;;  %v8756_v0 = vld [vmem:[%s10820_s1 + $0x508] sm:$0xff]  }
  0x78   : >> { %7970 = vmatpush3.bf16.msra.mxu1 %v8665_v13  ;;  %7949 = vmatprep.subr.bf16.mxu0 %v8666_v14  ;;  %v8707_v13 = vld [vmem:[%s10820_s1 + $0x4e0] sm:$0xff]   ;;  %v8757_v1 = vld [vmem:[%s10820_s1 + $0x588] sm:$0xff]  }
  0x79   : >> { %7971 = vmatprep.subr.bf16.mxu1 %v8667_v15  ;;  %v8708_v14 = vld [vmem:[%s10820_s1 + $0x420] sm:$0xff]  }
  0x7a   : >> { %v8709_v15 = vld [vmem:[%s10820_s1 + $0x4a0] sm:$0xff]  }
  0x7b   : >> { %7950 = vmatpush3.bf16.msra.mxu0 %v8668_v16  ;;  %v8710_v16 = vld [vmem:[%s10820_s1 + $0x458] sm:$0xff]  }
  0x7c   : >> { %7972 = vmatpush3.bf16.msra.mxu1 %v8669_v17  ;;  %7951 = vmatprep.subr.bf16.mxu0 %v8670_v18  ;;  %v8711_v17 = vld [vmem:[%s10820_s1 + $0x4d8] sm:$0xff]  }
  0x7d   : >> { %7973 = vmatprep.subr.bf16.mxu1 %v8671_v19  ;;  %v8712_v18 = vld [vmem:[%s10820_s1 + $0x418] sm:$0xff]  }
  0x7e   : >> { %v8713_v19 = vld [vmem:[%s10820_s1 + $0x498] sm:$0xff]  }
  0x7f   : >> { %7952 = vmatpush3.bf16.msra.mxu0 %v8672_v20  ;;  %v8714_v20 = vld [vmem:[%s10820_s1 + $0x450] sm:$0xff]  }
  0x80   : >> { %7974 = vmatpush3.bf16.msra.mxu1 %v8673_v21  ;;  %7953 = vmatprep.subr.bf16.mxu0 %v8674_v22  ;;  %v8715_v21 = vld [vmem:[%s10820_s1 + $0x4d0] sm:$0xff]  }
  0x81   : >> { %7975 = vmatprep.subr.bf16.mxu1 %v8675_v23  ;;  %v8716_v22 = vld [vmem:[%s10820_s1 + $0x410] sm:$0xff]  }
  0x82   : >> { %v8717_v23 = vld [vmem:[%s10820_s1 + $0x490] sm:$0xff]  }
  0x83   : >> { %7954 = vmatpush3.bf16.msra.mxu0 %v8676_v24  ;;  %v8718_v24 = vld [vmem:[%s10820_s1 + $0x448] sm:$0xff]  }
  0x84   : >> { %7976 = vmatpush3.bf16.msra.mxu1 %v8677_v25  ;;  %7955 = vmatprep.subr.bf16.mxu0 %v8678_v26  ;;  %v8719_v25 = vld [vmem:[%s10820_s1 + $0x4c8] sm:$0xff]  }
  0x85   : >> { %7977 = vmatprep.subr.bf16.mxu1 %v8679_v27  ;;  %v8720_v26 = vld [vmem:[%s10820_s1 + $0x408] sm:$0xff]  }
  0x86   : >> { %v8721_v27 = vld [vmem:[%s10820_s1 + $0x488] sm:$0xff]  }
  0x87   : >> { %7956 = vmatpush3.bf16.msra.mxu0 %v8680_v28  ;;  %v8722_v28 = vld [vmem:[%s10820_s1 + $0x440] sm:$0xff]  }
  0x88   : >> { %7978 = vmatpush3.bf16.msra.mxu1 %v8681_v29  ;;  %7957 = vmatprep.subr.bf16.mxu0 %v8682_v30  ;;  %v8723_v29 = vld [vmem:[%s10820_s1 + $0x4c0] sm:$0xff]  }
  0x89   : >> { %7979 = vmatprep.subr.bf16.mxu1 %v8683_v31  ;;  %v8724_v30 = vld [vmem:[%s10820_s1 + $0x400] sm:$0xff]  }
  0x8a   : >> { %v8725_v31 = vld [vmem:[%s10820_s1 + $0x480] sm:$0xff]  }
  0x8b   : >> { %7958 = vmatpush3.bf16.msra.mxu0 %v8684_v32  ;;  %v6582_v32 = vld [vmem:[%s9298_s14 + $0x10] sm:$0x11] }
  0x8c   : >> { %7980 = vmatpush3.bf16.msra.mxu1 %v8685_v33  ;;  %7959 = vmatprep.subr.bf16.mxu0 %v8686_v34  ;;  %v6583_v33 = vld [vmem:[%s9298_s14 + $0x18] sm:$0x11]  ;;  %v6649_v34 = vcombine.high %v6582_v32, %v6582_v32  ;;  %v6648_v38 = vcombine.low %v6582_v32, %v6582_v32  ;;  %v8770_v32 = vld [vmem:[%s10820_s1 + $0x670] sm:$0xff]  }
  0x8d   : >> { %7981 = vmatprep.subr.bf16.mxu1 %v8687_v35  ;;  %v8730_v35 = vld [vmem:[%s10820_s1 + $0x578] sm:$0xff]   ;;  %v6650_v39 = vcombine.low %v6583_v33, %v6583_v33 }
  0x8f   : >> { %7960 = vmatpush3.bf16.msra.mxu0 %v8688_v36  ;;  %v6651_v36 = vcombine.high %v6583_v33, %v6583_v33  ;;  %v8771_v33 = vld [vmem:[%s10820_s1 + $0x6f0] sm:$0xff]  }
  0x90   : >> { %7982 = vmatpush3.bf16.msra.mxu1 %v8689_v37  ;;  %7989 = vmatprep.subr.bf16.mxu0 %v8694_v44  ;;  %v8731_v37 = vld [vmem:[%s10820_s1 + $0x5f8] sm:$0xff]   ;;  %v8736_v44 = vld [vmem:[%s10820_s1 + $0x530] sm:$0xff]  }
  0x91   : >> { %8011 = vmatprep.subr.bf16.mxu1 %v8695_v45  ;;  %v8737_v45 = vld [vmem:[%s10820_s1 + $0x5b0] sm:$0xff]  }
  0x92   : >> { %1620 = vmatmul.mubr.bf16.vlgmr.msra.gmra.mxu0 %v1366_v3  ;;  %v8759_v3 = vld [vmem:[%s10820_s1 + $0x5c0] sm:$0xff]  }
  0x93   : >> { %1660 = vmatmul.mubr.bf16.vlgmr.msra.gmra.mxu1 %v1382_v4  ;;  %7990 = vmatpush3.bf16.msra.mxu0 %v8696_v58  ;;  %v8750_v58 = vld [vmem:[%s10820_s1 + $0x550] sm:$0xff]   ;;  %v8760_v4 = vld [vmem:[%s10820_s1 + $0x500] sm:$0xff]  }
  0x94   : >> { %8012 = vmatpush3.bf16.msra.mxu1 %v8697_v59  ;;  %7991 = vmatprep.subr.bf16.mxu0 %v8698_v2  ;;  %v8751_v59 = vld [vmem:[%s10820_s1 + $0x5d0] sm:$0xff]   ;;  %v8758_v2 = vld [vmem:[%s10820_s1 + $0x540] sm:$0xff]  }
  0x95   : >> { %8013 = vmatprep.subr.bf16.mxu1 %v8699_v5  ;;  %1977 = vmatprep.mubr.bf16.mxu0 %v6649_v34  ;;  %v8761_v5 = vld [vmem:[%s10820_s1 + $0x580] sm:$0xff]   ;;  %v8772_v34 = vld [vmem:[%s10820_s1 + $0x630] sm:$0xff]  }
  0x96   : >> { %2017 = vmatprep.mubr.bf16.mxu1 %v6651_v36  ;;  %v8774_v36 = vld [vmem:[%s10820_s1 + $0x668] sm:$0xff]  }
  0x97   : >> { %7992 = vmatpush3.bf16.msra.mxu0 %v8700_v6  ;;  %v6684_v6 = vld [vmem:[%s9298_s14 + $0x10] sm:$0x33] }
  0x98   : >> { %8014 = vmatpush3.bf16.msra.mxu1 %v8701_v7  ;;  %7993 = vmatprep.subr.bf16.mxu0 %v8702_v8  ;;  %v6750_v7 = vcombine.low %v6684_v6, %v6684_v6  ;;  %v6751_v8 = vcombine.high %v6684_v6, %v6684_v6  ;;  %v8802_v6 = vld [vmem:[%s10820_s1 + $0x778] sm:$0xff]  }
  0x99   : >> { %8015 = vmatprep.subr.bf16.mxu1 %v8703_v9  ;;  %v6685_v9 = vld [vmem:[%s9298_s14 + $0x18] sm:$0x33] }
  0x9b   : >> { %7994 = vmatpush3.bf16.msra.mxu0 %v8704_v10  ;;  %v6752_v10 = vcombine.low %v6685_v9, %v6685_v9 }
  0x9c   : >> { %8016 = vmatpush3.bf16.msra.mxu1 %v8705_v11  ;;  %7995 = vmatprep.subr.bf16.mxu0 %v8706_v12  ;;  %v6753_v11 = vcombine.high %v6685_v9, %v6685_v9  ;;  %v8766_v12 = vld [vmem:[%s10820_s1 + $0x678] sm:$0xff]  }
  0x9d   : >> { %8017 = vmatprep.subr.bf16.mxu1 %v8707_v13  ;;  %v2111_v13 = vshrl.u32 %v6751_v8, 16 }
  0x9f   : >> { %7996 = vmatpush3.bf16.msra.mxu0 %v8708_v14  ;;  %v2113_v14 = vshll.u32 %v6751_v8, 16 }
  0xa0   : >> { %8018 = vmatpush3.bf16.msra.mxu1 %v8709_v15  ;;  %7997 = vmatprep.subr.bf16.mxu0 %v8710_v16  ;;  %v2104_v15 = vshrl.u32 %v6750_v7, 16  ;;  %v2106_v16 = vshll.u32 %v6750_v7, 16  ;;  %v8803_v7 = vld [vmem:[%s10820_s1 + $0x7f8] sm:$0xff]  }
  0xa1   : >> { %8019 = vmatprep.subr.bf16.mxu1 %v8711_v17  ;;  %v8767_v17 = vld [vmem:[%s10820_s1 + $0x6f8] sm:$0xff]  }
  0xa3   : >> { %7998 = vmatpush3.bf16.msra.mxu0 %v8712_v18  ;;  %v2125_v18 = vshrl.u32 %v6753_v11, 16 }
  0xa4   : >> { %8020 = vmatpush3.bf16.msra.mxu1 %v8713_v19  ;;  %7999 = vmatprep.subr.bf16.mxu0 %v8714_v20  ;;  %v2127_v19 = vshll.u32 %v6753_v11, 16  ;;  %v2118_v20 = vshrl.u32 %v6752_v10, 16  ;;  %v8804_v11 = vld [vmem:[%s10820_s1 + $0x738] sm:$0xff]  }
  0xa5   : >> { %8021 = vmatprep.subr.bf16.mxu1 %v8715_v21  ;;  %v2120_v21 = vshll.u32 %v6752_v10, 16 }
  0xa7   : >> { %8000 = vmatpush3.bf16.msra.mxu0 %v8716_v22  ;;  %v2115_v22 = vrot.slane %v2113_v14, 1 }
  0xa8   : >> { %8022 = vmatpush3.bf16.msra.mxu1 %v8717_v23  ;;  %8001 = vmatprep.subr.bf16.mxu0 %v8718_v24  ;;  %v2108_v23 = vrot.slane %v2106_v16, 1  ;;  %v2129_v24 = vrot.slane %v2127_v19, 1  ;;  %v8806_v19 = vld [vmem:[%s10820_s1 + $0x770] sm:$0xff]  }
  0xa9   : >> { %8023 = vmatprep.subr.bf16.mxu1 %v8719_v25  ;;  %v2122_v25 = vrot.slane %v2120_v21, 1 }
  0xab   : >> { %8002 = vmatpush3.bf16.msra.mxu0 %v8720_v26  ;;  %v8768_v26 = vld [vmem:[%s10820_s1 + $0x638] sm:$0xff]  }
  0xac   : >> { %8024 = vmatpush3.bf16.msra.mxu1 %v8721_v27  ;;  %8003 = vmatprep.subr.bf16.mxu0 %v8722_v28  ;;  %v8769_v27 = vld [vmem:[%s10820_s1 + $0x6b8] sm:$0xff]   ;;  %v2116_v28 = vor.u32 %v2115_v22, %v2111_v13 }
  0xad   : >> { %8025 = vmatprep.subr.bf16.mxu1 %v8723_v29  ;;  %v2109_v29 = vor.u32 %v2108_v23, %v2104_v15  ;;  %v8805_v15 = vld [vmem:[%s10820_s1 + $0x7b8] sm:$0xff]   ;;  %v8808_v23 = vld [vmem:[%s10820_s1 + $0x730] sm:$0xff]  }
  0xaf   : >> { %8004 = vmatpush3.bf16.msra.mxu0 %v8724_v30  ;;  %v2130_v30 = vor.u32 %v2129_v24, %v2125_v18  ;;  %v8809_v24 = vld [vmem:[%s10820_s1 + $0x7b0] sm:$0xff]  }
  0xb0   : >> { %8026 = vmatpush3.bf16.msra.mxu1 %v8725_v31  ;;  %8033 = vmatprep.subr.bf16.mxu0 %v8730_v35  ;;  %v2123_v31 = vor.u32 %v2122_v25, %v2118_v20  ;;  %v8773_v35 = vld [vmem:[%s10820_s1 + $0x6b0] sm:$0xff]   ;;  %v8810_v25 = vld [vmem:[%s10820_s1 + $0x768] sm:$0xff]  }
  0xb1   : >> { %8055 = vmatprep.subr.bf16.mxu1 %v8731_v37  ;;  %v8775_v37 = vld [vmem:[%s10820_s1 + $0x6e8] sm:$0xff]   ;;  %v8807_v20 = vld [vmem:[%s10820_s1 + $0x7f0] sm:$0xff]  }
  0xb2   : >> { %1978 = vmatmul.mubr.bf16.vlgmr.msra.gmra.mxu0 %v6648_v38  ;;  %v8776_v38 = vld [vmem:[%s10820_s1 + $0x628] sm:$0xff]  }
  0xb3   : >> { %2018 = vmatmul.mubr.bf16.vlgmr.msra.gmra.mxu1 %v6650_v39  ;;  %8034 = vmatpush3.bf16.msra.mxu0 %v8732_v40  ;;  %v8777_v39 = vld [vmem:[%s10820_s1 + $0x6a8] sm:$0xff]   ;;  %v8778_v40 = vld [vmem:[%s10820_s1 + $0x660] sm:$0xff]  }
  0xb4   : >> { %8056 = vmatpush3.bf16.msra.mxu1 %v8733_v41  ;;  %8035 = vmatprep.subr.bf16.mxu0 %v8734_v42  ;;  %v8779_v41 = vld [vmem:[%s10820_s1 + $0x6e0] sm:$0xff]  }
  0xb5   : >> { %8057 = vmatprep.subr.bf16.mxu1 %v8735_v43  ;;  %2359 = vmatprep.mubr.bf16.mxu0 %v2116_v28  ;;  %v8780_v42 = vld [vmem:[%s10820_s1 + $0x620] sm:$0xff]   ;;  %v8813_v28 = vld [vmem:[%s10820_s1 + $0x7a8] sm:$0xff]  }
  0xb6   : >> { %2399 = vmatprep.mubr.bf16.mxu1 %v2130_v30  ;;  %v8781_v43 = vld [vmem:[%s10820_s1 + $0x6a0] sm:$0xff]  }
  0xb7   : >> { %8036 = vmatpush3.bf16.msra.mxu0 %v8736_v44  ;;  %v8782_v44 = vld [vmem:[%s10820_s1 + $0x658] sm:$0xff]   ;;  %v8815_v30 = vld [vmem:[%s10820_s1 + $0x7e0] sm:$0xff]  }
  0xb8   : >> { %8058 = vmatpush3.bf16.msra.mxu1 %v8737_v45  ;;  %8037 = vmatprep.subr.bf16.mxu0 %v8738_v46  ;;  %v8783_v45 = vld [vmem:[%s10820_s1 + $0x6d8] sm:$0xff]  }
  0xb9   : >> { %8059 = vmatprep.subr.bf16.mxu1 %v8739_v47  ;;  %v8784_v46 = vld [vmem:[%s10820_s1 + $0x618] sm:$0xff]  }
  0xba   : >> { %v8785_v47 = vld [vmem:[%s10820_s1 + $0x698] sm:$0xff]  }
  0xbb   : >> { %8038 = vmatpush3.bf16.msra.mxu0 %v8740_v48  ;;  %v8786_v48 = vld [vmem:[%s10820_s1 + $0x650] sm:$0xff]  }
  0xbc   : >> { %8060 = vmatpush3.bf16.msra.mxu1 %v8741_v49  ;;  %8039 = vmatprep.subr.bf16.mxu0 %v8742_v50  ;;  %v8787_v49 = vld [vmem:[%s10820_s1 + $0x6d0] sm:$0xff]  }
  0xbd   : >> { %8061 = vmatprep.subr.bf16.mxu1 %v8743_v51  ;;  %v8788_v50 = vld [vmem:[%s10820_s1 + $0x610] sm:$0xff]  }
  0xbe   : >> { %v8789_v51 = vld [vmem:[%s10820_s1 + $0x690] sm:$0xff]  }
  0xbf   : >> { %8040 = vmatpush3.bf16.msra.mxu0 %v8744_v52  ;;  %v8790_v52 = vld [vmem:[%s10820_s1 + $0x648] sm:$0xff]  }
  0xc0   : >> { %8062 = vmatpush3.bf16.msra.mxu1 %v8745_v53  ;;  %8041 = vmatprep.subr.bf16.mxu0 %v8746_v54  ;;  %v8791_v53 = vld [vmem:[%s10820_s1 + $0x6c8] sm:$0xff]  }
  0xc1   : >> { %8063 = vmatprep.subr.bf16.mxu1 %v8747_v55  ;;  %v8792_v54 = vld [vmem:[%s10820_s1 + $0x608] sm:$0xff]  }
  0xc2   : >> { %v8793_v55 = vld [vmem:[%s10820_s1 + $0x688] sm:$0xff]  }
  0xc3   : >> { %8042 = vmatpush3.bf16.msra.mxu0 %v8748_v56  ;;  %v8794_v56 = vld [vmem:[%s10820_s1 + $0x640] sm:$0xff]  }
  0xc4   : >> { %8064 = vmatpush3.bf16.msra.mxu1 %v8749_v57  ;;  %8043 = vmatprep.subr.bf16.mxu0 %v8750_v58  ;;  %v8795_v57 = vld [vmem:[%s10820_s1 + $0x6c0] sm:$0xff]  }
  0xc5   : >> { %8065 = vmatprep.subr.bf16.mxu1 %v8751_v59  ;;  %v8796_v58 = vld [vmem:[%s10820_s1 + $0x600] sm:$0xff]   ;;  %v6786_v59 = vld [vmem:[%s9298_s14 + $0x10] sm:$0x22] }
  0xc7   : >> { %8044 = vmatpush3.bf16.msra.mxu0 %v8752_v60  ;;  %v6852_v60 = vcombine.low %v6786_v59, %v6786_v59 }
  0xc8   : >> { %8066 = vmatpush3.bf16.msra.mxu1 %v8753_v61  ;;  %8045 = vmatprep.subr.bf16.mxu0 %v8754_v62  ;;  %v6853_v61 = vcombine.high %v6786_v59, %v6786_v59  ;;  %v6787_v62 = vld [vmem:[%s9298_s14 + $0x18] sm:$0x22] }
  0xc9   : >> { %8067 = vmatprep.subr.bf16.mxu1 %v8755_v63 }
  0xcb   : >> { %8046 = vmatpush3.bf16.msra.mxu0 %v8756_v0 }
  0xcc   : >> { %8068 = vmatpush3.bf16.msra.mxu1 %v8757_v1  ;;  %8047 = vmatprep.subr.bf16.mxu0 %v8758_v2  ;;  %v8797_v1 = vld [vmem:[%s10820_s1 + $0x680] sm:$0xff]   ;;  %v6854_v2 = vcombine.low %v6787_v62, %v6787_v62 }
  0xcd   : >> { %8069 = vmatprep.subr.bf16.mxu1 %v8759_v3  ;;  %v6855_v3 = vcombine.high %v6787_v62, %v6787_v62 }
  0xce   : >> { %v2487_v14 = vrot.slane %v6854_v2, 1 }
  0xcf   : >> { %8048 = vmatpush3.bf16.msra.mxu0 %v8760_v4  ;;  %v2485_v4 = vrot.slane %v6852_v60, 1  ;;  %v2488_v10 = vrot.slane %v6855_v3, 1 }
  0xd0   : >> { %8070 = vmatpush3.bf16.msra.mxu1 %v8761_v5  ;;  %8077 = vmatprep.subr.bf16.mxu0 %v8766_v12  ;;  %v2486_v5 = vrot.slane %v6853_v61, 1 }
  0xd1   : >> { %8099 = vmatprep.subr.bf16.mxu1 %v8767_v17 }
  0xd2   : >> { %2360 = vmatmul.mubr.bf16.vlgmr.msra.gmra.mxu0 %v2109_v29  ;;  %v8814_v29 = vld [vmem:[%s10820_s1 + $0x760] sm:$0xff]  }
  0xd3   : >> { %2400 = vmatmul.mubr.bf16.vlgmr.msra.gmra.mxu1 %v2123_v31  ;;  %8078 = vmatpush3.bf16.msra.mxu0 %v8768_v26  ;;  %v8811_v26 = vld [vmem:[%s10820_s1 + $0x7e8] sm:$0xff]   ;;  %v8816_v31 = vld [vmem:[%s10820_s1 + $0x720] sm:$0xff]  }
  0xd4   : >> { %8100 = vmatpush3.bf16.msra.mxu1 %v8769_v27  ;;  %8079 = vmatprep.subr.bf16.mxu0 %v8770_v32  ;;  %v8812_v27 = vld [vmem:[%s10820_s1 + $0x728] sm:$0xff]   ;;  %v8817_v32 = vld [vmem:[%s10820_s1 + $0x7a0] sm:$0xff]  }
  0xd5   : >> { %8101 = vmatprep.subr.bf16.mxu1 %v8771_v33  ;;  %2717 = vmatprep.mubr.bf16.mxu0 %v2486_v5  ;;  %v8818_v33 = vld [vmem:[%s10820_s1 + $0x758] sm:$0xff]  }
  0xd6   : >> { %2757 = vmatprep.mubr.bf16.mxu1 %v2488_v10 }
  0xd7   : >> { %8080 = vmatpush3.bf16.msra.mxu0 %v8772_v34  ;;  %v8819_v34 = vld [vmem:[%s10820_s1 + $0x7d8] sm:$0xff]  }
  0xd8   : >> { %8102 = vmatpush3.bf16.msra.mxu1 %v8773_v35  ;;  %8081 = vmatprep.subr.bf16.mxu0 %v8774_v36  ;;  %v8820_v35 = vld [vmem:[%s10820_s1 + $0x718] sm:$0xff]  }
  0xd9   : >> { %8103 = vmatprep.subr.bf16.mxu1 %v8775_v37  ;;  %v8821_v36 = vld [vmem:[%s10820_s1 + $0x798] sm:$0xff]   ;;  %v8822_v37 = vld [vmem:[%s10820_s1 + $0x750] sm:$0xff]  }
  0xdb   : >> { %8082 = vmatpush3.bf16.msra.mxu0 %v8776_v38  ;;  %v8823_v38 = vld [vmem:[%s10820_s1 + $0x7d0] sm:$0xff]  }
  0xdc   : >> { %8104 = vmatpush3.bf16.msra.mxu1 %v8777_v39  ;;  %8083 = vmatprep.subr.bf16.mxu0 %v8778_v40  ;;  %v8824_v39 = vld [vmem:[%s10820_s1 + $0x710] sm:$0xff]  }
  0xdd   : >> { %8105 = vmatprep.subr.bf16.mxu1 %v8779_v41  ;;  %v8825_v40 = vld [vmem:[%s10820_s1 + $0x790] sm:$0xff]   ;;  %v8826_v41 = vld [vmem:[%s10820_s1 + $0x748] sm:$0xff]  }
  0xdf   : >> { %8084 = vmatpush3.bf16.msra.mxu0 %v8780_v42  ;;  %v8827_v42 = vld [vmem:[%s10820_s1 + $0x7c8] sm:$0xff]  }
  0xe0   : >> { %8106 = vmatpush3.bf16.msra.mxu1 %v8781_v43  ;;  %8085 = vmatprep.subr.bf16.mxu0 %v8782_v44  ;;  %v8828_v43 = vld [vmem:[%s10820_s1 + $0x708] sm:$0xff]  }
  0xe1   : >> { %8107 = vmatprep.subr.bf16.mxu1 %v8783_v45  ;;  %v8829_v44 = vld [vmem:[%s10820_s1 + $0x788] sm:$0xff]   ;;  %v8830_v45 = vld [vmem:[%s10820_s1 + $0x740] sm:$0xff]  }
  0xe3   : >> { %8086 = vmatpush3.bf16.msra.mxu0 %v8784_v46  ;;  %v8831_v46 = vld [vmem:[%s10820_s1 + $0x7c0] sm:$0xff]  }
  0xe4   : >> { %8108 = vmatpush3.bf16.msra.mxu1 %v8785_v47  ;;  %8087 = vmatprep.subr.bf16.mxu0 %v8786_v48  ;;  %v8832_v47 = vld [vmem:[%s10820_s1 + $0x700] sm:$0xff]  }
  0xe5   : >> { %8109 = vmatprep.subr.bf16.mxu1 %v8787_v49  ;;  %v8833_v48 = vld [vmem:[%s10820_s1 + $0x780] sm:$0xff]   ;;  %v6888_v49 = vld [vmem:[%s9298_s14 + $0x10] sm:$0x66] }
  0xe7   : >> { %8088 = vmatpush3.bf16.msra.mxu0 %v8788_v50 }
  0xe8   : >> { %8110 = vmatpush3.bf16.msra.mxu1 %v8789_v51  ;;  %8089 = vmatprep.subr.bf16.mxu0 %v8790_v52  ;;  %v6954_v52 = vcombine.low %v6888_v49, %v6888_v49 }
  0xe9   : >> { %8111 = vmatprep.subr.bf16.mxu1 %v8791_v53  ;;  %v6955_v53 = vcombine.high %v6888_v49, %v6888_v49  ;;  %v8864_v49 = vld [vmem:[%s10820_s1 + $0x808] sm:$0xff]  }
  0xea   : >> { %v2844_v62 = vshrl.u32 %v6954_v52, 16 }
  0xeb   : >> { %8090 = vmatpush3.bf16.msra.mxu0 %v8792_v54  ;;  %v6889_v54 = vld [vmem:[%s9298_s14 + $0x18] sm:$0x66]  ;;  %v2852_v60 = vshrl.u32 %v6955_v53, 16  ;;  %v2855_v61 = vshll.u32 %v6955_v53, 16 }
  0xec   : >> { %8112 = vmatpush3.bf16.msra.mxu1 %v8793_v55  ;;  %8091 = vmatprep.subr.bf16.mxu0 %v8794_v56  ;;  %v6956_v55 = vcombine.low %v6889_v54, %v6889_v54  ;;  %v6957_v56 = vcombine.high %v6889_v54, %v6889_v54  ;;  %v8867_v54 = vld [vmem:[%s10820_s1 + $0x8c0] sm:$0xff]  }
  0xed   : >> { %8113 = vmatprep.subr.bf16.mxu1 %v8795_v57  ;;  %v8838_v57 = vld [vmem:[%s10820_s1 + $0x878] sm:$0xff]  }
  0xee   : >> { %v2871_v2 = vshll.u32 %v6957_v56, 16  ;;  %v2860_v3 = vshrl.u32 %v6956_v55, 16 }
  0xef   : >> { %8092 = vmatpush3.bf16.msra.mxu0 %v8796_v58 }
  0xf0   : >> { %8114 = vmatpush3.bf16.msra.mxu1 %v8797_v1  ;;  %8121 = vmatprep.subr.bf16.mxu0 %v8802_v6  ;;  %v2868_v1 = vshrl.u32 %v6957_v56, 16 }
  0xf1   : >> { %8143 = vmatprep.subr.bf16.mxu1 %v8803_v7  ;;  %v2854_v7 = vrot.slane %v2852_v60, 1 }
  0xf2   : >> { %v7829_v63 = vpop.f32.mrf.mxu0  ;;  %2718 = vmatmul.mubr.bf16.vlgmr.msra.gmra.mxu0 %v2485_v4  ;;  %v2863_v4 = vshll.u32 %v6956_v55, 16  ;;  %v8868_v55 = vld [vmem:[%s10820_s1 + $0x800] sm:$0xff]  }
  0xf3   : >> { %v7851_v0 = vpop.f32.mrf.mxu1  ;;  %2758 = vmatmul.mubr.bf16.vlgmr.msra.gmra.mxu1 %v2487_v14  ;;  %8122 = vmatpush3.bf16.msra.mxu0 %v8804_v11  ;;  %v8840_v11 = vld [vmem:[%s10820_s1 + $0x838] sm:$0xff]   ;;  %v2862_v14 = vrot.slane %v2860_v3, 1 }
  0xf4   : >> { %v7830_v8 = vpop.f32.mrf.mxu0  ;;  %8144 = vmatpush3.bf16.msra.mxu1 %v8805_v15  ;;  %8123 = vmatprep.subr.bf16.mxu0 %v8806_v19  ;;  %v2865_v15 = vrot.slane %v2863_v4, 2  ;;  %v8874_v3 = vld [vmem:[%s10820_s1 + $0x978] sm:$0xff]  }
  0xf5   : >> { %v7852_v9 = vpop.f32.mrf.mxu1  ;;  %v7831_v12 = vadd.f32 %v7830_v8, %v7829_v63  ;;  %8145 = vmatprep.subr.bf16.mxu1 %v8807_v20  ;;  %v2847_v63 = vshll.u32 %v6954_v52, 16  ;;  %v2857_v8 = vrot.slane %v2855_v61, 2 }
  0xf6   : >> { %v7853_v13 = vadd.f32 %v7852_v9, %v7851_v0  ;;  %v7832_v16 = vpop.f32.mrf.mxu0  ;;  %v8839_v0 = vld [vmem:[%s10820_s1 + $0x8f8] sm:$0xff]   ;;  %v2846_v9 = vrot.slane %v2844_v62, 1 }
  0xf7   : >> { %v7854_v17 = vpop.f32.mrf.mxu1  ;;  %8124 = vmatpush3.bf16.msra.mxu0 %v8808_v23  ;;  %v2849_v10 = vrot.slane %v2847_v63, 2  ;;  %v2858_v19 = vor.u32 %v2857_v8, %v2854_v7  ;;  %v6992_v63 = vld [vmem:[%s9298_s14 + $0x28] sm:$0x11] }
  0xf8   : >> { %v9908_v18 = vadd.f32 %v7853_v13, %v7831_v12  ;;  %v7833_v21 = vpop.f32.mrf.mxu0  ;;  %8146 = vmatpush3.bf16.msra.mxu1 %v8809_v24  ;;  %8125 = vmatprep.subr.bf16.mxu0 %v8810_v25  ;;  %v2870_v12 = vrot.slane %v2868_v1, 1  ;;  %v2873_v13 = vrot.slane %v2871_v2, 2  ;;  %v2866_v25 = vor.u32 %v2865_v15, %v2862_v14  ;;  %v8879_v14 = vld [vmem:[%s10820_s1 + $0x9f0] sm:$0xff]  }
  0xf9   : >> { %v7855_v22 = vpop.f32.mrf.mxu1  ;;  %8147 = vmatprep.subr.bf16.mxu1 %v8811_v26  ;;  %v2850_v20 = vor.u32 %v2849_v10, %v2846_v9  ;;  %v8841_v21 = vld [vmem:[%s10820_s1 + $0x8b8] sm:$0xff]   ;;  %v8842_v26 = vld [vmem:[%s10820_s1 + $0x870] sm:$0xff]   ;;  %3103 = vmatprep.mubr.bf16.mxu0 %v2858_v19  ;;  %v7060_v2 = vcombine.high %v6992_v63, %v6992_v63  ;;  %v7059_v9 = vcombine.low %v6992_v63, %v6992_v63  ;;  %v8883_v19 = vld [vmem:[%s10820_s1 + $0x9e8] sm:$0xff]  }
  0xfa   : >> { %v2874_v24 = vor.u32 %v2873_v13, %v2870_v12  ;;  %v8876_v10 = vld [vmem:[%s10820_s1 + $0x938] sm:$0xff]   ;;  %v8878_v13 = vld [vmem:[%s10820_s1 + $0x970] sm:$0xff]  }
  0xfb   : >> { %8126 = vmatpush3.bf16.msra.mxu0 %v8812_v27  ;;  %v8877_v12 = vld [vmem:[%s10820_s1 + $0x9b8] sm:$0xff]   ;;  %v8880_v15 = vld [vmem:[%s10820_s1 + $0x930] sm:$0xff]  }
  0xfc   : >> { %8148 = vmatpush3.bf16.msra.mxu1 %v8813_v28  ;;  %8127 = vmatprep.subr.bf16.mxu0 %v8814_v29  ;;  %v8843_v28 = vld [vmem:[%s10820_s1 + $0x8f0] sm:$0xff]  }
  0xfd   : >> { %8149 = vmatprep.subr.bf16.mxu1 %v8815_v30  ;;  %3143 = vmatprep.mubr.bf16.mxu1 %v2874_v24  ;;  %v8844_v29 = vld [vmem:[%s10820_s1 + $0x830] sm:$0xff]   ;;  %v8888_v24 = vld [vmem:[%s10820_s1 + $0x920] sm:$0xff]  }
  0xff   : >> { %8128 = vmatpush3.bf16.msra.mxu0 %v8816_v31  ;;  %v8845_v31 = vld [vmem:[%s10820_s1 + $0x8b0] sm:$0xff]  }
 0x100   : >> { %8150 = vmatpush3.bf16.msra.mxu1 %v8817_v32  ;;  %8129 = vmatprep.subr.bf16.mxu0 %v8818_v33  ;;  %v8847_v32 = vld [vmem:[%s10820_s1 + $0x8e8] sm:$0xff]  }
 0x101   : >> { %8151 = vmatprep.subr.bf16.mxu1 %v8819_v34  ;;  %v8848_v33 = vld [vmem:[%s10820_s1 + $0x828] sm:$0xff]  }
 0x102   : >> { %v8849_v34 = vld [vmem:[%s10820_s1 + $0x8a8] sm:$0xff]  }
 0x103   : >> { %8130 = vmatpush3.bf16.msra.mxu0 %v8820_v35  ;;  %v8850_v35 = vld [vmem:[%s10820_s1 + $0x860] sm:$0xff]  }
 0x104   : >> { %8152 = vmatpush3.bf16.msra.mxu1 %v8821_v36  ;;  %8131 = vmatprep.subr.bf16.mxu0 %v8822_v37  ;;  %v8851_v36 = vld [vmem:[%s10820_s1 + $0x8e0] sm:$0xff]  }
 0x105   : >> { %8153 = vmatprep.subr.bf16.mxu1 %v8823_v38  ;;  %v8852_v37 = vld [vmem:[%s10820_s1 + $0x820] sm:$0xff]  }
 0x106   : >> { %v8853_v38 = vld [vmem:[%s10820_s1 + $0x8a0] sm:$0xff]  }
 0x107   : >> { %8132 = vmatpush3.bf16.msra.mxu0 %v8824_v39  ;;  %v8854_v39 = vld [vmem:[%s10820_s1 + $0x858] sm:$0xff]  }
 0x108   : >> { %8154 = vmatpush3.bf16.msra.mxu1 %v8825_v40  ;;  %8133 = vmatprep.subr.bf16.mxu0 %v8826_v41  ;;  %v8855_v40 = vld [vmem:[%s10820_s1 + $0x8d8] sm:$0xff]  }
 0x109   : >> { %8155 = vmatprep.subr.bf16.mxu1 %v8827_v42  ;;  %v8856_v41 = vld [vmem:[%s10820_s1 + $0x818] sm:$0xff]  }
 0x10a   : >> { %v8857_v42 = vld [vmem:[%s10820_s1 + $0x898] sm:$0xff]  }
 0x10b   : >> { %8134 = vmatpush3.bf16.msra.mxu0 %v8828_v43  ;;  %v8858_v43 = vld [vmem:[%s10820_s1 + $0x850] sm:$0xff]  }
 0x10c   : >> { %8156 = vmatpush3.bf16.msra.mxu1 %v8829_v44  ;;  %8135 = vmatprep.subr.bf16.mxu0 %v8830_v45  ;;  %v8859_v44 = vld [vmem:[%s10820_s1 + $0x8d0] sm:$0xff]  }
 0x10d   : >> { %8157 = vmatprep.subr.bf16.mxu1 %v8831_v46  ;;  %v8860_v45 = vld [vmem:[%s10820_s1 + $0x810] sm:$0xff]  }
 0x10e   : >> { %v8861_v46 = vld [vmem:[%s10820_s1 + $0x890] sm:$0xff]  }
 0x10f   : >> { %8136 = vmatpush3.bf16.msra.mxu0 %v8832_v47  ;;  %v8862_v47 = vld [vmem:[%s10820_s1 + $0x848] sm:$0xff]  }
 0x110   : >> { %8158 = vmatpush3.bf16.msra.mxu1 %v8833_v48  ;;  %8165 = vmatprep.subr.bf16.mxu0 %v8838_v57  ;;  %v8863_v48 = vld [vmem:[%s10820_s1 + $0x8c8] sm:$0xff]  }
 0x111   : >> { %8187 = vmatprep.subr.bf16.mxu1 %v8839_v0 }
 0x112   : >> { %v7873_v50 = vpop.f32.mrf.mxu0  ;;  %3104 = vmatmul.mubr.bf16.vlgmr.msra.gmra.mxu0 %v2850_v20  ;;  %v8884_v20 = vld [vmem:[%s10820_s1 + $0x928] sm:$0xff]  }
 0x113   : >> { %v7895_v51 = vpop.f32.mrf.mxu1  ;;  %3144 = vmatmul.mubr.bf16.vlgmr.msra.gmra.mxu1 %v2866_v25  ;;  %8166 = vmatpush3.bf16.msra.mxu0 %v8840_v11  ;;  %v8889_v25 = vld [vmem:[%s10820_s1 + $0x9a0] sm:$0xff]  }
 0x114   : >> { %v7874_v58 = vpop.f32.mrf.mxu0  ;;  %8188 = vmatpush3.bf16.msra.mxu1 %v8841_v21  ;;  %8167 = vmatprep.subr.bf16.mxu0 %v8842_v26  ;;  %v8885_v21 = vld [vmem:[%s10820_s1 + $0x9a8] sm:$0xff]   ;;  %v8890_v26 = vld [vmem:[%s10820_s1 + $0x958] sm:$0xff]  }
 0x115   : >> { %v7896_v59 = vpop.f32.mrf.mxu1  ;;  %v7875_v22 = vadd.f32 %v7874_v58, %v7873_v50  ;;  %8189 = vmatprep.subr.bf16.mxu1 %v8843_v28  ;;  %v8865_v50 = vld [vmem:[%s10820_s1 + $0x888] sm:$0xff]   ;;  %v8869_v58 = vld [vmem:[%s10820_s1 + $0x880] sm:$0xff]   ;;  %3501 = vmatprep.mubr.bf16.mxu1 %v7060_v2  ;;  %v8892_v28 = vld [vmem:[%s10820_s1 + $0x918] sm:$0xff]  }
 0x116   : >> { %v7876_v5 = vpop.f32.mrf.mxu0  ;;  %v7897_v23 = vadd.f32 %v7896_v59, %v7895_v51  ;;  %v8866_v51 = vld [vmem:[%s10820_s1 + $0x840] sm:$0xff]   ;;  %v8913_v2 = vld [vmem:[%s10820_s1 + $0xab8] sm:$0xff]  }
 0x117   : >> { %v7898_v6 = vpop.f32.mrf.mxu1  ;;  %v879_v27 = vadd.f32 %v7875_v22, %v9908_v18  ;;  %v8846_v18 = vld [vmem:[%s10820_s1 + $0x868] sm:$0xff]   ;;  %8168 = vmatpush3.bf16.msra.mxu0 %v8844_v29  ;;  %v6991_v59 = vld [vmem:[%s9298_s14 + $0x20] sm:$0x11]  ;;  %v8893_v29 = vld [vmem:[%s10820_s1 + $0x998] sm:$0xff]  }
 0x118   : >> { %v7877_v16 = vpop.f32.mrf.mxu0  ;;  %8190 = vmatpush3.bf16.msra.mxu1 %v8845_v31  ;;  %8169 = vmatprep.subr.bf16.mxu0 %v8846_v18  ;;  %v7058_v62 = vcombine.high %v6991_v59, %v6991_v59  ;;  %v7057_v5 = vcombine.low %v6991_v59, %v6991_v59  ;;  %v8875_v6 = vld [vmem:[%s10820_s1 + $0x9f8] sm:$0xff]   ;;  %v8886_v22 = vld [vmem:[%s10820_s1 + $0x960] sm:$0xff]   ;;  %v8895_v31 = vld [vmem:[%s10820_s1 + $0x9d0] sm:$0xff]  }
 0x119   : >> { %v7899_v17 = vpop.f32.mrf.mxu1  ;;  %v10018_v30 = vadd.f32 %v7897_v23, %v879_v27  ;;  %8191 = vmatprep.subr.bf16.mxu1 %v8847_v32  ;;  %v8881_v16 = vld [vmem:[%s10820_s1 + $0x9b0] sm:$0xff]   ;;  %v8887_v23 = vld [vmem:[%s10820_s1 + $0x9e0] sm:$0xff]   ;;  %v8891_v27 = vld [vmem:[%s10820_s1 + $0x9d8] sm:$0xff]  }
 0x11a   : >> { %3461 = vmatprep.mubr.bf16.mxu0 %v7058_v62  ;;  %v8882_v17 = vld [vmem:[%s10820_s1 + $0x968] sm:$0xff]   ;;  %v8896_v18 = vld [vmem:[%s10820_s1 + $0x910] sm:$0xff]  }
 0x11b   : >> { %8170 = vmatpush3.bf16.msra.mxu0 %v8848_v33  ;;  %v8897_v32 = vld [vmem:[%s10820_s1 + $0x990] sm:$0xff]   ;;  %v8898_v33 = vld [vmem:[%s10820_s1 + $0x948] sm:$0xff]  }
 0x11c   : >> { %8192 = vmatpush3.bf16.msra.mxu1 %v8849_v34  ;;  %8171 = vmatprep.subr.bf16.mxu0 %v8850_v35  ;;  %v8899_v34 = vld [vmem:[%s10820_s1 + $0x9c8] sm:$0xff]  }
 0x11d   : >> { %8193 = vmatprep.subr.bf16.mxu1 %v8851_v36  ;;  %v8900_v35 = vld [vmem:[%s10820_s1 + $0x908] sm:$0xff]  }
 0x11e   : >> { %v8901_v36 = vld [vmem:[%s10820_s1 + $0x988] sm:$0xff]  }
 0x11f   : >> { %8172 = vmatpush3.bf16.msra.mxu0 %v8852_v37  ;;  %v8902_v37 = vld [vmem:[%s10820_s1 + $0x940] sm:$0xff]  }
 0x120   : >> { %8194 = vmatpush3.bf16.msra.mxu1 %v8853_v38  ;;  %8173 = vmatprep.subr.bf16.mxu0 %v8854_v39  ;;  %v8903_v38 = vld [vmem:[%s10820_s1 + $0x9c0] sm:$0xff]  }
 0x121   : >> { %8195 = vmatprep.subr.bf16.mxu1 %v8855_v40  ;;  %v8904_v39 = vld [vmem:[%s10820_s1 + $0x900] sm:$0xff]  }
 0x122   : >> { %v8905_v40 = vld [vmem:[%s10820_s1 + $0x980] sm:$0xff]  }
 0x123   : >> { %8174 = vmatpush3.bf16.msra.mxu0 %v8856_v41  ;;  %v7093_v41 = vld [vmem:[%s9298_s14 + $0x20] sm:$0x33] }
 0x124   : >> { %8196 = vmatpush3.bf16.msra.mxu1 %v8857_v42  ;;  %8175 = vmatprep.subr.bf16.mxu0 %v8858_v43  ;;  %v7094_v42 = vld [vmem:[%s9298_s14 + $0x28] sm:$0x33] }
 0x125   : >> { %8197 = vmatprep.subr.bf16.mxu1 %v8859_v44 }
 0x127   : >> { %8176 = vmatpush3.bf16.msra.mxu0 %v8860_v45  ;;  %v7159_v45 = vcombine.low %v7093_v41, %v7093_v41 }
 0x128   : >> { %8198 = vmatpush3.bf16.msra.mxu1 %v8861_v46  ;;  %8177 = vmatprep.subr.bf16.mxu0 %v8862_v47  ;;  %v7160_v46 = vcombine.high %v7093_v41, %v7093_v41  ;;  %v7161_v47 = vcombine.low %v7094_v42, %v7094_v42 }
 0x129   : >> { %8199 = vmatprep.subr.bf16.mxu1 %v8863_v48  ;;  %v7162_v48 = vcombine.high %v7094_v42, %v7094_v42 }
 0x12a   : >> { %v3602_v59 = vshrl.u32 %v7161_v47, 16 }
 0x12b   : >> { %8178 = vmatpush3.bf16.msra.mxu0 %v8864_v49  ;;  %v8910_v49 = vld [vmem:[%s10820_s1 + $0xa78] sm:$0xff]  }
 0x12c   : >> { %8200 = vmatpush3.bf16.msra.mxu1 %v8865_v50  ;;  %8179 = vmatprep.subr.bf16.mxu0 %v8866_v51  ;;  %v8911_v50 = vld [vmem:[%s10820_s1 + $0xaf8] sm:$0xff]  }
 0x12d   : >> { %8201 = vmatprep.subr.bf16.mxu1 %v8867_v54  ;;  %v3597_v54 = vshll.u32 %v7160_v46, 16 }
 0x12f   : >> { %8180 = vmatpush3.bf16.msra.mxu0 %v8868_v55  ;;  %v3609_v55 = vshrl.u32 %v7162_v48, 16  ;;  %v3599_v63 = vrot.slane %v3597_v54, 1  ;;  %v8946_v54 = vld [vmem:[%s10820_s1 + $0xb78] sm:$0xff]  }
 0x130   : >> { %8202 = vmatpush3.bf16.msra.mxu1 %v8869_v58  ;;  %8209 = vmatprep.subr.bf16.mxu0 %v8874_v3  ;;  %v3590_v58 = vshll.u32 %v7159_v45, 16 }
 0x131   : >> { %8231 = vmatprep.subr.bf16.mxu1 %v8875_v6 }
 0x132   : >> { %v7917_v52 = vpop.f32.mrf.mxu0  ;;  %3462 = vmatmul.mubr.bf16.vlgmr.msra.gmra.mxu0 %v7057_v5  ;;  %v3592_v5 = vrot.slane %v3590_v58, 1 }
 0x133   : >> { %v7939_v53 = vpop.f32.mrf.mxu1  ;;  %3502 = vmatmul.mubr.bf16.vlgmr.msra.gmra.mxu1 %v7059_v9  ;;  %8210 = vmatpush3.bf16.msra.mxu0 %v8876_v10 }
 0x134   : >> { %v7918_v56 = vpop.f32.mrf.mxu0  ;;  %8232 = vmatpush3.bf16.msra.mxu1 %v8877_v12  ;;  %8211 = vmatprep.subr.bf16.mxu0 %v8878_v13  ;;  %v8914_v13 = vld [vmem:[%s10820_s1 + $0xa70] sm:$0xff]  }
 0x135   : >> { %v7940_v57 = vpop.f32.mrf.mxu1  ;;  %v7919_v60 = vadd.f32 %v7918_v56, %v7917_v52  ;;  %8233 = vmatprep.subr.bf16.mxu1 %v8879_v14  ;;  %v3611_v56 = vshll.u32 %v7162_v48, 16 }
 0x136   : >> { %v7941_v61 = vadd.f32 %v7940_v57, %v7939_v53  ;;  %v7920_v0 = vpop.f32.mrf.mxu0  ;;  %v3595_v53 = vshrl.u32 %v7160_v46, 16  ;;  %v3588_v57 = vshrl.u32 %v7159_v45, 16  ;;  %v7195_v45 = vld [vmem:[%s9298_s14 + $0x20] sm:$0x22] }
 0x137   : >> { %v7942_v1 = vpop.f32.mrf.mxu1  ;;  %8212 = vmatpush3.bf16.msra.mxu0 %v8880_v15  ;;  %v3613_v0 = vrot.slane %v3611_v56, 1  ;;  %v7261_v48 = vcombine.low %v7195_v45, %v7195_v45 }
 0x138   : >> { %v1276_v4 = vadd.f32 %v7941_v61, %v7919_v60  ;;  %v7921_v7 = vpop.f32.mrf.mxu0  ;;  %8234 = vmatpush3.bf16.msra.mxu1 %v8881_v16  ;;  %8213 = vmatprep.subr.bf16.mxu0 %v8882_v17  ;;  %v3604_v60 = vshll.u32 %v7161_v47, 16  ;;  %v8912_v1 = vld [vmem:[%s10820_s1 + $0xa38] sm:$0xff]   ;;  %v3600_v9 = vor.u32 %v3599_v63, %v3595_v53  ;;  %v3593_v14 = vor.u32 %v3592_v5, %v3588_v57  ;;  %v8915_v16 = vld [vmem:[%s10820_s1 + $0xaf0] sm:$0xff]  }
 0x139   : >> { %v7943_v8 = vpop.f32.mrf.mxu1  ;;  %8235 = vmatprep.subr.bf16.mxu1 %v8883_v19  ;;  %v3614_v10 = vor.u32 %v3613_v0, %v3609_v55  ;;  %v8916_v19 = vld [vmem:[%s10820_s1 + $0xa30] sm:$0xff]   ;;  %v3969_v58 = vrot.slane %v7261_v48, 1 }
 0x13a   : >> { %v10107_v11 = vadd.f32 %v1276_v4, %v10018_v30  ;;  %v8894_v30 = vld [vmem:[%s10820_s1 + $0x950] sm:$0xff]   ;;  %v3606_v6 = vrot.slane %v3604_v60, 1  ;;  %3843 = vmatprep.mubr.bf16.mxu0 %v3600_v9  ;;  %v8947_v60 = vld [vmem:[%s10820_s1 + $0xbf8] sm:$0xff]   ;;  %v8954_v9 = vld [vmem:[%s10820_s1 + $0xb68] sm:$0xff]  }
 0x13b   : >> { %8214 = vmatpush3.bf16.msra.mxu0 %v8884_v20  ;;  %3883 = vmatprep.mubr.bf16.mxu1 %v3614_v10  ;;  %v8917_v20 = vld [vmem:[%s10820_s1 + $0xab0] sm:$0xff]   ;;  %v8955_v10 = vld [vmem:[%s10820_s1 + $0xbe8] sm:$0xff]  }
 0x13c   : >> { %8236 = vmatpush3.bf16.msra.mxu1 %v8885_v21  ;;  %8215 = vmatprep.subr.bf16.mxu0 %v8886_v22  ;;  %v3607_v15 = vor.u32 %v3606_v6, %v3602_v59  ;;  %v8918_v21 = vld [vmem:[%s10820_s1 + $0xa68] sm:$0xff]   ;;  %v8950_v5 = vld [vmem:[%s10820_s1 + $0xb70] sm:$0xff]  }
 0x13d   : >> { %8237 = vmatprep.subr.bf16.mxu1 %v8887_v23  ;;  %v8920_v22 = vld [vmem:[%s10820_s1 + $0xa28] sm:$0xff]   ;;  %v8951_v6 = vld [vmem:[%s10820_s1 + $0xbf0] sm:$0xff]  }
 0x13e   : >> { %v8921_v23 = vld [vmem:[%s10820_s1 + $0xaa8] sm:$0xff]  }
 0x13f   : >> { %8216 = vmatpush3.bf16.msra.mxu0 %v8888_v24  ;;  %v8922_v24 = vld [vmem:[%s10820_s1 + $0xa60] sm:$0xff]  }
 0x140   : >> { %8238 = vmatpush3.bf16.msra.mxu1 %v8889_v25  ;;  %8217 = vmatprep.subr.bf16.mxu0 %v8890_v26  ;;  %v8923_v25 = vld [vmem:[%s10820_s1 + $0xae0] sm:$0xff]  }
 0x141   : >> { %8239 = vmatprep.subr.bf16.mxu1 %v8891_v27  ;;  %v8924_v26 = vld [vmem:[%s10820_s1 + $0xa20] sm:$0xff]  }
 0x142   : >> { %v8925_v27 = vld [vmem:[%s10820_s1 + $0xaa0] sm:$0xff]  }
 0x143   : >> { %8218 = vmatpush3.bf16.msra.mxu0 %v8892_v28  ;;  %v8926_v28 = vld [vmem:[%s10820_s1 + $0xa58] sm:$0xff]  }
 0x144   : >> { %8240 = vmatpush3.bf16.msra.mxu1 %v8893_v29  ;;  %8219 = vmatprep.subr.bf16.mxu0 %v8894_v30  ;;  %v8927_v29 = vld [vmem:[%s10820_s1 + $0xad8] sm:$0xff]  }
 0x145   : >> { %8241 = vmatprep.subr.bf16.mxu1 %v8895_v31  ;;  %v8928_v30 = vld [vmem:[%s10820_s1 + $0xa18] sm:$0xff]  }
 0x146   : >> { %v8929_v31 = vld [vmem:[%s10820_s1 + $0xa98] sm:$0xff]  }
 0x147   : >> { %8220 = vmatpush3.bf16.msra.mxu0 %v8896_v18  ;;  %v8930_v18 = vld [vmem:[%s10820_s1 + $0xa50] sm:$0xff]  }
 0x148   : >> { %8242 = vmatpush3.bf16.msra.mxu1 %v8897_v32  ;;  %8221 = vmatprep.subr.bf16.mxu0 %v8898_v33  ;;  %v8931_v32 = vld [vmem:[%s10820_s1 + $0xad0] sm:$0xff]  }
 0x149   : >> { %8243 = vmatprep.subr.bf16.mxu1 %v8899_v34  ;;  %v8932_v33 = vld [vmem:[%s10820_s1 + $0xa10] sm:$0xff]  }
 0x14a   : >> { %v8933_v34 = vld [vmem:[%s10820_s1 + $0xa90] sm:$0xff]  }
 0x14b   : >> { %8222 = vmatpush3.bf16.msra.mxu0 %v8900_v35  ;;  %v8934_v35 = vld [vmem:[%s10820_s1 + $0xa48] sm:$0xff]  }
 0x14c   : >> { %8244 = vmatpush3.bf16.msra.mxu1 %v8901_v36  ;;  %8223 = vmatprep.subr.bf16.mxu0 %v8902_v37  ;;  %v8935_v36 = vld [vmem:[%s10820_s1 + $0xac8] sm:$0xff]  }
 0x14d   : >> { %8245 = vmatprep.subr.bf16.mxu1 %v8903_v38  ;;  %v8936_v37 = vld [vmem:[%s10820_s1 + $0xa08] sm:$0xff]  }
 0x14e   : >> { %v8937_v38 = vld [vmem:[%s10820_s1 + $0xa88] sm:$0xff]  }
 0x14f   : >> { %8224 = vmatpush3.bf16.msra.mxu0 %v8904_v39  ;;  %v8938_v39 = vld [vmem:[%s10820_s1 + $0xa40] sm:$0xff]  }
 0x150   : >> { %8246 = vmatpush3.bf16.msra.mxu1 %v8905_v40  ;;  %8253 = vmatprep.subr.bf16.mxu0 %v8910_v49  ;;  %v8939_v40 = vld [vmem:[%s10820_s1 + $0xac0] sm:$0xff]   ;;  %v7262_v49 = vcombine.high %v7195_v45, %v7195_v45 }
 0x151   : >> { %8275 = vmatprep.subr.bf16.mxu1 %v8911_v50  ;;  %v7196_v50 = vld [vmem:[%s9298_s14 + $0x28] sm:$0x22] }
 0x152   : >> { %v7961_v43 = vpop.f32.mrf.mxu0  ;;  %3844 = vmatmul.mubr.bf16.vlgmr.msra.gmra.mxu0 %v3593_v14  ;;  %v7264_v53 = vcombine.high %v7196_v50, %v7196_v50  ;;  %v3970_v59 = vrot.slane %v7262_v49, 1  ;;  %v8958_v14 = vld [vmem:[%s10820_s1 + $0xb60] sm:$0xff]  }
 0x153   : >> { %v7983_v44 = vpop.f32.mrf.mxu1  ;;  %3884 = vmatmul.mubr.bf16.vlgmr.msra.gmra.mxu1 %v3607_v15  ;;  %8254 = vmatpush3.bf16.msra.mxu0 %v8912_v1  ;;  %v8959_v15 = vld [vmem:[%s10820_s1 + $0xbe0] sm:$0xff]  }
 0x154   : >> { %v7962_v51 = vpop.f32.mrf.mxu0  ;;  %8276 = vmatpush3.bf16.msra.mxu1 %v8913_v2  ;;  %8255 = vmatprep.subr.bf16.mxu0 %v8914_v13  ;;  %v3972_v63 = vrot.slane %v7264_v53, 1  ;;  %v8957_v13 = vld [vmem:[%s10820_s1 + $0xba8] sm:$0xff]  }
 0x155   : >> { %v7984_v52 = vpop.f32.mrf.mxu1  ;;  %v7963_v3 = vadd.f32 %v7962_v51, %v7961_v43  ;;  %8277 = vmatprep.subr.bf16.mxu1 %v8915_v16  ;;  %v8940_v43 = vld [vmem:[%s10820_s1 + $0xa00] sm:$0xff]   ;;  %4201 = vmatprep.mubr.bf16.mxu0 %v3970_v59 }
 0x156   : >> { %v7964_v61 = vpop.f32.mrf.mxu0  ;;  %v7985_v4 = vadd.f32 %v7984_v52, %v7983_v44  ;;  %v8941_v44 = vld [vmem:[%s10820_s1 + $0xa80] sm:$0xff]   ;;  %v7263_v52 = vcombine.low %v7196_v50, %v7196_v50  ;;  %4241 = vmatprep.mubr.bf16.mxu1 %v3972_v63 }
 0x157   : >> { %v7986_v62 = vpop.f32.mrf.mxu1  ;;  %8256 = vmatpush3.bf16.msra.mxu0 %v8916_v19  ;;  %v8948_v61 = vld [vmem:[%s10820_s1 + $0xb38] sm:$0xff]   ;;  %v8960_v16 = vld [vmem:[%s10820_s1 + $0xb20] sm:$0xff]  }
 0x158   : >> { %v7965_v7 = vpop.f32.mrf.mxu0  ;;  %v1662_v12 = vadd.f32 %v7985_v4, %v7963_v3  ;;  %8278 = vmatpush3.bf16.msra.mxu1 %v8917_v20  ;;  %8257 = vmatprep.subr.bf16.mxu0 %v8918_v21  ;;  %v3971_v62 = vrot.slane %v7263_v52, 1  ;;  %v8949_v3 = vld [vmem:[%s10820_s1 + $0xbb8] sm:$0xff]  }
 0x159   : >> { %v7987_v8 = vpop.f32.mrf.mxu1  ;;  %v8952_v7 = vld [vmem:[%s10820_s1 + $0xb30] sm:$0xff]   ;;  %v8962_v19 = vld [vmem:[%s10820_s1 + $0xb58] sm:$0xff]  }
 0x15a   : >> { %v10217_v17 = vadd.f32 %v1662_v12, %v10107_v11  ;;  %v8919_v11 = vld [vmem:[%s10820_s1 + $0xae8] sm:$0xff]   ;;  %v8953_v8 = vld [vmem:[%s10820_s1 + $0xbb0] sm:$0xff]   ;;  %v8963_v20 = vld [vmem:[%s10820_s1 + $0xbd8] sm:$0xff]  }
 0x15b   : >> { %8279 = vmatprep.subr.bf16.mxu1 %v8919_v11  ;;  %8258 = vmatpush3.bf16.msra.mxu0 %v8920_v22  ;;  %v8956_v12 = vld [vmem:[%s10820_s1 + $0xb28] sm:$0xff]   ;;  %v8964_v21 = vld [vmem:[%s10820_s1 + $0xb18] sm:$0xff]   ;;  %v8966_v22 = vld [vmem:[%s10820_s1 + $0xb50] sm:$0xff]  }
 0x15c   : >> { %8280 = vmatpush3.bf16.msra.mxu1 %v8921_v23  ;;  %8259 = vmatprep.subr.bf16.mxu0 %v8922_v24  ;;  %v8965_v11 = vld [vmem:[%s10820_s1 + $0xb98] sm:$0xff]   ;;  %v8967_v23 = vld [vmem:[%s10820_s1 + $0xbd0] sm:$0xff]  }
 0x15d   : >> { %8281 = vmatprep.subr.bf16.mxu1 %v8923_v25  ;;  %v8968_v24 = vld [vmem:[%s10820_s1 + $0xb10] sm:$0xff]  }
 0x15e   : >> { %v8969_v25 = vld [vmem:[%s10820_s1 + $0xb90] sm:$0xff]  }
 0x15f   : >> { %8260 = vmatpush3.bf16.msra.mxu0 %v8924_v26  ;;  %v8970_v26 = vld [vmem:[%s10820_s1 + $0xb48] sm:$0xff]  }
 0x160   : >> { %8282 = vmatpush3.bf16.msra.mxu1 %v8925_v27  ;;  %8261 = vmatprep.subr.bf16.mxu0 %v8926_v28  ;;  %v8971_v27 = vld [vmem:[%s10820_s1 + $0xbc8] sm:$0xff]  }
 0x161   : >> { %8283 = vmatprep.subr.bf16.mxu1 %v8927_v29  ;;  %v8972_v28 = vld [vmem:[%s10820_s1 + $0xb08] sm:$0xff]  }
 0x162   : >> { %v8973_v29 = vld [vmem:[%s10820_s1 + $0xb88] sm:$0xff]  }
 0x163   : >> { %8262 = vmatpush3.bf16.msra.mxu0 %v8928_v30  ;;  %v8974_v30 = vld [vmem:[%s10820_s1 + $0xb40] sm:$0xff]  }
 0x164   : >> { %8284 = vmatpush3.bf16.msra.mxu1 %v8929_v31  ;;  %8263 = vmatprep.subr.bf16.mxu0 %v8930_v18  ;;  %v8975_v31 = vld [vmem:[%s10820_s1 + $0xbc0] sm:$0xff]  }
 0x165   : >> { %8285 = vmatprep.subr.bf16.mxu1 %v8931_v32  ;;  %v8976_v18 = vld [vmem:[%s10820_s1 + $0xb00] sm:$0xff]  }
 0x166   : >> { %v8977_v32 = vld [vmem:[%s10820_s1 + $0xb80] sm:$0xff]  }
 0x167   : >> { %8264 = vmatpush3.bf16.msra.mxu0 %v8932_v33  ;;  %v7297_v33 = vld [vmem:[%s9298_s14 + $0x20] sm:$0x66] }
 0x168   : >> { %8286 = vmatpush3.bf16.msra.mxu1 %v8933_v34  ;;  %8265 = vmatprep.subr.bf16.mxu0 %v8934_v35  ;;  %v7363_v35 = vcombine.low %v7297_v33, %v7297_v33 }
 0x169   : >> { %8287 = vmatprep.subr.bf16.mxu1 %v8935_v36  ;;  %v7364_v36 = vcombine.high %v7297_v33, %v7297_v33  ;;  %v9008_v33 = vld [vmem:[%s10820_s1 + $0xc08] sm:$0xff]  }
 0x16a   : >> { %v4328_v45 = vshrl.u32 %v7363_v35, 16 }
 0x16b   : >> { %8266 = vmatpush3.bf16.msra.mxu0 %v8936_v37  ;;  %v7298_v37 = vld [vmem:[%s9298_s14 + $0x28] sm:$0x66] }
 0x16c   : >> { %8288 = vmatpush3.bf16.msra.mxu1 %v8937_v38  ;;  %8267 = vmatprep.subr.bf16.mxu0 %v8938_v39  ;;  %v7365_v39 = vcombine.low %v7298_v37, %v7298_v37 }
 0x16d   : >> { %8289 = vmatprep.subr.bf16.mxu1 %v8939_v40  ;;  %v7366_v40 = vcombine.high %v7298_v37, %v7298_v37  ;;  %v9011_v37 = vld [vmem:[%s10820_s1 + $0xcc0] sm:$0xff]  }
 0x16e   : >> { %v4347_v52 = vshll.u32 %v7365_v39, 16 }
 0x16f   : >> { %8268 = vmatpush3.bf16.msra.mxu0 %v8940_v43  ;;  %v4336_v43 = vshrl.u32 %v7364_v36, 16  ;;  %v4352_v49 = vshrl.u32 %v7366_v40, 16  ;;  %v4355_v50 = vshll.u32 %v7366_v40, 16 }
 0x170   : >> { %8290 = vmatpush3.bf16.msra.mxu1 %v8941_v44  ;;  %8297 = vmatprep.subr.bf16.mxu0 %v8946_v54  ;;  %v4339_v44 = vshll.u32 %v7364_v36, 16  ;;  %v4349_v63 = vrot.slane %v4347_v52, 2 }
 0x171   : >> { %8319 = vmatprep.subr.bf16.mxu1 %v8947_v60  ;;  %v4338_v54 = vrot.slane %v4336_v43, 1  ;;  %v4354_v60 = vrot.slane %v4352_v49, 1 }
 0x172   : >> { %v8005_v41 = vpop.f32.mrf.mxu0  ;;  %4202 = vmatmul.mubr.bf16.vlgmr.msra.gmra.mxu0 %v3969_v58  ;;  %v8984_v58 = vld [vmem:[%s10820_s1 + $0xc38] sm:$0xff]  }
 0x173   : >> { %v8027_v42 = vpop.f32.mrf.mxu1  ;;  %4242 = vmatmul.mubr.bf16.vlgmr.msra.gmra.mxu1 %v3971_v62  ;;  %8298 = vmatpush3.bf16.msra.mxu0 %v8948_v61  ;;  %v4357_v61 = vrot.slane %v4355_v50, 2  ;;  %v9018_v50 = vld [vmem:[%s10820_s1 + $0xd78] sm:$0xff]  }
 0x174   : >> { %v8006_v46 = vpop.f32.mrf.mxu0  ;;  %8320 = vmatpush3.bf16.msra.mxu1 %v8949_v3  ;;  %8299 = vmatprep.subr.bf16.mxu0 %v8950_v5  ;;  %v8985_v3 = vld [vmem:[%s10820_s1 + $0xcb8] sm:$0xff]  }
 0x175   : >> { %v8028_v47 = vpop.f32.mrf.mxu1  ;;  %v8007_v51 = vadd.f32 %v8006_v46, %v8005_v41  ;;  %8321 = vmatprep.subr.bf16.mxu1 %v8951_v6  ;;  %v8982_v41 = vld [vmem:[%s10820_s1 + $0xc78] sm:$0xff]   ;;  %v4331_v46 = vshll.u32 %v7363_v35, 16  ;;  %v9010_v35 = vld [vmem:[%s10820_s1 + $0xc40] sm:$0xff]  }
 0x176   : >> { %v8029_v55 = vadd.f32 %v8028_v47, %v8027_v42  ;;  %v8008_v56 = vpop.f32.mrf.mxu0  ;;  %v8983_v47 = vld [vmem:[%s10820_s1 + $0xcf8] sm:$0xff]  }
 0x177   : >> { %v8030_v57 = vpop.f32.mrf.mxu1  ;;  %8300 = vmatpush3.bf16.msra.mxu0 %v8952_v7  ;;  %v4330_v56 = vrot.slane %v4328_v45, 1 }
 0x178   : >> { %v2020_v0 = vadd.f32 %v8029_v55, %v8007_v51  ;;  %v8009_v1 = vpop.f32.mrf.mxu0  ;;  %8322 = vmatpush3.bf16.msra.mxu1 %v8953_v8  ;;  %8301 = vmatprep.subr.bf16.mxu0 %v8954_v9  ;;  %v4344_v51 = vshrl.u32 %v7365_v39, 16  ;;  %v4341_v55 = vrot.slane %v4339_v44, 2  ;;  %v4333_v57 = vrot.slane %v4331_v46, 2  ;;  %v9012_v39 = vld [vmem:[%s10820_s1 + $0xc00] sm:$0xff]   ;;  %v7401_v46 = vld [vmem:[%s9298_s14 + $0x38] sm:$0x11] }
 0x179   : >> { %v8031_v2 = vpop.f32.mrf.mxu1  ;;  %8323 = vmatprep.subr.bf16.mxu1 %v8955_v10  ;;  %v4358_v8 = vor.u32 %v4357_v61, %v4354_v60  ;;  %v8986_v10 = vld [vmem:[%s10820_s1 + $0xc70] sm:$0xff]   ;;  %v7469_v49 = vcombine.high %v7401_v46, %v7401_v46 }
 0x17a   : >> { %v10312_v4 = vadd.f32 %v2020_v0, %v10217_v17  ;;  %v8961_v17 = vld [vmem:[%s10820_s1 + $0xba0] sm:$0xff]   ;;  %v4346_v62 = vrot.slane %v4344_v51, 1  ;;  %v4342_v1 = vor.u32 %v4341_v55, %v4338_v54  ;;  %v4334_v2 = vor.u32 %v4333_v57, %v4330_v56  ;;  %v9020_v57 = vld [vmem:[%s10820_s1 + $0xd38] sm:$0xff]   ;;  %v9022_v61 = vld [vmem:[%s10820_s1 + $0xd70] sm:$0xff]  }
 0x17b   : >> { %8302 = vmatpush3.bf16.msra.mxu0 %v8956_v12  ;;  %4627 = vmatprep.mubr.bf16.mxu1 %v4358_v8  ;;  %v7468_v56 = vcombine.low %v7401_v46, %v7401_v46  ;;  %v9032_v8 = vld [vmem:[%s10820_s1 + $0xd20] sm:$0xff]  }
 0x17c   : >> { %8324 = vmatpush3.bf16.msra.mxu1 %v8957_v13  ;;  %8303 = vmatprep.subr.bf16.mxu0 %v8958_v14  ;;  %v4350_v9 = vor.u32 %v4349_v63, %v4346_v62  ;;  %v8987_v13 = vld [vmem:[%s10820_s1 + $0xcf0] sm:$0xff]  }
 0x17d   : >> { %8325 = vmatprep.subr.bf16.mxu1 %v8959_v15  ;;  %4587 = vmatprep.mubr.bf16.mxu0 %v4342_v1  ;;  %v8988_v14 = vld [vmem:[%s10820_s1 + $0xc30] sm:$0xff]   ;;  %v9026_v1 = vld [vmem:[%s10820_s1 + $0xd68] sm:$0xff]  }
 0x17e   : >> { %v9023_v62 = vld [vmem:[%s10820_s1 + $0xdf0] sm:$0xff]  }
 0x17f   : >> { %8304 = vmatpush3.bf16.msra.mxu0 %v8960_v16  ;;  %v8989_v16 = vld [vmem:[%s10820_s1 + $0xcb0] sm:$0xff]  }
 0x180   : >> { %8326 = vmatpush3.bf16.msra.mxu1 %v8961_v17  ;;  %8305 = vmatprep.subr.bf16.mxu0 %v8962_v19  ;;  %v8990_v17 = vld [vmem:[%s10820_s1 + $0xc68] sm:$0xff]   ;;  %v9024_v63 = vld [vmem:[%s10820_s1 + $0xd30] sm:$0xff]  }
 0x181   : >> { %8327 = vmatprep.subr.bf16.mxu1 %v8963_v20  ;;  %v8991_v19 = vld [vmem:[%s10820_s1 + $0xce8] sm:$0xff]  }
 0x182   : >> { %v8993_v20 = vld [vmem:[%s10820_s1 + $0xca8] sm:$0xff]  }
 0x183   : >> { %8306 = vmatpush3.bf16.msra.mxu0 %v8964_v21  ;;  %v8994_v21 = vld [vmem:[%s10820_s1 + $0xc60] sm:$0xff]  }
 0x184   : >> { %8328 = vmatpush3.bf16.msra.mxu1 %v8965_v11  ;;  %8307 = vmatprep.subr.bf16.mxu0 %v8966_v22  ;;  %v8995_v11 = vld [vmem:[%s10820_s1 + $0xce0] sm:$0xff]  }
 0x185   : >> { %8329 = vmatprep.subr.bf16.mxu1 %v8967_v23  ;;  %v8996_v22 = vld [vmem:[%s10820_s1 + $0xc20] sm:$0xff]  }
 0x186   : >> { %v8997_v23 = vld [vmem:[%s10820_s1 + $0xca0] sm:$0xff]  }
 0x187   : >> { %8308 = vmatpush3.bf16.msra.mxu0 %v8968_v24  ;;  %v8998_v24 = vld [vmem:[%s10820_s1 + $0xc58] sm:$0xff]  }
 0x188   : >> { %8330 = vmatpush3.bf16.msra.mxu1 %v8969_v25  ;;  %8309 = vmatprep.subr.bf16.mxu0 %v8970_v26  ;;  %v8999_v25 = vld [vmem:[%s10820_s1 + $0xcd8] sm:$0xff]  }
 0x189   : >> { %8331 = vmatprep.subr.bf16.mxu1 %v8971_v27  ;;  %v9000_v26 = vld [vmem:[%s10820_s1 + $0xc18] sm:$0xff]  }
 0x18a   : >> { %v9001_v27 = vld [vmem:[%s10820_s1 + $0xc98] sm:$0xff]  }
 0x18b   : >> { %8310 = vmatpush3.bf16.msra.mxu0 %v8972_v28  ;;  %v9002_v28 = vld [vmem:[%s10820_s1 + $0xc50] sm:$0xff]  }
 0x18c   : >> { %8332 = vmatpush3.bf16.msra.mxu1 %v8973_v29  ;;  %8311 = vmatprep.subr.bf16.mxu0 %v8974_v30  ;;  %v9003_v29 = vld [vmem:[%s10820_s1 + $0xcd0] sm:$0xff]  }
 0x18d   : >> { %8333 = vmatprep.subr.bf16.mxu1 %v8975_v31  ;;  %v9004_v30 = vld [vmem:[%s10820_s1 + $0xc10] sm:$0xff]  }
 0x18e   : >> { %v9005_v31 = vld [vmem:[%s10820_s1 + $0xc90] sm:$0xff]  }
 0x18f   : >> { %8312 = vmatpush3.bf16.msra.mxu0 %v8976_v18  ;;  %v9006_v18 = vld [vmem:[%s10820_s1 + $0xc48] sm:$0xff]  }
 0x190   : >> { %8334 = vmatpush3.bf16.msra.mxu1 %v8977_v32  ;;  %8341 = vmatprep.subr.bf16.mxu0 %v8982_v41  ;;  %v9007_v32 = vld [vmem:[%s10820_s1 + $0xcc8] sm:$0xff]   ;;  %v9013_v41 = vld [vmem:[%s10820_s1 + $0xc80] sm:$0xff]  }
 0x191   : >> { %8363 = vmatprep.subr.bf16.mxu1 %v8983_v47 }
 0x192   : >> { %v8049_v34 = vpop.f32.mrf.mxu0  ;;  %4588 = vmatmul.mubr.bf16.vlgmr.msra.gmra.mxu0 %v4334_v2  ;;  %v9027_v2 = vld [vmem:[%s10820_s1 + $0xde8] sm:$0xff]  }
 0x193   : >> { %v8071_v38 = vpop.f32.mrf.mxu1  ;;  %4628 = vmatmul.mubr.bf16.vlgmr.msra.gmra.mxu1 %v4350_v9  ;;  %8342 = vmatpush3.bf16.msra.mxu0 %v8984_v58  ;;  %v9033_v9 = vld [vmem:[%s10820_s1 + $0xda0] sm:$0xff]  }
 0x194   : >> { %v8050_v42 = vpop.f32.mrf.mxu0  ;;  %8364 = vmatpush3.bf16.msra.mxu1 %v8985_v3  ;;  %8343 = vmatprep.subr.bf16.mxu0 %v8986_v10  ;;  %v9028_v3 = vld [vmem:[%s10820_s1 + $0xd28] sm:$0xff]   ;;  %v9034_v10 = vld [vmem:[%s10820_s1 + $0xd58] sm:$0xff]  }
 0x195   : >> { %v8072_v48 = vpop.f32.mrf.mxu1  ;;  %v8051_v5 = vadd.f32 %v8050_v42, %v8049_v34  ;;  %8365 = vmatprep.subr.bf16.mxu1 %v8987_v13  ;;  %v9009_v34 = vld [vmem:[%s10820_s1 + $0xc88] sm:$0xff]   ;;  %v7400_v42 = vld [vmem:[%s9298_s14 + $0x30] sm:$0x11]  ;;  %4985 = vmatprep.mubr.bf16.mxu1 %v7469_v49  ;;  %v9036_v13 = vld [vmem:[%s10820_s1 + $0xd18] sm:$0xff]  }
 0x196   : >> { %v8052_v53 = vpop.f32.mrf.mxu0  ;;  %v8073_v6 = vadd.f32 %v8072_v48, %v8071_v38  ;;  %v7467_v45 = vcombine.high %v7400_v42, %v7400_v42  ;;  %v7466_v52 = vcombine.low %v7400_v42, %v7400_v42 }
 0x197   : >> { %v8074_v59 = vpop.f32.mrf.mxu1  ;;  %8344 = vmatpush3.bf16.msra.mxu0 %v8988_v14  ;;  %v9019_v53 = vld [vmem:[%s10820_s1 + $0xdf8] sm:$0xff]  }
 0x198   : >> { %v8053_v0 = vpop.f32.mrf.mxu0  ;;  %v2402_v12 = vadd.f32 %v8073_v6, %v8051_v5  ;;  %8366 = vmatpush3.bf16.msra.mxu1 %v8989_v16  ;;  %8345 = vmatprep.subr.bf16.mxu0 %v8990_v17  ;;  %v9021_v59 = vld [vmem:[%s10820_s1 + $0xdb8] sm:$0xff]   ;;  %v9029_v5 = vld [vmem:[%s10820_s1 + $0xda8] sm:$0xff]   ;;  %v9030_v6 = vld [vmem:[%s10820_s1 + $0xd60] sm:$0xff]  }
 0x199   : >> { %v8075_v7 = vpop.f32.mrf.mxu1  ;;  %8367 = vmatprep.subr.bf16.mxu1 %v8991_v19  ;;  %4945 = vmatprep.mubr.bf16.mxu0 %v7467_v45  ;;  %v9025_v0 = vld [vmem:[%s10820_s1 + $0xdb0] sm:$0xff]   ;;  %v9037_v14 = vld [vmem:[%s10820_s1 + $0xd98] sm:$0xff]  }
 0x19a   : >> { %v10422_v15 = vadd.f32 %v2402_v12, %v10312_v4  ;;  %v8992_v4 = vld [vmem:[%s10820_s1 + $0xc28] sm:$0xff]   ;;  %v9031_v7 = vld [vmem:[%s10820_s1 + $0xde0] sm:$0xff]   ;;  %v9035_v12 = vld [vmem:[%s10820_s1 + $0xdd8] sm:$0xff]  }
 0x19b   : >> { %8346 = vmatpush3.bf16.msra.mxu0 %v8992_v4  ;;  %v9039_v16 = vld [vmem:[%s10820_s1 + $0xdd0] sm:$0xff]   ;;  %v9042_v4 = vld [vmem:[%s10820_s1 + $0xd48] sm:$0xff]  }
 0x19c   : >> { %8368 = vmatpush3.bf16.msra.mxu1 %v8993_v20  ;;  %8347 = vmatprep.subr.bf16.mxu0 %v8994_v21  ;;  %v9040_v17 = vld [vmem:[%s10820_s1 + $0xd10] sm:$0xff]   ;;  %v9043_v20 = vld [vmem:[%s10820_s1 + $0xdc8] sm:$0xff]  }
 0x19d   : >> { %8369 = vmatprep.subr.bf16.mxu1 %v8995_v11  ;;  %v9041_v19 = vld [vmem:[%s10820_s1 + $0xd90] sm:$0xff]   ;;  %v9044_v21 = vld [vmem:[%s10820_s1 + $0xd08] sm:$0xff]  }
 0x19e   : >> { %v9045_v11 = vld [vmem:[%s10820_s1 + $0xd88] sm:$0xff]  }
 0x19f   : >> { %8348 = vmatpush3.bf16.msra.mxu0 %v8996_v22  ;;  %v9046_v22 = vld [vmem:[%s10820_s1 + $0xd40] sm:$0xff]  }
 0x1a0   : >> { %8370 = vmatpush3.bf16.msra.mxu1 %v8997_v23  ;;  %8349 = vmatprep.subr.bf16.mxu0 %v8998_v24  ;;  %v9047_v23 = vld [vmem:[%s10820_s1 + $0xdc0] sm:$0xff]  }
 0x1a1   : >> { %8371 = vmatprep.subr.bf16.mxu1 %v8999_v25  ;;  %v9048_v24 = vld [vmem:[%s10820_s1 + $0xd00] sm:$0xff]  }
 0x1a3   : >> { %8350 = vmatpush3.bf16.msra.mxu0 %v9000_v26  ;;  %v9049_v26 = vld [vmem:[%s10820_s1 + $0xd80] sm:$0xff]  }
 0x1a4   : >> { %8372 = vmatpush3.bf16.msra.mxu1 %v9001_v27  ;;  %8351 = vmatprep.subr.bf16.mxu0 %v9002_v28  ;;  %v7502_v27 = vld [vmem:[%s9298_s14 + $0x30] sm:$0x33]  ;;  %v7503_v28 = vld [vmem:[%s9298_s14 + $0x38] sm:$0x33] }
 0x1a5   : >> { %8373 = vmatprep.subr.bf16.mxu1 %v9003_v29 }
 0x1a7   : >> { %8352 = vmatpush3.bf16.msra.mxu0 %v9004_v30  ;;  %v7568_v30 = vcombine.low %v7502_v27, %v7502_v27 }
 0x1a8   : >> { %8374 = vmatpush3.bf16.msra.mxu1 %v9005_v31  ;;  %8353 = vmatprep.subr.bf16.mxu0 %v9006_v18  ;;  %v7569_v31 = vcombine.high %v7502_v27, %v7502_v27  ;;  %v7570_v18 = vcombine.low %v7503_v28, %v7503_v28 }
 0x1a9   : >> { %8375 = vmatprep.subr.bf16.mxu1 %v9007_v32  ;;  %v7571_v32 = vcombine.high %v7503_v28, %v7503_v28  ;;  %v9084_v28 = vld [vmem:[%s10820_s1 + $0xe00] sm:$0xff]  }
 0x1aa   : >> { %v5086_v45 = vshrl.u32 %v7570_v18, 16  ;;  %v5088_v46 = vshll.u32 %v7570_v18, 16 }
 0x1ab   : >> { %8354 = vmatpush3.bf16.msra.mxu0 %v9008_v33  ;;  %v9054_v33 = vld [vmem:[%s10820_s1 + $0xe78] sm:$0xff]  }
 0x1ac   : >> { %8376 = vmatpush3.bf16.msra.mxu1 %v9009_v34  ;;  %8355 = vmatprep.subr.bf16.mxu0 %v9010_v35  ;;  %v9055_v35 = vld [vmem:[%s10820_s1 + $0xef8] sm:$0xff]  }
 0x1ad   : >> { %8377 = vmatprep.subr.bf16.mxu1 %v9011_v37 }
 0x1af   : >> { %8356 = vmatpush3.bf16.msra.mxu0 %v9012_v39  ;;  %v5081_v39 = vshll.u32 %v7569_v31, 16 }
 0x1b0   : >> { %8378 = vmatpush3.bf16.msra.mxu1 %v9013_v41  ;;  %8385 = vmatprep.subr.bf16.mxu0 %v9018_v50  ;;  %v5095_v41 = vshll.u32 %v7571_v32, 16  ;;  %v9056_v50 = vld [vmem:[%s10820_s1 + $0xe38] sm:$0xff]  }
 0x1b1   : >> { %8407 = vmatprep.subr.bf16.mxu1 %v9019_v53 }
 0x1b2   : >> { %v8093_v36 = vpop.f32.mrf.mxu0  ;;  %4946 = vmatmul.mubr.bf16.vlgmr.msra.gmra.mxu0 %v7466_v52  ;;  %v5097_v49 = vrot.slane %v5095_v41, 1 }
 0x1b3   : >> { %v8115_v38 = vpop.f32.mrf.mxu1  ;;  %4986 = vmatmul.mubr.bf16.vlgmr.msra.gmra.mxu1 %v7468_v56  ;;  %8386 = vmatpush3.bf16.msra.mxu0 %v9020_v57 }
 0x1b4   : >> { %v8094_v40 = vpop.f32.mrf.mxu0  ;;  %8408 = vmatpush3.bf16.msra.mxu1 %v9021_v59  ;;  %8387 = vmatprep.subr.bf16.mxu0 %v9022_v61  ;;  %v9058_v61 = vld [vmem:[%s10820_s1 + $0xe70] sm:$0xff]  }
 0x1b5   : >> { %v8095_v43 = vadd.f32 %v8094_v40, %v8093_v36  ;;  %v8116_v44 = vpop.f32.mrf.mxu1  ;;  %8409 = vmatprep.subr.bf16.mxu1 %v9023_v62  ;;  %v5093_v40 = vshrl.u32 %v7571_v32, 16 }
 0x1b6   : >> { %v8117_v47 = vadd.f32 %v8116_v44, %v8115_v38  ;;  %v8096_v48 = vpop.f32.mrf.mxu0  ;;  %v5079_v38 = vshrl.u32 %v7569_v31, 16  ;;  %v5074_v44 = vshll.u32 %v7568_v30, 16  ;;  %v7604_v31 = vld [vmem:[%s9298_s14 + $0x30] sm:$0x22] }
 0x1b7   : >> { %v8118_v51 = vpop.f32.mrf.mxu1  ;;  %8388 = vmatpush3.bf16.msra.mxu0 %v9024_v63  ;;  %v5083_v48 = vrot.slane %v5081_v39, 1 }
 0x1b8   : >> { %v2760_v54 = vadd.f32 %v8117_v47, %v8095_v43  ;;  %v8097_v55 = vpop.f32.mrf.mxu0  ;;  %8410 = vmatpush3.bf16.msra.mxu1 %v9025_v0  ;;  %8389 = vmatprep.subr.bf16.mxu0 %v9026_v1  ;;  %v5072_v43 = vshrl.u32 %v7568_v30, 16  ;;  %v9057_v51 = vld [vmem:[%s10820_s1 + $0xeb8] sm:$0xff]   ;;  %v9059_v0 = vld [vmem:[%s10820_s1 + $0xef0] sm:$0xff]   ;;  %v9085_v30 = vld [vmem:[%s10820_s1 + $0xe80] sm:$0xff]  }
 0x1b9   : >> { %v8119_v58 = vpop.f32.mrf.mxu1  ;;  %8411 = vmatprep.subr.bf16.mxu1 %v9027_v2  ;;  %v5090_v55 = vrot.slane %v5088_v46, 1  ;;  %v5084_v57 = vor.u32 %v5083_v48, %v5079_v38  ;;  %v9060_v2 = vld [vmem:[%s10820_s1 + $0xe30] sm:$0xff]  }
 0x1ba   : >> { %v10514_v60 = vadd.f32 %v2760_v54, %v10422_v15  ;;  %v9038_v15 = vld [vmem:[%s10820_s1 + $0xd50] sm:$0xff]   ;;  %v5076_v54 = vrot.slane %v5074_v44, 1  ;;  %v5098_v58 = vor.u32 %v5097_v49, %v5093_v40  ;;  %v9090_v40 = vld [vmem:[%s10820_s1 + $0xf78] sm:$0xff]  }
 0x1bb   : >> { %8390 = vmatpush3.bf16.msra.mxu0 %v9028_v3  ;;  %v5091_v63 = vor.u32 %v5090_v55, %v5086_v45  ;;  %5327 = vmatprep.mubr.bf16.mxu0 %v5084_v57  ;;  %v9061_v3 = vld [vmem:[%s10820_s1 + $0xeb0] sm:$0xff]   ;;  %v9091_v44 = vld [vmem:[%s10820_s1 + $0xff8] sm:$0xff]   ;;  %v9098_v57 = vld [vmem:[%s10820_s1 + $0xf68] sm:$0xff]  }
 0x1bc   : >> { %8412 = vmatpush3.bf16.msra.mxu1 %v9029_v5  ;;  %8391 = vmatprep.subr.bf16.mxu0 %v9030_v6  ;;  %v5077_v62 = vor.u32 %v5076_v54, %v5072_v43  ;;  %v9062_v5 = vld [vmem:[%s10820_s1 + $0xe68] sm:$0xff]   ;;  %v9092_v45 = vld [vmem:[%s10820_s1 + $0xf38] sm:$0xff]   ;;  %v9095_v54 = vld [vmem:[%s10820_s1 + $0xff0] sm:$0xff]  }
 0x1bd   : >> { %8413 = vmatprep.subr.bf16.mxu1 %v9031_v7  ;;  %5367 = vmatprep.mubr.bf16.mxu1 %v5098_v58  ;;  %v9064_v6 = vld [vmem:[%s10820_s1 + $0xe28] sm:$0xff]   ;;  %v9096_v55 = vld [vmem:[%s10820_s1 + $0xf30] sm:$0xff]  }
 0x1be   : >> { %v9065_v7 = vld [vmem:[%s10820_s1 + $0xea8] sm:$0xff]  }
 0x1bf   : >> { %8392 = vmatpush3.bf16.msra.mxu0 %v9032_v8  ;;  %v9066_v8 = vld [vmem:[%s10820_s1 + $0xe60] sm:$0xff]   ;;  %v9099_v58 = vld [vmem:[%s10820_s1 + $0xfe8] sm:$0xff]  }
 0x1c0   : >> { %8414 = vmatpush3.bf16.msra.mxu1 %v9033_v9  ;;  %8393 = vmatprep.subr.bf16.mxu0 %v9034_v10  ;;  %v9067_v9 = vld [vmem:[%s10820_s1 + $0xee0] sm:$0xff]  }
 0x1c1   : >> { %8415 = vmatprep.subr.bf16.mxu1 %v9035_v12  ;;  %v9068_v10 = vld [vmem:[%s10820_s1 + $0xe20] sm:$0xff]  }
 0x1c2   : >> { %v9069_v12 = vld [vmem:[%s10820_s1 + $0xea0] sm:$0xff]  }
 0x1c3   : >> { %8394 = vmatpush3.bf16.msra.mxu0 %v9036_v13  ;;  %v9070_v13 = vld [vmem:[%s10820_s1 + $0xe58] sm:$0xff]  }
 0x1c4   : >> { %8416 = vmatpush3.bf16.msra.mxu1 %v9037_v14  ;;  %8395 = vmatprep.subr.bf16.mxu0 %v9038_v15  ;;  %v9071_v14 = vld [vmem:[%s10820_s1 + $0xed8] sm:$0xff]  }
 0x1c5   : >> { %8417 = vmatprep.subr.bf16.mxu1 %v9039_v16  ;;  %v9072_v15 = vld [vmem:[%s10820_s1 + $0xe18] sm:$0xff]  }
 0x1c6   : >> { %v9073_v16 = vld [vmem:[%s10820_s1 + $0xe98] sm:$0xff]  }
 0x1c7   : >> { %8396 = vmatpush3.bf16.msra.mxu0 %v9040_v17  ;;  %v9074_v17 = vld [vmem:[%s10820_s1 + $0xe50] sm:$0xff]  }
 0x1c8   : >> { %8418 = vmatpush3.bf16.msra.mxu1 %v9041_v19  ;;  %8397 = vmatprep.subr.bf16.mxu0 %v9042_v4  ;;  %v9075_v19 = vld [vmem:[%s10820_s1 + $0xed0] sm:$0xff]  }
 0x1c9   : >> { %8419 = vmatprep.subr.bf16.mxu1 %v9043_v20  ;;  %v9076_v4 = vld [vmem:[%s10820_s1 + $0xe10] sm:$0xff]  }
 0x1ca   : >> { %v9077_v20 = vld [vmem:[%s10820_s1 + $0xe90] sm:$0xff]  }
 0x1cb   : >> { %8398 = vmatpush3.bf16.msra.mxu0 %v9044_v21  ;;  %v9078_v21 = vld [vmem:[%s10820_s1 + $0xe48] sm:$0xff]  }
 0x1cc   : >> { %8420 = vmatpush3.bf16.msra.mxu1 %v9045_v11  ;;  %8399 = vmatprep.subr.bf16.mxu0 %v9046_v22  ;;  %v9079_v11 = vld [vmem:[%s10820_s1 + $0xec8] sm:$0xff]  }
 0x1cd   : >> { %8421 = vmatprep.subr.bf16.mxu1 %v9047_v23  ;;  %v9080_v22 = vld [vmem:[%s10820_s1 + $0xe08] sm:$0xff]  }
 0x1ce   : >> { %v9081_v23 = vld [vmem:[%s10820_s1 + $0xe88] sm:$0xff]  }
 0x1cf   : >> { %8400 = vmatpush3.bf16.msra.mxu0 %v9048_v24  ;;  %v9082_v24 = vld [vmem:[%s10820_s1 + $0xe40] sm:$0xff]  }
 0x1d0   : >> { %8422 = vmatpush3.bf16.msra.mxu1 %v9049_v26  ;;  %8429 = vmatprep.subr.bf16.mxu0 %v9054_v33  ;;  %v9083_v26 = vld [vmem:[%s10820_s1 + $0xec0] sm:$0xff]   ;;  %v7670_v33 = vcombine.low %v7604_v31, %v7604_v31 }
 0x1d1   : >> { %8451 = vmatprep.subr.bf16.mxu1 %v9055_v35  ;;  %v7605_v35 = vld [vmem:[%s9298_s14 + $0x38] sm:$0x22] }
 0x1d2   : >> { %v8137_v25 = vpop.f32.mrf.mxu0  ;;  %5328 = vmatmul.mubr.bf16.vlgmr.msra.gmra.mxu0 %v5077_v62  ;;  %v7672_v38 = vcombine.low %v7605_v35, %v7605_v35  ;;  %v7673_v39 = vcombine.high %v7605_v35, %v7605_v35  ;;  %v9102_v62 = vld [vmem:[%s10820_s1 + $0xf60] sm:$0xff]  }
 0x1d3   : >> { %v8159_v29 = vpop.f32.mrf.mxu1  ;;  %5368 = vmatmul.mubr.bf16.vlgmr.msra.gmra.mxu1 %v5091_v63  ;;  %8430 = vmatpush3.bf16.msra.mxu0 %v9056_v50  ;;  %v9103_v63 = vld [vmem:[%s10820_s1 + $0xfe0] sm:$0xff]  }
 0x1d4   : >> { %v8138_v34 = vpop.f32.mrf.mxu0  ;;  %8452 = vmatpush3.bf16.msra.mxu1 %v9057_v51  ;;  %8431 = vmatprep.subr.bf16.mxu0 %v9058_v61  ;;  %v5455_v48 = vrot.slane %v7672_v38, 1  ;;  %v5456_v49 = vrot.slane %v7673_v39, 1  ;;  %v9093_v51 = vld [vmem:[%s10820_s1 + $0xfb8] sm:$0xff]   ;;  %v9101_v61 = vld [vmem:[%s10820_s1 + $0xfa8] sm:$0xff]  }
 0x1d5   : >> { %v8139_v36 = vadd.f32 %v8138_v34, %v8137_v25  ;;  %v8160_v37 = vpop.f32.mrf.mxu1  ;;  %8453 = vmatprep.subr.bf16.mxu1 %v9059_v0  ;;  %v7671_v34 = vcombine.high %v7604_v31, %v7604_v31  ;;  %v9104_v0 = vld [vmem:[%s10820_s1 + $0xf20] sm:$0xff]  }
 0x1d6   : >> { %v8140_v42 = vpop.f32.mrf.mxu0  ;;  %v8161_v52 = vadd.f32 %v8160_v37, %v8159_v29  ;;  %5725 = vmatprep.mubr.bf16.mxu1 %v5456_v49 }
 0x1d7   : >> { %v8162_v47 = vpop.f32.mrf.mxu1  ;;  %8432 = vmatpush3.bf16.msra.mxu0 %v9060_v2  ;;  %v5453_v42 = vrot.slane %v7670_v33, 1  ;;  %v5454_v43 = vrot.slane %v7671_v34, 1  ;;  %v9106_v2 = vld [vmem:[%s10820_s1 + $0xf58] sm:$0xff]  }
 0x1d8   : >> { %v8141_v53 = vpop.f32.mrf.mxu0  ;;  %v3146_v59 = vadd.f32 %v8161_v52, %v8139_v36  ;;  %8454 = vmatpush3.bf16.msra.mxu1 %v9061_v3  ;;  %8433 = vmatprep.subr.bf16.mxu0 %v9062_v5  ;;  %v9107_v3 = vld [vmem:[%s10820_s1 + $0xfd8] sm:$0xff]  }
 0x1d9   : >> { %v8163_v56 = vpop.f32.mrf.mxu1  ;;  %5685 = vmatprep.mubr.bf16.mxu0 %v5454_v43  ;;  %v9094_v53 = vld [vmem:[%s10820_s1 + $0xf70] sm:$0xff]   ;;  %v9108_v5 = vld [vmem:[%s10820_s1 + $0xf18] sm:$0xff]  }
 0x1da   : >> { %v10621_v1 = vadd.f32 %v3146_v59, %v10514_v60  ;;  %v9063_v60 = vld [vmem:[%s10820_s1 + $0xee8] sm:$0xff]   ;;  %v9097_v56 = vld [vmem:[%s10820_s1 + $0xfb0] sm:$0xff]  }
 0x1db   : >> { %8455 = vmatprep.subr.bf16.mxu1 %v9063_v60  ;;  %8434 = vmatpush3.bf16.msra.mxu0 %v9064_v6  ;;  %v9100_v59 = vld [vmem:[%s10820_s1 + $0xf28] sm:$0xff]   ;;  %v9109_v60 = vld [vmem:[%s10820_s1 + $0xf98] sm:$0xff]   ;;  %v9110_v6 = vld [vmem:[%s10820_s1 + $0xf50] sm:$0xff]  }
 0x1dc   : >> { %8456 = vmatpush3.bf16.msra.mxu1 %v9065_v7  ;;  %8435 = vmatprep.subr.bf16.mxu0 %v9066_v8  ;;  %v9111_v7 = vld [vmem:[%s10820_s1 + $0xfd0] sm:$0xff]  }
 0x1dd   : >> { %8457 = vmatprep.subr.bf16.mxu1 %v9067_v9  ;;  %v9112_v8 = vld [vmem:[%s10820_s1 + $0xf10] sm:$0xff]  }
 0x1de   : >> { %v9113_v9 = vld [vmem:[%s10820_s1 + $0xf90] sm:$0xff]  }
 0x1df   : >> { %8436 = vmatpush3.bf16.msra.mxu0 %v9068_v10  ;;  %v9114_v10 = vld [vmem:[%s10820_s1 + $0xf48] sm:$0xff]  }
 0x1e0   : >> { %8458 = vmatpush3.bf16.msra.mxu1 %v9069_v12  ;;  %8437 = vmatprep.subr.bf16.mxu0 %v9070_v13  ;;  %v9115_v12 = vld [vmem:[%s10820_s1 + $0xfc8] sm:$0xff]  }
 0x1e1   : >> { %8459 = vmatprep.subr.bf16.mxu1 %v9071_v14  ;;  %v9116_v13 = vld [vmem:[%s10820_s1 + $0xf08] sm:$0xff]  }
 0x1e2   : >> { %v9117_v14 = vld [vmem:[%s10820_s1 + $0xf88] sm:$0xff]  }
 0x1e3   : >> { %8438 = vmatpush3.bf16.msra.mxu0 %v9072_v15  ;;  %v9118_v15 = vld [vmem:[%s10820_s1 + $0xf40] sm:$0xff]  }
 0x1e4   : >> { %8460 = vmatpush3.bf16.msra.mxu1 %v9073_v16  ;;  %8439 = vmatprep.subr.bf16.mxu0 %v9074_v17  ;;  %v9119_v16 = vld [vmem:[%s10820_s1 + $0xfc0] sm:$0xff]  }
 0x1e5   : >> { %8461 = vmatprep.subr.bf16.mxu1 %v9075_v19  ;;  %v9120_v17 = vld [vmem:[%s10820_s1 + $0xf00] sm:$0xff]  }
 0x1e6   : >> { %v9121_v19 = vld [vmem:[%s10820_s1 + $0xf80] sm:$0xff]  }
 0x1e7   : >> { %8440 = vmatpush3.bf16.msra.mxu0 %v9076_v4  ;;  %v7706_v4 = vld [vmem:[%s9298_s14 + $0x30] sm:$0x66] }
 0x1e8   : >> { %8462 = vmatpush3.bf16.msra.mxu1 %v9077_v20  ;;  %8441 = vmatprep.subr.bf16.mxu0 %v9078_v21 }
 0x1e9   : >> { %8463 = vmatprep.subr.bf16.mxu1 %v9079_v11  ;;  %v7772_v11 = vcombine.low %v7706_v4, %v7706_v4 }
 0x1eb   : >> { %8442 = vmatpush3.bf16.msra.mxu0 %v9080_v22  ;;  %v7773_v22 = vcombine.high %v7706_v4, %v7706_v4  ;;  %v5815_v31 = vshll.u32 %v7772_v11, 16 }
 0x1ec   : >> { %8464 = vmatpush3.bf16.msra.mxu1 %v9081_v23  ;;  %8443 = vmatprep.subr.bf16.mxu0 %v9082_v24  ;;  %v7707_v23 = vld [vmem:[%s9298_s14 + $0x38] sm:$0x66]  ;;  %s7808_s14 = sshll.u32 %s9156_s21, 1  ;;  %s187_s21 = sadd.s32 1, %s9156_s21  }
 0x1ed   : >> { %8465 = vmatprep.subr.bf16.mxu1 %v9083_v26  ;;  %v7774_v24 = vcombine.low %v7707_v23, %v7707_v23  ;;  %s6121_s9 = scalar_lea.vmem %s9194_s17, %s7808_s14  ;;  %p184_p5 = scmp.ge.s32.totalorder %s187_s21, 2  }
 0x1ef   : >> { %8444 = vmatpush3.bf16.msra.mxu0 %v9084_v28  ;;  %v5820_v28 = vshrl.u32 %v7773_v22, 16  ;;  %v5828_v33 = vshrl.u32 %v7774_v24, 16  ;;  %v5831_v34 = vshll.u32 %v7774_v24, 16 }
 0x1f0   : >> { %8466 = vmatpush3.bf16.msra.mxu1 %v9085_v30  ;;  %8473 = vmatprep.subr.bf16.mxu0 %v9090_v40  ;;  %v5812_v30 = vshrl.u32 %v7772_v11, 16  ;;  %v5817_v40 = vrot.slane %v5815_v31, 2 }
 0x1f1   : >> { %8495 = vmatprep.subr.bf16.mxu1 %v9091_v44  ;;  %v5830_v43 = vrot.slane %v5828_v33, 1  ;;  %v5833_v44 = vrot.slane %v5831_v34, 2 }
 0x1f2   : >> { %v8181_v25 = vpop.f32.mrf.mxu0  ;;  %5686 = vmatmul.mubr.bf16.vlgmr.msra.gmra.mxu0 %v5453_v42  ;;  %v5814_v39 = vrot.slane %v5812_v30, 1 }
 0x1f3   : >> { %v8203_v27 = vpop.f32.mrf.mxu1  ;;  %5726 = vmatmul.mubr.bf16.vlgmr.msra.gmra.mxu1 %v5455_v48  ;;  %8474 = vmatpush3.bf16.msra.mxu0 %v9092_v45 }
 0x1f4   : >> { %v8182_v29 = vpop.f32.mrf.mxu0  ;;  %8496 = vmatpush3.bf16.msra.mxu1 %v9093_v51  ;;  %8475 = vmatprep.subr.bf16.mxu0 %v9094_v53  ;;  %v5818_v48 = vor.u32 %v5817_v40, %v5814_v39  ;;  %v5834_v53 = vor.u32 %v5833_v44, %v5830_v43 }
 0x1f5   : >> { %v8183_v18 = vadd.f32 %v8182_v29, %v8181_v25  ;;  %v8204_v32 = vpop.f32.mrf.mxu1  ;;  %8497 = vmatprep.subr.bf16.mxu1 %v9095_v54  ;;  %v7775_v25 = vcombine.high %v7707_v23, %v7707_v23  ;;  %v5823_v29 = vshll.u32 %v7773_v22, 16 }
 0x1f6   : >> { %v8205_v36 = vadd.f32 %v8204_v32, %v8203_v27  ;;  %v8184_v37 = vpop.f32.mrf.mxu0 }
 0x1f7   : >> { %v8206_v41 = vpop.f32.mrf.mxu1  ;;  %8476 = vmatpush3.bf16.msra.mxu0 %v9096_v55  ;;  %v5839_v32 = vshll.u32 %v7775_v25, 16  ;;  %v5822_v37 = vrot.slane %v5820_v28, 1  ;;  %v5825_v38 = vrot.slane %v5823_v29, 2 }
 0x1f8   : >> { %v3504_v46 = vadd.f32 %v8205_v36, %v8183_v18  ;;  %v8185_v47 = vpop.f32.mrf.mxu0  ;;  %8498 = vmatpush3.bf16.msra.mxu1 %v9097_v56  ;;  %8477 = vmatprep.subr.bf16.mxu0 %v9098_v57  ;;  %v5836_v18 = vshrl.u32 %v7775_v25, 16 }
 0x1f9   : >> { %v8207_v50 = vpop.f32.mrf.mxu1  ;;  %8499 = vmatprep.subr.bf16.mxu1 %v9099_v58  ;;  %v5841_v42 = vrot.slane %v5839_v32, 2  ;;  %v5826_v47 = vor.u32 %v5825_v38, %v5822_v37 }
 0x1fa   : >> { %v10716_v52 = vadd.f32 %v3504_v46, %v10621_v1  ;;  %v9105_v1 = vld [vmem:[%s10820_s1 + $0xfa0] sm:$0xff]   ;;  %v5838_v41 = vrot.slane %v5836_v18, 1 }
 0x1fb   : >> { %8478 = vmatpush3.bf16.msra.mxu0 %v9100_v59  ;;  %6071 = vmatprep.mubr.bf16.mxu0 %v5826_v47 }
 0x1fc   : >> { %8500 = vmatpush3.bf16.msra.mxu1 %v9101_v61  ;;  %8479 = vmatprep.subr.bf16.mxu0 %v9102_v62  ;;  %v5842_v51 = vor.u32 %v5841_v42, %v5838_v41 }
 0x1fd   : >> { %8501 = vmatprep.subr.bf16.mxu1 %v9103_v63 }
 0x1fe   : >> { %6111 = vmatprep.mubr.bf16.mxu1 %v5842_v51 }
 0x1ff   : >> { %8480 = vmatpush3.bf16.msra.mxu0 %v9104_v0 }
 0x200   : >> { %8502 = vmatpush3.bf16.msra.mxu1 %v9105_v1  ;;  %8481 = vmatprep.subr.bf16.mxu0 %v9106_v2 }
 0x201   : >> { %8503 = vmatprep.subr.bf16.mxu1 %v9107_v3 }
 0x203   : >> { %8482 = vmatpush3.bf16.msra.mxu0 %v9108_v5 }
 0x204   : >> { %8504 = vmatpush3.bf16.msra.mxu1 %v9109_v60  ;;  %8483 = vmatprep.subr.bf16.mxu0 %v9110_v6 }
 0x205   : >> { %8505 = vmatprep.subr.bf16.mxu1 %v9111_v7 }
 0x207   : >> { %8484 = vmatpush3.bf16.msra.mxu0 %v9112_v8 }
 0x208   : >> { %8506 = vmatpush3.bf16.msra.mxu1 %v9113_v9  ;;  %8485 = vmatprep.subr.bf16.mxu0 %v9114_v10 }
 0x209   : >> { %8507 = vmatprep.subr.bf16.mxu1 %v9115_v12 }
 0x20b   : >> { %8486 = vmatpush3.bf16.msra.mxu0 %v9116_v13 }
 0x20c   : >> { %8508 = vmatpush3.bf16.msra.mxu1 %v9117_v14  ;;  %8487 = vmatprep.subr.bf16.mxu0 %v9118_v15 }
 0x20d   : >> { %8509 = vmatprep.subr.bf16.mxu1 %v9119_v16 }
 0x20f   : >> { %8488 = vmatpush3.bf16.msra.mxu0 %v9120_v17 }
 0x210   : >> { %8510 = vmatpush3.bf16.msra.mxu1 %v9121_v19 }
 0x212   : >> { %v8225_v20 = vpop.f32.mrf.mxu0  ;;  %6072 = vmatmul.mubr.bf16.vlgmr.msra.gmra.mxu0 %v5818_v48 }
 0x213   : >> { %v8247_v21 = vpop.f32.mrf.mxu1  ;;  %6112 = vmatmul.mubr.bf16.vlgmr.msra.gmra.mxu1 %v5834_v53 }
 0x214   : >> { %v8226_v26 = vpop.f32.mrf.mxu0 }
 0x215   : >> { %v8248_v27 = vpop.f32.mrf.mxu1  ;;  %v8227_v49 = vadd.f32 %v8226_v26, %v8225_v20 }
 0x216   : >> { %v8228_v35 = vpop.f32.mrf.mxu0  ;;  %v8249_v50 = vadd.f32 %v8248_v27, %v8247_v21 }
 0x217   : >> { %v8250_v36 = vpop.f32.mrf.mxu1 }
 0x218   : >> { %v8229_v45 = vpop.f32.mrf.mxu0  ;;  %v3886_v54 = vadd.f32 %v8249_v50, %v8227_v49 }
 0x219   : >> { %v8251_v46 = vpop.f32.mrf.mxu1 }
 0x21a   : >> { %v3891_v55 = vadd.f32 %v3886_v54, %v10716_v52 }
 0x232   : >> { %v8269_v56 = vpop.f32.mrf.mxu0 }
 0x233   : >> { %v8291_v57 = vpop.f32.mrf.mxu1 }
 0x234   : >> { %v8270_v58 = vpop.f32.mrf.mxu0 }
 0x235   : >> { %v8292_v59 = vpop.f32.mrf.mxu1  ;;  %v8271_v61 = vadd.f32 %v8270_v58, %v8269_v56 }
 0x236   : >> { %v8293_v62 = vadd.f32 %v8292_v59, %v8291_v57  ;;  %v8272_v63 = vpop.f32.mrf.mxu0 }
 0x237   : >> { %v8294_v0 = vpop.f32.mrf.mxu1 }
 0x238   : >> { %v4244_v1 = vadd.f32 %v8293_v62, %v8271_v61  ;;  %v8273_v2 = vpop.f32.mrf.mxu0 }
 0x239   : >> { %v8295_v3 = vpop.f32.mrf.mxu1 }
 0x23a   : >> { %v4249_v5 = vadd.f32 %v4244_v1, %v3891_v55 }
 0x252   : >> { %v8313_v60 = vpop.f32.mrf.mxu0 }
 0x253   : >> { %v8335_v6 = vpop.f32.mrf.mxu1 }
 0x254   : >> { %v8314_v7 = vpop.f32.mrf.mxu0 }
 0x255   : >> { %v8315_v8 = vadd.f32 %v8314_v7, %v8313_v60  ;;  %v8336_v9 = vpop.f32.mrf.mxu1 }
 0x256   : >> { %v8337_v10 = vadd.f32 %v8336_v9, %v8335_v6  ;;  %v8316_v12 = vpop.f32.mrf.mxu0 }
 0x257   : >> { %v8338_v52 = vpop.f32.mrf.mxu1 }
 0x258   : >> { %v4630_v13 = vadd.f32 %v8337_v10, %v8315_v8  ;;  %v8317_v14 = vpop.f32.mrf.mxu0 }
 0x259   : >> { %v8339_v15 = vpop.f32.mrf.mxu1 }
 0x25a   : >> { %v4635_v16 = vadd.f32 %v4630_v13, %v4249_v5 }
 0x272   : >> { %v8357_v17 = vpop.f32.mrf.mxu0 }
 0x273   : >> { %v8379_v19 = vpop.f32.mrf.mxu1 }
 0x274   : >> { %v8358_v4 = vpop.f32.mrf.mxu0 }
 0x275   : >> { %v8359_v20 = vadd.f32 %v8358_v4, %v8357_v17  ;;  %v8380_v21 = vpop.f32.mrf.mxu1 }
 0x276   : >> { %v8381_v11 = vadd.f32 %v8380_v21, %v8379_v19  ;;  %v8360_v22 = vpop.f32.mrf.mxu0 }
 0x277   : >> { %v8382_v23 = vpop.f32.mrf.mxu1 }
 0x278   : >> { %v4988_v24 = vadd.f32 %v8381_v11, %v8359_v20  ;;  %v8361_v25 = vpop.f32.mrf.mxu0 }
 0x279   : >> { %v8383_v26 = vpop.f32.mrf.mxu1 }
 0x27a   : >> { %v4993_v27 = vadd.f32 %v4988_v24, %v4635_v16 }
 0x292   : >> { %v8401_v28 = vpop.f32.mrf.mxu0 }
 0x293   : >> { %v8423_v29 = vpop.f32.mrf.mxu1 }
 0x294   : >> { %v8402_v30 = vpop.f32.mrf.mxu0 }
 0x295   : >> { %v8424_v31 = vpop.f32.mrf.mxu1  ;;  %v8403_v18 = vadd.f32 %v8402_v30, %v8401_v28 }
 0x296   : >> { %v8425_v32 = vadd.f32 %v8424_v31, %v8423_v29  ;;  %v8404_v33 = vpop.f32.mrf.mxu0 }
 0x297   : >> { %v8426_v34 = vpop.f32.mrf.mxu1 }
 0x298   : >> { %v5370_v35 = vadd.f32 %v8425_v32, %v8403_v18  ;;  %v8405_v36 = vpop.f32.mrf.mxu0 }
 0x299   : >> { %v8427_v37 = vpop.f32.mrf.mxu1 }
 0x29a   : >> { %v5375_v38 = vadd.f32 %v5370_v35, %v4993_v27 }
 0x2b2   : >> { %v8445_v39 = vpop.f32.mrf.mxu0 }
 0x2b3   : >> { %v8467_v40 = vpop.f32.mrf.mxu1 }
 0x2b4   : >> { %v8446_v41 = vpop.f32.mrf.mxu0 }
 0x2b5   : >> { %v8468_v42 = vpop.f32.mrf.mxu1  ;;  %v8447_v47 = vadd.f32 %v8446_v41, %v8445_v39 }
 0x2b6   : >> { %v8448_v43 = vpop.f32.mrf.mxu0  ;;  %v8469_v48 = vadd.f32 %v8468_v42, %v8467_v40 }
 0x2b7   : >> { %v8470_v44 = vpop.f32.mrf.mxu1 }
 0x2b8   : >> { %v8449_v45 = vpop.f32.mrf.mxu0  ;;  %v5728_v51 = vadd.f32 %v8469_v48, %v8447_v47 }
 0x2b9   : >> { %v8471_v46 = vpop.f32.mrf.mxu1 }
 0x2ba   : >> { %v5733_v59 = vadd.f32 %v5728_v51, %v5375_v38 }
 0x2d2   : >> { %v8489_v49 = vpop.f32.mrf.mxu0 }
 0x2d3   : >> { %v8511_v50 = vpop.f32.mrf.mxu1 }
 0x2d4   : >> { %v8490_v53 = vpop.f32.mrf.mxu0 }
 0x2d5   : >> { %v8491_v54 = vadd.f32 %v8490_v53, %v8489_v49  ;;  %v8512_v55 = vpop.f32.mrf.mxu1 }
 0x2d6   : >> { %v8513_v56 = vadd.f32 %v8512_v55, %v8511_v50  ;;  %v8492_v57 = vpop.f32.mrf.mxu0 }
 0x2d7   : >> { %v8514_v58 = vpop.f32.mrf.mxu1 }
 0x2d8   : >> { %v6114_v61 = vadd.f32 %v8513_v56, %v8491_v54  ;;  %v8493_v62 = vpop.f32.mrf.mxu0  ;;  %186 = sbr.rel (!%p184_p5) target bundleno = 16 (0x10), region = 88 }
 0x2d9   : >> { %v8515_v63 = vpop.f32.mrf.mxu1 }
 0x2da   : >> { %v6119_v0 = vadd.f32 %v6114_v61, %v5733_v59 }
 0x2dc   : >> { %6122 = vst [vmem:[%s6121_s9] sm:$0x3] %v6119_v0 }
 0x2dd PF: > { %s12_s11 = sadd.s32 1, %s9152_s11   ;;  %s10822_s9 = smov %s9148_s10 }
 0x2de   : > { %p9_p6 = scmp.ge.s32.totalorder %s12_s11, 4   ;;  %s10823_s10 = smov %s10825_s12 }
 0x2e0   :  { %11 = sbr.rel (!%p9_p6) target bundleno = 2 (0x2), region = 99 }

</bundles_post_ra>
